<compile_context>
chip_gen: v7x
topology: tpu7x:2x2x1
jax: 0.10.0
libtpu: 0.0.40
codegen_flags: <defaults>
</compile_context>

<pallas_src>
import functools
import numpy as np
import jax
import jax.numpy as jnp
from jax.experimental import pallas as pl
from jax.experimental.pallas import tpu as pltpu


# ---------------------------------------------------------------------------
# Scaled-down config consistent with the module's construction logic
# (condition_dim = TIME_DIM + REL_DIM + COR_DIM).
# ---------------------------------------------------------------------------
BATCH      = 1024         # grid of 4 batch tiles -> pipelining on all chips
TILE_B     = 256          # batch tile per grid step
PARAM_DIM  = 256
RANK       = 128
HIDDEN_DIM = 512
TIME_DIM   = 64
REL_DIM    = 32
COR_DIM    = 32
COND_DIM   = TIME_DIM + REL_DIM + COR_DIM      # 128
COMB_DIM   = RANK + COND_DIM                   # 256
K_BIG      = PARAM_DIM + 128 + 128             # 512: [xn | th | rh+onehot]
LN_EPS     = 1e-5

# lane offsets of the onehot(flag) inside the third 128-lane slab of U
_FLAG0_LANE = 64          # rh occupies lanes 0:64 (padded to 128 with zeros)
_FLAG1_LANE = 65


def _silu(v):
    return v * jax.nn.sigmoid(v)


# ---------------------------------------------------------------------------
# Packed layout for all tiny f32 parameter vectors (one lane-dense DMA).
# Every segment is a multiple of 128 lanes -> dense, 128-aligned slices.
# ---------------------------------------------------------------------------
def _pack_layout(sizes, align=128):
    layout, off = {}, 0
    for name, n in sizes:
        layout[name] = (off, n)
        off += ((n + align - 1) // align) * align
    return layout, off


_SMALL_SIZES = [
    ("ln_w", PARAM_DIM), ("ln_b", PARAM_DIM),
    ("tw1", 128), ("tb1", 128),
    ("rw1", 128), ("rb1", 128),            # real values in lanes 0:64, rest 0
    ("comb_b", COMB_DIM),                  # [proj_b | tb2 | rb2 | 0]
    ("b1", HIDDEN_DIM), ("b2", HIDDEN_DIM), ("b3", PARAM_DIM),
]
SMALL_LAYOUT, SMALL_TOTAL = _pack_layout(_SMALL_SIZES)   # 2560


# ---------------------------------------------------------------------------
# Pallas kernel: one batch tile per grid step, all weights VMEM-resident.
# ---------------------------------------------------------------------------
def fm_kernel(x_ref,        # (TILE_B, P)          f32
              sc_ref,       # (TILE_B, 8)          f32  [t | rel | flag | pad]
              small_ref,    # (1, SMALL_TOTAL)     f32  packed small params
              wbig_ref,     # (K_BIG, COMB_DIM)    bf16 block-diag proj+cond
              w1_ref,       # (COMB_DIM, HIDDEN)   bf16
              w2_ref,       # (HIDDEN, HIDDEN)     bf16
              w3_ref,       # (HIDDEN, P)          bf16
              out_ref):     # (TILE_B, P)          f32
    bf16, f32 = jnp.bfloat16, jnp.float32

    def seg(name):
        off, n = SMALL_LAYOUT[name]
        return small_ref[:, off:off + n]              # (1, n) f32, static slice

    # ---- LayerNorm over param_dim (f32, biased variance, eps inside sqrt) --
    x = x_ref[...]
    mean = jnp.mean(x, axis=-1, keepdims=True)
    xc = x - mean
    var = jnp.mean(xc * xc, axis=-1, keepdims=True)
    xn = xc * jax.lax.rsqrt(var + LN_EPS)
    xn = xn * seg("ln_w") + seg("ln_b")               # (TB, 256)

    # ---- per-row scalars (single packed DMA) ----
    sc = sc_ref[...]
    t    = sc[:, 0:1]                                 # (TB, 1)
    rel  = sc[:, 1:2]
    flag = sc[:, 2:3]                                 # 0.0 / 1.0

    # ---- hidden of the two K=1 embed layers (broadcast, not matmul) ----
    th = _silu(t * seg("tw1") + seg("tb1"))           # (TB, 128)
    # rw1/rb1 are zero-padded to 128 lanes -> silu(0)=0 in lanes 64:128
    rh = _silu(rel * seg("rw1") + seg("rb1"))         # (TB, 128)

    # onehot(flag) injected at lanes 64/65 of the third slab (lane-dense VPU)
    lane = jax.lax.broadcasted_iota(jnp.int32, rh.shape, 1)
    onehot = (jnp.where(lane == _FLAG0_LANE, 1.0 - flag, 0.0)
              + jnp.where(lane == _FLAG1_LANE, flag, 0.0))
    third = rh + onehot                               # (TB, 128)

    # ---- fused block-diagonal proj + condition matmul ----
    # U = [xn(256) | th(128) | third(128)]: all pieces 128-lane aligned ->
    # in-register concat, no scratch, no masked stores.
    u = jnp.concatenate([xn, th, third], axis=-1).astype(bf16)   # (TB, 512)
    comb = jnp.dot(u, wbig_ref[...],
                   preferred_element_type=f32) + seg("comb_b")   # (TB, 256)
    # comb == [x_proj | t_emb | r_emb | c_emb], already assembled by the MXU.

    # ---- MLP: SiLU -> (256,H) -> SiLU -> (H,H) -> SiLU -> (H,P) ----
    h1 = jnp.dot(_silu(comb).astype(bf16), w1_ref[...],
                 preferred_element_type=f32) + seg("b1")
    h2 = jnp.dot(_silu(h1).astype(bf16), w2_ref[...],
                 preferred_element_type=f32) + seg("b2")
    out = jnp.dot(_silu(h2).astype(bf16), w3_ref[...],
                  preferred_element_type=f32) + seg("b3")
    out_ref[...] = out


@functools.partial(jax.jit, static_argnames=("tile_b",))
def flow_matching_forward(params, x, t, reliability, is_corrupted_flag,
                          tile_b=TILE_B):
    """x:(B,P) f32, t:(B,1) f32, reliability:(B,1) f32, is_corrupted_flag:(B,) i32."""
    B, P = x.shape
    assert B % tile_b == 0, "batch must be a multiple of the tile size"

    # pack t / reliability / flag into one (B, 8) f32 input -> one DMA per tile
    flag_f = is_corrupted_flag.astype(jnp.float32).reshape(B, 1)
    scalars = jnp.concatenate(
        [t, reliability, flag_f, jnp.zeros((B, 5), jnp.float32)], axis=1)

    def batch_spec(cols):
        return pl.BlockSpec((tile_b, cols), lambda b: (b, 0))

    def const_spec(shape):           # same block every step -> VMEM resident
        return pl.BlockSpec(shape, lambda b: (0, 0))

    weights = [params["small"], params["w_big"],
               params["w1"], params["w2"], params["w3"]]

    return pl.pallas_call(
        fm_kernel,
        out_shape=jax.ShapeDtypeStruct((B, P), jnp.float32),
        grid=(B // tile_b,),
        in_specs=[batch_spec(P), batch_spec(8)]
                + [const_spec(w.shape) for w in weights],
        out_specs=batch_spec(P),
        compiler_params=pltpu.CompilerParams(
            # independent batch tiles -> shard across both v7x TensorCores
            dimension_semantics=("parallel",)),
    )(x, scalars, *weights)


# ---------------------------------------------------------------------------
# Deterministic synthetic parameters (mimics nn.Linear / nn.Embedding init).
# Builds the fused block-diagonal weight + packed small-vector buffer for the
# kernel, and keeps the plain per-layer f32 tensors for the reference.
# ---------------------------------------------------------------------------
def init_params(key):
    ks = jax.random.split(key, 9)

    def lin(k, fan_in, fan_out):
        bound = 1.0 / np.sqrt(fan_in)
        kw, kb = jax.random.split(k)
        w = np.asarray(jax.random.uniform(kw, (fan_in, fan_out), jnp.float32,
                                          -bound, bound))
        b = np.asarray(jax.random.uniform(kb, (fan_out,), jnp.float32,
                                          -bound, bound))
        return w, b

    ln_w = np.ones(PARAM_DIM, np.float32)
    ln_b = np.zeros(PARAM_DIM, np.float32)
    proj_w, proj_b = lin(ks[0], PARAM_DIM, RANK)
    tw1, tb1 = lin(ks[1], 1, 128)
    tw2, tb2 = lin(ks[2], 128, TIME_DIM)
    rw1, rb1 = lin(ks[3], 1, 64)
    rw2, rb2 = lin(ks[4], 64, REL_DIM)
    ctab = np.asarray(jax.random.normal(ks[5], (2, COR_DIM), jnp.float32))
    # ctab lives inside the bf16 block-diag weight -> pre-round so the f32
    # reference uses the exact same values.
    ctab = np.asarray(jnp.asarray(ctab).astype(jnp.bfloat16).astype(jnp.float32))
    w1, b1 = lin(ks[6], COMB_DIM, HIDDEN_DIM)
    w2, b2 = lin(ks[7], HIDDEN_DIM, HIDDEN_DIM)
    w3, b3 = lin(ks[8], HIDDEN_DIM, PARAM_DIM)

    # ---- fused block-diagonal proj + condition weight (K_BIG, COMB_DIM) ----
    wbig = np.zeros((K_BIG, COMB_DIM), np.float32)
    wbig[0:PARAM_DIM, 0:RANK] = proj_w
    wbig[PARAM_DIM:PARAM_DIM + 128, RANK:RANK + TIME_DIM] = tw2
    wbig[PARAM_DIM + 128:PARAM_DIM + 128 + 64,
         RANK + TIME_DIM:RANK + TIME_DIM + REL_DIM] = rw2
    wbig[PARAM_DIM + 128 + _FLAG0_LANE, RANK + TIME_DIM + REL_DIM:] = ctab[0]
    wbig[PARAM_DIM + 128 + _FLAG1_LANE, RANK + TIME_DIM + REL_DIM:] = ctab[1]

    # fused bias for comb = [proj_b | tb2 | rb2 | 0] (embedding has no bias)
    comb_b = np.zeros(COMB_DIM, np.float32)
    comb_b[0:RANK] = proj_b
    comb_b[RANK:RANK + TIME_DIM] = tb2
    comb_b[RANK + TIME_DIM:RANK + TIME_DIM + REL_DIM] = rb2

    # K=1 first-layer weights of the reliability embed, zero-padded to 128
    rw1_pad = np.zeros(128, np.float32); rw1_pad[:64] = rw1.reshape(-1)
    rb1_pad = np.zeros(128, np.float32); rb1_pad[:64] = rb1

    small = {"ln_w": ln_w, "ln_b": ln_b,
             "tw1": tw1.reshape(-1), "tb1": tb1,
             "rw1": rw1_pad, "rb1": rb1_pad,
             "comb_b": comb_b, "b1": b1, "b2": b2, "b3": b3}
    buf = np.zeros((1, SMALL_TOTAL), np.float32)
    for name, v in small.items():
        off, n = SMALL_LAYOUT[name]
        buf[0, off:off + n] = v

    ref = {"ln_w": ln_w, "ln_b": ln_b, "proj_w": proj_w, "proj_b": proj_b,
           "tw1": tw1.reshape(-1), "tb1": tb1, "tw2": tw2, "tb2": tb2,
           "rw1": rw1.reshape(-1), "rb1": rb1, "rw2": rw2, "rb2": rb2,
           "ctab": ctab, "w1": w1, "b1": b1, "w2": w2, "b2": b2,
           "w3": w3, "b3": b3}
    ref = {k: jnp.asarray(v) for k, v in ref.items()}

    return {
        "small": jnp.asarray(buf),
        "w_big": jnp.asarray(wbig).astype(jnp.bfloat16),
        "w1": jnp.asarray(w1).astype(jnp.bfloat16),
        "w2": jnp.asarray(w2).astype(jnp.bfloat16),
        "w3": jnp.asarray(w3).astype(jnp.bfloat16),
        "ref": ref,                     # f32 per-layer tensors (reference only)
    }


# ---------------------------------------------------------------------------
# Pure-JAX reference mirroring the PyTorch forward (same bf16 cast points as
# the kernel so the comparison is tight).
# TODO(synk): dropout (defined but unused in the module's forward) is omitted.
# ---------------------------------------------------------------------------
def reference_forward(params, x, t, reliability, is_corrupted_flag):
    r = params["ref"]
    bf, f32 = jnp.bfloat16, jnp.float32

    mean = jnp.mean(x, axis=-1, keepdims=True)
    var = jnp.mean((x - mean) ** 2, axis=-1, keepdims=True)
    xn = (x - mean) * jax.lax.rsqrt(var + LN_EPS)
    xn = xn * r["ln_w"] + r["ln_b"]
    x_proj = jnp.dot(xn.astype(bf), r["proj_w"].astype(bf),
                     preferred_element_type=f32) + r["proj_b"]

    th = _silu(t * r["tw1"][None, :] + r["tb1"][None, :])
    t_emb = jnp.dot(th.astype(bf), r["tw2"].astype(bf),
                    preferred_element_type=f32) + r["tb2"]
    rh = _silu(reliability * r["rw1"][None, :] + r["rb1"][None, :])
    r_emb = jnp.dot(rh.astype(bf), r["rw2"].astype(bf),
                    preferred_element_type=f32) + r["rb2"]
    c_emb = r["ctab"][is_corrupted_flag]

    comb = jnp.concatenate([x_proj, t_emb, r_emb, c_emb], axis=1)
    h1 = jnp.dot(_silu(comb).astype(bf), r["w1"].astype(bf),
                 preferred_element_type=f32) + r["b1"]
    h2 = jnp.dot(_silu(h1).astype(bf), r["w2"].astype(bf),
                 preferred_element_type=f32) + r["b2"]
    return jnp.dot(_silu(h2).astype(bf), r["w3"].astype(bf),
                   preferred_element_type=f32) + r["b3"]


if __name__ == "__main__":
    key = jax.random.PRNGKey(0)
    kp, kx, kt, kr, kf = jax.random.split(key, 5)

    params = init_params(kp)
    x = jax.random.normal(kx, (BATCH, PARAM_DIM), jnp.float32)
    t = jax.random.uniform(kt, (BATCH, 1), jnp.float32)
    reliability = jax.random.uniform(kr, (BATCH, 1), jnp.float32)
    is_corrupted_flag = jax.random.bernoulli(kf, 0.5, (BATCH,)).astype(jnp.int32)

    out = flow_matching_forward(params, x, t, reliability, is_corrupted_flag)
    out = jax.block_until_ready(out)

    ref = reference_forward(params, x, t, reliability, is_corrupted_flag)
    assert out.shape == (BATCH, PARAM_DIM)
    np.testing.assert_allclose(np.asarray(out), np.asarray(ref),
                               rtol=5e-3, atol=5e-3)
    print("KERNEL_OK")
</pallas_src>

<mosaic_0001>
module attributes {stable_mosaic.version = 11 : i64} {
  func.func @fm_kernel(%arg0: i32, %arg1: memref<256x256xf32, #tpu.memory_space<vmem>>, %arg2: memref<256x8xf32, #tpu.memory_space<vmem>>, %arg3: memref<1x2560xf32, #tpu.memory_space<vmem>>, %arg4: memref<512x256xbf16, #tpu.memory_space<vmem>>, %arg5: memref<256x512xbf16, #tpu.memory_space<vmem>>, %arg6: memref<512x512xbf16, #tpu.memory_space<vmem>>, %arg7: memref<512x256xbf16, #tpu.memory_space<vmem>>, %arg8: memref<256x256xf32, #tpu.memory_space<vmem>>) attributes {dimension_semantics = [#tpu.dimension_semantics<parallel>], iteration_bounds = array<i64: 4>, scalar_prefetch = 0 : i64, scratch_operands = 0 : i64, tpu.core_type = #tpu.core_type<tc>, window_params = [{transform_indices = @transform_0, window_bounds = array<i64: 256, 256>}, {transform_indices = @transform_1, window_bounds = array<i64: 256, 8>}, {pipeline_mode = #tpu.pipeline_mode<synchronous>, transform_indices = @transform_2, window_bounds = array<i64: 1, 2560>}, {pipeline_mode = #tpu.pipeline_mode<synchronous>, transform_indices = @transform_3, window_bounds = array<i64: 512, 256>}, {pipeline_mode = #tpu.pipeline_mode<synchronous>, transform_indices = @transform_4, window_bounds = array<i64: 256, 512>}, {pipeline_mode = #tpu.pipeline_mode<synchronous>, transform_indices = @transform_5, window_bounds = array<i64: 512, 512>}, {pipeline_mode = #tpu.pipeline_mode<synchronous>, transform_indices = @transform_6, window_bounds = array<i64: 512, 256>}, {transform_indices = @transform_7, window_bounds = array<i64: 256, 256>}]} {
    %c0 = arith.constant 0 : index
    %c0_0 = arith.constant 0 : index
    %0 = vector.load %arg1[%c0, %c0_0] : memref<256x256xf32, #tpu.memory_space<vmem>>, vector<256x256xf32>
    %cst = arith.constant dense<0.000000e+00> : vector<256xf32>
    %1 = vector.multi_reduction <add>, %0, %cst [1] : vector<256x256xf32> to vector<256xf32>
    %2 = vector.shape_cast %1 : vector<256xf32> to vector<256x1xf32>
    %cst_1 = arith.constant 2.560000e+02 : f32
    %3 = vector.broadcast %cst_1 : f32 to vector<256x1xf32>
    %4 = arith.divf %2, %3 : vector<256x1xf32>
    %5 = vector.broadcast %4 : vector<256x1xf32> to vector<256x256xf32>
    %6 = arith.subf %0, %5 : vector<256x256xf32>
    %7 = arith.mulf %6, %6 : vector<256x256xf32>
    %cst_2 = arith.constant dense<0.000000e+00> : vector<256xf32>
    %8 = vector.multi_reduction <add>, %7, %cst_2 [1] : vector<256x256xf32> to vector<256xf32>
    %9 = vector.shape_cast %8 : vector<256xf32> to vector<256x1xf32>
    %cst_3 = arith.constant 2.560000e+02 : f32
    %10 = vector.broadcast %cst_3 : f32 to vector<256x1xf32>
    %11 = arith.divf %9, %10 : vector<256x1xf32>
    %cst_4 = arith.constant 9.99999974E-6 : f32
    %12 = vector.broadcast %cst_4 : f32 to vector<256x1xf32>
    %13 = arith.addf %11, %12 : vector<256x1xf32>
    %14 = math.rsqrt %13 : vector<256x1xf32>
    %15 = vector.broadcast %14 : vector<256x1xf32> to vector<256x256xf32>
    %16 = arith.mulf %6, %15 : vector<256x256xf32>
    %c0_5 = arith.constant 0 : index
    %c0_6 = arith.constant 0 : index
    %17 = vector.load %arg3[%c0_5, %c0_6] : memref<1x2560xf32, #tpu.memory_space<vmem>>, vector<1x256xf32>
    %18 = vector.broadcast %17 : vector<1x256xf32> to vector<256x256xf32>
    %19 = arith.mulf %16, %18 : vector<256x256xf32>
    %c0_7 = arith.constant 0 : index
    %c256 = arith.constant 256 : index
    %20 = vector.load %arg3[%c0_7, %c256] : memref<1x2560xf32, #tpu.memory_space<vmem>>, vector<1x256xf32>
    %21 = vector.broadcast %20 : vector<1x256xf32> to vector<256x256xf32>
    %22 = arith.addf %19, %21 : vector<256x256xf32>
    %c0_8 = arith.constant 0 : index
    %c0_9 = arith.constant 0 : index
    %23 = vector.load %arg2[%c0_8, %c0_9] : memref<256x8xf32, #tpu.memory_space<vmem>>, vector<256x8xf32>
    %24 = vector.extract_strided_slice %23 {offsets = [0, 0], sizes = [256, 1], strides = [1, 1]} : vector<256x8xf32> to vector<256x1xf32>
    %25 = vector.extract_strided_slice %23 {offsets = [0, 1], sizes = [256, 1], strides = [1, 1]} : vector<256x8xf32> to vector<256x1xf32>
    %26 = vector.extract_strided_slice %23 {offsets = [0, 2], sizes = [256, 1], strides = [1, 1]} : vector<256x8xf32> to vector<256x1xf32>
    %c0_10 = arith.constant 0 : index
    %c512 = arith.constant 512 : index
    %27 = vector.load %arg3[%c0_10, %c512] : memref<1x2560xf32, #tpu.memory_space<vmem>>, vector<1x128xf32>
    %28 = vector.broadcast %24 : vector<256x1xf32> to vector<256x128xf32>
    %29 = vector.broadcast %27 : vector<1x128xf32> to vector<256x128xf32>
    %30 = arith.mulf %28, %29 : vector<256x128xf32>
    %c0_11 = arith.constant 0 : index
    %c640 = arith.constant 640 : index
    %31 = vector.load %arg3[%c0_11, %c640] : memref<1x2560xf32, #tpu.memory_space<vmem>>, vector<1x128xf32>
    %32 = vector.broadcast %31 : vector<1x128xf32> to vector<256x128xf32>
    %33 = arith.addf %30, %32 : vector<256x128xf32>
    %34 = arith.negf %33 : vector<256x128xf32>
    %35 = math.exp %34 : vector<256x128xf32>
    %cst_12 = arith.constant 1.000000e+00 : f32
    %36 = vector.broadcast %cst_12 : f32 to vector<256x128xf32>
    %37 = arith.addf %36, %35 : vector<256x128xf32>
    %38 = arith.divf %36, %37 : vector<256x128xf32>
    %39 = arith.mulf %33, %38 : vector<256x128xf32>
    %c0_13 = arith.constant 0 : index
    %c768 = arith.constant 768 : index
    %40 = vector.load %arg3[%c0_13, %c768] : memref<1x2560xf32, #tpu.memory_space<vmem>>, vector<1x128xf32>
    %41 = vector.broadcast %25 : vector<256x1xf32> to vector<256x128xf32>
    %42 = vector.broadcast %40 : vector<1x128xf32> to vector<256x128xf32>
    %43 = arith.mulf %41, %42 : vector<256x128xf32>
    %c0_14 = arith.constant 0 : index
    %c896 = arith.constant 896 : index
    %44 = vector.load %arg3[%c0_14, %c896] : memref<1x2560xf32, #tpu.memory_space<vmem>>, vector<1x128xf32>
    %45 = vector.broadcast %44 : vector<1x128xf32> to vector<256x128xf32>
    %46 = arith.addf %43, %45 : vector<256x128xf32>
    %47 = arith.negf %46 : vector<256x128xf32>
    %48 = math.exp %47 : vector<256x128xf32>
    %cst_15 = arith.constant 1.000000e+00 : f32
    %49 = vector.broadcast %cst_15 : f32 to vector<256x128xf32>
    %50 = arith.addf %49, %48 : vector<256x128xf32>
    %51 = arith.divf %49, %50 : vector<256x128xf32>
    %52 = arith.mulf %46, %51 : vector<256x128xf32>
    %53 = tpu.iota {dimensions = array<i32: 1>} : vector<256x128xi32>
    %c64_i32 = arith.constant 64 : i32
    %54 = vector.broadcast %c64_i32 : i32 to vector<256x128xi32>
    %55 = arith.cmpi eq, %53, %54 : vector<256x128xi32>
    %cst_16 = arith.constant 1.000000e+00 : f32
    %56 = vector.broadcast %cst_16 : f32 to vector<256x1xf32>
    %57 = arith.subf %56, %26 : vector<256x1xf32>
    %cst_17 = arith.constant 0.000000e+00 : f32
    %58 = vector.shape_cast %57 : vector<256x1xf32> to vector<256x1xf32>
    %59 = vector.broadcast %58 : vector<256x1xf32> to vector<256x128xf32>
    %60 = vector.broadcast %cst_17 : f32 to vector<256x128xf32>
    %61 = arith.select %55, %59, %60 : vector<256x128xi1>, vector<256x128xf32>
    %c65_i32 = arith.constant 65 : i32
    %62 = vector.broadcast %c65_i32 : i32 to vector<256x128xi32>
    %63 = arith.cmpi eq, %53, %62 : vector<256x128xi32>
    %cst_18 = arith.constant 0.000000e+00 : f32
    %64 = vector.shape_cast %26 : vector<256x1xf32> to vector<256x1xf32>
    %65 = vector.broadcast %64 : vector<256x1xf32> to vector<256x128xf32>
    %66 = vector.broadcast %cst_18 : f32 to vector<256x128xf32>
    %67 = arith.select %63, %65, %66 : vector<256x128xi1>, vector<256x128xf32>
    %68 = arith.addf %61, %67 : vector<256x128xf32>
    %69 = arith.addf %52, %68 : vector<256x128xf32>
    %70 = tpu.concatenate %22, %39, %69 in 1 : vector<256x256xf32>, vector<256x128xf32>, vector<256x128xf32> -> vector<256x512xf32>
    %71 = arith.truncf %70 : vector<256x512xf32> to vector<256x512xbf16>
    %c0_19 = arith.constant 0 : index
    %c0_20 = arith.constant 0 : index
    %72 = vector.load %arg4[%c0_19, %c0_20] : memref<512x256xbf16, #tpu.memory_space<vmem>>, vector<512x256xbf16>
    %cst_21 = arith.constant dense<0.000000e+00> : vector<256x256xf32>
    %73 = tpu.matmul %71, %72, %cst_21 {dimension_numbers = #tpu.dot_dimension_numbers<[1], [0], [0], [1], [0, 0, 1, 1], [], []>} : vector<256x512xbf16>, vector<512x256xbf16>, vector<256x256xf32> -> vector<256x256xf32>
    %c0_22 = arith.constant 0 : index
    %c1024 = arith.constant 1024 : index
    %74 = vector.load %arg3[%c0_22, %c1024] : memref<1x2560xf32, #tpu.memory_space<vmem>>, vector<1x256xf32>
    %75 = vector.broadcast %74 : vector<1x256xf32> to vector<256x256xf32>
    %76 = arith.addf %73, %75 : vector<256x256xf32>
    %77 = arith.negf %76 : vector<256x256xf32>
    %78 = math.exp %77 : vector<256x256xf32>
    %cst_23 = arith.constant 1.000000e+00 : f32
    %79 = vector.broadcast %cst_23 : f32 to vector<256x256xf32>
    %80 = arith.addf %79, %78 : vector<256x256xf32>
    %81 = arith.divf %79, %80 : vector<256x256xf32>
    %82 = arith.mulf %76, %81 : vector<256x256xf32>
    %83 = arith.truncf %82 : vector<256x256xf32> to vector<256x256xbf16>
    %c0_24 = arith.constant 0 : index
    %c0_25 = arith.constant 0 : index
    %84 = vector.load %arg5[%c0_24, %c0_25] : memref<256x512xbf16, #tpu.memory_space<vmem>>, vector<256x512xbf16>
    %cst_26 = arith.constant dense<0.000000e+00> : vector<256x512xf32>
    %85 = tpu.matmul %83, %84, %cst_26 {dimension_numbers = #tpu.dot_dimension_numbers<[1], [0], [0], [1], [0, 0, 1, 1], [], []>} : vector<256x256xbf16>, vector<256x512xbf16>, vector<256x512xf32> -> vector<256x512xf32>
    %c0_27 = arith.constant 0 : index
    %c1280 = arith.constant 1280 : index
    %86 = vector.load %arg3[%c0_27, %c1280] : memref<1x2560xf32, #tpu.memory_space<vmem>>, vector<1x512xf32>
    %87 = vector.broadcast %86 : vector<1x512xf32> to vector<256x512xf32>
    %88 = arith.addf %85, %87 : vector<256x512xf32>
    %89 = arith.negf %88 : vector<256x512xf32>
    %90 = math.exp %89 : vector<256x512xf32>
    %cst_28 = arith.constant 1.000000e+00 : f32
    %91 = vector.broadcast %cst_28 : f32 to vector<256x512xf32>
    %92 = arith.addf %91, %90 : vector<256x512xf32>
    %93 = arith.divf %91, %92 : vector<256x512xf32>
    %94 = arith.mulf %88, %93 : vector<256x512xf32>
    %95 = arith.truncf %94 : vector<256x512xf32> to vector<256x512xbf16>
    %c0_29 = arith.constant 0 : index
    %c0_30 = arith.constant 0 : index
    %96 = vector.load %arg6[%c0_29, %c0_30] : memref<512x512xbf16, #tpu.memory_space<vmem>>, vector<512x512xbf16>
    %cst_31 = arith.constant dense<0.000000e+00> : vector<256x512xf32>
    %97 = tpu.matmul %95, %96, %cst_31 {dimension_numbers = #tpu.dot_dimension_numbers<[1], [0], [0], [1], [0, 0, 1, 1], [], []>} : vector<256x512xbf16>, vector<512x512xbf16>, vector<256x512xf32> -> vector<256x512xf32>
    %c0_32 = arith.constant 0 : index
    %c1792 = arith.constant 1792 : index
    %98 = vector.load %arg3[%c0_32, %c1792] : memref<1x2560xf32, #tpu.memory_space<vmem>>, vector<1x512xf32>
    %99 = vector.broadcast %98 : vector<1x512xf32> to vector<256x512xf32>
    %100 = arith.addf %97, %99 : vector<256x512xf32>
    %101 = arith.negf %100 : vector<256x512xf32>
    %102 = math.exp %101 : vector<256x512xf32>
    %cst_33 = arith.constant 1.000000e+00 : f32
    %103 = vector.broadcast %cst_33 : f32 to vector<256x512xf32>
    %104 = arith.addf %103, %102 : vector<256x512xf32>
    %105 = arith.divf %103, %104 : vector<256x512xf32>
    %106 = arith.mulf %100, %105 : vector<256x512xf32>
    %107 = arith.truncf %106 : vector<256x512xf32> to vector<256x512xbf16>
    %c0_34 = arith.constant 0 : index
    %c0_35 = arith.constant 0 : index
    %108 = vector.load %arg7[%c0_34, %c0_35] : memref<512x256xbf16, #tpu.memory_space<vmem>>, vector<512x256xbf16>
    %cst_36 = arith.constant dense<0.000000e+00> : vector<256x256xf32>
    %109 = tpu.matmul %107, %108, %cst_36 {dimension_numbers = #tpu.dot_dimension_numbers<[1], [0], [0], [1], [0, 0, 1, 1], [], []>} : vector<256x512xbf16>, vector<512x256xbf16>, vector<256x256xf32> -> vector<256x256xf32>
    %c0_37 = arith.constant 0 : index
    %c2304 = arith.constant 2304 : index
    %110 = vector.load %arg3[%c0_37, %c2304] : memref<1x2560xf32, #tpu.memory_space<vmem>>, vector<1x256xf32>
    %111 = vector.broadcast %110 : vector<1x256xf32> to vector<256x256xf32>
    %112 = arith.addf %109, %111 : vector<256x256xf32>
    %c0_38 = arith.constant 0 : index
    %c0_39 = arith.constant 0 : index
    %113 = vector.load %arg8[%c0_38, %c0_39] : memref<256x256xf32, #tpu.memory_space<vmem>>, vector<256x256xf32>
    tpu.vector_store %arg8[%c0_38, %c0_39], %112 {strides = array<i32>} : memref<256x256xf32, #tpu.memory_space<vmem>>, vector<256x256xf32>,
    return
  }
  func.func @transform_0(%arg0: i32) -> (i32, i32) {
    %c0_i32 = arith.constant 0 : i32
    %c0_i32_0 = arith.constant 0 : i32
    return %arg0, %c0_i32 : i32, i32
  }
  func.func @transform_1(%arg0: i32) -> (i32, i32) {
    %c0_i32 = arith.constant 0 : i32
    %c0_i32_0 = arith.constant 0 : i32
    return %arg0, %c0_i32 : i32, i32
  }
  func.func @transform_2(%arg0: i32) -> (i32, i32) {
    %c0_i32 = arith.constant 0 : i32
    %c0_i32_0 = arith.constant 0 : i32
    %c0_i32_1 = arith.constant 0 : i32
    return %c0_i32, %c0_i32_0 : i32, i32
  }
  func.func @transform_3(%arg0: i32) -> (i32, i32) {
    %c0_i32 = arith.constant 0 : i32
    %c0_i32_0 = arith.constant 0 : i32
    %c0_i32_1 = arith.constant 0 : i32
    return %c0_i32, %c0_i32_0 : i32, i32
  }
  func.func @transform_4(%arg0: i32) -> (i32, i32) {
    %c0_i32 = arith.constant 0 : i32
    %c0_i32_0 = arith.constant 0 : i32
    %c0_i32_1 = arith.constant 0 : i32
    return %c0_i32, %c0_i32_0 : i32, i32
  }
  func.func @transform_5(%arg0: i32) -> (i32, i32) {
    %c0_i32 = arith.constant 0 : i32
    %c0_i32_0 = arith.constant 0 : i32
    %c0_i32_1 = arith.constant 0 : i32
    return %c0_i32, %c0_i32_0 : i32, i32
  }
  func.func @transform_6(%arg0: i32) -> (i32, i32) {
    %c0_i32 = arith.constant 0 : i32
    %c0_i32_0 = arith.constant 0 : i32
    %c0_i32_1 = arith.constant 0 : i32
    return %c0_i32, %c0_i32_0 : i32, i32
  }
  func.func @transform_7(%arg0: i32) -> (i32, i32) {
    %c0_i32 = arith.constant 0 : i32
    %c0_i32_0 = arith.constant 0 : i32
    return %arg0, %c0_i32 : i32, i32
  }
}

</mosaic_0001>

<bundles_post_ra>
// kernel: flow_matching_forward.1
= control target key start
LH: loop header
LB: loop body
LE: loop exit
PB: predicated region body
PF: predicated region fallthrough
CT: control target
= control target key end

     0   :  { %s18128_s0 = inlined_call_operand.hbm [shape: f32[1024,256], index: 0, kind: input, shape index: {}]   ;;  %s18129_s1 = inlined_call_operand.vmem [shape: f32[1024,8], index: 1, kind: input, shape index: {}]   ;;  %s18130_s2 = inlined_call_operand.vmem [shape: f32[1,2560], index: 2, kind: input, shape index: {}]   ;;  %s18131_s3 = inlined_call_operand.hbm [shape: bf16[512,256], index: 3, kind: input, shape index: {}]   ;;  %s18132_s4 = inlined_call_operand.hbm [shape: bf16[256,512], index: 4, kind: input, shape index: {}]   ;;  %s18133_s5 = inlined_call_operand.vmem [shape: bf16[512,512], index: 5, kind: input, shape index: {}]   ;;  %s18134_s6 = inlined_call_operand.hbm [shape: bf16[512,256], index: 6, kind: input, shape index: {}]   ;;  %s18135_s7 = inlined_call_operand.hbm [shape: f32[1024,256], index: 7, kind: output, shape index: {}]  }
   0x1   :  { %18252 = sst [smem:[#allocation127_spill]] %s18131_s3 }
   0x2   :  { %12 = vsyncpa [#allocation3], 0 }
   0x3   :  { %14 = vsyncpa [#allocation3 + $0x1], 0 }
   0x4   :  { %15 = vsyncpa [#allocation6], 0 }
   0x5   :  { %16 = vsyncpa [#allocation9], 0 }
   0x6   :  { %17 = vsyncpa [#allocation4], 0 }
   0x7   :  { %19 = vsyncpa [#allocation4 + $0x1], 0  ;;  %s12778_s24 = smov 0   ;;  %s12780_s25 = smov 0  }
   0x8   :  { %s12782_s26 = smov 0   ;;  %s12784_s27 = smov 0  }
   0x9 LB: > { %s12799_s28 = sadd.s32 4294967295, %s12722_s27   ;;  %s9046_s29 = sadd.s32 4294967294, %s12722_s27   ;;  %s12722_s27 = sphi %s12784_s27, %s18838_s27   ;;  %s12718_s26 = sphi %s12782_s26, %s18837_s26   ;;  %s12714_s25 = sphi %s12780_s25, %s18836_s25   ;;  %s12710_s24 = sphi %s12778_s24, %s18835_s24  }
   0xa   : > { %p45_p0 = scmp.ne.s32.totalorder %s12714_s25, %s12710_s24  ;;  %p18136_p1 = scmp.eq.s32.totalorder %s12799_s28, 0 }
   0xb   : > { %p206_p3 = scmp.eq.s32.totalorder %s9046_s29, 3  ;;  %p9047_p5 = scmp.ge.s32.totalorder %s12722_s27, 1 }
   0xc   : > { %p12808_p4 = por %p18136_p1, %p45_p0  ;;  %p213_p7 = scmp.lt.s32.totalorder %s12722_s27, 5 }
   0xd   : > { %p12813_p6 = por %p206_p3, %p45_p0  ;;  %s12724_s10 = smov [#allocation5]  }
   0xe   : > { %s18253_s30 = scalar_select %p12808_p4, 1, 0 }
   0xf   : > { %s18254_s8 = scalar_select %p12813_p6, 1, 0 }
  0x10   : > { %p12818_p8 = pnand %p9047_p5, %p213_p7  ;;  %s228_s11 = sshll.u32 %s12724_s10, 4  ;;  %s229_s11 = int_to_ptr.vmem [resolvable:$true] %s228_s11 }
  0x11   : > { %18255 = sst [smem:[#allocation15_spill]] %s18254_s8  ;;  %s12725_s13 = smov [#allocation7]  }
  0x12   : > { %s18256_s9 = scalar_select %p12818_p8, 1, 0 }
  0x13   : > { %p10310_p9 = pneg %p12818_p8  ;;  %s241_s14 = sshll.u32 %s12725_s13, 4  ;;  %s12830_s14 = int_to_ptr.vmem [resolvable:$true] %s241_s14 }
  0x14   : > { %s18258_s3 = sld [smem:[#allocation127_spill]] }
  0x15   : > { %p12826_p10 = pnand %p10310_p9, %p18136_p1 }
  0x17   : > { %p12840_p12 = pneg %p12826_p10 }
  0x1a   : > { %s12534_s17 = scalar_lea.hbm %s18258_s3, 8192 }
  0x1b   : > { %p12535_p11 = scmp.ne.s32.totalorder %s18258_s3, %s12534_s17  ;;  %p12541_p3 = scmp.lt.u32.totalorder %s12534_s17, %s18258_s3 }
  0x1d   : > { %p12537_p13 = pnand %p12840_p12, %p12535_p11 }
  0x1f   : > { %p12538_p0 = pneg %p12537_p13 }
  0x21   : > { %p12543_p5 = pnand %p12541_p3, %p12538_p0 }
  0x23   : > { %12546 = shalt.err (!%p12543_p5)
}
  0x24   : > { %s12547_s23 = scalar_lea.vmem %s229_s11, 8192  ;;  %p12555_p2 = scmp.lt.s32.totalorder %s229_s11, %s229_s11 }
  0x25   : > { %p12548_p7 = scmp.ne.s32.totalorder %s229_s11, %s12547_s23  ;;  %p12556_p6 = scmp.lt.s32.totalorder %s12547_s23, %s12547_s23 }
  0x27   : > { %p12550_p9 = pnand %p12548_p7, %p12840_p12  ;;  %p12557_p4 = por %p12556_p6, %p12555_p2 }
  0x29   : > { %p12551_p1 = pneg %p12550_p9 }
  0x2b   : > { %p12558_p8 = pnand %p12557_p4, %p12551_p1 }
  0x2d   : > { %12561 = shalt.err (!%p12558_p8)
}
  0x2e   : > { %s18139_s29 = smov 128   ;;  %s18140_s10 = smov 8  }
  0x2f   : > { %10313 = dma.hbm_to_vmem [thread:$0]  (!%p12826_p10), %s18258_s3, 8192, %s229_s11, [#allocation6], %s18139_s29, %s18139_s29, %s18140_s10  }
  0x30   : > { %s12562_s18 = scalar_lea.hbm %s18132_s4, 8192 }
  0x31   : > { %p12563_p1 = scmp.ne.s32.totalorder %s18132_s4, %s12562_s18  ;;  %p12569_p6 = scmp.lt.u32.totalorder %s12562_s18, %s18132_s4 }
  0x33   : > { %p12565_p2 = pnand %p12563_p1, %p12840_p12 }
  0x35   : > { %p12566_p4 = pneg %p12565_p2 }
  0x37   : > { %p12571_p8 = pnand %p12569_p6, %p12566_p4 }
  0x39   : > { %12574 = shalt.err (!%p12571_p8)
}
  0x3a   : > { %s12575_s11 = scalar_lea.vmem %s12830_s14, 8192  ;;  %p12583_p3 = scmp.lt.s32.totalorder %s12830_s14, %s12830_s14 }
  0x3b   : > { %p12576_p11 = scmp.ne.s32.totalorder %s12830_s14, %s12575_s11  ;;  %p12584_p5 = scmp.lt.s32.totalorder %s12575_s11, %s12575_s11 }
  0x3d   : > { %p12578_p13 = pnand %p12576_p11, %p12840_p12  ;;  %p12585_p7 = por %p12584_p5, %p12583_p3 }
  0x3f   : > { %p12579_p0 = pneg %p12578_p13 }
  0x41   : > { %p12586_p9 = pnand %p12585_p7, %p12579_p0 }
  0x43   : > { %12589 = shalt.err (!%p12586_p9)
}
  0x44   : > { %s12728_s13 = smov 256   ;;  %s12729_s15 = smov 16  }
  0x45   : > { %10316 = dma.hbm_to_vmem [thread:$0]  (!%p12826_p10), %s18132_s4, 8192, %s12830_s14, [#allocation6], %s12728_s13, %s12728_s13, %s12729_s15  }
  0x46   : > { %s12730_s18 = smov [#allocation8]   ;;  %s12886_s21 = sadd.s32 1, %s12722_s27  }
  0x47   : > { %s257_s19 = sshll.u32 %s12730_s18, 4  ;;  %s12590_s11 = scalar_lea.hbm %s18134_s6, 8192  ;;  %s258_s19 = int_to_ptr.vmem [resolvable:$true] %s257_s19 }
  0x48   : > { %p12591_p1 = scmp.ne.s32.totalorder %s18134_s6, %s12590_s11  ;;  %p12597_p6 = scmp.lt.u32.totalorder %s12590_s11, %s18134_s6 }
  0x4a   : > { %p12593_p2 = pnand %p12591_p1, %p12840_p12 }
  0x4c   : > { %p12594_p4 = pneg %p12593_p2 }
  0x4e   : > { %p12599_p8 = pnand %p12597_p6, %p12594_p4 }
  0x50   : > { %12602 = shalt.err (!%p12599_p8)
}
  0x51   : > { %s12603_s14 = scalar_lea.vmem %s258_s19, 8192  ;;  %p12611_p3 = scmp.lt.s32.totalorder %s258_s19, %s258_s19 }
  0x52   : > { %p12604_p11 = scmp.ne.s32.totalorder %s258_s19, %s12603_s14  ;;  %p12612_p5 = scmp.lt.s32.totalorder %s12603_s14, %s12603_s14 }
  0x54   : > { %p12606_p13 = pnand %p12604_p11, %p12840_p12  ;;  %p12613_p7 = por %p12612_p5, %p12611_p3 }
  0x56   : > { %p12607_p0 = pneg %p12606_p13 }
  0x58   : > { %p12614_p9 = pnand %p12613_p7, %p12607_p0 }
  0x5a   : > { %12617 = shalt.err (!%p12614_p9)
}
  0x5b   : > { %s18260_s29 = smov 8   ;;  %s18261_s10 = smov 128  }
  0x5c   : > { %10319 = dma.hbm_to_vmem [thread:$0]  (!%p12826_p10), %s18134_s6, 8192, %s258_s19, [#allocation9], %s18261_s10, %s18261_s10, %s18260_s29  }
  0x5d   : > { %s29_s20 = ssub.s32 %s12722_s27, %s12886_s21  ;;  %s32_s12 = sadd.s32 1, %s12718_s26 }
  0x5e   : > { %p30_p12 = scmp.eq.s32.totalorder %s29_s20, 0  ;;  %p39_p1 = scmp.ne.s32.totalorder %s12718_s26, %s12714_s25 }
  0x5f   : > { %p40_p2 = scmp.eq.s32.totalorder %s12722_s27, 0  ;;  %p10331_p4 = scmp.lt.s32.totalorder %s12722_s27, 4 }
  0x60   : > { %s12917_s16 = scalar_select %p30_p12, %s12718_s26, %s32_s12  }
  0x61   : > { %p41_p6 = por %p40_p2, %p39_p1  ;;  %p18262_p8 = scmp.eq.s32.totalorder %s12799_s28, 3 }
  0x62   : > { %s271_s18 = sand.u32 1, %s12718_s26   ;;  %s9779_s22 = sshll.u32 %s12722_s27, 13 }
  0x63   : > { %p12921_p11 = por %p18262_p8, %p39_p1  ;;  %s9052_s23 = sshll.u32 %s271_s18, 9 }
  0x64   : > { %s12930_s19 = scalar_lea.hbm %s18128_s0, %s9779_s22  ;;  %s275_s29 = scalar_lea.vmem [#allocation2], %s9052_s23 }
  0x65   : > { %s283_s10 = sshll.u32 %s275_s29, 4  ;;  %p12932_p10 = pnand %p10331_p4, %p41_p6  ;;  %s12936_s10 = int_to_ptr.vmem [resolvable:$true] %s283_s10 }
  0x66   : > { %s12938_s8 = scalar_lea.sflag [#allocation3], %s271_s18  ;;  %s12618_s20 = scalar_lea.hbm %s12930_s19, 8192 }
  0x67   : > { %p12619_p13 = scmp.ne.s32.totalorder %s12930_s19, %s12618_s20  ;;  %p12620_p0 = pneg %p12932_p10 }
  0x68   : > { %s12623_s23 = scalar_lea.hbm %s18128_s0, 32768  ;;  %p12624_p7 = scmp.lt.u32.totalorder %s12930_s19, %s18128_s0 }
  0x69   : > { %p12621_p3 = pnand %p12620_p0, %p12619_p13  ;;  %p12625_p9 = scmp.lt.u32.totalorder %s12623_s23, %s12618_s20 }
  0x6a   : > { %p12627_p1 = scmp.lt.u32.totalorder %s12618_s20, %s12930_s19 }
  0x6b   : > { %p12622_p5 = pneg %p12621_p3  ;;  %p12626_p12 = por %p12625_p9, %p12624_p7 }
  0x6d   : > { %p12628_p2 = por %p12627_p1, %p12626_p12 }
  0x6f   : > { %p12629_p4 = pnand %p12628_p2, %p12622_p5 }
  0x71   : > { %12632 = shalt.err (!%p12629_p4)
}
  0x72   : > { %s12633_s18 = scalar_lea.vmem %s12936_s10, 8192  ;;  %s12731_s29 = smov [#allocation2]  }
  0x73   : > { %p12634_p6 = scmp.ne.s32.totalorder %s12936_s10, %s12633_s18  ;;  %s12638_s12 = sshll.u32 %s12731_s29, 4  ;;  %s12639_s12 = int_to_ptr.vmem [resolvable:$false] %s12638_s12 }
  0x74   : > { %s12640_s22 = scalar_lea.vmem %s12639_s12, 16384  ;;  %p12641_p3 = scmp.lt.s32.totalorder %s12936_s10, %s12639_s12 }
  0x75   : > { %p12636_p8 = pnand %p12634_p6, %p12620_p0  ;;  %p12642_p7 = scmp.lt.s32.totalorder %s12640_s22, %s12633_s18 }
  0x77   : > { %p12637_p13 = pneg %p12636_p8  ;;  %p12643_p9 = por %p12642_p7, %p12641_p3 }
  0x79   : > { %p12644_p12 = pnand %p12643_p9, %p12637_p13 }
  0x7b   : > { %12647 = shalt.err (!%p12644_p12)
}
  0x7c   : > { %10323 = dma.hbm_to_vmem [thread:$0]  (!%p12932_p10), %s12930_s19, 8192, %s12936_s10, %s12938_s8, %s12728_s13, %s12728_s13, %s12729_s15  }
  0x7d   : > { %p18265_p0 = scmp.ne.s32.totalorder %s18256_s9, 0 }
  0x7f   : > { %304 = sbr.rel (%p18265_p0) target bundleno = 2443 (0x98b), region = 48 }
  0x86   : > { %s12972_s20 = sand.u32 1, %s12714_s25   ;;  %p18266_p5 = scmp.ne.s32.totalorder %s18253_s30, 0 }
  0x87   : > { %s9057_s23 = sshll.u32 %s12972_s20, 9  ;;  %s307_s11 = scalar_lea.sflag [#allocation3], %s12972_s20 }
  0x88   : > { %s12978_s3 = scalar_lea.vmem [#allocation2], %s9057_s23 }
  0x89   : > { %12693 = dma.done.wait (%p18266_p5), %s307_s11, 8192  }
  0x8a   : > { %12695 = vsyncadd (%p18266_p5), %s307_s11, 4294959104  ;;  %p18267_p10 = scmp.eq.s32.totalorder %s12799_s28, 0 }
  0x8c   : > { %12697 = dma.done.wait (%p18267_p10), [#allocation6], 16384   ;;  %p18268_p1 = pmov %p18267_p10 }
  0x8e   : > { %12699 = vsyncadd (%p18268_p1), [#allocation6], 4294950912  ;;  %p18269_p2 = pmov %p18268_p1 }
  0x8f   : > { %p18270_p4 = pmov %p18268_p1 }
  0x90   : > { %12701 = dma.done.wait (%p18269_p2), [#allocation9], 8192  }
  0x91   : > { %12703 = vsyncadd (%p18270_p4), [#allocation9], 4294959104  ;;  %v12993_v0 = vld [vmem:[%s12978_s3 + $0x20] sm:$0xff]  ;;  %v12996_v1 = vld [vmem:[%s12978_s3 + $0x28] sm:$0xff]  ;;  %s9062_s19 = sshll.u32 %s12799_s28, 5  ;;  %s17950_s13 = scalar_lea.vmem [#allocation10], %s9057_s23 }
  0x92   : > { %v12999_v2 = vld [vmem:[%s12978_s3] sm:$0xff]  ;;  %v436_v3 = vadd.f32 %v12996_v1, %v12993_v0  ;;  %v13004_v4 = vld [vmem:[%s12978_s3 + $0x8] sm:$0xff]  ;;  %v13007_v5 = vld [vmem:[%s12978_s3 + $0x30] sm:$0xff]  ;;  %p13457_p6 = scmp.lt.s32.totalorder %s9062_s19, 127  ;;  %s9781_s23 = sshll.u32 %s12799_s28, 13 }
  0x93   : > { %v13010_v6 = vld [vmem:[%s12978_s3 + $0x38] sm:$0xff]  ;;  %v430_v7 = vadd.f32 %v13004_v4, %v12999_v2  ;;  %v13015_v8 = vld [vmem:[%s12978_s3 + $0x10] sm:$0xff]  ;;  %v13031_v14 = vld [vmem:[%s12978_s3 + $0x40] sm:$0xff]  ;;  %s8932_s15 = sshll.u32 %s17950_s13, 4  ;;  %s8918_s28 = scalar_lea.sflag [#allocation4], %s12972_s20  ;;  %s18081_s15 = int_to_ptr.vmem [resolvable:$true] %s8932_s15 }
  0x94   : > { %v13018_v9 = vld [vmem:[%s12978_s3 + $0x18] sm:$0xff]  ;;  %437 = vadd.xlane.f32.xlu1 %v436_v3  ;;  %v439_v10 = vadd.f32 %v13010_v6, %v13007_v5  ;;  %v13025_v12 = vld [vmem:[%s12978_s3 + $0x50] sm:$0xff]  ;;  %v13034_v15 = vld [vmem:[%s12978_s3 + $0x48] sm:$0xff]  ;;  %s18840_s19 = smov (!%p13457_p6, %s9062_s19), 127  ;;  %s12648_s14 = scalar_lea.vmem %s18081_s15, 8192 }
  0x95   : > { %431 = vadd.xlane.f32.xlu0 %v430_v7  ;;  %v433_v11 = vadd.f32 %v13018_v9, %v13015_v8  ;;  %v13028_v13 = vld [vmem:[%s12978_s3 + $0x58] sm:$0xff]  ;;  %v442_v17 = vadd.f32 %v13034_v15, %v13031_v14  ;;  %v13041_v18 = vld [vmem:[%s12978_s3 + $0x70] sm:$0xff]  ;;  %v13047_v20 = vld [vmem:[%s12978_s3 + $0x60] sm:$0xff]  ;;  %s9063_s8 = sshll.u32 %s18840_s19, 3  ;;  %p12649_p8 = scmp.ne.s32.totalorder %s18081_s15, %s12648_s14 }
  0x96   : > { %v445_v16 = vadd.f32 %v13028_v13, %v13025_v12  ;;  %v13044_v19 = vld [vmem:[%s12978_s3 + $0x78] sm:$0xff]  ;;  %v13050_v21 = vld [vmem:[%s12978_s3 + $0x68] sm:$0xff]  ;;  %v384_v24 = vld [vmem:[%s12978_s3 + $0x90] sm:$0xff]  ;;  %s13504_s29 = scalar_lea.vmem %s18129_s1, %s9063_s8  ;;  %s18079_s8 = scalar_lea.hbm %s18135_s7, %s9781_s23 }
  0x97   : > { %v451_v22 = vadd.f32 %v13044_v19, %v13041_v18  ;;  %v448_v23 = vadd.f32 %v13050_v21, %v13047_v20  ;;  %v385_v25 = vld [vmem:[%s12978_s3 + $0x98] sm:$0xff]  ;;  %v382_v26 = vld [vmem:[%s12978_s3 + $0x80] sm:$0xff]  ;;  %v383_v27 = vld [vmem:[%s12978_s3 + $0x88] sm:$0xff]  ;;  %p12650_p13 = pnand %p12649_p8, %p12921_p11  ;;  %s12735_s18 = smov [#allocation10]  }
  0x98   : > { %440 = vadd.xlane.f32.xlu1 %v439_v10  ;;  %v457_v28 = vadd.f32 %v385_v25, %v384_v24  ;;  %v454_v29 = vadd.f32 %v383_v27, %v382_v26  ;;  %v13061_v30 = vld [vmem:[%s12978_s3 + $0xa0] sm:$0xff]  ;;  %v13064_v31 = vld [vmem:[%s12978_s3 + $0xb0] sm:$0xff]  ;;  %v13067_v32 = vld [vmem:[%s12978_s3 + $0xb8] sm:$0xff] }
  0x99   : > { %434 = vadd.xlane.f32.xlu0 %v433_v11  ;;  %v13070_v33 = vld [vmem:[%s12978_s3 + $0xa8] sm:$0xff]  ;;  %v392_v34 = vld [vmem:[%s12978_s3 + $0xd0] sm:$0xff]  ;;  %v393_v35 = vld [vmem:[%s12978_s3 + $0xd8] sm:$0xff]  ;;  %v463_v36 = vadd.f32 %v13067_v32, %v13064_v31  ;;  %p12651_p3 = pneg %p12650_p13 }
  0x9a   : > { %v390_v37 = vld [vmem:[%s12978_s3 + $0xc0] sm:$0xff]  ;;  %v391_v38 = vld [vmem:[%s12978_s3 + $0xc8] sm:$0xff]  ;;  %v460_v39 = vadd.f32 %v13070_v33, %v13061_v30  ;;  %v396_v40 = vld [vmem:[%s12978_s3 + $0xf0] sm:$0xff]  ;;  %v469_v42 = vadd.f32 %v393_v35, %v392_v34 }
  0x9b   : > { %v397_v41 = vld [vmem:[%s12978_s3 + $0xf8] sm:$0xff]  ;;  %v394_v43 = vld [vmem:[%s12978_s3 + $0xe0] sm:$0xff]  ;;  %v395_v44 = vld [vmem:[%s12978_s3 + $0xe8] sm:$0xff]  ;;  %v466_v45 = vadd.f32 %v391_v38, %v390_v37 }
  0x9c   : > { %446 = vadd.xlane.f32.xlu1 %v445_v16  ;;  %v400_v46 = vld [vmem:[%s12978_s3 + $0x110] sm:$0xff]  ;;  %v401_v47 = vld [vmem:[%s12978_s3 + $0x118] sm:$0xff]  ;;  %v475_v48 = vadd.f32 %v397_v41, %v396_v40  ;;  %v398_v49 = vld [vmem:[%s12978_s3 + $0x100] sm:$0xff]  ;;  %v472_v51 = vadd.f32 %v395_v44, %v394_v43 }
  0x9d   : > { %443 = vadd.xlane.f32.xlu0 %v442_v17  ;;  %v399_v50 = vld [vmem:[%s12978_s3 + $0x108] sm:$0xff]  ;;  %v404_v52 = vld [vmem:[%s12978_s3 + $0x130] sm:$0xff]  ;;  %v405_v53 = vld [vmem:[%s12978_s3 + $0x138] sm:$0xff]  ;;  %v481_v54 = vadd.f32 %v401_v47, %v400_v46 }
  0x9e   : > { %v402_v55 = vld [vmem:[%s12978_s3 + $0x120] sm:$0xff]  ;;  %v403_v56 = vld [vmem:[%s12978_s3 + $0x128] sm:$0xff]  ;;  %v478_v57 = vadd.f32 %v399_v50, %v398_v49  ;;  %v487_v60 = vadd.f32 %v405_v53, %v404_v52  ;;  %v408_v61 = vld [vmem:[%s12978_s3 + $0x150] sm:$0xff] }
  0x9f   : > { %v406_v58 = vld [vmem:[%s12978_s3 + $0x140] sm:$0xff]  ;;  %v407_v59 = vld [vmem:[%s12978_s3 + $0x148] sm:$0xff]  ;;  %v409_v62 = vld [vmem:[%s12978_s3 + $0x158] sm:$0xff]  ;;  %v484_v63 = vadd.f32 %v403_v56, %v402_v55 }
  0xa0   : > { %452 = vadd.xlane.f32.xlu1 %v451_v22  ;;  %v490_v3 = vadd.f32 %v407_v59, %v406_v58  ;;  %v412_v7 = vld [vmem:[%s12978_s3 + $0x170] sm:$0xff]  ;;  %v413_v10 = vld [vmem:[%s12978_s3 + $0x178] sm:$0xff]  ;;  %v410_v11 = vld [vmem:[%s12978_s3 + $0x160] sm:$0xff]  ;;  %v493_v16 = vadd.f32 %v409_v62, %v408_v61 }
  0xa1   : > { %449 = vadd.xlane.f32.xlu0 %v448_v23  ;;  %v411_v17 = vld [vmem:[%s12978_s3 + $0x168] sm:$0xff]  ;;  %v414_v22 = vld [vmem:[%s12978_s3 + $0x180] sm:$0xff]  ;;  %v416_v24 = vld [vmem:[%s12978_s3 + $0x190] sm:$0xff]  ;;  %v499_v27 = vadd.f32 %v413_v10, %v412_v7 }
  0xa2   : > { %v415_v23 = vld [vmem:[%s12978_s3 + $0x188] sm:$0xff]  ;;  %v417_v25 = vld [vmem:[%s12978_s3 + $0x198] sm:$0xff]  ;;  %v496_v26 = vadd.f32 %v411_v17, %v410_v11 }
  0xa3   : > { %v10387_v34 = vld [vmem:[#allocation5 + $0x4] ss:$8 sps:$4 sm:$0xff]   ;;  %v10389_v35 = vld [vmem:[#allocation5] ss:$8 sps:$4 sm:$0xff]   ;;  %v10392_v37 = vld [vmem:[#allocation5 + $0x10] ss:$8 sps:$4 sm:$0xff]  }
  0xa4   : > { %458 = vadd.xlane.f32.xlu1 %v457_v28  ;;  %v502_v28 = vadd.f32 %v415_v23, %v414_v22  ;;  %2931 = vmatprep.subr.bf16.mxu1 %v10387_v34  ;;  %v10393_v38 = vld [vmem:[#allocation5 + $0x24] ss:$8 sps:$4 sm:$0xff]   ;;  %v10396_v40 = vld [vmem:[#allocation5 + $0x34] ss:$8 sps:$4 sm:$0xff]   ;;  %v10398_v41 = vld [vmem:[#allocation5 + $0x30] ss:$8 sps:$4 sm:$0xff]  }
  0xa5   : > { %455 = vadd.xlane.f32.xlu0 %v454_v29  ;;  %v505_v29 = vadd.f32 %v417_v25, %v416_v24  ;;  %2932 = vmatpush1.bf16.msra.mxu1 %v10389_v35  ;;  %v10401_v43 = vld [vmem:[#allocation5 + $0x40] ss:$8 sps:$4 sm:$0xff]   ;;  %v10402_v44 = vld [vmem:[#allocation5 + $0x54] ss:$8 sps:$4 sm:$0xff]   ;;  %v10405_v46 = vld [vmem:[#allocation5 + $0x64] ss:$8 sps:$4 sm:$0xff]  }
  0xa6   : > { %v10407_v47 = vld [vmem:[#allocation5 + $0x60] ss:$8 sps:$4 sm:$0xff]   ;;  %v10410_v49 = vld [vmem:[#allocation5 + $0x70] ss:$8 sps:$4 sm:$0xff]   ;;  %v10411_v50 = vld [vmem:[#allocation5 + $0x84] ss:$8 sps:$4 sm:$0xff]  }
  0xa8   : > { %464 = vadd.xlane.f32.xlu1 %v463_v36  ;;  %v10390_v36 = vld [vmem:[#allocation5 + $0x14] ss:$8 sps:$4 sm:$0xff]  }
  0xa9   : > { %461 = vadd.xlane.f32.xlu0 %v460_v39  ;;  %2933 = vmatprep.subr.bf16.mxu1 %v10390_v36  ;;  %v10395_v39 = vld [vmem:[#allocation5 + $0x20] ss:$8 sps:$4 sm:$0xff]  }
  0xaa   : > { %2934 = vmatpush1.bf16.msra.mxu1 %v10392_v37 }
  0xab   : > { %2935 = vmatprep.subr.bf16.mxu1 %v10393_v38 }
  0xac   : > { %470 = vadd.xlane.f32.xlu1 %v469_v42  ;;  %v10399_v42 = vld [vmem:[#allocation5 + $0x44] ss:$8 sps:$4 sm:$0xff]  }
  0xad   : > { %467 = vadd.xlane.f32.xlu0 %v466_v45  ;;  %v10404_v45 = vld [vmem:[#allocation5 + $0x50] ss:$8 sps:$4 sm:$0xff]  }
  0xae   : > { %2936 = vmatpush1.bf16.msra.mxu1 %v10395_v39 }
  0xaf   : > { %2937 = vmatprep.subr.bf16.mxu1 %v10396_v40 }
  0xb0   : > { %476 = vadd.xlane.f32.xlu1 %v475_v48  ;;  %v10408_v48 = vld [vmem:[#allocation5 + $0x74] ss:$8 sps:$4 sm:$0xff]  }
  0xb1   : > { %473 = vadd.xlane.f32.xlu0 %v472_v51  ;;  %v10413_v51 = vld [vmem:[#allocation5 + $0x80] ss:$8 sps:$4 sm:$0xff]  }
  0xb2   : > { %2938 = vmatpush1.bf16.msra.mxu1 %v10398_v41 }
  0xb3   : > { %2939 = vmatprep.subr.bf16.mxu1 %v10399_v42 }
  0xb4   : > { %482 = vadd.xlane.f32.xlu1 %v481_v54 }
  0xb5   : > { %479 = vadd.xlane.f32.xlu0 %v478_v57 }
  0xb6   : > { %2940 = vmatpush1.bf16.msra.mxu1 %v10401_v43 }
  0xb7   : > { %2941 = vmatprep.subr.bf16.mxu1 %v10402_v44 }
  0xb8   : > { %488 = vadd.xlane.f32.xlu1 %v487_v60 }
  0xb9   : > { %485 = vadd.xlane.f32.xlu0 %v484_v63 }
  0xba   : > { %2942 = vmatpush1.bf16.msra.mxu1 %v10404_v45 }
  0xbb   : > { %2943 = vmatprep.subr.bf16.mxu1 %v10405_v46 }
  0xbc   : > { %491 = vadd.xlane.f32.xlu1 %v490_v3 }
  0xbd   : > { %494 = vadd.xlane.f32.xlu0 %v493_v16 }
  0xbe   : > { %2944 = vmatpush1.bf16.msra.mxu1 %v10407_v47 }
  0xbf   : > { %2945 = vmatprep.subr.bf16.mxu1 %v10408_v48 }
  0xc0   : > { %497 = vadd.xlane.f32.xlu1 %v496_v26 }
  0xc1   : > { %500 = vadd.xlane.f32.xlu0 %v499_v27 }
  0xc2   : > { %2946 = vmatpush1.bf16.msra.mxu1 %v10410_v49  ;;  %v424_v49 = vld [vmem:[%s12978_s3 + $0x1d0] sm:$0xff] }
  0xc3   : > { %2947 = vmatprep.subr.bf16.mxu1 %v10411_v50  ;;  %v425_v50 = vld [vmem:[%s12978_s3 + $0x1d8] sm:$0xff] }
  0xc4   : > { %503 = vadd.xlane.f32.xlu1 %v502_v28 }
  0xc5   : > { %506 = vadd.xlane.f32.xlu0 %v505_v29 }
  0xc6   : > { %2948 = vmatpush1.bf16.msra.mxu1 %v10413_v51  ;;  %v13183_v51 = vld [vmem:[%s12978_s3 + $0x1a0] sm:$0xff] }
 0x121   : > { %v438_v52 = vpop.xlane.xlu1 %437 }
 0x122   : > { %v529_v53 = vmul.f32 0.00390625, %v438_v52  ;;  %v432_v54 = vpop.xlane.xlu0 %431  ;;  %v13186_v52 = vld [vmem:[%s12978_s3 + $0x1a8] sm:$0xff] }
 0x123   : > { %v527_v55 = vmul.f32 0.00390625, %v432_v54 }
 0x124   : > { %v13105_v56 = vsub.f32 %v12993_v0, %v529_v53  ;;  %v13108_v57 = vsub.f32 %v12996_v1, %v529_v53 }
 0x125   : > { %v13111_v58 = vsub.f32 %v12999_v2, %v527_v55  ;;  %v13114_v59 = vsub.f32 %v13004_v4, %v527_v55  ;;  %v441_v60 = vpop.xlane.xlu1 %440  ;;  %v517_v55 = vadd.f32 %v425_v50, %v424_v49  ;;  %v12470_v50 = vld [vmem:[%s12978_s3 + $0x88] sm:$0xff] }
 0x126   : > { %v530_v61 = vmul.f32 0.00390625, %v441_v60  ;;  %v435_v62 = vpop.xlane.xlu0 %434  ;;  %v627_v63 = vmul.f32 %v13105_v56, %v13105_v56  ;;  %v628_v3 = vmul.f32 %v13108_v57, %v13108_v57 }
 0x127   : > { %v528_v0 = vmul.f32 0.00390625, %v435_v62  ;;  %v623_v1 = vmul.f32 %v13111_v58, %v13111_v58  ;;  %v624_v2 = vmul.f32 %v13114_v59, %v13114_v59  ;;  %v508_v62 = vadd.f32 %v13186_v52, %v13183_v51 }
 0x128   : > { %v13125_v7 = vsub.f32 %v13007_v5, %v530_v61  ;;  %v693_v4 = vadd.f32 %v628_v3, %v627_v63  ;;  %v13128_v10 = vsub.f32 %v13010_v6, %v530_v61  ;;  %v426_v63 = vld [vmem:[%s12978_s3 + $0x1e0] sm:$0xff]  ;;  %v427_v3 = vld [vmem:[%s12978_s3 + $0x1e8] sm:$0xff] }
 0x129   : > { %v13131_v11 = vsub.f32 %v13015_v8, %v528_v0  ;;  %v13134_v16 = vsub.f32 %v13018_v9, %v528_v0  ;;  %v447_v17 = vpop.xlane.xlu1 %446  ;;  %v687_v22 = vadd.f32 %v624_v2, %v623_v1  ;;  %v10414_v1 = vld [vmem:[#allocation5 + $0x94] ss:$8 sps:$4 sm:$0xff]  }
 0x12a   : > { %v532_v23 = vmul.f32 0.00390625, %v447_v17  ;;  %694 = vadd.xlane.f32.xlu0 %v693_v4  ;;  %v444_v24 = vpop.xlane.xlu0 %443  ;;  %v629_v26 = vmul.f32 %v13125_v7, %v13125_v7  ;;  %v630_v34 = vmul.f32 %v13128_v10, %v13128_v10  ;;  %2949 = vmatprep.subr.bf16.mxu1 %v10414_v1 }
 0x12b   : > { %688 = vadd.xlane.f32.xlu1 %v687_v22  ;;  %v531_v25 = vmul.f32 0.00390625, %v444_v24  ;;  %v625_v5 = vmul.f32 %v13131_v11, %v13131_v11  ;;  %v626_v6 = vmul.f32 %v13134_v16, %v13134_v16  ;;  %v520_v24 = vadd.f32 %v427_v3, %v426_v63  ;;  %v12472_v3 = vld [vmem:[%s12978_s3 + $0xf8] sm:$0xff] }
 0x12c   : > { %v13141_v8 = vsub.f32 %v13025_v12, %v532_v23  ;;  %v13144_v9 = vsub.f32 %v13028_v13, %v532_v23  ;;  %v696_v41 = vadd.f32 %v630_v34, %v629_v26  ;;  %v10419_v34 = vld [vmem:[#allocation5 + $0xa0] ss:$8 sps:$4 sm:$0xff]  }
 0x12d   : > { %v13149_v27 = vsub.f32 %v13031_v14, %v531_v25  ;;  %v13152_v28 = vsub.f32 %v13034_v15, %v531_v25  ;;  %v690_v29 = vadd.f32 %v626_v6, %v625_v5  ;;  %v453_v35 = vpop.xlane.xlu1 %452  ;;  %v13161_v14 = vld [vmem:[%s12978_s3 + $0x1b0] sm:$0xff]  ;;  %v13164_v15 = vld [vmem:[%s12978_s3 + $0x1b8] sm:$0xff] }
 0x12e   : > { %v450_v36 = vpop.xlane.xlu0 %449  ;;  %v633_v12 = vmul.f32 %v13141_v8, %v13141_v8  ;;  %v634_v13 = vmul.f32 %v13144_v9, %v13144_v9  ;;  %v534_v43 = vmul.f32 0.00390625, %v453_v35  ;;  %v511_v45 = vadd.f32 %v13164_v15, %v13161_v14 }
 0x12f   : > { %691 = vadd.xlane.f32.xlu1 %v690_v29  ;;  %v533_v37 = vmul.f32 0.00390625, %v450_v36  ;;  %v631_v38 = vmul.f32 %v13149_v27, %v13149_v27  ;;  %v632_v39 = vmul.f32 %v13152_v28, %v13152_v28  ;;  %v10417_v29 = vld [vmem:[#allocation5 + $0xa4] ss:$8 sps:$4 sm:$0xff]  }
 0x130   : > { %v702_v40 = vadd.f32 %v634_v13, %v633_v12  ;;  %v13189_v54 = vsub.f32 %v13041_v18, %v534_v43  ;;  %v12467_v13 = vld [vmem:[%s12978_s3 + $0xd0] sm:$0xff] }
 0x131   : > { %v13170_v42 = vpop.xlane.xlu1 %458  ;;  %v13175_v46 = vsub.f32 %v13047_v20, %v533_v37  ;;  %v13178_v47 = vsub.f32 %v13050_v21, %v533_v37  ;;  %v699_v48 = vadd.f32 %v632_v39, %v631_v38  ;;  %v13192_v20 = vsub.f32 %v13044_v19, %v534_v43  ;;  %v10416_v19 = vld [vmem:[#allocation5 + $0x90] ss:$8 sps:$4 sm:$0xff]  }
 0x132   : > { %703 = vadd.xlane.f32.xlu0 %v702_v40  ;;  %v456_v44 = vpop.xlane.xlu0 %455  ;;  %2950 = vmatpush1.bf16.msra.mxu1 %v10416_v19  ;;  %v12468_v38 = vld [vmem:[%s12978_s3 + $0xd8] sm:$0xff] }
 0x133   : > { %697 = vadd.xlane.f32.xlu1 %v696_v41  ;;  %v635_v0 = vmul.f32 %v13175_v46, %v13175_v46  ;;  %v636_v18 = vmul.f32 %v13178_v47, %v13178_v47  ;;  %2951 = vmatprep.subr.bf16.mxu1 %v10417_v29  ;;  %v10423_v29 = vld [vmem:[#allocation5 + $0xc4] ss:$8 sps:$4 sm:$0xff]  }
 0x135   : > { %v465_v53 = vpop.xlane.xlu1 %464  ;;  %v705_v6 = vadd.f32 %v636_v18, %v635_v0 }
 0x136   : > { %512 = vadd.xlane.f32.xlu0 %v511_v45  ;;  %v462_v21 = vpop.xlane.xlu0 %461  ;;  %v538_v60 = vmul.f32 0.00390625, %v465_v53  ;;  %v13236_v45 = vld [vmem:[%s12978_s3 + $0x1c8] sm:$0xff]  ;;  %2952 = vmatpush1.bf16.msra.mxu1 %v10419_v34 }
 0x137   : > { %700 = vadd.xlane.f32.xlu1 %v699_v48  ;;  %v537_v61 = vmul.f32 0.00390625, %v462_v21  ;;  %v12469_v48 = vld [vmem:[%s12978_s3 + $0x80] sm:$0xff]  ;;  %v536_v21 = vmul.f32 0.00390625, %v13170_v42 }
 0x138   : > { %v13209_v17 = vsub.f32 %v13064_v31, %v538_v60  ;;  %v13212_v22 = vsub.f32 %v13067_v32, %v538_v60  ;;  %v535_v31 = vmul.f32 0.00390625, %v456_v44  ;;  %v13233_v44 = vld [vmem:[%s12978_s3 + $0x1c0] sm:$0xff]  ;;  %v10420_v60 = vld [vmem:[#allocation5 + $0xb4] ss:$8 sps:$4 sm:$0xff]  }
 0x139   : > { %v13203_v2 = vsub.f32 %v13061_v30, %v537_v61  ;;  %v13206_v4 = vsub.f32 %v13070_v33, %v537_v61  ;;  %v471_v23 = vpop.xlane.xlu1 %470  ;;  %v637_v30 = vmul.f32 %v13189_v54, %v13189_v54  ;;  %v638_v33 = vmul.f32 %v13192_v20, %v13192_v20  ;;  %v10422_v61 = vld [vmem:[#allocation5 + $0xb0] ss:$8 sps:$4 sm:$0xff]   ;;  %2953 = vmatprep.subr.bf16.mxu1 %v10420_v60 }
 0x13a   : > { %518 = vadd.xlane.f32.xlu0 %v517_v55  ;;  %v540_v25 = vmul.f32 0.00390625, %v471_v23  ;;  %v468_v5 = vpop.xlane.xlu0 %467  ;;  %v645_v36 = vmul.f32 %v13209_v17, %v13209_v17  ;;  %v646_v12 = vmul.f32 %v13212_v22, %v13212_v22  ;;  %v13239_v49 = vsub.f32 %v12469_v48, %v535_v31  ;;  %2954 = vmatpush1.bf16.msra.mxu1 %v10422_v61 }
 0x13b   : > { %509 = vadd.xlane.f32.xlu1 %v508_v62  ;;  %v643_v32 = vmul.f32 %v13203_v2, %v13203_v2  ;;  %v644_v26 = vmul.f32 %v13206_v4, %v13206_v4  ;;  %v13242_v53 = vsub.f32 %v12470_v50, %v535_v31  ;;  %v708_v55 = vadd.f32 %v638_v33, %v637_v30  ;;  %v12471_v62 = vld [vmem:[%s12978_s3 + $0xf0] sm:$0xff]  ;;  %v12474_v31 = vld [vmem:[%s12978_s3 + $0x98] sm:$0xff] }
 0x13c   : > { %v13227_v37 = vsub.f32 %v12467_v13, %v540_v25  ;;  %v13230_v39 = vsub.f32 %v12468_v38, %v540_v25  ;;  %v514_v18 = vadd.f32 %v13236_v45, %v13233_v44  ;;  %v720_v19 = vadd.f32 %v646_v12, %v645_v36  ;;  %v12473_v30 = vld [vmem:[%s12978_s3 + $0x90] sm:$0xff]  ;;  %2955 = vmatprep.subr.bf16.mxu1 %v10423_v29  ;;  %v12480_v29 = vld [vmem:[%s12978_s3 + $0x128] sm:$0xff] }
 0x13d   : > { %v477_v35 = vpop.xlane.xlu1 %476  ;;  %v717_v40 = vadd.f32 %v644_v26, %v643_v32  ;;  %v13260_v33 = vsub.f32 %v12473_v30, %v536_v21  ;;  %v639_v32 = vmul.f32 %v13239_v49, %v13239_v49  ;;  %v640_v26 = vmul.f32 %v13242_v53, %v13242_v53  ;;  %v12475_v36 = vld [vmem:[%s12978_s3 + $0x110] sm:$0xff] }
 0x13e   : > { %521 = vadd.xlane.f32.xlu0 %v520_v24  ;;  %v542_v41 = vmul.f32 0.00390625, %v477_v35  ;;  %v474_v43 = vpop.xlane.xlu0 %473  ;;  %v649_v24 = vmul.f32 %v13227_v37, %v13227_v37  ;;  %v650_v25 = vmul.f32 %v13230_v39, %v13230_v39  ;;  %v539_v34 = vmul.f32 0.00390625, %v468_v5  ;;  %v10425_v35 = vld [vmem:[#allocation5 + $0xc0] ss:$8 sps:$4 sm:$0xff]  }
 0x13f   : > { %706 = vadd.xlane.f32.xlu1 %v705_v6  ;;  %v13263_v6 = vsub.f32 %v12474_v31, %v536_v21  ;;  %2956 = vmatpush1.bf16.msra.mxu1 %v10425_v35  ;;  %v711_v21 = vadd.f32 %v640_v26, %v639_v32  ;;  %v641_v60 = vmul.f32 %v13260_v33, %v13260_v33  ;;  %v12479_v32 = vld [vmem:[%s12978_s3 + $0x120] sm:$0xff] }
 0x140   : > { %v13246_v63 = vsub.f32 %v12471_v62, %v542_v41  ;;  %v13249_v0 = vsub.f32 %v12472_v3, %v542_v41  ;;  %v12476_v41 = vld [vmem:[%s12978_s3 + $0x118] sm:$0xff]  ;;  %v726_v5 = vadd.f32 %v650_v25, %v649_v24  ;;  %v12477_v3 = vld [vmem:[%s12978_s3 + $0xc0] sm:$0xff]  ;;  %v541_v25 = vmul.f32 0.00390625, %v474_v43 }
 0x141   : > { %v483_v1 = vpop.xlane.xlu1 %482  ;;  %v642_v61 = vmul.f32 %v13263_v6, %v13263_v6  ;;  %v10426_v62 = vld [vmem:[#allocation5 + $0xd4] ss:$8 sps:$4 sm:$0xff]   ;;  %v10428_v24 = vld [vmem:[#allocation5 + $0xd0] ss:$8 sps:$4 sm:$0xff]  }
 0x142   : > { %718 = vadd.xlane.f32.xlu0 %v717_v40  ;;  %v544_v42 = vmul.f32 0.00390625, %v483_v1  ;;  %v13253_v23 = vpop.xlane.xlu0 %479  ;;  %v653_v38 = vmul.f32 %v13246_v63, %v13246_v63  ;;  %v654_v40 = vmul.f32 %v13249_v0, %v13249_v0  ;;  %v13286_v1 = vsub.f32 %v12477_v3, %v539_v34  ;;  %2957 = vmatprep.subr.bf16.mxu1 %v10426_v62  ;;  %v10431_v62 = vld [vmem:[#allocation5 + $0xe0] ss:$8 sps:$4 sm:$0xff]  }
 0x143   : > { %709 = vadd.xlane.f32.xlu1 %v708_v55  ;;  %2958 = vmatpush1.bf16.msra.mxu1 %v10428_v24  ;;  %v12481_v3 = vld [vmem:[%s12978_s3 + $0xe0] sm:$0xff]  ;;  %v12483_v24 = vld [vmem:[%s12978_s3 + $0x148] sm:$0xff] }
 0x144   : > { %v13270_v12 = vsub.f32 %v12475_v36, %v544_v42  ;;  %v13279_v48 = vsub.f32 %v12476_v41, %v544_v42  ;;  %v428_v41 = vld [vmem:[%s12978_s3 + $0x1f0] sm:$0xff] }
 0x145   : > { %v13272_v13 = vpop.xlane.xlu1 %488 }
 0x146   : > { %18271 = vst [vmem:[#allocation16_spill] sm:$0xff] %v13270_v12  ;;  %721 = vadd.xlane.f32.xlu0 %v720_v19  ;;  %18272 = vst [vmem:[#allocation17_spill] sm:$0xff] %v13279_v48  ;;  %v486_v50 = vpop.xlane.xlu0 %485  ;;  %v12478_v19 = vld [vmem:[%s12978_s3 + $0xc8] sm:$0xff]  ;;  %v657_v31 = vmul.f32 %v13270_v12, %v13270_v12  ;;  %v658_v36 = vmul.f32 %v13279_v48, %v13279_v48 }
 0x147   : > { %515 = vadd.xlane.f32.xlu1 %v514_v18  ;;  %v545_v55 = vmul.f32 0.00390625, %v486_v50  ;;  %v13289_v42 = vsub.f32 %v12478_v19, %v539_v34  ;;  %v732_v18 = vadd.f32 %v654_v40, %v653_v38  ;;  %v714_v38 = vadd.f32 %v642_v61, %v641_v60  ;;  %v10429_v40 = vld [vmem:[#allocation5 + $0xe4] ss:$8 sps:$4 sm:$0xff]  }
 0x148   : > { %v647_v50 = vmul.f32 %v13286_v1, %v13286_v1  ;;  %v13308_v19 = vsub.f32 %v12481_v3, %v541_v25  ;;  %2959 = vmatprep.subr.bf16.mxu1 %v10429_v40  ;;  %v738_v60 = vadd.f32 %v658_v36, %v657_v31  ;;  %v12484_v3 = vld [vmem:[%s12978_s3 + $0xe8] sm:$0xff]  ;;  %v10434_v36 = vld [vmem:[#allocation5 + $0xf0] ss:$8 sps:$4 sm:$0xff]  }
 0x149   : > { %v492_v30 = vpop.xlane.xlu1 %491  ;;  %v13294_v26 = vsub.f32 %v12479_v32, %v545_v55  ;;  %v13297_v35 = vsub.f32 %v12480_v29, %v545_v55  ;;  %v648_v55 = vmul.f32 %v13289_v42, %v13289_v42  ;;  %2960 = vmatpush1.bf16.msra.mxu1 %v10431_v62  ;;  %v13321_v48 = vsub.f32 %v12484_v3, %v541_v25 }
 0x14a   : > { %727 = vadd.xlane.f32.xlu0 %v726_v5  ;;  %v547_v34 = vmul.f32 0.00390625, %v492_v30  ;;  %v495_v43 = vpop.xlane.xlu0 %494  ;;  %v429_v5 = vld [vmem:[%s12978_s3 + $0x1f8] sm:$0xff]  ;;  %v12482_v30 = vld [vmem:[%s12978_s3 + $0x140] sm:$0xff]  ;;  %v651_v62 = vmul.f32 %v13308_v19, %v13308_v19 }
 0x14b   : > { %18273 = vst [vmem:[#allocation18_spill] sm:$0xff] %v13294_v26  ;;  %18274 = vst [vmem:[#allocation19_spill] sm:$0xff] %v13297_v35  ;;  %712 = vadd.xlane.f32.xlu1 %v711_v21  ;;  %v659_v29 = vmul.f32 %v13294_v26, %v13294_v26  ;;  %v660_v12 = vmul.f32 %v13297_v35, %v13297_v35  ;;  %v723_v31 = vadd.f32 %v648_v55, %v647_v50  ;;  %v12487_v55 = vld [vmem:[%s12978_s3 + $0x100] sm:$0xff] }
 0x14c   : > { %v13311_v32 = vsub.f32 %v12482_v30, %v547_v34  ;;  %v13314_v21 = vsub.f32 %v12483_v24, %v547_v34  ;;  %v543_v30 = vmul.f32 0.00390625, %v13253_v23  ;;  %v523_v34 = vadd.f32 %v429_v5, %v428_v41  ;;  %v12485_v23 = vld [vmem:[%s12978_s3 + $0x170] sm:$0xff]  ;;  %v12486_v41 = vld [vmem:[%s12978_s3 + $0x178] sm:$0xff] }
 0x14d   : > { %v546_v24 = vmul.f32 0.00390625, %v13272_v13  ;;  %v741_v13 = vadd.f32 %v660_v12, %v659_v29  ;;  %v548_v29 = vmul.f32 0.00390625, %v495_v43 }
 0x14e   : > { %18275 = vst [vmem:[#allocation20_spill] sm:$0xff] %v13311_v32  ;;  %18276 = vst [vmem:[#allocation21_spill] sm:$0xff] %v13314_v21  ;;  %733 = vadd.xlane.f32.xlu0 %v732_v18  ;;  %v501_v61 = vpop.xlane.xlu0 %500  ;;  %v10432_v18 = vld [vmem:[#allocation5 + $0xf4] ss:$8 sps:$4 sm:$0xff]   ;;  %v663_v25 = vmul.f32 %v13311_v32, %v13311_v32  ;;  %v664_v3 = vmul.f32 %v13314_v21, %v13314_v21  ;;  %v12488_v32 = vld [vmem:[%s12978_s3 + $0x108] sm:$0xff] }
 0x14f   : > { %715 = vadd.xlane.f32.xlu1 %v714_v38  ;;  %v550_v40 = vmul.f32 0.00390625, %v501_v61  ;;  %2961 = vmatprep.subr.bf16.mxu1 %v10432_v18  ;;  %v13338_v61 = vsub.f32 %v12487_v55, %v543_v30  ;;  %v13341_v21 = vsub.f32 %v12488_v32, %v543_v30  ;;  %v652_v18 = vmul.f32 %v13321_v48, %v13321_v48  ;;  %v12492_v32 = vld [vmem:[%s12978_s3 + $0x198] sm:$0xff] }
 0x150   : > { %2962 = vmatpush1.bf16.msra.mxu1 %v10434_v36  ;;  %v747_v36 = vadd.f32 %v664_v3, %v663_v25  ;;  %v12493_v3 = vld [vmem:[%s12978_s3 + $0x150] sm:$0xff] }
 0x151   : > { %v13332_v38 = vsub.f32 %v12485_v23, %v550_v40  ;;  %v13335_v5 = vsub.f32 %v12486_v41, %v550_v40  ;;  %v12489_v23 = vld [vmem:[%s12978_s3 + $0x130] sm:$0xff]  ;;  %v12490_v40 = vld [vmem:[%s12978_s3 + $0x138] sm:$0xff]  ;;  %v655_v43 = vmul.f32 %v13338_v61, %v13338_v61  ;;  %v656_v25 = vmul.f32 %v13341_v21, %v13341_v21 }
 0x152   : > { %739 = vadd.xlane.f32.xlu0 %v738_v60  ;;  %v507_v50 = vpop.xlane.xlu0 %506  ;;  %v13346_v26 = vsub.f32 %v12489_v23, %v546_v24  ;;  %v13349_v12 = vsub.f32 %v12490_v40, %v546_v24  ;;  %v12491_v41 = vld [vmem:[%s12978_s3 + $0x190] sm:$0xff]  ;;  %v498_v23 = vpop.xlane.xlu1 %497  ;;  %v729_v24 = vadd.f32 %v652_v18, %v651_v62 }
 0x153   : > { %18277 = vst [vmem:[#allocation22_spill] sm:$0xff] %v13332_v38  ;;  %18278 = vst [vmem:[#allocation23_spill] sm:$0xff] %v13335_v5  ;;  %524 = vadd.xlane.f32.xlu1 %v523_v34  ;;  %v552_v60 = vmul.f32 0.00390625, %v507_v50  ;;  %v669_v34 = vmul.f32 %v13332_v38, %v13332_v38  ;;  %v670_v50 = vmul.f32 %v13335_v5, %v13335_v5  ;;  %v549_v38 = vmul.f32 0.00390625, %v498_v23 }
 0x154   : > { %18279 = vst [vmem:[#allocation24_spill] sm:$0xff] %v13346_v26  ;;  %v662_v40 = vmul.f32 %v13349_v12, %v13349_v12 }
 0x155   : > { %v13352_v55 = vsub.f32 %v12491_v41, %v552_v60  ;;  %v13355_v30 = vsub.f32 %v12492_v32, %v552_v60  ;;  %v661_v60 = vmul.f32 %v13346_v26, %v13346_v26  ;;  %v12494_v41 = vld [vmem:[%s12978_s3 + $0x158] sm:$0xff] }
 0x156   : > { %742 = vadd.xlane.f32.xlu0 %v741_v13  ;;  %v13366_v13 = vsub.f32 %v12493_v3, %v548_v29  ;;  %v13373_v32 = vsub.f32 %v12494_v41, %v548_v29  ;;  %v735_v3 = vadd.f32 %v656_v25, %v655_v43  ;;  %v504_v5 = vpop.xlane.xlu1 %503  ;;  %v12496_v41 = vld [vmem:[%s12978_s3 + $0x168] sm:$0xff]  ;;  %v18151_v43 = vmov 0  }
 0x157   : > { %18280 = vst [vmem:[#allocation25_spill] sm:$0xff] %v13352_v55  ;;  %18281 = vst [vmem:[#allocation26_spill] sm:$0xff] %v13355_v30  ;;  %724 = vadd.xlane.f32.xlu1 %v723_v31  ;;  %v756_v31 = vadd.f32 %v670_v50, %v669_v34  ;;  %v673_v62 = vmul.f32 %v13352_v55, %v13352_v55  ;;  %v674_v18 = vmul.f32 %v13355_v30, %v13355_v30  ;;  %v12495_v34 = vld [vmem:[%s12978_s3 + $0x160] sm:$0xff] }
 0x158   : > { %v744_v26 = vadd.f32 %v662_v40, %v661_v60  ;;  %v665_v29 = vmul.f32 %v13366_v13, %v13366_v13  ;;  %v13384_v50 = vsub.f32 %v12495_v34, %v549_v38  ;;  %v551_v23 = vmul.f32 0.00390625, %v504_v5  ;;  %10380 = vset.pattern.permute.xlu1 %v18151_v43  ;;  %v12497_v60 = vld [vmem:[%s12978_s3 + $0x180] sm:$0xff] }
 0x159   : > { %v762_v35 = vadd.f32 %v674_v18, %v673_v62 }
 0x15a   : > { %748 = vadd.xlane.f32.xlu0 %v747_v36  ;;  %v666_v36 = vmul.f32 %v13373_v32, %v13373_v32  ;;  %v13391_v40 = vsub.f32 %v12497_v60, %v551_v23  ;;  %v667_v18 = vmul.f32 %v13384_v50, %v13384_v50 }
 0x15b   : > { %730 = vadd.xlane.f32.xlu1 %v729_v24  ;;  %v13387_v24 = vsub.f32 %v12496_v41, %v549_v38 }
 0x15c   : > { %v750_v25 = vadd.f32 %v666_v36, %v665_v29  ;;  %18282 = vst [vmem:[#allocation27_spill] sm:$0xff] %v13391_v40  ;;  %v18155_v29 = vmov 1  }
 0x15d   : > { %v668_v38 = vmul.f32 %v13387_v24, %v13387_v24  ;;  %10381 = vset.pattern.permute.xlu0 %v18155_v29 }
 0x15e   : > { %757 = vadd.xlane.f32.xlu0 %v756_v31  ;;  %v12498_v31 = vld [vmem:[%s12978_s3 + $0x188] sm:$0xff] }
 0x15f   : > { %736 = vadd.xlane.f32.xlu1 %v735_v3  ;;  %v13394_v62 = vsub.f32 %v12498_v31, %v551_v23  ;;  %v753_v5 = vadd.f32 %v668_v38, %v667_v18  ;;  %v671_v3 = vmul.f32 %v13391_v40, %v13391_v40  ;;  %v18156_v18 = vlaneseq }
 0x162   : > { %763 = vadd.xlane.f32.xlu0 %v762_v35 }
 0x163   : > { %745 = vadd.xlane.f32.xlu1 %v744_v26  ;;  %v672_v26 = vmul.f32 %v13394_v62, %v13394_v62 }
 0x165   : > { %v759_v35 = vadd.f32 %v672_v26, %v671_v3  ;;  %v13406_v3 = vshrl.u32 %v18156_v18, 7 }
 0x167   : > { %751 = vadd.xlane.f32.xlu1 %v750_v25  ;;  %18283 = vst [vmem:[#allocation28_spill] sm:$0xff] %v13406_v3 }
 0x16b   : > { %754 = vadd.xlane.f32.xlu1 %v753_v5 }
 0x16f   : > { %760 = vadd.xlane.f32.xlu1 %v759_v35 }
 0x1b7   : > { %v695_v36 = vpop.xlane.xlu0 %694 }
 0x1b8   : > { %v689_v34 = vpop.xlane.xlu1 %688  ;;  %v785_v41 = vmul.f32 0.00390625, %v695_v36 }
 0x1b9   : > { %v783_v23 = vmul.f32 0.00390625, %v689_v34 }
 0x1ba   : > { %v817_v60 = vadd.f32 1e-05, %v785_v41 }
 0x1bb   : > { %v815_v31 = vadd.f32 1e-05, %v783_v23  ;;  %v13409_v23 = vsub.s32 1, %v13406_v3 }
 0x1bc   : > { %10867 = vrsqrt.f32 %v817_v60  ;;  %v692_v25 = vpop.xlane.xlu1 %691 }
 0x1bd   : > { %10869 = vrsqrt.f32 %v815_v31  ;;  %v784_v38 = vmul.f32 0.00390625, %v692_v25  ;;  %18284 = vst [vmem:[#allocation29_spill] sm:$0xff] %v13409_v23  ;;  %v943_v31 = vld [vmem:[%s18130_s2] sm:$0x3] }
 0x1bf   : > { %v816_v43 = vadd.f32 1e-05, %v784_v38  ;;  %v704_v55 = vpop.xlane.xlu0 %703 }
 0x1c0   : > { %v698_v40 = vpop.xlane.xlu1 %697  ;;  %v788_v5 = vmul.f32 0.00390625, %v704_v55 }
 0x1c1   : > { %10871 = vrsqrt.f32 %v816_v43  ;;  %v786_v26 = vmul.f32 0.00390625, %v698_v40 }
 0x1c2   : > { %v820_v29 = vadd.f32 1e-05, %v788_v5 }
 0x1c3   : > { %v818_v35 = vadd.f32 1e-05, %v786_v26  ;;  %v513_v36 = vpop.xlane.xlu0 %512  ;;  %v13423_v26 = vsub.s32 0, %v13406_v3 }
 0x1c4   : > { %v701_v34 = vpop.xlane.xlu1 %700  ;;  %v554_v41 = vmul.f32 0.00390625, %v513_v36 }
 0x1c5   : > { %10873 = vrsqrt.f32 %v818_v35  ;;  %v787_v60 = vmul.f32 0.00390625, %v701_v34  ;;  %18288 = vst [vmem:[#allocation33_spill] sm:$0xff] %v13423_v26 }
 0x1c6   : > { %v10868_v55 = vpop.eup %10867  ;;  %v13415_v25 = vsub.f32 %v13161_v14, %v554_v41  ;;  %v13418_v43 = vsub.f32 %v13164_v15, %v554_v41  ;;  %10875 = vrsqrt.f32 %v820_v29  ;;  %v13431_v15 = vrot.slane %v943_v31, %v13409_v23  ;;  %v1019_v41 = vld [vmem:[%s18130_s2 + $0x2] sm:$0x3] }
 0x1c7   : > { %v10870_v40 = vpop.eup %10869  ;;  %v819_v38 = vadd.f32 1e-05, %v787_v60  ;;  %v13420_v5 = vpop.xlane.xlu0 %518  ;;  %v884_v18 = vmul.f32 %v10868_v55, %v13108_v57 }
 0x1c8   : > { %18285 = vst [vmem:[#allocation30_spill] sm:$0xff] %v13415_v25  ;;  %18286 = vst [vmem:[#allocation31_spill] sm:$0xff] %v13418_v43  ;;  %v510_v35 = vpop.xlane.xlu1 %509  ;;  %v677_v36 = vmul.f32 %v13415_v25, %v13415_v25  ;;  %v678_v34 = vmul.f32 %v13418_v43, %v13418_v43  ;;  %v880_v14 = vmul.f32 %v10870_v40, %v13114_v59 }
 0x1c9   : > { %18287 = vst [vmem:[#allocation32_spill] sm:$0xff] %v13420_v5  ;;  %10877 = vrsqrt.f32 %v819_v38  ;;  %v553_v29 = vmul.f32 0.00390625, %v510_v35  ;;  %v13447_v38 = vrot.slane %v943_v31, %v13423_v26  ;;  %v879_v35 = vmul.f32 %v10870_v40, %v13111_v58 }
 0x1ca   : > { %v768_v60 = vadd.f32 %v678_v34, %v677_v36  ;;  %v956_v57 = vmul.f32 %v13431_v15, %v880_v14  ;;  %v13453_v34 = vrot.slane %v1019_v41, %v13409_v23  ;;  %v960_v40 = vmul.f32 %v13431_v15, %v884_v18 }
 0x1cb   : > { %v10872_v3 = vpop.eup %10871  ;;  %v13439_v25 = vsub.f32 %v13183_v51, %v553_v29  ;;  %v13442_v59 = vsub.f32 %v13186_v52, %v553_v29  ;;  %v13444_v43 = vpop.xlane.xlu0 %521 }
 0x1cc   : > { %18291 = vst [vmem:[#allocation36_spill] sm:$0xff] %v13444_v43  ;;  %v707_v5 = vpop.xlane.xlu1 %706  ;;  %769 = vadd.xlane.f32.xlu1 %v768_v60  ;;  %v882_v36 = vmul.f32 %v10872_v3, %v13134_v16  ;;  %v881_v31 = vmul.f32 %v10872_v3, %v13131_v11  ;;  %v13469_v43 = vrot.slane %v1019_v41, %v13423_v26 }
 0x1cd   : > { %18289 = vst [vmem:[#allocation34_spill] sm:$0xff] %v13439_v25  ;;  %18290 = vst [vmem:[#allocation35_spill] sm:$0xff] %v13442_v59  ;;  %v789_v51 = vmul.f32 0.00390625, %v707_v5  ;;  %v675_v58 = vmul.f32 %v13439_v25, %v13439_v25  ;;  %v676_v52 = vmul.f32 %v13442_v59, %v13442_v59  ;;  %v955_v5 = vmul.f32 %v13447_v38, %v879_v35 }
 0x1ce   : > { %v958_v16 = vmul.f32 %v13431_v15, %v882_v36  ;;  %v1032_v25 = vadd.f32 %v13453_v34, %v956_v57  ;;  %v957_v3 = vmul.f32 %v13447_v38, %v881_v31  ;;  %v1036_v35 = vadd.f32 %v13453_v34, %v960_v40 }
 0x1cf   : > { %v10874_v14 = vpop.eup %10873  ;;  %v821_v29 = vadd.f32 1e-05, %v789_v51  ;;  %v719_v60 = vpop.xlane.xlu0 %718  ;;  %v765_v23 = vadd.f32 %v676_v52, %v675_v58  ;;  %v883_v57 = vmul.f32 %v10868_v55, %v13105_v56  ;;  %v1031_v26 = vadd.f32 %v13469_v43, %v955_v5 }
 0x1d0   : > { %v710_v30 = vpop.xlane.xlu1 %709  ;;  %v1034_v59 = vadd.f32 %v13453_v34, %v958_v16  ;;  %v10876_v11 = vpop.eup %10875  ;;  %v886_v41 = vmul.f32 %v10874_v14, %v13128_v10  ;;  %v885_v51 = vmul.f32 %v10874_v14, %v13125_v7  ;;  %v793_v5 = vmul.f32 0.00390625, %v719_v60 }
 0x1d1   : > { %10879 = vrsqrt.f32 %v821_v29  ;;  %v790_v18 = vmul.f32 0.00390625, %v710_v30  ;;  %766 = vadd.xlane.f32.xlu0 %v765_v23  ;;  %v1033_v30 = vadd.f32 %v13469_v43, %v957_v3  ;;  %v890_v56 = vmul.f32 %v10876_v11, %v13144_v9 }
 0x1d2   : > { %v2472_v36 = vpack.c.bf16 %v1034_v59, %v1032_v25  ;;  %v962_v23 = vmul.f32 %v13431_v15, %v886_v41  ;;  %v961_v25 = vmul.f32 %v13447_v38, %v885_v51  ;;  %v959_v14 = vmul.f32 %v13447_v38, %v883_v57 }
 0x1d3   : > { %v10878_v58 = vpop.eup %10877  ;;  %v822_v52 = vadd.f32 1e-05, %v790_v18  ;;  %v722_v16 = vpop.xlane.xlu0 %721  ;;  %v2471_v55 = vpack.c.bf16 %v1033_v30, %v1031_v26  ;;  %v966_v60 = vmul.f32 %v13431_v15, %v890_v56  ;;  %v825_v30 = vadd.f32 1e-05, %v793_v5 }
 0x1d4   : > { %2963 = vmatprep.mubr.bf16.mxu1 %v2472_v36  ;;  %v516_v31 = vpop.xlane.xlu1 %515  ;;  %v794_v10 = vmul.f32 0.00390625, %v722_v16  ;;  %v888_v59 = vmul.f32 %v10878_v58, %v13152_v28  ;;  %v1038_v40 = vadd.f32 %v13453_v34, %v962_v23  ;;  %v1037_v41 = vadd.f32 %v13469_v43, %v961_v25 }
 0x1d5   : > { %10881 = vrsqrt.f32 %v822_v52  ;;  %v555_v7 = vmul.f32 0.00390625, %v516_v31  ;;  %2964 = vmatmul.mubr.bf16.vlgmr.msra.gmra.mrb[0].mxu1 %v2471_v55  ;;  %v1035_v57 = vadd.f32 %v13469_v43, %v959_v14  ;;  %v13516_v52 = vld [vmem:[%s13504_s29] sm:$0xff]  ;;  %v13524_v14 = vld [vmem:[%s13504_s29 + $0x8] sm:$0xff] }
 0x1d6   : > { %v964_v29 = vmul.f32 %v13431_v15, %v888_v59  ;;  %v2476_v28 = vpack.c.bf16 %v1038_v40, %v1036_v35  ;;  %v826_v9 = vadd.f32 1e-05, %v794_v10  ;;  %v887_v35 = vmul.f32 %v10878_v58, %v13149_v27 }
 0x1d7   : > { %v13496_v18 = vsub.f32 %v13233_v44, %v555_v7  ;;  %v13499_v3 = vsub.f32 %v13236_v45, %v555_v7  ;;  %v889_v10 = vmul.f32 %v10876_v11, %v13141_v8  ;;  %v728_v25 = vpop.xlane.xlu0 %727  ;;  %v2475_v56 = vpack.c.bf16 %v1037_v41, %v1035_v57 }
 0x1d8   : > { %v713_v26 = vpop.xlane.xlu1 %712  ;;  %2973 = vmatprep.mubr.bf16.mxu1 %v2476_v28  ;;  %v1040_v51 = vadd.f32 %v13453_v34, %v964_v29  ;;  %10883 = vrsqrt.f32 %v826_v9  ;;  %v1042_v7 = vadd.f32 %v13453_v34, %v966_v60  ;;  %v963_v58 = vmul.f32 %v13447_v38, %v887_v35  ;;  %v13535_v60 = vld [vmem:[%s13504_s29 + $0x10] sm:$0xff] }
 0x1d9   : > { %v791_v36 = vmul.f32 0.00390625, %v713_v26  ;;  %v679_v44 = vmul.f32 %v13496_v18, %v13496_v18  ;;  %v680_v45 = vmul.f32 %v13499_v3, %v13499_v3  ;;  %v796_v11 = vmul.f32 0.00390625, %v728_v25 }
 0x1da   : > { %v2480_v40 = vpack.c.bf16 %v1042_v7, %v1040_v51  ;;  %v965_v5 = vmul.f32 %v13447_v38, %v889_v10 }
 0x1db   : > { %v10880_v16 = vpop.eup %10879  ;;  %v823_v23 = vadd.f32 1e-05, %v791_v36  ;;  %v771_v31 = vadd.f32 %v680_v45, %v679_v44  ;;  %v828_v45 = vadd.f32 1e-05, %v796_v11 }
 0x1dc   : > { %v716_v59 = vpop.xlane.xlu1 %715  ;;  %v892_v55 = vmul.f32 %v10880_v16, %v13178_v47  ;;  %v1039_v47 = vadd.f32 %v13469_v43, %v963_v58  ;;  %v891_v44 = vmul.f32 %v10880_v16, %v13175_v46  ;;  %v1041_v35 = vadd.f32 %v13469_v43, %v965_v5  ;;  %v13554_v5 = vld [vmem:[%s13504_s29 + $0x20] sm:$0xff] }
 0x1dd   : > { %10885 = vrsqrt.f32 %v823_v23  ;;  %v792_v27 = vmul.f32 0.00390625, %v716_v59  ;;  %772 = vadd.xlane.f32.xlu0 %v771_v31  ;;  %1130 = vperm.xlu1 %10380, %v13516_v52   ;;  %v13545_v59 = vld [vmem:[%s13504_s29 + $0x18] sm:$0xff] }
 0x1de   : > { %10887 = vrsqrt.f32 %v825_v30  ;;  %2974 = vmatmul.mubr.bf16.gmra.mrb[4].mxu1 %v2475_v56  ;;  %v968_v26 = vmul.f32 %v13431_v15, %v892_v55  ;;  %v967_v46 = vmul.f32 %v13447_v38, %v891_v44 }
 0x1df   : > { %v10882_v8 = vpop.eup %10881  ;;  %v824_v29 = vadd.f32 1e-05, %v792_v27  ;;  %2983 = vmatprep.mubr.bf16.mxu1 %v2480_v40 }
 0x1e0   : > { %v13527_v28 = vpop.xlane.xlu1 %524  ;;  %v894_v9 = vmul.f32 %v10882_v8, %v13192_v20  ;;  %v893_v41 = vmul.f32 %v10882_v8, %v13189_v54  ;;  %v734_v20 = vpop.xlane.xlu0 %733  ;;  %v1044_v51 = vadd.f32 %v13453_v34, %v968_v26  ;;  %v2479_v54 = vpack.c.bf16 %v1041_v35, %v1039_v47 }
 0x1e1   : > { %10889 = vrsqrt.f32 %v824_v29  ;;  %1135 = vperm.xlu1 %10380, %v13524_v14   ;;  %v798_v56 = vmul.f32 0.00390625, %v734_v20  ;;  %v1043_v29 = vadd.f32 %v13469_v43, %v967_v46 }
 0x1e2   : > { %v970_v36 = vmul.f32 %v13431_v15, %v894_v9  ;;  %v969_v23 = vmul.f32 %v13447_v38, %v893_v41  ;;  %v10884_v10 = vpop.eup %10883  ;;  %10891 = vrsqrt.f32 %v828_v45 }
 0x1e3   : > { %v902_v9 = vmul.f32 %v10884_v10, %v13212_v22  ;;  %v830_v47 = vadd.f32 1e-05, %v798_v56 }
 0x1e4   : > { %v725_v57 = vpop.xlane.xlu1 %724  ;;  %v1046_v30 = vadd.f32 %v13453_v34, %v970_v36  ;;  %v1045_v58 = vadd.f32 %v13469_v43, %v969_v23  ;;  %v740_v36 = vpop.xlane.xlu0 %739 }
 0x1e5   : > { %v795_v31 = vmul.f32 0.00390625, %v725_v57  ;;  %1140 = vperm.xlu1 %10380, %v13535_v60   ;;  %v978_v23 = vmul.f32 %v13431_v15, %v902_v9 }
 0x1e6   : > { %v2484_v25 = vpack.c.bf16 %v1046_v30, %v1044_v51  ;;  %2984 = vmatmul.mubr.bf16.gmra.mrb[8].mxu1 %v2479_v54  ;;  %v13564_v51 = vld [vmem:[%s13504_s29 + $0x30] sm:$0xff] }
 0x1e7   : > { %v10886_v16 = vpop.eup %10885  ;;  %v827_v7 = vadd.f32 1e-05, %v795_v31 }
 0x1e8   : > { %v731_v27 = vpop.xlane.xlu1 %730  ;;  %2993 = vmatprep.mubr.bf16.mxu1 %v2484_v25  ;;  %v896_v55 = vmul.f32 %v10886_v16, %v13242_v53  ;;  %v10888_v40 = vpop.eup %10887  ;;  %v895_v11 = vmul.f32 %v10886_v16, %v13239_v49  ;;  %v2483_v53 = vpack.c.bf16 %v1045_v58, %v1043_v29 }
 0x1e9   : > { %10893 = vrsqrt.f32 %v827_v7  ;;  %v797_v8 = vmul.f32 0.00390625, %v731_v27  ;;  %1145 = vperm.xlu1 %10380, %v13545_v59   ;;  %v900_v20 = vmul.f32 %v10888_v40, %v13206_v4  ;;  %v901_v7 = vmul.f32 %v10884_v10, %v13209_v17 }
 0x1ea   : > { %v972_v35 = vmul.f32 %v13431_v15, %v896_v55  ;;  %v971_v22 = vmul.f32 %v13447_v38, %v895_v11  ;;  %v1102_v55 = vld [vmem:[%s13504_s29 + $0x38] sm:$0xff] }
 0x1eb   : > { %v10890_v26 = vpop.eup %10889  ;;  %v829_v41 = vadd.f32 1e-05, %v797_v8  ;;  %v1054_v8 = vadd.f32 %v13453_v34, %v978_v23 }
 0x1ec   : > { %v737_v44 = vpop.xlane.xlu1 %736  ;;  %v898_v45 = vmul.f32 %v10890_v26, %v13263_v6  ;;  %v897_v57 = vmul.f32 %v10890_v26, %v13260_v33  ;;  %v800_v6 = vmul.f32 0.00390625, %v740_v36  ;;  %v1048_v31 = vadd.f32 %v13453_v34, %v972_v35  ;;  %v10892_v25 = vpop.eup %10891 }
 0x1ed   : > { %10895 = vrsqrt.f32 %v829_v41  ;;  %v799_v49 = vmul.f32 0.00390625, %v737_v44  ;;  %1150 = vperm.xlu1 %10380, %v13554_v5   ;;  %v976_v33 = vmul.f32 %v13431_v15, %v900_v20  ;;  %v1047_v16 = vadd.f32 %v13469_v43, %v971_v22 }
 0x1ee   : > { %v974_v30 = vmul.f32 %v13431_v15, %v898_v45  ;;  %10897 = vrsqrt.f32 %v830_v47  ;;  %2994 = vmatmul.mubr.bf16.gmra.mrb[12].mxu1 %v2483_v53  ;;  %v973_v4 = vmul.f32 %v13447_v38, %v897_v57  ;;  %v832_v29 = vadd.f32 1e-05, %v800_v6  ;;  %v743_v47 = vpop.xlane.xlu0 %742  ;;  %v13585_v45 = vld [vmem:[%s13504_s29 + $0x40] sm:$0xff] }
 0x1ef   : > { %v831_v46 = vadd.f32 1e-05, %v799_v49  ;;  %v899_v26 = vmul.f32 %v10888_v40, %v13203_v2  ;;  %v1052_v41 = vadd.f32 %v13453_v34, %v976_v33  ;;  %v906_v17 = vmul.f32 %v10892_v25, %v13230_v39 }
 0x1f0   : > { %v1050_v54 = vadd.f32 %v13453_v34, %v974_v30  ;;  %v1049_v56 = vadd.f32 %v13469_v43, %v973_v4  ;;  %v746_v27 = vpop.xlane.xlu1 %745  ;;  %v977_v44 = vmul.f32 %v13447_v38, %v901_v7  ;;  %v801_v40 = vmul.f32 0.00390625, %v743_v47  ;;  %v13595_v30 = vld [vmem:[%s13504_s29 + $0x48] sm:$0xff] }
 0x1f1   : > { %1160 = vperm.xlu1 %10380, %v13564_v51   ;;  %10899 = vrsqrt.f32 %v831_v46  ;;  %v802_v10 = vmul.f32 0.00390625, %v746_v27  ;;  %v2492_v53 = vpack.c.bf16 %v1054_v8, %v1052_v41  ;;  %v982_v39 = vmul.f32 %v13431_v15, %v906_v17  ;;  %v13607_v27 = vld [vmem:[%s13504_s29 + $0x50] sm:$0xff] }
 0x1f2   : > { %v2488_v58 = vpack.c.bf16 %v1050_v54, %v1048_v31  ;;  %v2487_v9 = vpack.c.bf16 %v1049_v56, %v1047_v16  ;;  %10901 = vrsqrt.f32 %v832_v29  ;;  %v1053_v49 = vadd.f32 %v13469_v43, %v977_v44  ;;  %v749_v33 = vpop.xlane.xlu0 %748 }
 0x1f3   : > { %v10894_v11 = vpop.eup %10893  ;;  %1591 = vperm.xlu0 %10381, %v13516_v52   ;;  %v834_v20 = vadd.f32 1e-05, %v802_v10  ;;  %v833_v4 = vadd.f32 1e-05, %v801_v40  ;;  %v905_v54 = vmul.f32 %v10892_v25, %v13227_v37  ;;  %v1058_v46 = vadd.f32 %v13453_v34, %v982_v39  ;;  %v13612_v25 = vld [vmem:[%s13504_s29 + $0x58] sm:$0xff]  ;;  %v18293_v40 = vld [vmem:[#allocation17_spill] sm:$0xff] }
 0x1f4   : > { %3003 = vmatprep.mubr.bf16.mxu1 %v2488_v58  ;;  %v904_v36 = vmul.f32 %v10894_v11, %v13289_v42  ;;  %v975_v42 = vmul.f32 %v13447_v38, %v899_v26  ;;  %v903_v57 = vmul.f32 %v10894_v11, %v13286_v1  ;;  %v752_v22 = vpop.xlane.xlu1 %751  ;;  %v803_v37 = vmul.f32 0.00390625, %v749_v33 }
 0x1f5   : > { %1165 = vperm.xlu1 %10380, %v1102_v55   ;;  %10903 = vrsqrt.f32 %v834_v20  ;;  %v804_v16 = vmul.f32 0.00390625, %v752_v22  ;;  %v13631_v20 = vld [vmem:[%s13504_s29 + $0x60] sm:$0xff]  ;;  %v13637_v22 = vld [vmem:[%s13504_s29 + $0x98] sm:$0xff] }
 0x1f6   : > { %v980_v52 = vmul.f32 %v13431_v15, %v904_v36  ;;  %3004 = vmatmul.mubr.bf16.gmra.mrb[16].mxu1 %v2487_v9  ;;  %v1051_v31 = vadd.f32 %v13469_v43, %v975_v42  ;;  %10905 = vrsqrt.f32 %v833_v4  ;;  %v835_v36 = vadd.f32 1e-05, %v803_v37  ;;  %v758_v44 = vpop.xlane.xlu0 %757 }
 0x1f7   : > { %v10896_v2 = vpop.eup %10895  ;;  %1603 = vperm.xlu0 %10381, %v13545_v59   ;;  %3013 = vmatprep.mubr.bf16.mxu1 %v2492_v53  ;;  %v836_v29 = vadd.f32 1e-05, %v804_v16 }
 0x1f8   : > { %v10898_v35 = vpop.eup %10897  ;;  %v1056_v23 = vadd.f32 %v13453_v34, %v980_v52  ;;  %v908_v6 = vmul.f32 %v10896_v2, %v13321_v48  ;;  %v2491_v56 = vpack.c.bf16 %v1053_v49, %v1051_v31  ;;  %v979_v48 = vmul.f32 %v13447_v38, %v903_v57  ;;  %v755_v47 = vpop.xlane.xlu1 %754  ;;  %v13625_v52 = vld [vmem:[%s13504_s29 + $0x70] sm:$0xff] }
 0x1f9   : > { %1170 = vperm.xlu1 %10380, %v13585_v45   ;;  %v910_v1 = vmul.f32 %v10898_v35, %v13249_v0  ;;  %v981_v0 = vmul.f32 %v13447_v38, %v905_v54  ;;  %v907_v26 = vmul.f32 %v10896_v2, %v13308_v19  ;;  %v909_v10 = vmul.f32 %v10898_v35, %v13246_v63 }
 0x1fa   : > { %v2496_v7 = vpack.c.bf16 %v1058_v46, %v1056_v23  ;;  %v1055_v9 = vadd.f32 %v13469_v43, %v979_v48  ;;  %10907 = vrsqrt.f32 %v836_v29  ;;  %v805_v2 = vmul.f32 0.00390625, %v755_v47  ;;  %v13644_v46 = vld [vmem:[%s13504_s29 + $0x68] sm:$0xff]  ;;  %v764_v37 = vpop.xlane.xlu0 %763 }
 0x1fb   : > { %1607 = vperm.xlu0 %10381, %v13554_v5   ;;  %v984_v5 = vmul.f32 %v13431_v15, %v908_v6  ;;  %v10900_v58 = vpop.eup %10899  ;;  %v986_v8 = vmul.f32 %v13431_v15, %v910_v1  ;;  %v1057_v17 = vadd.f32 %v13469_v43, %v981_v0  ;;  %10909 = vrsqrt.f32 %v835_v36  ;;  %v13662_v36 = vld [vmem:[%s13504_s29 + $0xd8] sm:$0xff] }
 0x1fc   : > { %v10902_v11 = vpop.eup %10901  ;;  %v806_v49 = vmul.f32 0.00390625, %v758_v44  ;;  %v985_v57 = vmul.f32 %v13447_v38, %v909_v10  ;;  %v837_v4 = vadd.f32 1e-05, %v805_v2  ;;  %v911_v54 = vmul.f32 %v10900_v58, %v13338_v61  ;;  %v761_v33 = vpop.xlane.xlu1 %760  ;;  %v18295_v61 = vld [vmem:[#allocation19_spill] sm:$0xff]  ;;  %v13669_v2 = vld [vmem:[%s13504_s29 + $0x80] sm:$0xff] }
 0x1fd   : > { %1175 = vperm.xlu1 %10380, %v13595_v30   ;;  %v1060_v41 = vadd.f32 %v13453_v34, %v984_v5  ;;  %v1062_v53 = vadd.f32 %v13453_v34, %v986_v8  ;;  %v914_v19 = vmul.f32 %v10902_v11, %v18293_v40  ;;  %v2495_v42 = vpack.c.bf16 %v1057_v17, %v1055_v9  ;;  %v13653_v8 = vld [vmem:[%s13504_s29 + $0xb0] sm:$0xff]  ;;  %v18296_v40 = vld [vmem:[#allocation24_spill] sm:$0xff] }
 0x1fe   : > { %3014 = vmatmul.mubr.bf16.gmra.mrb[20].mxu1 %v2491_v56  ;;  %v838_v56 = vadd.f32 1e-05, %v806_v49  ;;  %v1061_v48 = vadd.f32 %v13469_v43, %v985_v57  ;;  %10911 = vrsqrt.f32 %v837_v4  ;;  %v807_v29 = vmul.f32 0.00390625, %v761_v33  ;;  %v18297_v49 = vld [vmem:[#allocation18_spill] sm:$0xff] }
 0x1ff   : > { %1619 = vperm.xlu0 %10381, %v1102_v55   ;;  %3023 = vmatprep.mubr.bf16.mxu1 %v2496_v7  ;;  %v912_v55 = vmul.f32 %v10900_v58, %v13341_v21  ;;  %v983_v21 = vmul.f32 %v13447_v38, %v907_v26  ;;  %v2500_v39 = vpack.c.bf16 %v1062_v53, %v1060_v41  ;;  %v10904_v35 = vpop.eup %10903  ;;  %v18294_v7 = vld [vmem:[#allocation16_spill] sm:$0xff]  ;;  %v808_v41 = vmul.f32 0.00390625, %v764_v37  ;;  %v13678_v4 = vld [vmem:[%s13504_s29 + $0xf0] sm:$0xff] }
 0x200   : > { %v990_v23 = vmul.f32 %v13431_v15, %v914_v19  ;;  %v10906_v6 = vpop.eup %10905  ;;  %v918_v16 = vmul.f32 %v10904_v35, %v13349_v12  ;;  %v913_v5 = vmul.f32 %v10902_v11, %v18294_v7  ;;  %v987_v12 = vmul.f32 %v13447_v38, %v911_v54 }
 0x201   : > { %1180 = vperm.xlu1 %10380, %v13607_v27   ;;  %v988_v63 = vmul.f32 %v13431_v15, %v912_v55  ;;  %v1059_v31 = vadd.f32 %v13469_v43, %v983_v21  ;;  %v916_v58 = vmul.f32 %v10906_v6, %v18295_v61  ;;  %10913 = vrsqrt.f32 %v838_v56  ;;  %v13697_v61 = vld [vmem:[%s13504_s29 + $0x90] sm:$0xff] }
 0x202   : > { %v1066_v0 = vadd.f32 %v13453_v34, %v990_v23  ;;  %v994_v47 = vmul.f32 %v13431_v15, %v918_v16  ;;  %v989_v55 = vmul.f32 %v13447_v38, %v913_v5  ;;  %v839_v44 = vadd.f32 1e-05, %v807_v29  ;;  %v13692_v5 = vld [vmem:[%s13504_s29 + $0x28] sm:$0xff] }
 0x203   : > { %1635 = vperm.xlu0 %10381, %v13612_v25   ;;  %v1064_v1 = vadd.f32 %v13453_v34, %v988_v63  ;;  %v2499_v9 = vpack.c.bf16 %v1061_v48, %v1059_v31  ;;  %v992_v17 = vmul.f32 %v13431_v15, %v916_v58  ;;  %v1063_v53 = vadd.f32 %v13469_v43, %v987_v12  ;;  %v18298_v31 = vld [vmem:[#allocation21_spill] sm:$0xff] }
 0x204   : > { %v10908_v11 = vpop.eup %10907  ;;  %v917_v19 = vmul.f32 %v10904_v35, %v18296_v40  ;;  %v1065_v63 = vadd.f32 %v13469_v43, %v989_v55  ;;  %v915_v57 = vmul.f32 %v10906_v6, %v18297_v49  ;;  %10915 = vrsqrt.f32 %v839_v44  ;;  %v18301_v55 = vld [vmem:[#allocation23_spill] sm:$0xff]  ;;  %v13723_v49 = vld [vmem:[%s13504_s29 + $0xa0] sm:$0xff] }
 0x205   : > { %1185 = vperm.xlu1 %10380, %v13612_v25   ;;  %v2504_v26 = vpack.c.bf16 %v1066_v0, %v1064_v1  ;;  %v10910_v10 = vpop.eup %10909  ;;  %v922_v21 = vmul.f32 %v10908_v11, %v13373_v32  ;;  %v1068_v23 = vadd.f32 %v13453_v34, %v992_v17  ;;  %v13684_v1 = vld [vmem:[%s13504_s29 + $0x88] sm:$0xff]  ;;  %v921_v0 = vmul.f32 %v10908_v11, %v13366_v13  ;;  %v13709_v11 = vld [vmem:[%s13504_s29 + $0x78] sm:$0xff] }
 0x206   : > { %3024 = vmatmul.mubr.bf16.gmra.mrb[24].mxu1 %v2495_v42  ;;  %v1070_v42 = vadd.f32 %v13453_v34, %v994_v47  ;;  %v920_v35 = vmul.f32 %v10910_v10, %v18298_v31  ;;  %v2503_v54 = vpack.c.bf16 %v1065_v63, %v1063_v53  ;;  %v993_v32 = vmul.f32 %v13447_v38, %v917_v19 }
 0x207   : > { %1647 = vperm.xlu0 %10381, %v13625_v52   ;;  %3033 = vmatprep.mubr.bf16.mxu1 %v2500_v39  ;;  %v840_v39 = vadd.f32 1e-05, %v808_v41  ;;  %v998_v16 = vmul.f32 %v13431_v15, %v922_v21  ;;  %v991_v56 = vmul.f32 %v13447_v38, %v915_v57  ;;  %v13718_v21 = vld [vmem:[%s13504_s29 + $0xb8] sm:$0xff] }
 0x208   : > { %v2508_v33 = vpack.c.bf16 %v1070_v42, %v1068_v23  ;;  %v10912_v6 = vpop.eup %10911  ;;  %v996_v48 = vmul.f32 %v13431_v15, %v920_v35  ;;  %v1069_v37 = vadd.f32 %v13469_v43, %v993_v32  ;;  %v18302_v35 = vld [vmem:[#allocation22_spill] sm:$0xff] }
 0x209   : > { %1190 = vperm.xlu1 %10380, %v13631_v20   ;;  %10917 = vrsqrt.f32 %v840_v39  ;;  %v1074_v58 = vadd.f32 %v13453_v34, %v998_v16  ;;  %v924_v29 = vmul.f32 %v10912_v6, %v13387_v24  ;;  %v1067_v12 = vadd.f32 %v13469_v43, %v991_v56 }
 0x20a   : > { %v1072_v41 = vadd.f32 %v13453_v34, %v996_v48  ;;  %v997_v24 = vmul.f32 %v13447_v38, %v921_v0  ;;  %v923_v63 = vmul.f32 %v10912_v6, %v13384_v50  ;;  %v13734_v50 = vld [vmem:[%s13504_s29 + $0xf8] sm:$0xff] }
 0x20b   : > { %1667 = vperm.xlu0 %10381, %v13637_v22   ;;  %v10914_v7 = vpop.eup %10913  ;;  %v2507_v13 = vpack.c.bf16 %v1069_v37, %v1067_v12  ;;  %v1000_v53 = vmul.f32 %v13431_v15, %v924_v29  ;;  %v13738_v37 = vld [vmem:[%s13504_s29 + $0xa8] sm:$0xff]  ;;  %v18304_v12 = vld [vmem:[#allocation27_spill] sm:$0xff] }
 0x20c   : > { %v926_v17 = vmul.f32 %v10914_v7, %v18301_v55  ;;  %v2512_v44 = vpack.c.bf16 %v1074_v58, %v1072_v41  ;;  %v1073_v39 = vadd.f32 %v13469_v43, %v997_v24  ;;  %v999_v6 = vmul.f32 %v13447_v38, %v923_v63  ;;  %v18305_v55 = vld [vmem:[#allocation25_spill] sm:$0xff] }
 0x20d   : > { %1195 = vperm.xlu1 %10380, %v13644_v46   ;;  %v1076_v57 = vadd.f32 %v13453_v34, %v1000_v53  ;;  %v2023_v58 = vsub.f32 1.0, %v13524_v14  ;;  %v2024_v53 = vsub.f32 1.0, %v13535_v60  ;;  %v13763_v63 = vld [vmem:[%s13504_s29 + $0xc8] sm:$0xff] }
 0x20e   : > { %3034 = vmatmul.mubr.bf16.gmra.mrb[28].mxu1 %v2499_v9  ;;  %v18299_v9 = vmov 0   ;;  %v10916_v40 = vpop.eup %10915  ;;  %v1002_v19 = vmul.f32 %v13431_v15, %v926_v17  ;;  %v1075_v29 = vadd.f32 %v13469_v43, %v999_v6  ;;  %v2036_v6 = vsub.f32 1.0, %v13625_v52 }
 0x20f   : > { %1679 = vperm.xlu0 %10381, %v13653_v8   ;;  %3043 = vmatprep.mubr.bf16.mxu1 %v2504_v26  ;;  %v18300_v26 = vld [vmem:[#allocation20_spill] sm:$0xff]  ;;  %v928_v23 = vmul.f32 %v10916_v40, %v13394_v62 }
 0x210   : > { %v919_v47 = vmul.f32 %v10910_v10, %v18300_v26  ;;  %v1078_v32 = vadd.f32 %v13453_v34, %v1002_v19  ;;  %v927_v26 = vmul.f32 %v10916_v40, %v18304_v12  ;;  %v13757_v19 = vld [vmem:[%s13504_s29 + $0xc0] sm:$0xff]  ;;  %v12499_v12 = vld [vmem:[%s12978_s3 + $0x1d0] sm:$0xff] }
 0x211   : > { %1200 = vperm.xlu1 %10380, %v13625_v52   ;;  %v1004_v62 = vmul.f32 %v13431_v15, %v928_v23 }
 0x212   : > { %v995_v10 = vmul.f32 %v13447_v38, %v919_v47  ;;  %v2516_v48 = vpack.c.bf16 %v1078_v32, %v1076_v57  ;;  %v1003_v40 = vmul.f32 %v13447_v38, %v927_v26  ;;  %v2030_v32 = vsub.f32 1.0, %v13585_v45 }
 0x213   : > { %1699 = vperm.xlu0 %10381, %v13662_v36   ;;  %v10918_v42 = vpop.eup %10917  ;;  %v1080_v47 = vadd.f32 %v13453_v34, %v1004_v62  ;;  %v18307_v62 = vld [vmem:[#allocation32_spill] sm:$0xff] }
 0x214   : > { %v1071_v31 = vadd.f32 %v13469_v43, %v995_v10  ;;  %v929_v17 = vmul.f32 %v10918_v42, %v18305_v55 }
 0x215   : > { %1210 = vperm.xlu1 %10380, %v13669_v2  }
 0x216   : > { %3044 = vmatmul.mubr.bf16.gmra.mrb[32].mxu1 %v2503_v54  ;;  %v925_v54 = vmul.f32 %v10914_v7, %v18302_v35  ;;  %v2511_v56 = vpack.c.bf16 %v1073_v39, %v1071_v31  ;;  %v1079_v39 = vadd.f32 %v13469_v43, %v1003_v40  ;;  %v2027_v31 = vsub.f32 1.0, %v13692_v5  ;;  %v13770_v35 = vld [vmem:[%s13504_s29 + $0xd0] sm:$0xff] }
 0x217   : > { %1711 = vperm.xlu0 %10381, %v13678_v4   ;;  %3053 = vmatprep.mubr.bf16.mxu1 %v2508_v33  ;;  %v18303_v33 = vld [vmem:[#allocation26_spill] sm:$0xff] }
 0x218   : > { %v930_v16 = vmul.f32 %v10918_v42, %v18303_v33  ;;  %v1001_v7 = vmul.f32 %v13447_v38, %v925_v54  ;;  %v1005_v42 = vmul.f32 %v13447_v38, %v929_v17  ;;  %v2028_v54 = vsub.f32 1.0, %v13564_v51 }
 0x219   : > { %1215 = vperm.xlu1 %10380, %v13684_v1   ;;  %v2032_v33 = vsub.f32 1.0, %v13607_v27 }
 0x21a   : > { %v1006_v0 = vmul.f32 %v13431_v15, %v930_v16  ;;  %v1077_v41 = vadd.f32 %v13469_v43, %v1001_v7  ;;  %v1081_v57 = vadd.f32 %v13469_v43, %v1005_v42  ;;  %v13782_v16 = vld [vmem:[%s13504_s29 + $0xe8] sm:$0xff]  ;;  %v556_v7 = vmul.f32 0.00390625, %v18307_v62 }
 0x21b   : > { %10383 = vset.pattern.permute.xlu0 %v18299_v9 }
 0x21c   : > { %1155 = vperm.xlu0 %10383, %v13692_v5   ;;  %v1082_v24 = vadd.f32 %v13453_v34, %v1006_v0  ;;  %v2519_v23 = vpack.c.bf16 %v1081_v57, %v1079_v39  ;;  %v13794_v26 = vsub.f32 %v12499_v12, %v556_v7  ;;  %v2044_v39 = vsub.f32 1.0, %v13653_v8 }
 0x21d   : > { %1220 = vperm.xlu1 %10380, %v13697_v61  }
 0x21e   : > { %3054 = vmatmul.mubr.bf16.gmra.mrb[36].mxu1 %v2507_v13  ;;  %v18168_v13 = vmov 2   ;;  %v2520_v10 = vpack.c.bf16 %v1082_v24, %v1080_v47  ;;  %v12500_v47 = vld [vmem:[%s12978_s3 + $0x1d8] sm:$0xff]  ;;  %v681_v24 = vmul.f32 %v13794_v26, %v13794_v26 }
 0x21f   : > { %3063 = vmatprep.mubr.bf16.mxu1 %v2512_v44  ;;  %v2515_v44 = vpack.c.bf16 %v1077_v41, %v1075_v29  ;;  %v13797_v41 = vsub.f32 %v12500_v47, %v556_v7 }
 0x220   : > { %1205 = vperm.xlu0 %10383, %v13709_v11  }
 0x221   : > { %1225 = vperm.xlu1 %10380, %v13637_v22  }
 0x224   : > { %1245 = vperm.xlu0 %10383, %v13718_v21  }
 0x225   : > { %1230 = vperm.xlu1 %10380, %v13723_v49  }
 0x226   : > { %3064 = vmatmul.mubr.bf16.gmra.mrb[40].mxu1 %v2511_v56  ;;  %v18306_v56 = vmov 1  }
 0x227   : > { %3073 = vmatprep.mubr.bf16.mxu1 %v2516_v48  ;;  %v2038_v48 = vsub.f32 1.0, %v13669_v2 }
 0x228   : > { %1285 = vperm.xlu0 %10383, %v13734_v50  }
 0x229   : > { %1235 = vperm.xlu1 %10380, %v13738_v37  }
 0x22c   : > { %10385 = vset.pattern.permute.xlu0 %v18168_v13 }
 0x22d   : > { %2061 = vperm.xlu0 %10385, %v2023_v58   ;;  %1240 = vperm.xlu1 %10380, %v13653_v8   ;;  %v2040_v58 = vsub.f32 1.0, %v13697_v61 }
 0x22e   : > { %3074 = vmatmul.mubr.bf16.gmra.mrb[44].mxu1 %v2515_v44  ;;  %v682_v44 = vmul.f32 %v13797_v41, %v13797_v41 }
 0x22f   : > { %3083 = vmatprep.mubr.bf16.mxu1 %v2520_v10  ;;  %v2042_v10 = vsub.f32 1.0, %v13723_v49 }
 0x230   : > { %v774_v57 = vadd.f32 %v682_v44, %v681_v24 }
 0x231   : > { %2066 = vperm.xlu0 %10385, %v2024_v53   ;;  %1250 = vperm.xlu1 %10380, %v13757_v19  }
 0x235   : > { %2260 = vperm.xlu0 %10385, %v13545_v59   ;;  %1255 = vperm.xlu1 %10380, %v13763_v63   ;;  %v13777_v59 = vld [vmem:[%s13504_s29 + $0xe0] sm:$0xff] }
 0x236   : > { %3084 = vmatmul.mubr.bf16.gmra.mrb[48].mxu1 %v2519_v23 }
 0x239   : > { %2081 = vperm.xlu0 %10385, %v2027_v31   ;;  %1260 = vperm.xlu1 %10380, %v13770_v35  }
 0x23d   : > { %2086 = vperm.xlu0 %10385, %v2028_v54   ;;  %1265 = vperm.xlu1 %10380, %v13662_v36   ;;  %v2034_v36 = vsub.f32 1.0, %v13631_v20  ;;  %v18308_v54 = vld [vmem:[#allocation31_spill] sm:$0xff] }
 0x241   : > { %2096 = vperm.xlu0 %10385, %v2030_v32   ;;  %1270 = vperm.xlu1 %10380, %v13777_v59  }
 0x245   : > { %2106 = vperm.xlu0 %10385, %v2032_v33   ;;  %1275 = vperm.xlu1 %10380, %v13782_v16   ;;  %v18309_v33 = vld [vmem:[#allocation30_spill] sm:$0xff] }
 0x249   : > { %2292 = vperm.xlu0 %10385, %v13612_v25   ;;  %10382 = vset.pattern.permute.xlu1 %v18306_v56 }
 0x24d   : > { %2116 = vperm.xlu0 %10385, %v2034_v36  }
 0x251   : > { %2126 = vperm.xlu0 %10385, %v2036_v6  }
 0x255   : > { %2304 = vperm.xlu0 %10385, %v13625_v52  }
 0x259   : > { %2136 = vperm.xlu0 %10385, %v2038_v48   ;;  %v770_v0 = vpop.xlane.xlu1 %769  ;;  %v18310_v48 = vld [vmem:[#allocation35_spill] sm:$0xff] }
 0x25a   : > { %v810_v25 = vmul.f32 0.00390625, %v770_v0  ;;  %v18311_v0 = vld [vmem:[#allocation34_spill] sm:$0xff] }
 0x25c   : > { %v842_v29 = vadd.f32 1e-05, %v810_v25 }
 0x25d   : > { %2146 = vperm.xlu0 %10385, %v2040_v58   ;;  %v13799_v55 = vpop.permute.xlu1 %1130 }
 0x25e   : > { %10919 = vrsqrt.f32 %v842_v29  ;;  %v767_v52 = vpop.xlane.xlu0 %766 }
 0x25f   : > { %v809_v17 = vmul.f32 0.00390625, %v767_v52 }
 0x261   : > { %v841_v53 = vadd.f32 1e-05, %v809_v17  ;;  %2324 = vperm.xlu0 %10385, %v13637_v22   ;;  %v13806_v40 = vpop.permute.xlu1 %1135 }
 0x263   : > { %10921 = vrsqrt.f32 %v841_v53 }
 0x265   : > { %2156 = vperm.xlu0 %10385, %v2042_v10   ;;  %v13809_v42 = vpop.permute.xlu1 %1140 }
 0x268   : > { %v10920_v23 = vpop.eup %10919 }
 0x269   : > { %2166 = vperm.xlu0 %10385, %v2044_v39   ;;  %v13812_v31 = vpop.permute.xlu1 %1145  ;;  %775 = vadd.xlane.f32.xlu1 %v774_v57  ;;  %v934_v32 = vmul.f32 %v10920_v23, %v18308_v54  ;;  %v933_v22 = vmul.f32 %v10920_v23, %v18309_v33  ;;  %v558_v54 = vmul.f32 0.00390625, %v13527_v28 }
 0x26a   : > { %v13819_v6 = vpop.xlane.xlu0 %772 }
 0x26b   : > { %v1010_v7 = vmul.f32 %v13431_v15, %v934_v32  ;;  %v1009_v25 = vmul.f32 %v13447_v38, %v933_v22  ;;  %v12501_v22 = vld [vmem:[%s12978_s3 + $0x1f0] sm:$0xff] }
 0x26d   : > { %v10922_v36 = vpop.eup %10921  ;;  %2336 = vperm.xlu0 %10385, %v13653_v8   ;;  %v13817_v56 = vpop.permute.xlu1 %1150  ;;  %v1086_v52 = vadd.f32 %v13453_v34, %v1010_v7  ;;  %v1085_v24 = vadd.f32 %v13469_v43, %v1009_v25 }
 0x26e   : > { %v932_v62 = vmul.f32 %v10922_v36, %v18310_v48  ;;  %v931_v58 = vmul.f32 %v10922_v36, %v18311_v0  ;;  %v13849_v36 = vsub.f32 %v12501_v22, %v558_v54  ;;  %v12502_v48 = vld [vmem:[%s12978_s3 + $0x1f8] sm:$0xff] }
 0x270   : > { %v1008_v29 = vmul.f32 %v13431_v15, %v932_v62  ;;  %v1007_v12 = vmul.f32 %v13447_v38, %v931_v58  ;;  %v13852_v62 = vsub.f32 %v12502_v48, %v558_v54  ;;  %v685_v28 = vmul.f32 %v13849_v36, %v13849_v36  ;;  %v13901_v54 = vld [vmem:[%s18130_s2 + $0x6] ss:$0 sm:$0xff] }
 0x271   : > { %v13833_v44 = vpop.permute.xlu1 %1160 }
 0x272   : > { %v13827_v47 = vpop.permute.xlu0 %1591  ;;  %v1084_v8 = vadd.f32 %v13453_v34, %v1008_v29  ;;  %v1083_v17 = vadd.f32 %v13469_v43, %v1007_v12 }
 0x274   : > { %v2524_v53 = vpack.c.bf16 %v1086_v52, %v1084_v8  ;;  %v2523_v10 = vpack.c.bf16 %v1085_v24, %v1083_v17 }
 0x275   : > { %v13837_v57 = vpop.permute.xlu1 %1165 }
 0x276   : > { %3093 = vmatprep.mubr.bf16.mxu1 %v2524_v53  ;;  %v13835_v39 = vpop.permute.xlu0 %1603 }
 0x277   : > { %3094 = vmatmul.mubr.bf16.gmra.mrb[52].mxu1 %v2523_v10 }
 0x279   : > { %v13846_v33 = vpop.permute.xlu1 %1170 }
 0x27a   : > { %1595 = vperm.xlu1 %10382, %v13524_v14   ;;  %v13840_v23 = vpop.permute.xlu0 %1607 }
 0x27d   : > { %v13857_v14 = vpop.permute.xlu1 %1175 }
 0x27e   : > { %1599 = vperm.xlu1 %10382, %v13535_v60   ;;  %v13844_v32 = vpop.permute.xlu0 %1619  ;;  %v686_v60 = vmul.f32 %v13852_v62, %v13852_v62 }
 0x280   : > { %v780_v25 = vadd.f32 %v686_v60, %v685_v28  ;;  %v2053_v28 = vsub.f32 1.0, %v13734_v50 }
 0x281   : > { %v13867_v29 = vpop.permute.xlu1 %1180 }
 0x282   : > { %1611 = vperm.xlu1 %10382, %v13692_v5   ;;  %v13855_v7 = vpop.permute.xlu0 %1635 }
 0x285   : > { %v13870_v8 = vpop.permute.xlu1 %1185 }
 0x286   : > { %1615 = vperm.xlu1 %10382, %v13564_v51   ;;  %v1648_v0 = vpop.permute.xlu0 %1647 }
 0x28a   : > { %1623 = vperm.xlu1 %10382, %v13585_v45   ;;  %v13865_v58 = vpop.permute.xlu0 %1667  ;;  %v13878_v45 = vpop.permute.xlu1 %1190 }
 0x28c   : > { %781 = vadd.xlane.f32.xlu0 %v780_v25 }
 0x28e   : > { %1627 = vperm.xlu1 %10382, %v13595_v30   ;;  %v1680_v12 = vpop.permute.xlu0 %1679  ;;  %v13883_v24 = vpop.permute.xlu1 %1195  ;;  %v2046_v30 = vsub.f32 1.0, %v13757_v19 }
 0x28f   : > { %18314 = vst [vmem:[#allocation19_spill] sm:$0xff] %v13883_v24 }
 0x292   : > { %1631 = vperm.xlu1 %10382, %v13607_v27   ;;  %v13873_v52 = vpop.permute.xlu0 %1699  ;;  %v2051_v27 = vsub.f32 1.0, %v13782_v16 }
 0x293   : > { %18312 = vst [vmem:[#allocation17_spill] sm:$0xff] %v13873_v52 }
 0x296   : > { %1639 = vperm.xlu1 %10382, %v13631_v20   ;;  %v13876_v51 = vpop.permute.xlu0 %1711  ;;  %v13891_v20 = vpop.permute.xlu1 %1200 }
 0x297   : > { %18313 = vst [vmem:[#allocation16_spill] sm:$0xff] %v13876_v51  ;;  %18316 = vst [vmem:[#allocation18_spill] sm:$0xff] %v13891_v20 }
 0x29a   : > { %1643 = vperm.xlu1 %10382, %v13644_v46   ;;  %v13903_v22 = vpop.permute.xlu1 %1210 }
 0x29b   : > { %v13881_v17 = vpop.permute.xlu0 %1155  ;;  %18318 = vst [vmem:[#allocation20_spill] sm:$0xff] %v13903_v22 }
 0x29e   : > { %1651 = vperm.xlu1 %10382, %v13709_v11  }
 0x29f   : > { %v13887_v53 = vpop.permute.xlu0 %1205 }
 0x2a0   : > { %18315 = vst [vmem:[#allocation24_spill] sm:$0xff] %v13887_v53 }
 0x2a2   : > { %1655 = vperm.xlu1 %10382, %v13669_v2   ;;  %2176 = vperm.xlu0 %10385, %v2046_v30   ;;  %v1738_v2 = vmul.f32 %v13901_v54, %v1648_v0 }
 0x2a3   : > { %v13893_v10 = vpop.permute.xlu0 %1245 }
 0x2a4   : > { %18317 = vst [vmem:[#allocation21_spill] sm:$0xff] %v13893_v10 }
 0x2a6   : > { %1659 = vperm.xlu1 %10382, %v13684_v1   ;;  %2201 = vperm.xlu0 %10385, %v2051_v27   ;;  %v13920_v27 = vld [vmem:[%s18130_s2 + $0x7] ss:$0 sm:$0xff] }
 0x2a7   : > { %v13896_v46 = vpop.permute.xlu0 %1285  ;;  %v1777_v13 = vadd.f32 %v13920_v27, %v1738_v2 }
 0x2a8   : > { %v13906_v48 = vpop.f32.mrb[0].mxu1 }
 0x2a9   : > { %18319 = vst [vmem:[#allocation23_spill] sm:$0xff] %v13906_v48  ;;  %v13911_v60 = vpop.f32.mrb[1].mxu1  ;;  %v13926_v48 = vpop.permute.xlu1 %1215 }
 0x2aa   : > { %1663 = vperm.xlu1 %10382, %v13697_v61   ;;  %2364 = vperm.xlu0 %10385, %v13782_v16   ;;  %18320 = vst [vmem:[#allocation22_spill] sm:$0xff] %v13911_v60  ;;  %v13913_v25 = vpop.f32.mrb[2].mxu1  ;;  %18323 = vst [vmem:[#allocation25_spill] sm:$0xff] %v13926_v48  ;;  %v9114_v60 = vmul.f32 -1.442695, %v1777_v13 }
 0x2ab   : > { %18321 = vst [vmem:[#allocation26_spill] sm:$0xff] %v13913_v25  ;;  %v13922_v0 = vpop.f32.mrb[3].mxu1 }
 0x2ac   : > { %v13915_v30 = vpop.permute.xlu0 %2061  ;;  %18322 = vst [vmem:[#allocation27_spill] sm:$0xff] %v13922_v0  ;;  %10923 = vpow2.f32 %v9114_v60 }
 0x2ad   : > { %v13940_v2 = vpop.permute.xlu1 %1220 }
 0x2ae   : > { %1671 = vperm.xlu1 %10382, %v13723_v49   ;;  %2211 = vperm.xlu0 %10385, %v2053_v28   ;;  %18327 = vst [vmem:[#allocation35_spill] sm:$0xff] %v13940_v2 }
 0x2b0   : > { %v13928_v51 = vpop.permute.xlu0 %2066 }
 0x2b1   : > { %v13930_v25 = vpop.f32.mrb[4].mxu1  ;;  %v13950_v22 = vpop.permute.xlu1 %1225 }
 0x2b2   : > { %18324 = vst [vmem:[#allocation32_spill] sm:$0xff] %v13930_v25  ;;  %1675 = vperm.xlu1 %10382, %v13738_v37   ;;  %2372 = vperm.xlu0 %10385, %v13734_v50   ;;  %v13934_v52 = vpop.f32.mrb[5].mxu1  ;;  %18331 = vst [vmem:[#allocation39_spill] sm:$0xff] %v13950_v22 }
 0x2b3   : > { %18325 = vst [vmem:[#allocation31_spill] sm:$0xff] %v13934_v52  ;;  %v13936_v10 = vpop.f32.mrb[6].mxu1 }
 0x2b4   : > { %18326 = vst [vmem:[#allocation30_spill] sm:$0xff] %v13936_v10  ;;  %v13938_v0 = vpop.permute.xlu0 %2260  ;;  %v13942_v28 = vpop.f32.mrb[7].mxu1 }
 0x2b5   : > { %18328 = vst [vmem:[#allocation34_spill] sm:$0xff] %v13942_v28  ;;  %v13963_v28 = vpop.permute.xlu1 %1230 }
 0x2b6   : > { %1683 = vperm.xlu1 %10382, %v13718_v21   ;;  %v10924_v60 = vpop.eup %10923  ;;  %18337 = vst [vmem:[#allocation45_spill] sm:$0xff] %v13963_v28 }
 0x2b8   : > { %v13945_v48 = vpop.permute.xlu0 %2081 }
 0x2b9   : > { %18329 = vst [vmem:[#allocation37_spill] sm:$0xff] %v13945_v48  ;;  %v13947_v25 = vpop.f32.mrb[8].mxu1 }
 0x2ba   : > { %18330 = vst [vmem:[#allocation38_spill] sm:$0xff] %v13947_v25  ;;  %1687 = vperm.xlu1 %10382, %v13757_v19   ;;  %v13952_v52 = vpop.f32.mrb[9].mxu1  ;;  %v1746_v25 = vmul.f32 %v13901_v54, %v1680_v12  ;;  %v13981_v12 = vpop.permute.xlu1 %1235 }
 0x2bb   : > { %18332 = vst [vmem:[#allocation40_spill] sm:$0xff] %v13952_v52  ;;  %v13954_v10 = vpop.f32.mrb[10].mxu1  ;;  %v1905_v52 = vadd.f32 1.0, %v10924_v60  ;;  %18343 = vst [vmem:[#allocation51_spill] sm:$0xff] %v13981_v12 }
 0x2bc   : > { %18333 = vst [vmem:[#allocation41_spill] sm:$0xff] %v13954_v10  ;;  %v13956_v53 = vpop.permute.xlu0 %2086  ;;  %v13958_v2 = vpop.f32.mrb[11].mxu1  ;;  %v13978_v20 = vadd.f32 %v13920_v27, %v1746_v25 }
 0x2bd   : > { %18334 = vst [vmem:[#allocation42_spill] sm:$0xff] %v13956_v53  ;;  %18335 = vst [vmem:[#allocation43_spill] sm:$0xff] %v13958_v2  ;;  %10925 = vrcp.f32 %v1905_v52 }
 0x2be   : > { %1691 = vperm.xlu1 %10382, %v13763_v63  }
 0x2c0   : > { %v13961_v21 = vpop.permute.xlu0 %2096 }
 0x2c1   : > { %18336 = vst [vmem:[#allocation44_spill] sm:$0xff] %v13961_v21  ;;  %v13966_v19 = vpop.f32.mrb[12].mxu1 }
 0x2c2   : > { %18338 = vst [vmem:[#allocation46_spill] sm:$0xff] %v13966_v19  ;;  %1695 = vperm.xlu1 %10382, %v13770_v35   ;;  %v13969_v22 = vpop.f32.mrb[13].mxu1  ;;  %v9122_v35 = vmul.f32 -1.442695, %v13978_v20 }
 0x2c3   : > { %18339 = vst [vmem:[#allocation47_spill] sm:$0xff] %v13969_v22  ;;  %v13971_v10 = vpop.f32.mrb[14].mxu1 }
 0x2c4   : > { %18340 = vst [vmem:[#allocation48_spill] sm:$0xff] %v13971_v10  ;;  %v13973_v53 = vpop.permute.xlu0 %2106  ;;  %v13975_v2 = vpop.f32.mrb[15].mxu1  ;;  %10927 = vpow2.f32 %v9122_v35 }
 0x2c5   : > { %18341 = vst [vmem:[#allocation49_spill] sm:$0xff] %v13973_v53  ;;  %18342 = vst [vmem:[#allocation50_spill] sm:$0xff] %v13975_v2  ;;  %v18348_v2 = vlaneseq }
 0x2c6   : > { %1703 = vperm.xlu1 %10382, %v13777_v59   ;;  %v13998_v59 = vpop.permute.xlu1 %1240 }
 0x2c7   : > { %v13994_v25 = vand.u32 127, %v18348_v2  ;;  %18350 = vst [vmem:[#allocation57_spill] sm:$0xff] %v13998_v59 }
 0x2c8   : > { %v13983_v19 = vpop.permute.xlu0 %2292 }
 0x2c9   : > { %18344 = vst [vmem:[#allocation52_spill] sm:$0xff] %v13983_v19  ;;  %v13986_v60 = vpop.f32.mrb[16].mxu1  ;;  %vm2021_vm0 = vcmp.eq.s32.totalorder %v13994_v25, 64  ;;  %vm2246_vm1 = vcmp.eq.s32.totalorder %v13994_v25, 65  ;;  %v18476_v25 = vld [vmem:[#allocation33_spill] sm:$0xff] }
 0x2ca   : > { %18345 = vst [vmem:[#allocation53_spill] sm:$0xff] %v13986_v60  ;;  %1707 = vperm.xlu1 %10382, %v13782_v16   ;;  %v13989_v10 = vpop.f32.mrb[17].mxu1  ;;  %v10926_v16 = vpop.eup %10925 }
 0x2cb   : > { %18346 = vst [vmem:[#allocation54_spill] sm:$0xff] %v13989_v10  ;;  %v13991_v22 = vpop.f32.mrb[18].mxu1  ;;  %v14008_v2 = vpop.permute.xlu1 %1250 }
 0x2cc   : > { %18347 = vst [vmem:[#allocation55_spill] sm:$0xff] %v13991_v22  ;;  %v13996_v28 = vpop.permute.xlu0 %2116  ;;  %v14000_v52 = vpop.f32.mrb[19].mxu1  ;;  %18353 = vst [vmem:[#allocation60_spill] sm:$0xff] %v14008_v2 }
 0x2cd   : > { %18349 = vst [vmem:[#allocation56_spill] sm:$0xff] %v13996_v28  ;;  %18351 = vst [vmem:[#allocation58_spill] sm:$0xff] %v14000_v52  ;;  %v18357_v28 = vmov 2  }
 0x2ce   : > { %1715 = vperm.xlu1 %10382, %v13734_v50   ;;  %v2001_v50 = vmul.f32 %v10926_v16, %v1777_v13  ;;  %v10928_v2 = vpop.eup %10927 }
 0x2cf   : > { %v1913_v13 = vadd.f32 1.0, %v10928_v2 }
 0x2d0   : > { %v2127_v60 = vpop.permute.xlu0 %2126 }
 0x2d1   : > { %v14004_v12 = vpop.f32.mrb[20].mxu1  ;;  %v2228_v35 = vsel %vm2021_vm0, %v2127_v60, 0.0  ;;  %10929 = vrcp.f32 %v1913_v13 }
 0x2d2   : > { %18352 = vst [vmem:[#allocation59_spill] sm:$0xff] %v14004_v12  ;;  %10384 = vset.pattern.permute.xlu1 %v18299_v9  ;;  %v14010_v22 = vpop.f32.mrb[21].mxu1 }
 0x2d3   : > { %18354 = vst [vmem:[#allocation61_spill] sm:$0xff] %v14010_v22  ;;  %1280 = vperm.xlu1 %10384, %v13678_v4   ;;  %v14015_v52 = vpop.f32.mrb[22].mxu1  ;;  %v14026_v4 = vpop.permute.xlu1 %1255 }
 0x2d4   : > { %18355 = vst [vmem:[#allocation62_spill] sm:$0xff] %v14015_v52  ;;  %v2305_v10 = vpop.permute.xlu0 %2304  ;;  %v14017_v59 = vpop.f32.mrb[23].mxu1  ;;  %18360 = vst [vmem:[#allocation66_spill] sm:$0xff] %v14026_v4  ;;  %v12503_v4 = vld [vmem:[%s12978_s3 + $0x1e0] sm:$0xff] }
 0x2d5   : > { %18356 = vst [vmem:[#allocation63_spill] sm:$0xff] %v14017_v59  ;;  %v2389_v9 = vsel %vm2246_vm1, %v2305_v10, 0.0 }
 0x2d6   : > { %v2421_v12 = vadd.f32 %v2389_v9, %v2228_v35 }
 0x2d7   : > { %10386 = vset.pattern.permute.xlu1 %v18357_v28  ;;  %v14038_v28 = vpop.permute.xlu1 %1260 }
 0x2d8   : > { %v14022_v53 = vadd.f32 %v2421_v12, %v2001_v50  ;;  %v14024_v22 = vpop.permute.xlu0 %2136  ;;  %18366 = vst [vmem:[#allocation72_spill] sm:$0xff] %v14038_v28  ;;  %v10435_v50 = vld [vmem:[#allocation5 + $0x104] ss:$8 sps:$4 sm:$0xff]  }
 0x2d9   : > { %18359 = vst [vmem:[#allocation65_spill] sm:$0xff] %v14024_v22  ;;  %v14028_v60 = vpop.f32.mrb[24].mxu1  ;;  %3124 = vmatprep.subr.bf16.mxu0 %v10435_v50  ;;  %v18374_v28 = vld [vmem:[#allocation36_spill] sm:$0xff]  ;;  %v12504_v50 = vld [vmem:[%s12978_s3 + $0x1e8] sm:$0xff] }
 0x2da   : > { %18358 = vst [vmem:[#allocation64_spill] sm:$0xff] %v14022_v53  ;;  %18361 = vst [vmem:[#allocation67_spill] sm:$0xff] %v14028_v60  ;;  %v14030_v16 = vpop.f32.mrb[25].mxu1  ;;  %v10437_v60 = vld [vmem:[#allocation5 + $0x100] ss:$8 sps:$4 sm:$0xff]  }
 0x2db   : > { %18362 = vst [vmem:[#allocation68_spill] sm:$0xff] %v14030_v16  ;;  %v14032_v52 = vpop.f32.mrb[26].mxu1  ;;  %3125 = vmatpush1.bf16.msra.mxu0 %v10437_v60 }
 0x2dc   : > { %18363 = vst [vmem:[#allocation69_spill] sm:$0xff] %v14032_v52  ;;  %v14034_v59 = vpop.permute.xlu0 %2146  ;;  %v14036_v10 = vpop.f32.mrb[27].mxu1 }
 0x2dd   : > { %18364 = vst [vmem:[#allocation70_spill] sm:$0xff] %v14034_v59  ;;  %18365 = vst [vmem:[#allocation71_spill] sm:$0xff] %v14036_v10  ;;  %v14050_v52 = vpop.permute.xlu1 %1265  ;;  %v10438_v10 = vld [vmem:[#allocation5 + $0x114] ss:$8 sps:$4 sm:$0xff]   ;;  %v557_v59 = vmul.f32 0.00390625, %v18374_v28 }
 0x2de   : > { %18372 = vst [vmem:[#allocation78_spill] sm:$0xff] %v14050_v52  ;;  %3126 = vmatprep.subr.bf16.mxu0 %v10438_v10 }
 0x2df   : > { %v14061_v53 = vsub.f32 %v12504_v50, %v557_v59 }
 0x2e0   : > { %v14040_v12 = vpop.permute.xlu0 %2324 }
 0x2e1   : > { %18367 = vst [vmem:[#allocation73_spill] sm:$0xff] %v14040_v12  ;;  %v14042_v35 = vpop.f32.mrb[28].mxu1  ;;  %v14063_v52 = vpop.permute.xlu1 %1270 }
 0x2e2   : > { %18368 = vst [vmem:[#allocation74_spill] sm:$0xff] %v14042_v35  ;;  %v14044_v9 = vpop.f32.mrb[29].mxu1  ;;  %v10440_v35 = vld [vmem:[#allocation5 + $0x110] ss:$8 sps:$4 sm:$0xff]   ;;  %18376 = vst [vmem:[#allocation80_spill] sm:$0xff] %v14063_v52 }
 0x2e3   : > { %18369 = vst [vmem:[#allocation75_spill] sm:$0xff] %v14044_v9  ;;  %v14046_v2 = vpop.f32.mrb[30].mxu1  ;;  %v10930_v9 = vpop.eup %10929  ;;  %3127 = vmatpush1.bf16.msra.mxu0 %v10440_v35 }
 0x2e4   : > { %18370 = vst [vmem:[#allocation76_spill] sm:$0xff] %v14046_v2  ;;  %v14048_v16 = vpop.permute.xlu0 %2156  ;;  %v14052_v13 = vpop.f32.mrb[31].mxu1  ;;  %v10441_v2 = vld [vmem:[#allocation5 + $0x124] ss:$8 sps:$4 sm:$0xff]   ;;  %v2009_v10 = vmul.f32 %v10930_v9, %v13978_v20  ;;  %v684_v20 = vmul.f32 %v14061_v53, %v14061_v53  ;;  %v10446_v9 = vld [vmem:[#allocation5 + $0x130] ss:$8 sps:$4 sm:$0xff]  }
 0x2e5   : > { %18371 = vst [vmem:[#allocation77_spill] sm:$0xff] %v14048_v16  ;;  %18373 = vst [vmem:[#allocation79_spill] sm:$0xff] %v14052_v13  ;;  %v14058_v16 = vsub.f32 %v12503_v4, %v557_v59  ;;  %v10443_v13 = vld [vmem:[#allocation5 + $0x120] ss:$8 sps:$4 sm:$0xff]   ;;  %3128 = vmatprep.subr.bf16.mxu0 %v10441_v2  ;;  %v811_v4 = vmul.f32 0.00390625, %v13819_v6  ;;  %v14083_v52 = vpop.permute.xlu1 %1275 }
 0x2e6   : > { %v10447_v6 = vld [vmem:[#allocation5 + $0x144] ss:$8 sps:$4 sm:$0xff]   ;;  %18381 = vst [vmem:[#allocation85_spill] sm:$0xff] %v14083_v52 }
 0x2e7   : > { %3129 = vmatpush1.bf16.msra.mxu0 %v10443_v13  ;;  %v843_v2 = vadd.f32 1e-05, %v811_v4  ;;  %v10450_v13 = vld [vmem:[#allocation5 + $0x154] ss:$8 sps:$4 sm:$0xff]   ;;  %v10453_v4 = vld [vmem:[#allocation5 + $0x164] ss:$8 sps:$4 sm:$0xff]  }
 0x2e8   : > { %v2167_v12 = vpop.permute.xlu0 %2166 }
 0x2e9   : > { %v14055_v22 = vpop.f32.mrb[32].mxu1  ;;  %v2236_v28 = vsel %vm2021_vm0, %v2167_v12, 0.0  ;;  %v683_v12 = vmul.f32 %v14058_v16, %v14058_v16  ;;  %10931 = vrsqrt.f32 %v843_v2 }
 0x2ea   : > { %18375 = vst [vmem:[#allocation36_spill] sm:$0xff] %v14055_v22  ;;  %v14065_v60 = vpop.f32.mrb[33].mxu1 }
 0x2eb   : > { %18377 = vst [vmem:[#allocation81_spill] sm:$0xff] %v14065_v60  ;;  %v14070_v35 = vpop.f32.mrb[34].mxu1  ;;  %v10444_v60 = vld [vmem:[#allocation5 + $0x134] ss:$8 sps:$4 sm:$0xff]  }
 0x2ec   : > { %18378 = vst [vmem:[#allocation82_spill] sm:$0xff] %v14070_v35  ;;  %v2337_v22 = vpop.permute.xlu0 %2336  ;;  %v14073_v19 = vpop.f32.mrb[35].mxu1  ;;  %3130 = vmatprep.subr.bf16.mxu0 %v10444_v60  ;;  %v10452_v60 = vld [vmem:[#allocation5 + $0x150] ss:$8 sps:$4 sm:$0xff]  }
 0x2ed   : > { %18379 = vst [vmem:[#allocation83_spill] sm:$0xff] %v14073_v19  ;;  %v2397_v59 = vsel %vm2246_vm1, %v2337_v22, 0.0  ;;  %3131 = vmatpush1.bf16.msra.mxu0 %v10446_v9  ;;  %v10449_v19 = vld [vmem:[#allocation5 + $0x140] ss:$8 sps:$4 sm:$0xff]  }
 0x2ee   : > { %v2429_v50 = vadd.f32 %v2397_v59, %v2236_v28  ;;  %v777_v59 = vadd.f32 %v684_v20, %v683_v12  ;;  %3132 = vmatprep.subr.bf16.mxu0 %v10447_v6  ;;  %v10456_v12 = vld [vmem:[#allocation5 + $0x174] ss:$8 sps:$4 sm:$0xff]   ;;  %v10458_v6 = vld [vmem:[#allocation5 + $0x170] ss:$8 sps:$4 sm:$0xff]  }
 0x2f0   : > { %v14081_v35 = vadd.f32 %v2429_v50, %v2009_v10 }
 0x2f1   : > { %v14085_v22 = vpop.f32.mrb[36].mxu1  ;;  %3133 = vmatpush1.bf16.msra.mxu0 %v10449_v19 }
 0x2f2   : > { %18380 = vst [vmem:[#allocation84_spill] sm:$0xff] %v14081_v35  ;;  %18382 = vst [vmem:[#allocation86_spill] sm:$0xff] %v14085_v22  ;;  %v14087_v28 = vpop.f32.mrb[37].mxu1  ;;  %3134 = vmatprep.subr.bf16.mxu0 %v10450_v13  ;;  %v10455_v22 = vld [vmem:[#allocation5 + $0x160] ss:$8 sps:$4 sm:$0xff]  }
 0x2f3   : > { %18383 = vst [vmem:[#allocation87_spill] sm:$0xff] %v14087_v28  ;;  %v14089_v21 = vpop.f32.mrb[38].mxu1 }
 0x2f4   : > { %18384 = vst [vmem:[#allocation88_spill] sm:$0xff] %v14089_v21  ;;  %v14091_v24 = vpop.f32.mrb[39].mxu1 }
 0x2f5   : > { %18385 = vst [vmem:[#allocation89_spill] sm:$0xff] %v14091_v24  ;;  %3135 = vmatpush1.bf16.msra.mxu0 %v10452_v60  ;;  %v10932_v60 = vpop.eup %10931 }
 0x2f6   : > { %v776_v10 = vpop.xlane.xlu1 %775  ;;  %3136 = vmatprep.subr.bf16.mxu0 %v10453_v4 }
 0x2f7   : > { %v812_v50 = vmul.f32 0.00390625, %v776_v10  ;;  %778 = vadd.xlane.f32.xlu1 %v777_v59  ;;  %v10459_v59 = vld [vmem:[#allocation5 + $0x184] ss:$8 sps:$4 sm:$0xff]   ;;  %v10461_v10 = vld [vmem:[#allocation5 + $0x180] ss:$8 sps:$4 sm:$0xff]  }
 0x2f9   : > { %v844_v9 = vadd.f32 1e-05, %v812_v50  ;;  %v14093_v35 = vpop.f32.mrb[40].mxu1  ;;  %3137 = vmatpush1.bf16.msra.mxu0 %v10455_v22 }
 0x2fa   : > { %18386 = vst [vmem:[#allocation90_spill] sm:$0xff] %v14093_v35  ;;  %v14095_v28 = vpop.permute.xlu1 %1595  ;;  %v14097_v20 = vpop.f32.mrb[41].mxu1  ;;  %3138 = vmatprep.subr.bf16.mxu0 %v10456_v12  ;;  %v12505_v35 = vld [vmem:[%s13504_s29] sm:$0xff] }
 0x2fb   : > { %10933 = vrsqrt.f32 %v844_v9  ;;  %18387 = vst [vmem:[#allocation91_spill] sm:$0xff] %v14097_v20  ;;  %v14099_v2 = vpop.f32.mrb[42].mxu1  ;;  %v936_v9 = vmul.f32 %v10932_v60, %v13499_v3  ;;  %v2022_v12 = vsub.f32 1.0, %v12505_v35 }
 0x2fc   : > { %18388 = vst [vmem:[#allocation92_spill] sm:$0xff] %v14099_v2  ;;  %v14101_v19 = vpop.f32.mrb[43].mxu1  ;;  %v935_v2 = vmul.f32 %v10932_v60, %v13496_v18  ;;  %v10465_v60 = vld [vmem:[#allocation5 + $0x1a4] ss:$8 sps:$4 sm:$0xff]  }
 0x2fd   : > { %18389 = vst [vmem:[#allocation93_spill] sm:$0xff] %v14101_v19  ;;  %3139 = vmatpush1.bf16.msra.mxu0 %v10458_v6  ;;  %v10462_v19 = vld [vmem:[#allocation5 + $0x194] ss:$8 sps:$4 sm:$0xff]   ;;  %v10464_v6 = vld [vmem:[#allocation5 + $0x190] ss:$8 sps:$4 sm:$0xff]   ;;  %v1012_v3 = vmul.f32 %v13431_v15, %v936_v9 }
 0x2fe   : > { %v14103_v13 = vpop.permute.xlu1 %1599  ;;  %3140 = vmatprep.subr.bf16.mxu0 %v10459_v59  ;;  %v1011_v59 = vmul.f32 %v13447_v38, %v935_v2  ;;  %v10468_v2 = vld [vmem:[#allocation5 + $0x1b4] ss:$8 sps:$4 sm:$0xff]  }
 0x301   : > { %v14105_v50 = vpop.f32.mrb[44].mxu1  ;;  %3141 = vmatpush1.bf16.msra.mxu0 %v10461_v10  ;;  %v10467_v10 = vld [vmem:[#allocation5 + $0x1a0] ss:$8 sps:$4 sm:$0xff]  }
 0x302   : > { %18390 = vst [vmem:[#allocation94_spill] sm:$0xff] %v14105_v50  ;;  %v14107_v4 = vpop.permute.xlu1 %1611  ;;  %v14111_v22 = vpop.f32.mrb[45].mxu1  ;;  %3142 = vmatprep.subr.bf16.mxu0 %v10462_v19 }
 0x303   : > { %18391 = vst [vmem:[#allocation95_spill] sm:$0xff] %v14111_v22  ;;  %v14113_v20 = vpop.f32.mrb[46].mxu1 }
 0x304   : > { %18392 = vst [vmem:[#allocation96_spill] sm:$0xff] %v14113_v20  ;;  %v14116_v21 = vpop.f32.mrb[47].mxu1 }
 0x305   : > { %v10934_v24 = vpop.eup %10933  ;;  %18393 = vst [vmem:[#allocation97_spill] sm:$0xff] %v14116_v21  ;;  %3143 = vmatpush1.bf16.msra.mxu0 %v10464_v6 }
 0x306   : > { %v14118_v50 = vpop.permute.xlu1 %1615  ;;  %v938_v52 = vmul.f32 %v10934_v24, %v13797_v41  ;;  %v937_v18 = vmul.f32 %v10934_v24, %v13794_v26  ;;  %v1088_v41 = vadd.f32 %v13453_v34, %v1012_v3  ;;  %v1087_v26 = vadd.f32 %v13469_v43, %v1011_v59  ;;  %3144 = vmatprep.subr.bf16.mxu0 %v10465_v60  ;;  %v10470_v3 = vld [vmem:[#allocation5 + $0x1b0] ss:$8 sps:$4 sm:$0xff]   ;;  %v12506_v59 = vld [vmem:[%s13504_s29 + $0x8] sm:$0xff] }
 0x307   : > { %v12507_v60 = vld [vmem:[%s13504_s29 + $0x18] sm:$0xff] }
 0x308   : > { %2056 = vperm.xlu1 %10386, %v2022_v12   ;;  %v1014_v20 = vmul.f32 %v13431_v15, %v938_v52  ;;  %v1013_v22 = vmul.f32 %v13447_v38, %v937_v18 }
 0x309   : > { %v14126_v21 = vpop.f32.mrb[48].mxu1  ;;  %3145 = vmatpush1.bf16.msra.mxu0 %v10467_v10  ;;  %v10476_v10 = vld [vmem:[#allocation5 + $0x1d0] ss:$8 sps:$4 sm:$0xff]  }
 0x30a   : > { %18394 = vst [vmem:[#allocation98_spill] sm:$0xff] %v14126_v21  ;;  %v14128_v48 = vpop.permute.xlu1 %1623  ;;  %v1090_v9 = vadd.f32 %v13453_v34, %v1014_v20  ;;  %v1089_v24 = vadd.f32 %v13469_v43, %v1013_v22  ;;  %v14134_v52 = vpop.f32.mrb[49].mxu1  ;;  %3146 = vmatprep.subr.bf16.mxu0 %v10468_v2  ;;  %v10471_v22 = vld [vmem:[#allocation5 + $0x1c4] ss:$8 sps:$4 sm:$0xff]   ;;  %v12508_v2 = vld [vmem:[%s13504_s29 + $0x10] sm:$0xff] }
 0x30b   : > { %18395 = vst [vmem:[#allocation99_spill] sm:$0xff] %v14134_v52  ;;  %v14136_v19 = vpop.f32.mrb[50].mxu1  ;;  %v2025_v52 = vsub.f32 1.0, %v12507_v60 }
 0x30c   : > { %18396 = vst [vmem:[#allocation100_spill] sm:$0xff] %v14136_v19  ;;  %2248 = vperm.xlu1 %10386, %v12505_v35   ;;  %v2528_v12 = vpack.c.bf16 %v1090_v9, %v1088_v41  ;;  %v2527_v6 = vpack.c.bf16 %v1089_v24, %v1087_v26  ;;  %v14138_v18 = vpop.f32.mrb[51].mxu1  ;;  %v10473_v35 = vld [vmem:[#allocation5 + $0x1c0] ss:$8 sps:$4 sm:$0xff]   ;;  %v10474_v9 = vld [vmem:[#allocation5 + $0x1d4] ss:$8 sps:$4 sm:$0xff]  }
 0x30d   : > { %18397 = vst [vmem:[#allocation101_spill] sm:$0xff] %v14138_v18  ;;  %3147 = vmatpush1.bf16.msra.mxu0 %v10470_v3  ;;  %v10477_v24 = vld [vmem:[#allocation5 + $0x1e4] ss:$8 sps:$4 sm:$0xff]  }
 0x30e   : > { %v14140_v20 = vpop.permute.xlu1 %1627  ;;  %3103 = vmatprep.mubr.bf16.mxu1 %v2528_v12  ;;  %3148 = vmatprep.subr.bf16.mxu0 %v10471_v22  ;;  %v12509_v12 = vld [vmem:[%s13504_s29 + $0x20] sm:$0xff]  ;;  %v10480_v22 = vld [vmem:[#allocation5 + $0x1f4] ss:$8 sps:$4 sm:$0xff]  }
 0x30f   : > { %3104 = vmatmul.mubr.bf16.gmra.mrb[56].mxu1 %v2527_v6  ;;  %v2026_v6 = vsub.f32 1.0, %v12509_v12  ;;  %v12513_v18 = vld [vmem:[%s13504_s29 + $0x40] sm:$0xff] }
 0x310   : > { %2252 = vperm.xlu1 %10386, %v12506_v59   ;;  %v10479_v59 = vld [vmem:[#allocation5 + $0x1e0] ss:$8 sps:$4 sm:$0xff]  }
 0x311   : > { %3149 = vmatpush1.bf16.msra.mxu0 %v10473_v35 }
 0x312   : > { %v14144_v41 = vpop.permute.xlu1 %1631  ;;  %3150 = vmatprep.subr.bf16.mxu0 %v10474_v9  ;;  %v12510_v9 = vld [vmem:[%s13504_s29 + $0x38] sm:$0xff] }
 0x314   : > { %2071 = vperm.xlu1 %10386, %v2025_v52   ;;  %v10482_v52 = vld [vmem:[#allocation5 + $0x1f0] ss:$8 sps:$4 sm:$0xff]  }
 0x315   : > { %3151 = vmatpush1.bf16.msra.mxu0 %v10476_v10  ;;  %v2029_v10 = vsub.f32 1.0, %v12510_v9 }
 0x316   : > { %v14146_v26 = vpop.permute.xlu1 %1639  ;;  %3152 = vmatprep.subr.bf16.mxu0 %v10477_v24 }
 0x318   : > { %2256 = vperm.xlu1 %10386, %v12508_v2  }
 0x319   : > { %3153 = vmatpush1.bf16.msra.mxu0 %v10479_v59 }
 0x31a   : > { %v14150_v3 = vpop.permute.xlu1 %1643  ;;  %3154 = vmatprep.subr.bf16.mxu0 %v10480_v22 }
 0x31c   : > { %2076 = vperm.xlu1 %10386, %v2026_v6   ;;  %v12511_v6 = vld [vmem:[%s13504_s29 + $0x30] sm:$0xff] }
 0x31d   : > { %3155 = vmatpush1.bf16.msra.mxu0 %v10482_v52 }
 0x31e   : > { %v14152_v60 = vpop.permute.xlu1 %1651 }
 0x31f   : > { %18398 = vst [vmem:[#allocation102_spill] sm:$0xff] %v14152_v60 }
 0x320   : > { %2264 = vperm.xlu1 %10386, %v12509_v12   ;;  %v12512_v12 = vld [vmem:[%s13504_s29 + $0x48] sm:$0xff] }
 0x321   : > { %v2031_v22 = vsub.f32 1.0, %v12512_v12 }
 0x322   : > { %v14154_v35 = vpop.permute.xlu1 %1655 }
 0x323   : > { %18399 = vst [vmem:[#allocation103_spill] sm:$0xff] %v14154_v35 }
 0x324   : > { %2268 = vperm.xlu1 %10386, %v13692_v5  }
 0x326   : > { %v14158_v2 = vpop.permute.xlu1 %1659 }
 0x327   : > { %18400 = vst [vmem:[#allocation104_spill] sm:$0xff] %v14158_v2 }
 0x328   : > { %2091 = vperm.xlu1 %10386, %v2029_v10   ;;  %v12514_v10 = vld [vmem:[%s13504_s29 + $0x58] sm:$0xff] }
 0x329   : > { %v2033_v21 = vsub.f32 1.0, %v12514_v10 }
 0x32a   : > { %v14160_v24 = vpop.permute.xlu1 %1663 }
 0x32b   : > { %18401 = vst [vmem:[#allocation105_spill] sm:$0xff] %v14160_v24  ;;  %v12517_v24 = vld [vmem:[%s13504_s29 + $0x60] sm:$0xff] }
 0x32c   : > { %2272 = vperm.xlu1 %10386, %v12511_v6  }
 0x32e   : > { %v14163_v59 = vpop.permute.xlu1 %1671 }
 0x32f   : > { %18402 = vst [vmem:[#allocation106_spill] sm:$0xff] %v14163_v59 }
 0x330   : > { %2276 = vperm.xlu1 %10386, %v12510_v9  }
 0x332   : > { %v14166_v52 = vpop.permute.xlu1 %1675 }
 0x333   : > { %18403 = vst [vmem:[#allocation107_spill] sm:$0xff] %v14166_v52  ;;  %v14181_v52 = vld [vmem:[%s18130_s2 + $0x4] ss:$0 sm:$0xff] }
 0x334   : > { %2101 = vperm.xlu1 %10386, %v2031_v22   ;;  %v12515_v22 = vld [vmem:[%s13504_s29 + $0x50] sm:$0xff] }
 0x336   : > { %v14168_v5 = vpop.permute.xlu1 %1683 }
 0x337   : > { %18404 = vst [vmem:[#allocation108_spill] sm:$0xff] %v14168_v5  ;;  %v12516_v5 = vld [vmem:[%s13504_s29 + $0x68] sm:$0xff] }
 0x338   : > { %2280 = vperm.xlu1 %10386, %v12513_v18   ;;  %v2035_v18 = vsub.f32 1.0, %v12516_v5 }
 0x33a   : > { %v14171_v19 = vpop.permute.xlu1 %1687 }
 0x33b   : > { %18405 = vst [vmem:[#allocation109_spill] sm:$0xff] %v14171_v19 }
 0x33c   : > { %2284 = vperm.xlu1 %10386, %v12512_v12   ;;  %v1325_v12 = vmul.f32 %v14181_v52, %v13896_v46 }
 0x33e   : > { %v14174_v6 = vpop.permute.xlu1 %1691 }
 0x33f   : > { %18406 = vst [vmem:[#allocation110_spill] sm:$0xff] %v14174_v6 }
 0x340   : > { %2111 = vperm.xlu1 %10386, %v2033_v21   ;;  %v14192_v21 = vld [vmem:[%s18130_s2 + $0x5] ss:$0 sm:$0xff] }
 0x341   : > { %v1364_v10 = vadd.f32 %v14192_v21, %v1325_v12 }
 0x342   : > { %v14176_v9 = vpop.permute.xlu1 %1695 }
 0x343   : > { %18407 = vst [vmem:[#allocation111_spill] sm:$0xff] %v14176_v9  ;;  %v9097_v46 = vmul.f32 -1.442695, %v1364_v10 }
 0x344   : > { %2288 = vperm.xlu1 %10386, %v12515_v22  }
 0x345   : > { %10935 = vpow2.f32 %v9097_v46  ;;  %v12518_v46 = vld [vmem:[%s13504_s29 + $0x80] sm:$0xff] }
 0x346   : > { %v14187_v19 = vpop.permute.xlu1 %1703 }
 0x347   : > { %18408 = vst [vmem:[#allocation112_spill] sm:$0xff] %v14187_v19 }
 0x348   : > { %2121 = vperm.xlu1 %10386, %v2035_v18   ;;  %v2037_v18 = vsub.f32 1.0, %v13709_v11 }
 0x34a   : > { %v14195_v9 = vpop.f32.mrb[52].mxu1  ;;  %v14197_v6 = vpop.permute.xlu1 %1707 }
 0x34b   : > { %18409 = vst [vmem:[#allocation113_spill] sm:$0xff] %v14195_v9  ;;  %18410 = vst [vmem:[#allocation114_spill] sm:$0xff] %v14197_v6  ;;  %v14199_v22 = vpop.f32.mrb[53].mxu1 }
 0x34c   : > { %18411 = vst [vmem:[#allocation115_spill] sm:$0xff] %v14199_v22  ;;  %v14201_v59 = vpop.f32.mrb[54].mxu1  ;;  %2296 = vperm.xlu1 %10386, %v12517_v24   ;;  %v2039_v24 = vsub.f32 1.0, %v13684_v1 }
 0x34d   : > { %18412 = vst [vmem:[#allocation116_spill] sm:$0xff] %v14201_v59  ;;  %v14204_v19 = vpop.f32.mrb[55].mxu1 }
 0x34e   : > { %18413 = vst [vmem:[#allocation117_spill] sm:$0xff] %v14204_v19  ;;  %v14206_v2 = vpop.permute.xlu1 %1715 }
 0x34f   : > { %18414 = vst [vmem:[#allocation118_spill] sm:$0xff] %v14206_v2  ;;  %v10936_v19 = vpop.eup %10935 }
 0x350   : > { %2300 = vperm.xlu1 %10386, %v12516_v5   ;;  %v1492_v59 = vadd.f32 1.0, %v10936_v19  ;;  %v1295_v5 = vmul.f32 %v14181_v52, %v13806_v40  ;;  %v1724_v40 = vmul.f32 %v13901_v54, %v13827_v47 }
 0x352   : > { %v1281_v12 = vpop.permute.xlu1 %1280 }
 0x353   : > { %v1324_v9 = vmul.f32 %v14181_v52, %v1281_v12  ;;  %v14219_v12 = vadd.f32 %v14192_v21, %v1295_v5  ;;  %v14235_v5 = vadd.f32 %v13920_v27, %v1724_v40 }
 0x354   : > { %2131 = vperm.xlu1 %10386, %v2037_v18   ;;  %v1294_v18 = vmul.f32 %v14181_v52, %v13799_v55  ;;  %v1725_v55 = vmul.f32 %v13901_v54, %v14095_v28  ;;  %v2043_v28 = vsub.f32 1.0, %v13738_v37 }
 0x355   : > { %v1363_v22 = vadd.f32 %v14192_v21, %v1324_v9 }
 0x356   : > { %v14224_v19 = vadd.f32 %v14192_v21, %v1294_v18  ;;  %v14240_v47 = vadd.f32 %v13920_v27, %v1725_v55 }
 0x357   : > { %v9096_v6 = vmul.f32 -1.442695, %v1363_v22 }
 0x358   : > { %2308 = vperm.xlu1 %10386, %v13709_v11   ;;  %v9101_v40 = vmul.f32 -1.442695, %v14240_v47 }
 0x359   : > { %10937 = vpow2.f32 %v9096_v6  ;;  %v12519_v6 = vld [vmem:[%s13504_s29 + $0x98] sm:$0xff] }
 0x35a   : > { %10939 = vrcp.f32 %v1492_v59  ;;  %v2041_v2 = vsub.f32 1.0, %v12519_v6  ;;  %v9066_v59 = vmul.f32 -1.442695, %v14224_v19 }
 0x35c   : > { %2141 = vperm.xlu1 %10386, %v2039_v24   ;;  %v9067_v24 = vmul.f32 -1.442695, %v14219_v12 }
 0x360   : > { %2312 = vperm.xlu1 %10386, %v12518_v46   ;;  %v1727_v46 = vmul.f32 %v13901_v54, %v13835_v39 }
 0x362   : > { %v14251_v39 = vadd.f32 %v13920_v27, %v1727_v46  ;;  %v1300_v46 = vmul.f32 %v14181_v52, %v13833_v44  ;;  %v12520_v44 = vld [vmem:[%s13504_s29 + $0xb8] sm:$0xff] }
 0x363   : > { %v10938_v9 = vpop.eup %10937 }
 0x364   : > { %v1491_v11 = vadd.f32 1.0, %v10938_v9  ;;  %2316 = vperm.xlu1 %10386, %v13684_v1   ;;  %v1296_v1 = vmul.f32 %v14181_v52, %v13809_v42  ;;  %v10940_v18 = vpop.eup %10939  ;;  %v1297_v42 = vmul.f32 %v14181_v52, %v13812_v31  ;;  %v9100_v9 = vmul.f32 -1.442695, %v14235_v5 }
 0x366   : > { %10941 = vrcp.f32 %v1491_v11  ;;  %v14253_v11 = vmul.f32 %v10940_v18, %v1364_v10  ;;  %v14262_v31 = vadd.f32 %v14192_v21, %v1297_v42  ;;  %v1298_v10 = vmul.f32 %v14181_v52, %v13817_v56 }
 0x367   : > { %10943 = vpow2.f32 %v9067_v24 }
 0x368   : > { %2151 = vperm.xlu1 %10386, %v2041_v2   ;;  %10945 = vpow2.f32 %v9066_v59  ;;  %v14245_v2 = vadd.f32 %v14192_v21, %v1296_v1  ;;  %18415 = vst [vmem:[#allocation119_spill] sm:$0xff] %v14253_v11  ;;  %v9103_v59 = vmul.f32 -1.442695, %v14251_v39  ;;  %v9069_v56 = vmul.f32 -1.442695, %v14262_v31 }
 0x369   : > { %10947 = vpow2.f32 %v9100_v9  ;;  %v14279_v42 = vadd.f32 %v14192_v21, %v1298_v10 }
 0x36a   : > { %v9068_v24 = vmul.f32 -1.442695, %v14245_v2  ;;  %10949 = vpow2.f32 %v9101_v40  ;;  %v2045_v40 = vsub.f32 1.0, %v12520_v44 }
 0x36b   : > { %v9070_v1 = vmul.f32 -1.442695, %v14279_v42 }
 0x36c   : > { %2320 = vperm.xlu1 %10386, %v13697_v61   ;;  %v1726_v61 = vmul.f32 %v13901_v54, %v14103_v13  ;;  %v1728_v13 = vmul.f32 %v13901_v54, %v13840_v23  ;;  %10951 = vpow2.f32 %v9068_v24  ;;  %v782_v23 = vpop.xlane.xlu0 %781  ;;  %v14290_v24 = vadd.f32 %v14192_v21, %v1300_v46 }
 0x36d   : > { %10953 = vpow2.f32 %v9103_v59  ;;  %v814_v10 = vmul.f32 0.00390625, %v782_v23 }
 0x36e   : > { %v14282_v9 = vadd.f32 %v13920_v27, %v1728_v13  ;;  %18417 = vst [vmem:[#allocation121_spill] sm:$0xff] %v14290_v24  ;;  %10955 = vpow2.f32 %v9069_v56  ;;  %v9072_v46 = vmul.f32 -1.442695, %v14290_v24  ;;  %v1301_v56 = vmul.f32 %v14181_v52, %v13837_v57 }
 0x370   : > { %v10942_v6 = vpop.eup %10941  ;;  %2161 = vperm.xlu1 %10386, %v2043_v28  }
 0x371   : > { %v14259_v55 = vmul.f32 %v10942_v6, %v1363_v22  ;;  %v14272_v22 = vadd.f32 %v13920_v27, %v1726_v61  ;;  %v10944_v18 = vpop.eup %10943  ;;  %v1299_v6 = vmul.f32 %v14181_v52, %v13881_v17 }
 0x372   : > { %v10946_v28 = vpop.eup %10945  ;;  %v1462_v61 = vadd.f32 1.0, %v10944_v18 }
 0x373   : > { %18416 = vst [vmem:[#allocation120_spill] sm:$0xff] %v14259_v55  ;;  %v1461_v59 = vadd.f32 1.0, %v10946_v28  ;;  %v10948_v13 = vpop.eup %10947  ;;  %v9104_v55 = vmul.f32 -1.442695, %v14282_v9  ;;  %v14295_v17 = vadd.f32 %v14192_v21, %v1299_v6  ;;  %v846_v28 = vadd.f32 1e-05, %v814_v10 }
 0x374   : > { %2328 = vperm.xlu1 %10386, %v13723_v49   ;;  %v9102_v49 = vmul.f32 -1.442695, %v14272_v22  ;;  %v10950_v18 = vpop.eup %10949  ;;  %v1891_v11 = vadd.f32 1.0, %v10948_v13  ;;  %v1302_v6 = vmul.f32 %v14181_v52, %v13846_v33  ;;  %v14310_v10 = vadd.f32 %v14192_v21, %v1301_v56 }
 0x375   : > { %v1731_v13 = vmul.f32 %v13901_v54, %v13844_v32  ;;  %v1730_v32 = vmul.f32 %v13901_v54, %v14118_v50 }
 0x376   : > { %10957 = vpow2.f32 %v9102_v49  ;;  %v10952_v23 = vpop.eup %10951  ;;  %18418 = vst [vmem:[#allocation122_spill] sm:$0xff] %v14310_v10 }
 0x377   : > { %10959 = vrcp.f32 %v1462_v61  ;;  %v10954_v49 = vpop.eup %10953  ;;  %v2047_v61 = vsub.f32 1.0, %v13763_v63  ;;  %v1463_v57 = vadd.f32 1.0, %v10952_v23 }
 0x378   : > { %2332 = vperm.xlu1 %10386, %v13738_v37   ;;  %v1729_v37 = vmul.f32 %v13901_v54, %v14107_v4  ;;  %10961 = vrcp.f32 %v1461_v59  ;;  %v9071_v4 = vmul.f32 -1.442695, %v14295_v17  ;;  %v1892_v59 = vadd.f32 1.0, %v10950_v18  ;;  %v10956_v33 = vpop.eup %10955 }
 0x379   : > { %10963 = vpow2.f32 %v9070_v1  ;;  %v1894_v1 = vadd.f32 1.0, %v10954_v49  ;;  %v1303_v18 = vmul.f32 %v14181_v52, %v13857_v14 }
 0x37a   : > { %10965 = vpow2.f32 %v9104_v55  ;;  %v14313_v55 = vadd.f32 %v14192_v21, %v1302_v6 }
 0x37b   : > { %10967 = vpow2.f32 %v9072_v46  ;;  %v14332_v50 = vadd.f32 %v14192_v21, %v1303_v18 }
 0x37c   : > { %2171 = vperm.xlu1 %10386, %v2045_v40   ;;  %v14306_v40 = vadd.f32 %v13920_v27, %v1729_v37  ;;  %10969 = vrsqrt.f32 %v846_v28  ;;  %18419 = vst [vmem:[#allocation123_spill] sm:$0xff] %v14313_v55  ;;  %v1464_v28 = vadd.f32 1.0, %v10956_v33  ;;  %v9074_v49 = vmul.f32 -1.442695, %v14313_v55 }
 0x37d   : > { %10971 = vrcp.f32 %v1891_v11  ;;  %v9073_v11 = vmul.f32 -1.442695, %v14310_v10  ;;  %18421 = vst [vmem:[#allocation125_spill] sm:$0xff] %v14332_v50 }
 0x37e   : > { %10973 = vpow2.f32 %v9071_v4  ;;  %v14325_v4 = vadd.f32 %v13920_v27, %v1731_v13  ;;  %v14337_v13 = vadd.f32 %v13920_v27, %v1730_v32 }
 0x37f   : > { %10975 = vrcp.f32 %v1892_v59 }
 0x380   : > { %2340 = vperm.xlu1 %10386, %v12520_v44   ;;  %v9105_v44 = vmul.f32 -1.442695, %v14306_v40  ;;  %v10958_v46 = vpop.eup %10957  ;;  %10977 = vrcp.f32 %v1463_v57  ;;  %18420 = vst [vmem:[#allocation124_spill] sm:$0xff] %v14325_v4  ;;  %18422 = vst [vmem:[#allocation126_spill] sm:$0xff] %v14337_v13 }
 0x381   : > { %v10960_v56 = vpop.eup %10959  ;;  %10979 = vrcp.f32 %v1894_v1  ;;  %v1893_v14 = vadd.f32 1.0, %v10958_v46  ;;  %v9107_v46 = vmul.f32 -1.442695, %v14325_v4 }
 0x382   : > { %v10962_v6 = vpop.eup %10961  ;;  %10981 = vpow2.f32 %v9105_v44  ;;  %v14329_v33 = vmul.f32 %v10960_v56, %v14219_v12 }
 0x383   : > { %v10964_v57 = vpop.eup %10963 }
 0x384   : > { %2181 = vperm.xlu1 %10386, %v2047_v61   ;;  %v779_v63 = vpop.xlane.xlu1 %778  ;;  %v12521_v61 = vld [vmem:[%s13504_s29 + $0xc0] sm:$0xff]  ;;  %v10966_v1 = vpop.eup %10965 }
 0x385   : > { %v813_v37 = vmul.f32 0.00390625, %v779_v63  ;;  %v14334_v63 = vpop.eup %10967 }
 0x386   : > { %v10970_v44 = vpop.eup %10969 }
 0x387   : > { %v845_v23 = vadd.f32 1e-05, %v813_v37  ;;  %v14340_v37 = vmul.f32 %v10962_v6, %v14224_v19  ;;  %v10972_v56 = vpop.eup %10971  ;;  %v14353_v6 = vmul.f32 -1.442695, %v14332_v50  ;;  %v942_v55 = vmul.f32 %v10970_v44, %v13852_v62 }
 0x388   : > { %2344 = vperm.xlu1 %10386, %v12521_v61   ;;  %v2057_v59 = vpop.permute.xlu1 %2056  ;;  %v14348_v61 = vadd.f32 1.0, %v10964_v57  ;;  %v10974_v19 = vpop.eup %10973  ;;  %v941_v50 = vmul.f32 %v10970_v44, %v13849_v36  ;;  %v2378_v36 = vsel %vm2246_vm1, %v13938_v0, 0.0 }
 0x389   : > { %10983 = vrsqrt.f32 %v845_v23  ;;  %v12522_v23 = vld [vmem:[%s13504_s29 + $0xc8] sm:$0xff]  ;;  %v2473_v57 = vpack.c.bf16 %v14329_v33, %v14340_v37  ;;  %v14372_v33 = vld [vmem:[%s13504_s29 + $0xd8] sm:$0xff] }
 0x38a   : > { %10985 = vpow2.f32 %v9073_v11  ;;  %v14345_v11 = vld [vmem:[%s13504_s29 + $0xd0] sm:$0xff]  ;;  %v2049_v37 = vsub.f32 1.0, %v14372_v33  ;;  %v1017_v0 = vmul.f32 %v13447_v38, %v941_v50 }
 0x38b   : > { %10987 = vrcp.f32 %v1464_v28  ;;  %v2048_v18 = vsub.f32 1.0, %v14345_v11  ;;  %v1895_v28 = vadd.f32 1.0, %v10966_v1  ;;  %v10976_v1 = vpop.eup %10975 }
 0x38c   : > { %10989 = vpow2.f32 %v9074_v49  ;;  %2348 = vperm.xlu1 %10386, %v12522_v23   ;;  %v2249_v12 = vpop.permute.xlu1 %2248  ;;  %v1304_v49 = vmul.f32 %v14181_v52, %v13867_v29  ;;  %v2215_v23 = vsel %vm2021_vm0, %v13915_v30, 0.0  ;;  %v14367_v35 = vpop.eup %10977  ;;  %v1735_v29 = vmul.f32 %v13901_v54, %v13855_v7 }
 0x38d   : > { %10991 = vrcp.f32 %v1893_v14  ;;  %v2375_v32 = vsel %vm2246_vm1, %v2249_v12, 0.0  ;;  %v9106_v14 = vmul.f32 -1.442695, %v14337_v13  ;;  %v2214_v12 = vsel %vm2021_vm0, %v2057_v59, 0.0  ;;  %v10980_v10 = vpop.eup %10979 }
 0x38e   : > { %10993 = vpow2.f32 %v9107_v46  ;;  %v2407_v30 = vadd.f32 %v2375_v32, %v2214_v12  ;;  %v1466_v59 = vadd.f32 1.0, %v10974_v19  ;;  %v10982_v44 = vpop.eup %10981  ;;  %v1732_v7 = vmul.f32 %v13901_v54, %v14128_v48 }
 0x38f   : > { %10995 = vrcp.f32 %v1895_v28  ;;  %v1988_v32 = vmul.f32 %v10976_v1, %v14240_v47  ;;  %v1733_v28 = vmul.f32 %v13901_v54, %v14140_v20  ;;  %v1018_v19 = vmul.f32 %v13431_v15, %v942_v55 }
 0x390   : > { %2186 = vperm.xlu1 %10386, %v2048_v18   ;;  %v2253_v24 = vpop.permute.xlu1 %2252  ;;  %v1987_v18 = vmul.f32 %v10972_v56, %v14235_v5  ;;  %10997 = vpow2.f32 %v9106_v14  ;;  %v1990_v47 = vmul.f32 %v10980_v10, %v14251_v39  ;;  %v2216_v54 = vsel %vm2021_vm0, %v13928_v51, 0.0 }
 0x391   : > { %v2376_v62 = vsel %vm2246_vm1, %v2253_v24, 0.0  ;;  %v1896_v20 = vadd.f32 1.0, %v10982_v44  ;;  %v14404_v39 = vadd.f32 %v13920_v27, %v1733_v28  ;;  %v1094_v51 = vadd.f32 %v13453_v34, %v1018_v19 }
 0x392   : > { %v2408_v46 = vadd.f32 %v2376_v62, %v2215_v23  ;;  %v2439_v4 = vadd.f32 %v2407_v30, %v1987_v18  ;;  %v14401_v30 = vadd.f32 %v13920_v27, %v1732_v7  ;;  %v1093_v10 = vadd.f32 %v13469_v43, %v1017_v0 }
 0x393   : > { %v10984_v12 = vpop.eup %10983  ;;  %10999 = vrcp.f32 %v1466_v59 }
 0x394   : > { %v10986_v13 = vpop.eup %10985  ;;  %2191 = vperm.xlu1 %10386, %v2049_v37   ;;  %v2072_v24 = vpop.permute.xlu1 %2071  ;;  %v2440_v60 = vadd.f32 %v2408_v46, %v1988_v32  ;;  %v940_v48 = vmul.f32 %v10984_v12, %v14061_v53  ;;  %v939_v5 = vmul.f32 %v10984_v12, %v14058_v16  ;;  %11001 = vrcp.f32 %v1896_v20 }
 0x395   : > { %v10988_v56 = vpop.eup %10987  ;;  %v2217_v55 = vsel %vm2021_vm0, %v2072_v24, 0.0  ;;  %11003 = vrcp.f32 %v14348_v61  ;;  %v12526_v61 = vld [vmem:[%s13504_s29 + $0xe0] sm:$0xff]  ;;  %v1559_v12 = vmul.f32 %v14367_v35, %v14245_v2 }
 0x396   : > { %v14396_v50 = vpop.eup %10989  ;;  %v2410_v23 = vadd.f32 %v2378_v36, %v2217_v55  ;;  %v2474_v1 = vpack.c.bf16 %v2440_v60, %v2439_v4  ;;  %v1016_v14 = vmul.f32 %v13431_v15, %v940_v48  ;;  %v1015_v53 = vmul.f32 %v13447_v38, %v939_v5  ;;  %v14446_v35 = vld [vmem:[%s18130_s2 + $0x7] ss:$0 sm:$0xff] }
 0x397   : > { %v10992_v16 = vpop.eup %10991  ;;  %v14412_v4 = vadd.f32 %v14192_v21, %v1304_v49  ;;  %v14415_v36 = vadd.f32 %v13920_v27, %v1735_v29  ;;  %v1305_v27 = vmul.f32 %v14181_v52, %v13870_v8  ;;  %v9108_v49 = vmul.f32 -1.442695, %v14401_v30 }
 0x398   : > { %v2442_v37 = vadd.f32 %v2410_v23, %v1990_v47  ;;  %2352 = vperm.xlu1 %10386, %v14345_v11   ;;  %v2257_v60 = vpop.permute.xlu1 %2256  ;;  %3156 = vmatprep.mubr.bf16.mxu0 %v2474_v1  ;;  %v1092_v15 = vadd.f32 %v13453_v34, %v1016_v14  ;;  %v1091_v38 = vadd.f32 %v13469_v43, %v1015_v53  ;;  %v10994_v59 = vpop.eup %10993  ;;  %v9109_v29 = vmul.f32 -1.442695, %v14404_v39 }
 0x399   : > { %v2377_v62 = vsel %vm2246_vm1, %v2257_v60, 0.0  ;;  %3157 = vmatmul.mubr.bf16.vlgmr.msra.gmra.mrb[0].mxu0 %v2473_v57  ;;  %v1989_v11 = vmul.f32 %v10992_v16, %v14272_v22  ;;  %v10996_v46 = vpop.eup %10995  ;;  %v1560_v43 = vmul.f32 %v10988_v56, %v14262_v31  ;;  %v14429_v22 = vld [vmem:[%s18130_s2 + $0x6] ss:$0 sm:$0xff]  ;;  %v2050_v32 = vsub.f32 1.0, %v12526_v61  ;;  %v12528_v16 = vld [vmem:[%s13504_s29 + $0xf0] sm:$0xff]  ;;  %s12652_s29 = sshll.u32 %s12735_s18, 4  ;;  %s12653_s29 = int_to_ptr.vmem [resolvable:$false] %s12652_s29 }
 0x39a   : > { %v2409_v44 = vadd.f32 %v2377_v62, %v2216_v54  ;;  %v2532_v7 = vpack.c.bf16 %v1094_v51, %v1092_v15  ;;  %v2531_v34 = vpack.c.bf16 %v1093_v10, %v1091_v38  ;;  %v1734_v57 = vmul.f32 %v14429_v22, %v14144_v41  ;;  %v10998_v8 = vpop.eup %10997  ;;  %v18424_v38 = vld [vmem:[#allocation19_spill] sm:$0xff]  ;;  %s12654_s12 = scalar_lea.vmem %s12653_s29, 16384  ;;  %p12655_p7 = scmp.lt.s32.totalorder %s18081_s15, %s12653_s29 }
 0x39b   : > { %11005 = vpow2.f32 %v14353_v6  ;;  %v9076_v28 = vmul.f32 -1.442695, %v14412_v4  ;;  %v9111_v19 = vmul.f32 -1.442695, %v14415_v36  ;;  %v1468_v41 = vadd.f32 1.0, %v10986_v13  ;;  %p12656_p9 = scmp.lt.s32.totalorder %s12654_s12, %s12648_s14 }
 0x39c   : > { %v2441_v18 = vadd.f32 %v2409_v44, %v1989_v11  ;;  %2356 = vperm.xlu1 %10386, %v14372_v33   ;;  %v2077_v31 = vpop.permute.xlu1 %2076  ;;  %3113 = vmatprep.mubr.bf16.mxu1 %v2532_v7  ;;  %v14441_v24 = vadd.f32 %v14192_v21, %v1305_v27  ;;  %11007 = vpow2.f32 %v9108_v49  ;;  %v2477_v33 = vpack.c.bf16 %v1560_v43, %v1559_v12 }
 0x39d   : > { %3114 = vmatmul.mubr.bf16.gmra.mrb[60].mxu1 %v2531_v34  ;;  %v1898_v48 = vadd.f32 1.0, %v10994_v59  ;;  %11009 = vpow2.f32 %v9109_v29  ;;  %v14449_v2 = vadd.f32 %v14446_v35, %v1734_v57  ;;  %v1306_v13 = vmul.f32 %v14181_v52, %v13878_v45  ;;  %v11000_v47 = vpop.eup %10999  ;;  %p12657_p12 = por %p12656_p9, %p12655_p7 }
 0x39e   : > { %v2478_v0 = vpack.c.bf16 %v2442_v37, %v2441_v18  ;;  %11011 = vpow2.f32 %v9076_v28  ;;  %v1897_v5 = vadd.f32 1.0, %v10998_v8  ;;  %v1467_v54 = vadd.f32 1.0, %v14334_v63  ;;  %v11002_v20 = vpop.eup %11001  ;;  %v18423_v37 = vld [vmem:[#allocation37_spill] sm:$0xff] }
 0x39f   : > { %11013 = vpow2.f32 %v9111_v19  ;;  %v9077_v55 = vmul.f32 -1.442695, %v14441_v24  ;;  %v1743_v23 = vmul.f32 %v14429_v22, %v13865_v58  ;;  %v2218_v45 = vsel %vm2021_vm0, %v2077_v31, 0.0  ;;  %v11004_v63 = vpop.eup %11003  ;;  %p12658_p0 = pnand %p12657_p12, %p12651_p3 }
 0x3a0   : > { %2196 = vperm.xlu1 %10386, %v2050_v32   ;;  %v2265_v6 = vpop.permute.xlu1 %2264  ;;  %3166 = vmatprep.mubr.bf16.mxu0 %v2478_v0  ;;  %11015 = vrcp.f32 %v1468_v41  ;;  %v9110_v1 = vmul.f32 -1.442695, %v14449_v2  ;;  %v2052_v51 = vsub.f32 1.0, %v12528_v16  ;;  %v14464_v10 = vadd.f32 %v14192_v21, %v1306_v13 }
 0x3a1   : > { %v2379_v56 = vsel %vm2246_vm1, %v2265_v6, 0.0  ;;  %3167 = vmatmul.mubr.bf16.gmra.mrb[4].mxu0 %v2477_v33  ;;  %11017 = vrcp.f32 %v1898_v48  ;;  %v2219_v60 = vsel %vm2021_vm0, %v18423_v37, 0.0  ;;  %v1991_v15 = vmul.f32 %v10996_v46, %v14282_v9  ;;  %v18428_v37 = vld [vmem:[#allocation24_spill] sm:$0xff] }
 0x3a2   : > { %v2411_v14 = vadd.f32 %v2379_v56, %v2218_v45  ;;  %11019 = vrcp.f32 %v1897_v5  ;;  %v1307_v62 = vmul.f32 %v14181_v52, %v18424_v38  ;;  %v1992_v59 = vmul.f32 %v11002_v20, %v14306_v40 }
 0x3a3   : > { %11021 = vrcp.f32 %v1467_v54  ;;  %v1469_v7 = vadd.f32 1.0, %v14396_v50  ;;  %v1562_v34 = vmul.f32 %v11000_v47, %v14295_v17  ;;  %v1736_v43 = vmul.f32 %v14429_v22, %v14146_v26 }
 0x3a4   : > { %2360 = vperm.xlu1 %10386, %v12526_v61   ;;  %v2269_v53 = vpop.permute.xlu1 %2268  ;;  %11023 = vpow2.f32 %v9110_v1  ;;  %v1737_v27 = vmul.f32 %v14429_v22, %v14150_v3  ;;  %v2443_v9 = vadd.f32 %v2411_v14, %v1991_v15  ;;  %v1561_v40 = vmul.f32 %v11004_v63, %v14279_v42  ;;  %v18425_v61 = vld [vmem:[#allocation18_spill] sm:$0xff] }
 0x3a5   : > { %v2380_v58 = vsel %vm2246_vm1, %v2269_v53, 0.0  ;;  %v11006_v44 = vpop.eup %11005  ;;  %11025 = vpow2.f32 %v9077_v55  ;;  %v9078_v57 = vmul.f32 -1.442695, %v14464_v10  ;;  %v14484_v17 = vadd.f32 %v14446_v35, %v1743_v23  ;;  %v18426_v55 = vld [vmem:[#allocation42_spill] sm:$0xff] }
 0x3a6   : > { %v2412_v11 = vadd.f32 %v2380_v58, %v2219_v60  ;;  %v11008_v29 = vpop.eup %11007  ;;  %v1470_v18 = vadd.f32 1.0, %v11006_v44  ;;  %v14487_v26 = vadd.f32 %v14192_v21, %v1307_v62  ;;  %v1308_v32 = vmul.f32 %v14181_v52, %v18425_v61  ;;  %v18427_v14 = vld [vmem:[#allocation102_spill] sm:$0xff]  ;;  %v18429_v62 = vld [vmem:[#allocation124_spill] sm:$0xff] }
 0x3a7   : > { %v11010_v50 = vpop.eup %11009  ;;  %v14492_v8 = vadd.f32 %v14446_v35, %v1736_v43  ;;  %v2481_v42 = vpack.c.bf16 %v1562_v34, %v1561_v40  ;;  %11027 = vrcp.f32 %v1469_v7  ;;  %v1899_v28 = vadd.f32 1.0, %v11008_v29  ;;  %v18431_v43 = vld [vmem:[#allocation122_spill] sm:$0xff] }
 0x3a8   : > { %v2444_v46 = vadd.f32 %v2412_v11, %v1992_v59  ;;  %2206 = vperm.xlu1 %10386, %v2052_v51   ;;  %v2092_v49 = vpop.permute.xlu1 %2091  ;;  %v11012_v3 = vpop.eup %11011  ;;  %v14495_v19 = vadd.f32 %v14446_v35, %v1737_v27  ;;  %11029 = vpow2.f32 %v9078_v57  ;;  %v1900_v33 = vadd.f32 1.0, %v11010_v50  ;;  %v18430_v11 = vld [vmem:[#allocation126_spill] sm:$0xff] }
 0x3a9   : > { %v11014_v12 = vpop.eup %11013  ;;  %11031 = vrcp.f32 %v1470_v18  ;;  %v1471_v13 = vadd.f32 1.0, %v11012_v3  ;;  %v9119_v5 = vmul.f32 -1.442695, %v14484_v17  ;;  %v9079_v56 = vmul.f32 -1.442695, %v14487_v26  ;;  %v18433_v3 = vld [vmem:[#allocation121_spill] sm:$0xff] }
 0x3aa   : > { %v2482_v31 = vpack.c.bf16 %v2444_v46, %v2443_v9  ;;  %v11016_v41 = vpop.eup %11015  ;;  %v1902_v54 = vadd.f32 1.0, %v11014_v12  ;;  %v14502_v20 = vadd.f32 %v14192_v21, %v1308_v32  ;;  %v2220_v23 = vsel %vm2021_vm0, %v18426_v55, 0.0  ;;  %v18432_v46 = vld [vmem:[#allocation20_spill] sm:$0xff] }
 0x3ab   : > { %v11018_v6 = vpop.eup %11017  ;;  %v9112_v45 = vmul.f32 -1.442695, %v14492_v8  ;;  %11033 = vrcp.f32 %v1899_v28  ;;  %v9113_v1 = vmul.f32 -1.442695, %v14495_v19  ;;  %v1739_v53 = vmul.f32 %v14429_v22, %v18427_v14  ;;  %v10483_v18 = vld [vmem:[#allocation7] ss:$16 sps:$4 sm:$0xff]  }
 0x3ac   : > { %2368 = vperm.xlu1 %10386, %v12528_v16   ;;  %v2273_v0 = vpop.permute.xlu1 %2272  ;;  %3176 = vmatprep.mubr.bf16.mxu0 %v2482_v31  ;;  %v11020_v47 = vpop.eup %11019  ;;  %v1309_v60 = vmul.f32 %v14181_v52, %v18428_v37  ;;  %11035 = vrcp.f32 %v1900_v33  ;;  %v2221_v58 = vsel %vm2021_vm0, %v2092_v49, 0.0  ;;  %v1994_v59 = vmul.f32 %v11018_v6, %v18429_v62  ;;  %v10485_v31 = vld [vmem:[#allocation7 + $0x4] ss:$16 sps:$4 sm:$0xff]   ;;  %v18436_v37 = vld [vmem:[#allocation103_spill] sm:$0xff] }
 0x3ad   : > { %v2381_v48 = vsel %vm2246_vm1, %v2273_v0, 0.0  ;;  %3177 = vmatmul.mubr.bf16.gmra.mrb[8].mxu0 %v2481_v42  ;;  %v11022_v63 = vpop.eup %11021  ;;  %11037 = vpow2.f32 %v9079_v56  ;;  %v1993_v44 = vmul.f32 %v11020_v47, %v18430_v11  ;;  %v1564_v27 = vmul.f32 %v11016_v41, %v18431_v43  ;;  %v10488_v12 = vld [vmem:[#allocation7 + $0x24] ss:$16 sps:$4 sm:$0xff]   ;;  %4203 = vmatprep.subr.bf16.mxu1 %v10485_v31  ;;  %v10486_v56 = vld [vmem:[#allocation7 + $0x20] ss:$16 sps:$4 sm:$0xff]  }
 0x3ae   : > { %v2413_v16 = vadd.f32 %v2381_v48, %v2220_v23  ;;  %v11024_v38 = vpop.eup %11023  ;;  %v9080_v9 = vmul.f32 -1.442695, %v14502_v20  ;;  %v1310_v29 = vmul.f32 %v14181_v52, %v18432_v46  ;;  %11039 = vpow2.f32 %v9112_v45  ;;  %4204 = vmatpush1.bf16.msra.mxu1 %v10483_v18  ;;  %v10491_v23 = vld [vmem:[#allocation7 + $0x44] ss:$16 sps:$4 sm:$0xff]  }
 0x3af   : > { %v11026_v34 = vpop.eup %11025  ;;  %11041 = vpow2.f32 %v9113_v1  ;;  %v14524_v49 = vadd.f32 %v14446_v35, %v1739_v53  ;;  %v1563_v61 = vmul.f32 %v11022_v63, %v18433_v3  ;;  %v14528_v32 = vadd.f32 %v14192_v21, %v1309_v60  ;;  %4205 = vmatprep.subr.bf16.mxu1 %v10488_v12  ;;  %v18434_v53 = vld [vmem:[#allocation25_spill] sm:$0xff]  ;;  %v18440_v12 = vld [vmem:[#allocation35_spill] sm:$0xff] }
 0x3b0   : > { %v2277_v51 = vpop.permute.xlu1 %2276  ;;  %v2445_v40 = vadd.f32 %v2413_v16, %v1993_v44  ;;  %11043 = vrcp.f32 %v1902_v54  ;;  %v1901_v42 = vadd.f32 1.0, %v11024_v38  ;;  %v1472_v0 = vadd.f32 1.0, %v11026_v34  ;;  %v18437_v38 = vld [vmem:[#allocation123_spill] sm:$0xff]  ;;  %v10494_v34 = vld [vmem:[#allocation7 + $0x64] ss:$16 sps:$4 sm:$0xff]  }
 0x3b1   : > { %v2382_v15 = vsel %vm2246_vm1, %v2277_v51, 0.0  ;;  %v11028_v28 = vpop.eup %11027  ;;  %11045 = vpow2.f32 %v9119_v5  ;;  %v14531_v48 = vadd.f32 %v14192_v21, %v1310_v29  ;;  %v2485_v6 = vpack.c.bf16 %v1564_v27, %v1563_v61  ;;  %v18435_v51 = vld [vmem:[#allocation44_spill] sm:$0xff] }
 0x3b2   : > { %v2414_v7 = vadd.f32 %v2382_v15, %v2221_v58  ;;  %v11030_v33 = vpop.eup %11029  ;;  %11047 = vrcp.f32 %v1471_v13  ;;  %v9115_v54 = vmul.f32 -1.442695, %v14524_v49  ;;  %v9081_v5 = vmul.f32 -1.442695, %v14528_v32  ;;  %4206 = vmatpush1.bf16.msra.mxu1 %v10486_v56  ;;  %v10489_v58 = vld [vmem:[#allocation7 + $0x40] ss:$16 sps:$4 sm:$0xff]  }
 0x3b3   : > { %v11032_v47 = vpop.eup %11031  ;;  %11049 = vpow2.f32 %v9080_v9  ;;  %v9082_v14 = vmul.f32 -1.442695, %v14531_v48  ;;  %v1311_v16 = vmul.f32 %v14181_v52, %v18434_v53  ;;  %v2222_v63 = vsel %vm2021_vm0, %v18435_v51, 0.0  ;;  %4207 = vmatprep.subr.bf16.mxu1 %v10491_v23 }
 0x3b4   : > { %v2446_v57 = vadd.f32 %v2414_v7, %v1994_v59  ;;  %v2102_v50 = vpop.permute.xlu1 %2101  ;;  %11051 = vrcp.f32 %v1901_v42  ;;  %v1740_v60 = vmul.f32 %v14429_v22, %v18436_v37  ;;  %v1565_v62 = vmul.f32 %v11028_v28, %v18437_v38  ;;  %v18438_v59 = vld [vmem:[#allocation104_spill] sm:$0xff] }
 0x3b5   : > { %v11034_v45 = vpop.eup %11033  ;;  %11053 = vrcp.f32 %v1472_v0  ;;  %v1741_v11 = vmul.f32 %v14429_v22, %v18438_v59  ;;  %v1473_v27 = vadd.f32 1.0, %v11030_v33  ;;  %v2223_v9 = vsel %vm2021_vm0, %v2102_v50, 0.0  ;;  %v10492_v0 = vld [vmem:[#allocation7 + $0x60] ss:$16 sps:$4 sm:$0xff]  }
 0x3b6   : > { %v2486_v41 = vpack.c.bf16 %v2446_v57, %v2445_v40  ;;  %v11036_v1 = vpop.eup %11035  ;;  %11055 = vpow2.f32 %v9115_v54  ;;  %v18439_v40 = vld [vmem:[#allocation125_spill] sm:$0xff]  ;;  %v1995_v18 = vmul.f32 %v11034_v45, %v14401_v30  ;;  %v14556_v42 = vadd.f32 %v14192_v21, %v1311_v16  ;;  %4208 = vmatpush1.bf16.msra.mxu1 %v10489_v58  ;;  %v10495_v38 = vld [vmem:[#allocation7 + $0x80] ss:$16 sps:$4 sm:$0xff]  }
 0x3b7   : > { %v11038_v15 = vpop.eup %11037  ;;  %11057 = vpow2.f32 %v9081_v5  ;;  %v1566_v57 = vmul.f32 %v11032_v47, %v18439_v40  ;;  %v1996_v31 = vmul.f32 %v11036_v1, %v14404_v39  ;;  %v1312_v28 = vmul.f32 %v14181_v52, %v18440_v12  ;;  %4209 = vmatprep.subr.bf16.mxu1 %v10494_v34  ;;  %v10497_v47 = vld [vmem:[#allocation7 + $0x84] ss:$16 sps:$4 sm:$0xff]  }
 0x3b8   : > { %v2281_v55 = vpop.permute.xlu1 %2280  ;;  %3186 = vmatprep.mubr.bf16.mxu0 %v2486_v41  ;;  %v11040_v43 = vpop.eup %11039  ;;  %11059 = vpow2.f32 %v9082_v14  ;;  %v14561_v50 = vadd.f32 %v14446_v35, %v1740_v60  ;;  %v14566_v30 = vadd.f32 %v14446_v35, %v1741_v11  ;;  %v1474_v14 = vadd.f32 1.0, %v11038_v15  ;;  %v10500_v34 = vld [vmem:[#allocation7 + $0xa4] ss:$16 sps:$4 sm:$0xff]  }
 0x3b9   : > { %v2383_v13 = vsel %vm2246_vm1, %v2281_v55, 0.0  ;;  %3187 = vmatmul.mubr.bf16.gmra.mrb[12].mxu0 %v2485_v6  ;;  %v11042_v29 = vpop.eup %11041  ;;  %v1903_v33 = vadd.f32 1.0, %v11040_v43  ;;  %11061 = vrcp.f32 %v1473_v27  ;;  %v18441_v55 = vld [vmem:[#allocation52_spill] sm:$0xff]  ;;  %v14576_v37 = vadd.f32 %v14192_v21, %v1312_v28  ;;  %v18443_v43 = vld [vmem:[#allocation39_spill] sm:$0xff] }
 0x3ba   : > { %v2415_v44 = vadd.f32 %v2383_v13, %v2222_v63  ;;  %v11044_v61 = vpop.eup %11043  ;;  %v2386_v23 = vsel %vm2246_vm1, %v18441_v55, 0.0  ;;  %v1904_v5 = vadd.f32 1.0, %v11042_v29  ;;  %v9083_v63 = vmul.f32 -1.442695, %v14556_v42  ;;  %4210 = vmatpush1.bf16.msra.mxu1 %v10492_v0 }
 0x3bb   : > { %v14563_v41 = vpop.eup %11045  ;;  %v1998_v1 = vmul.f32 %v11044_v61, %v14415_v36  ;;  %v9116_v60 = vmul.f32 -1.442695, %v14561_v50  ;;  %v2489_v58 = vpack.c.bf16 %v1566_v57, %v1565_v62  ;;  %11063 = vrcp.f32 %v1903_v33  ;;  %4211 = vmatprep.subr.bf16.mxu1 %v10497_v47  ;;  %v10498_v61 = vld [vmem:[#allocation7 + $0xa0] ss:$16 sps:$4 sm:$0xff]  }
 0x3bc   : > { %v2285_v7 = vpop.permute.xlu1 %2284  ;;  %v2447_v39 = vadd.f32 %v2415_v44, %v1995_v18  ;;  %v11048_v54 = vpop.eup %11047  ;;  %v9117_v11 = vmul.f32 -1.442695, %v14566_v30  ;;  %v18442_v44 = vld [vmem:[#allocation105_spill] sm:$0xff]  ;;  %v1313_v27 = vmul.f32 %v14181_v52, %v18443_v43  ;;  %11065 = vrcp.f32 %v1904_v5 }
 0x3bd   : > { %v2384_v46 = vsel %vm2246_vm1, %v2285_v7, 0.0  ;;  %v11050_v45 = vpop.eup %11049  ;;  %v1742_v36 = vmul.f32 %v14429_v22, %v18442_v44  ;;  %11067 = vrcp.f32 %v1474_v14  ;;  %v9084_v12 = vmul.f32 -1.442695, %v14576_v37  ;;  %v18445_v5 = vld [vmem:[#allocation45_spill] sm:$0xff] }
 0x3be   : > { %v2416_v3 = vadd.f32 %v2384_v46, %v2223_v9  ;;  %v11052_v51 = vpop.eup %11051  ;;  %v18444_v9 = vld [vmem:[#allocation49_spill] sm:$0xff]  ;;  %11069 = vpow2.f32 %v9116_v60  ;;  %4212 = vmatpush1.bf16.msra.mxu1 %v10495_v38  ;;  %v18446_v60 = vld [vmem:[#allocation51_spill] sm:$0xff]  ;;  %v18447_v38 = vld [vmem:[#allocation56_spill] sm:$0xff] }
 0x3bf   : > { %v11054_v59 = vpop.eup %11053  ;;  %v2224_v62 = vsel %vm2021_vm0, %v18444_v9, 0.0  ;;  %v1997_v40 = vmul.f32 %v11052_v51, %v14449_v2  ;;  %11071 = vpow2.f32 %v9117_v11  ;;  %v14593_v28 = vadd.f32 %v14446_v35, %v1742_v36  ;;  %4213 = vmatprep.subr.bf16.mxu1 %v10500_v34  ;;  %v18448_v11 = vld [vmem:[#allocation106_spill] sm:$0xff]  ;;  %v18450_v9 = vld [vmem:[#allocation21_spill] sm:$0xff] }
 0x3c0   : > { %v2448_v6 = vadd.f32 %v2416_v3, %v1996_v31  ;;  %v2112_v56 = vpop.permute.xlu1 %2111  ;;  %v11056_v29 = vpop.eup %11055  ;;  %v1568_v31 = vmul.f32 %v11054_v59, %v14441_v24  ;;  %v1475_v3 = vadd.f32 1.0, %v11050_v45  ;;  %v1567_v2 = vmul.f32 %v11048_v54, %v14412_v4 }
 0x3c1   : > { %v2225_v13 = vsel %vm2021_vm0, %v2112_v56, 0.0  ;;  %v11058_v18 = vpop.eup %11057  ;;  %11073 = vpow2.f32 %v9083_v63  ;;  %v14597_v24 = vadd.f32 %v14192_v21, %v1313_v27  ;;  %v1906_v56 = vadd.f32 1.0, %v11056_v29  ;;  %v14611_v63 = vld [vmem:[%s18130_s2 + $0x4] ss:$0 sm:$0xff] }
 0x3c2   : > { %v2418_v53 = vadd.f32 %v2386_v23, %v2225_v13  ;;  %v2490_v16 = vpack.c.bf16 %v2448_v6, %v2447_v39  ;;  %v10503_v39 = vld [vmem:[#allocation7 + $0xc4] ss:$16 sps:$4 sm:$0xff]   ;;  %v11060_v6 = vpop.eup %11059  ;;  %v1476_v47 = vadd.f32 1.0, %v11058_v18  ;;  %11075 = vrcp.f32 %v1475_v3  ;;  %4214 = vmatpush1.bf16.msra.mxu1 %v10498_v61 }
 0x3c3   : > { %v11062_v23 = vpop.eup %11061  ;;  %v1314_v13 = vmul.f32 %v14181_v52, %v18445_v5  ;;  %v2493_v45 = vpack.c.bf16 %v1568_v31, %v1567_v2  ;;  %11077 = vpow2.f32 %v9084_v12  ;;  %v9118_v14 = vmul.f32 -1.442695, %v14593_v28  ;;  %4215 = vmatprep.subr.bf16.mxu1 %v10503_v39 }
 0x3c4   : > { %v2450_v15 = vadd.f32 %v2418_v53, %v1998_v1  ;;  %v2289_v7 = vpop.permute.xlu1 %2288  ;;  %3196 = vmatprep.mubr.bf16.mxu0 %v2490_v16  ;;  %v10501_v1 = vld [vmem:[#allocation7 + $0xc0] ss:$16 sps:$4 sm:$0xff]   ;;  %v9085_v4 = vmul.f32 -1.442695, %v14597_v24  ;;  %11079 = vrcp.f32 %v1906_v56  ;;  %v2226_v59 = vsel %vm2021_vm0, %v18447_v38, 0.0 }
 0x3c5   : > { %v2385_v46 = vsel %vm2246_vm1, %v2289_v7, 0.0  ;;  %3197 = vmatmul.mubr.bf16.gmra.mrb[16].mxu0 %v2489_v58  ;;  %v11064_v16 = vpop.eup %11063  ;;  %11081 = vrcp.f32 %v1476_v47  ;;  %v14606_v52 = vadd.f32 %v14192_v21, %v1314_v13  ;;  %v1315_v58 = vmul.f32 %v14611_v63, %v18446_v60 }
 0x3c6   : > { %v2417_v57 = vadd.f32 %v2385_v46, %v2224_v62  ;;  %v11066_v51 = vpop.eup %11065  ;;  %v1744_v44 = vmul.f32 %v14429_v22, %v18448_v11  ;;  %4216 = vmatpush1.bf16.msra.mxu1 %v10501_v1  ;;  %v1910_v21 = vadd.f32 1.0, %v14563_v41  ;;  %11083 = vpow2.f32 %v9118_v14 }
 0x3c7   : > { %v11068_v36 = vpop.eup %11067  ;;  %11085 = vpow2.f32 %v9085_v4  ;;  %v1317_v62 = vmul.f32 %v14611_v63, %v18450_v9  ;;  %v1999_v41 = vmul.f32 %v11064_v16, %v14492_v8  ;;  %v2000_v18 = vmul.f32 %v11066_v51, %v14495_v19 }
 0x3c8   : > { %v2449_v0 = vadd.f32 %v2417_v57, %v1997_v40  ;;  %v2122_v33 = vpop.permute.xlu1 %2121  ;;  %v11070_v27 = vpop.eup %11069  ;;  %v1477_v57 = vadd.f32 1.0, %v11060_v6  ;;  %v1570_v61 = vmul.f32 %v11068_v36, %v14487_v26  ;;  %v9086_v12 = vmul.f32 -1.442695, %v14606_v52 }
 0x3c9   : > { %v2227_v46 = vsel %vm2021_vm0, %v2122_v33, 0.0  ;;  %v11072_v40 = vpop.eup %11071  ;;  %v14642_v39 = vadd.f32 %v14446_v35, %v1744_v44  ;;  %v1907_v8 = vadd.f32 1.0, %v11070_v27  ;;  %v1569_v47 = vmul.f32 %v11062_v23, %v14464_v10  ;;  %v18451_v23 = vld [vmem:[#allocation108_spill] sm:$0xff] }
 0x3ca   : > { %v2494_v55 = vpack.c.bf16 %v2450_v15, %v2449_v0  ;;  %v18449_v15 = vld [vmem:[#allocation107_spill] sm:$0xff]  ;;  %v14636_v0 = vld [vmem:[%s18130_s2 + $0x5] ss:$0 sm:$0xff]  ;;  %11087 = vrcp.f32 %v1910_v21  ;;  %v1747_v51 = vmul.f32 %v14429_v22, %v18451_v23 }
 0x3cb   : > { %v1745_v7 = vmul.f32 %v14429_v22, %v18449_v15  ;;  %v11074_v3 = vpop.eup %11073  ;;  %v14639_v33 = vadd.f32 %v14636_v0, %v1315_v58  ;;  %11089 = vrcp.f32 %v1477_v57  ;;  %v14649_v14 = vadd.f32 %v14636_v0, %v1317_v62  ;;  %v18452_v58 = vld [vmem:[#allocation57_spill] sm:$0xff] }
 0x3cc   : > { %v2297_v53 = vpop.permute.xlu1 %2296  ;;  %3206 = vmatprep.mubr.bf16.mxu0 %v2494_v55  ;;  %v11076_v56 = vpop.eup %11075  ;;  %v1908_v55 = vadd.f32 1.0, %v11072_v40  ;;  %v1478_v13 = vadd.f32 1.0, %v11074_v3  ;;  %11091 = vpow2.f32 %v9086_v12  ;;  %v2497_v4 = vpack.c.bf16 %v1570_v61, %v1569_v47  ;;  %v18453_v40 = vld [vmem:[#allocation64_spill] sm:$0xff] }
 0x3cd   : > { %v2387_v54 = vsel %vm2246_vm1, %v2297_v53, 0.0  ;;  %3207 = vmatmul.mubr.bf16.gmra.mrb[20].mxu0 %v2493_v45  ;;  %v14645_v19 = vadd.f32 %v14446_v35, %v1745_v7  ;;  %v11078_v5 = vpop.eup %11077  ;;  %v9120_v53 = vmul.f32 -1.442695, %v14642_v39  ;;  %v9087_v16 = vmul.f32 -1.442695, %v14639_v33 }
 0x3ce   : > { %v2419_v34 = vadd.f32 %v2387_v54, %v2226_v59  ;;  %v11080_v1 = vpop.eup %11079  ;;  %11093 = vrcp.f32 %v1907_v8  ;;  %v1316_v38 = vmul.f32 %v14611_v63, %v18452_v58  ;;  %v1571_v62 = vmul.f32 %v11076_v56, %v14502_v20 }
 0x3cf   : > { %v11082_v54 = vpop.eup %11081  ;;  %v9121_v10 = vmul.f32 -1.442695, %v14645_v19  ;;  %11095 = vrcp.f32 %v1908_v55  ;;  %v2002_v36 = vmul.f32 %v11080_v1, %v14524_v49 }
 0x3d0   : > { %v2301_v43 = vpop.permute.xlu1 %2300  ;;  %v2451_v6 = vadd.f32 %v2419_v34, %v1999_v41  ;;  %v11084_v44 = vpop.eup %11083  ;;  %11097 = vrcp.f32 %v1478_v13  ;;  %v1572_v7 = vmul.f32 %v11082_v54, %v14528_v32  ;;  %v9089_v34 = vmul.f32 -1.442695, %v14649_v14  ;;  %v18457_v54 = vld [vmem:[#allocation110_spill] sm:$0xff] }
 0x3d1   : > { %v2388_v29 = vsel %vm2246_vm1, %v2301_v43, 0.0  ;;  %v11086_v15 = vpop.eup %11085  ;;  %11099 = vpow2.f32 %v9120_v53  ;;  %v14666_v43 = vadd.f32 %v14446_v35, %v1747_v51  ;;  %v1909_v49 = vadd.f32 1.0, %v11084_v44 }
 0x3d2   : > { %v2420_v31 = vadd.f32 %v2388_v29, %v2227_v46  ;;  %11101 = vpow2.f32 %v9121_v10  ;;  %v14670_v46 = vadd.f32 %v14636_v0, %v1316_v38  ;;  %v1480_v29 = vadd.f32 1.0, %v11086_v15 }
 0x3d3   : > { %11103 = vpow2.f32 %v9087_v16  ;;  %v1479_v41 = vadd.f32 1.0, %v11078_v5  ;;  %v2501_v3 = vpack.c.bf16 %v1572_v7, %v1571_v62  ;;  %v9123_v12 = vmul.f32 -1.442695, %v14666_v43  ;;  %v18455_v5 = vld [vmem:[#allocation65_spill] sm:$0xff] }
 0x3d4   : > { %v2452_v2 = vadd.f32 %v2420_v31, %v2000_v18  ;;  %v2132_v26 = vpop.permute.xlu1 %2131  ;;  %v11088_v32 = vpop.eup %11087  ;;  %v18454_v18 = vld [vmem:[#allocation66_spill] sm:$0xff]  ;;  %11105 = vpow2.f32 %v9089_v34  ;;  %v2230_v13 = vsel %vm2021_vm0, %v18455_v5, 0.0  ;;  %v1749_v16 = vmul.f32 %v14429_v22, %v18457_v54 }
 0x3d5   : > { %v2229_v59 = vsel %vm2021_vm0, %v2132_v26, 0.0  ;;  %v1319_v31 = vmul.f32 %v14611_v63, %v18454_v18  ;;  %v11090_v61 = vpop.eup %11089  ;;  %11107 = vrcp.f32 %v1909_v49  ;;  %v2006_v58 = vmul.f32 %v11088_v32, %v14484_v17  ;;  %v18458_v17 = vld [vmem:[#allocation60_spill] sm:$0xff] }
 0x3d6   : > { %v2498_v45 = vpack.c.bf16 %v2452_v2, %v2451_v6  ;;  %v11092_v20 = vpop.eup %11091  ;;  %v9088_v6 = vmul.f32 -1.442695, %v14670_v46  ;;  %11109 = vrcp.f32 %v1480_v29  ;;  %v1318_v62 = vmul.f32 %v14611_v63, %v18458_v17 }
 0x3d7   : > { %11111 = vrcp.f32 %v1479_v41  ;;  %v14682_v55 = vadd.f32 %v14636_v0, %v1319_v31  ;;  %v18459_v41 = vld [vmem:[#allocation73_spill] sm:$0xff] }
 0x3d8   : > { %v2309_v60 = vpop.permute.xlu1 %2308  ;;  %3216 = vmatprep.mubr.bf16.mxu0 %v2498_v45  ;;  %v11094_v26 = vpop.eup %11093  ;;  %v18456_v45 = vld [vmem:[#allocation109_spill] sm:$0xff]  ;;  %11113 = vpow2.f32 %v9123_v12 }
 0x3d9   : > { %v2390_v11 = vsel %vm2246_vm1, %v2309_v60, 0.0  ;;  %3217 = vmatmul.mubr.bf16.gmra.mrb[24].mxu0 %v2497_v4  ;;  %v11096_v47 = vpop.eup %11095  ;;  %v1748_v1 = vmul.f32 %v14429_v22, %v18456_v45  ;;  %11115 = vpow2.f32 %v9088_v6 }
 0x3da   : > { %v2422_v21 = vadd.f32 %v2390_v11, %v2229_v59  ;;  %v11098_v4 = vpop.eup %11097  ;;  %v2004_v15 = vmul.f32 %v11096_v47, %v14566_v30  ;;  %v1573_v30 = vmul.f32 %v11090_v61, %v14531_v48 }
 0x3db   : > { %v11100_v60 = vpop.eup %11099  ;;  %v14709_v49 = vadd.f32 %v14446_v35, %v1748_v1  ;;  %v18460_v1 = vld [vmem:[#allocation70_spill] sm:$0xff] }
 0x3dc   : > { %v2454_v27 = vadd.f32 %v2422_v21, %v2002_v36  ;;  %v2142_v9 = vpop.permute.xlu1 %2141  ;;  %v11102_v44 = vpop.eup %11101  ;;  %v1481_v36 = vadd.f32 1.0, %v11092_v20  ;;  %v2003_v21 = vmul.f32 %v11094_v26, %v14561_v50  ;;  %v1911_v29 = vadd.f32 1.0, %v11100_v60 }
 0x3dd   : > { %v2231_v38 = vsel %vm2021_vm0, %v2142_v9, 0.0  ;;  %v11104_v34 = vpop.eup %11103  ;;  %v9091_v9 = vmul.f32 -1.442695, %v14682_v55  ;;  %v1912_v18 = vadd.f32 1.0, %v11102_v44  ;;  %v9124_v48 = vmul.f32 -1.442695, %v14709_v49 }
 0x3de   : > { %v2502_v57 = vpack.c.bf16 %v2454_v27, %v18453_v40  ;;  %v1574_v27 = vmul.f32 %v11098_v4, %v14556_v42  ;;  %v14712_v40 = vadd.f32 %v14446_v35, %v1749_v16  ;;  %v2394_v42 = vsel %vm2246_vm1, %v18459_v41, 0.0 }
 0x3df   : > { %11117 = vrcp.f32 %v1481_v36  ;;  %v1482_v12 = vadd.f32 1.0, %v11104_v34  ;;  %v2232_v4 = vsel %vm2021_vm0, %v18460_v1, 0.0  ;;  %v18462_v34 = vld [vmem:[#allocation78_spill] sm:$0xff] }
 0x3e0   : > { %v2313_v8 = vpop.permute.xlu1 %2312  ;;  %3226 = vmatprep.mubr.bf16.mxu0 %v2502_v57  ;;  %11119 = vpow2.f32 %v9091_v9  ;;  %v2505_v61 = vpack.c.bf16 %v1574_v27, %v1573_v30  ;;  %v9125_v47 = vmul.f32 -1.442695, %v14712_v40  ;;  %v1321_v27 = vmul.f32 %v14611_v63, %v18462_v34  ;;  %v18467_v34 = vld [vmem:[#allocation112_spill] sm:$0xff] }
 0x3e1   : > { %v2391_v2 = vsel %vm2246_vm1, %v2313_v8, 0.0  ;;  %3227 = vmatmul.mubr.bf16.gmra.mrb[28].mxu0 %v2501_v3  ;;  %v11106_v3 = vpop.eup %11105  ;;  %11121 = vrcp.f32 %v1911_v29 }
 0x3e2   : > { %v14679_v56 = vpop.f32.mrb[56].mxu1  ;;  %v2423_v10 = vadd.f32 %v2391_v2, %v2230_v13  ;;  %v11108_v6 = vpop.eup %11107  ;;  %v14721_v2 = vadd.f32 %v14636_v0, %v1318_v62  ;;  %11123 = vrcp.f32 %v1912_v18  ;;  %v1484_v36 = vadd.f32 1.0, %v11106_v3  ;;  %v10506_v18 = vld [vmem:[#allocation7 + $0xe4] ss:$16 sps:$4 sm:$0xff]  }
 0x3e3   : > { %v14689_v53 = vpop.f32.mrb[57].mxu1  ;;  %v11110_v26 = vpop.eup %11109  ;;  %11125 = vrcp.f32 %v1482_v12  ;;  %v18464_v12 = vld [vmem:[#allocation72_spill] sm:$0xff]  ;;  %4217 = vmatprep.subr.bf16.mxu1 %v10506_v18 }
 0x3e4   : > { %v2317_v23 = vpop.permute.xlu1 %2316  ;;  %v14693_v51 = vpop.f32.mrb[58].mxu1  ;;  %v2455_v57 = vadd.f32 %v2423_v10, %v2003_v21  ;;  %v2005_v10 = vmul.f32 %v11108_v6, %v14593_v28  ;;  %v9090_v44 = vmul.f32 -1.442695, %v14721_v2  ;;  %11127 = vpow2.f32 %v9124_v48 }
 0x3e5   : > { %v2392_v59 = vsel %vm2246_vm1, %v2317_v23, 0.0  ;;  %v14700_v11 = vpop.f32.mrb[59].mxu1  ;;  %v11112_v45 = vpop.eup %11111  ;;  %11129 = vpow2.f32 %v9125_v47 }
 0x3e6   : > { %v2424_v7 = vadd.f32 %v2392_v59, %v2231_v38  ;;  %v11114_v16 = vpop.eup %11113  ;;  %v18461_v38 = vld [vmem:[#allocation17_spill] sm:$0xff]  ;;  %v1576_v59 = vmul.f32 %v11110_v26, %v14597_v24  ;;  %11131 = vpow2.f32 %v9090_v44  ;;  %v18463_v24 = vld [vmem:[#allocation111_spill] sm:$0xff] }
 0x3e7   : > { %v11116_v60 = vpop.eup %11115  ;;  %v1914_v28 = vadd.f32 1.0, %v11114_v16  ;;  %v1750_v29 = vmul.f32 %v14429_v22, %v18463_v24  ;;  %11133 = vrcp.f32 %v1484_v36  ;;  %v18468_v24 = vld [vmem:[#allocation85_spill] sm:$0xff] }
 0x3e8   : > { %v2456_v50 = vadd.f32 %v2424_v7, %v2004_v15  ;;  %v2152_v32 = vpop.permute.xlu1 %2151  ;;  %v1575_v7 = vmul.f32 %v11112_v45, %v14576_v37  ;;  %v1483_v17 = vadd.f32 1.0, %v11116_v60  ;;  %v14744_v37 = vadd.f32 %v14636_v0, %v1321_v27 }
 0x3e9   : > { %v2233_v31 = vsel %vm2021_vm0, %v2152_v32, 0.0  ;;  %11135 = vrcp.f32 %v1914_v28  ;;  %v14755_v48 = vadd.f32 %v14446_v35, %v1750_v29  ;;  %v1752_v27 = vmul.f32 %v14429_v22, %v18467_v34 }
 0x3ea   : > { %v2426_v8 = vadd.f32 %v2394_v42, %v2233_v31  ;;  %v2506_v20 = vpack.c.bf16 %v2456_v50, %v2455_v57  ;;  %v2509_v57 = vpack.c.bf16 %v1576_v59, %v1575_v7  ;;  %v11118_v50 = vpop.eup %11117  ;;  %11137 = vrcp.f32 %v1483_v17  ;;  %v10509_v59 = vld [vmem:[#allocation7 + $0x104] ss:$16 sps:$4 sm:$0xff]  }
 0x3eb   : > { %v11120_v30 = vpop.eup %11119  ;;  %v9093_v1 = vmul.f32 -1.442695, %v14744_v37 }
 0x3ec   : > { %v2458_v5 = vadd.f32 %v2426_v8, %v2006_v58  ;;  %v2321_v13 = vpop.permute.xlu1 %2320  ;;  %3236 = vmatprep.mubr.bf16.mxu0 %v2506_v20  ;;  %v1751_v58 = vmul.f32 %v14429_v22, %v18461_v38  ;;  %v11122_v42 = vpop.eup %11121  ;;  %v1320_v8 = vmul.f32 %v14611_v63, %v18464_v12  ;;  %v18465_v20 = vld [vmem:[#allocation77_spill] sm:$0xff]  ;;  %v1486_v45 = vadd.f32 1.0, %v11120_v30 }
 0x3ed   : > { %v2393_v54 = vsel %vm2246_vm1, %v2321_v13, 0.0  ;;  %3237 = vmatmul.mubr.bf16.gmra.mrb[32].mxu0 %v2505_v61  ;;  %v11124_v31 = vpop.eup %11123  ;;  %v2234_v6 = vsel %vm2021_vm0, %v18465_v20, 0.0  ;;  %v10504_v61 = vld [vmem:[#allocation7 + $0xe0] ss:$16 sps:$4 sm:$0xff]   ;;  %v2007_v60 = vmul.f32 %v11122_v42, %v14642_v39 }
 0x3ee   : > { %v2425_v23 = vadd.f32 %v2393_v54, %v2232_v4  ;;  %v14739_v9 = vadd.f32 %v14446_v35, %v1751_v58  ;;  %v11126_v26 = vpop.eup %11125  ;;  %4218 = vmatpush1.bf16.msra.mxu1 %v10504_v61  ;;  %v2008_v38 = vmul.f32 %v11124_v31, %v14645_v19  ;;  %v14768_v36 = vadd.f32 %v14636_v0, %v1320_v8  ;;  %v18469_v31 = vld [vmem:[#allocation80_spill] sm:$0xff] }
 0x3ef   : > { %v11128_v13 = vpop.eup %11127  ;;  %v1578_v44 = vmul.f32 %v11126_v26, %v14639_v33  ;;  %4219 = vmatprep.subr.bf16.mxu1 %v10509_v59  ;;  %v1323_v33 = vmul.f32 %v14611_v63, %v18468_v24  ;;  %v18470_v8 = vld [vmem:[#allocation16_spill] sm:$0xff]  ;;  %v14785_v61 = vadd.f32 %v14446_v35, %v1752_v27 }
 0x3f0   : > { %v2457_v21 = vadd.f32 %v2425_v23, %v2005_v10  ;;  %v2162_v15 = vpop.permute.xlu1 %2161  ;;  %v9127_v3 = vmul.f32 -1.442695, %v14739_v9  ;;  %v11130_v16 = vpop.eup %11129  ;;  %v18466_v10 = vld [vmem:[#allocation114_spill] sm:$0xff]  ;;  %v1915_v7 = vadd.f32 1.0, %v11128_v13  ;;  %v9092_v18 = vmul.f32 -1.442695, %v14768_v36 }
 0x3f1   : > { %v2235_v4 = vsel %vm2021_vm0, %v2162_v15, 0.0  ;;  %v1753_v23 = vmul.f32 %v14429_v22, %v18466_v10  ;;  %v10507_v15 = vld [vmem:[#allocation7 + $0x100] ss:$16 sps:$4 sm:$0xff]   ;;  %v11132_v19 = vpop.eup %11131  ;;  %v1916_v29 = vadd.f32 1.0, %v11130_v16  ;;  %v1754_v20 = vmul.f32 %v14429_v22, %v18470_v8 }
 0x3f2   : > { %v2510_v62 = vpack.c.bf16 %v2458_v5, %v2457_v21  ;;  %11139 = vpow2.f32 %v9127_v3  ;;  %v9126_v21 = vmul.f32 -1.442695, %v14755_v48  ;;  %4220 = vmatpush1.bf16.msra.mxu1 %v10507_v15  ;;  %v1322_v3 = vmul.f32 %v14611_v63, %v18469_v31  ;;  %v18471_v13 = vld [vmem:[#allocation118_spill] sm:$0xff] }
 0x3f3   : > { %11141 = vpow2.f32 %v9093_v1  ;;  %v10518_v15 = vld [vmem:[#allocation7 + $0x164] ss:$16 sps:$4 sm:$0xff]   ;;  %v10519_v31 = vld [vmem:[#allocation7 + $0x180] ss:$16 sps:$4 sm:$0xff]  }
 0x3f4   : > { %v2329_v32 = vpop.permute.xlu1 %2328  ;;  %3246 = vmatprep.mubr.bf16.mxu0 %v2510_v62  ;;  %v1577_v62 = vmul.f32 %v11118_v50, %v14606_v52  ;;  %11143 = vrcp.f32 %v1486_v45  ;;  %v10510_v50 = vld [vmem:[#allocation7 + $0x120] ss:$16 sps:$4 sm:$0xff]  }
 0x3f5   : > { %v2395_v41 = vsel %vm2246_vm1, %v2329_v32, 0.0  ;;  %3247 = vmatmul.mubr.bf16.gmra.mrb[36].mxu0 %v2509_v57  ;;  %v11134_v57 = vpop.eup %11133  ;;  %v14777_v32 = vadd.f32 %v14446_v35, %v1753_v23  ;;  %11145 = vpow2.f32 %v9126_v21  ;;  %v12531_v35 = vld [vmem:[%s18130_s2 + $0x6] ss:$0 sm:$0xff]  ;;  %v14803_v23 = vadd.f32 %v14636_v0, %v1322_v3 }
 0x3f6   : > { %v2427_v47 = vadd.f32 %v2395_v41, %v2234_v6  ;;  %v10512_v41 = vld [vmem:[#allocation7 + $0x124] ss:$16 sps:$4 sm:$0xff]   ;;  %v11136_v42 = vpop.eup %11135  ;;  %v2513_v52 = vpack.c.bf16 %v1578_v44, %v1577_v62  ;;  %v1485_v6 = vadd.f32 1.0, %v11132_v19  ;;  %11147 = vrcp.f32 %v1915_v7 }
 0x3f7   : > { %v11138_v12 = vpop.eup %11137  ;;  %4221 = vmatprep.subr.bf16.mxu1 %v10512_v41  ;;  %11149 = vrcp.f32 %v1916_v29  ;;  %v9129_v22 = vmul.f32 -1.442695, %v14777_v32  ;;  %v1755_v45 = vmul.f32 %v12531_v35, %v18471_v13  ;;  %v2010_v1 = vmul.f32 %v11136_v42, %v14666_v43  ;;  %v10524_v13 = vld [vmem:[#allocation7 + $0x1a4] ss:$16 sps:$4 sm:$0xff]  }
 0x3f8   : > { %v2333_v5 = vpop.permute.xlu1 %2332  ;;  %v2459_v28 = vadd.f32 %v2427_v47, %v2007_v60  ;;  %v14788_v47 = vadd.f32 %v14636_v0, %v1323_v33  ;;  %4222 = vmatpush1.bf16.msra.mxu1 %v10510_v50  ;;  %v1579_v16 = vmul.f32 %v11138_v12, %v14670_v46  ;;  %v1580_v10 = vmul.f32 %v11134_v57, %v14649_v14  ;;  %v10513_v60 = vld [vmem:[#allocation7 + $0x140] ss:$16 sps:$4 sm:$0xff]   ;;  %v12532_v14 = vld [vmem:[%s18130_s2 + $0x7] ss:$0 sm:$0xff]  ;;  %v2177_v57 = vpop.permute.xlu0 %2176 }
 0x3f9   : > { %v2396_v54 = vsel %vm2246_vm1, %v2333_v5, 0.0  ;;  %11151 = vpow2.f32 %v9092_v18  ;;  %v14810_v46 = vadd.f32 %v12532_v14, %v1755_v45  ;;  %v18472_v0 = vld [vmem:[#allocation84_spill] sm:$0xff]  ;;  %v14813_v34 = vadd.f32 %v12532_v14, %v1754_v20 }
 0x3fa   : > { %v2428_v58 = vadd.f32 %v2396_v54, %v2235_v4  ;;  %v10515_v54 = vld [vmem:[#allocation7 + $0x144] ss:$16 sps:$4 sm:$0xff]   ;;  %11153 = vrcp.f32 %v1485_v6  ;;  %v9095_v43 = vmul.f32 -1.442695, %v14788_v47  ;;  %v9094_v27 = vmul.f32 -1.442695, %v14803_v23 }
 0x3fb   : > { %4223 = vmatprep.subr.bf16.mxu1 %v10515_v54  ;;  %11155 = vpow2.f32 %v9129_v22  ;;  %v9131_v29 = vmul.f32 -1.442695, %v14810_v46  ;;  %v9130_v42 = vmul.f32 -1.442695, %v14813_v34  ;;  %v2238_v18 = vsel %vm2021_vm0, %v2177_v57, 0.0 }
 0x3fc   : > { %v2460_v17 = vadd.f32 %v2428_v58, %v2008_v38  ;;  %v2172_v39 = vpop.permute.xlu1 %2171  ;;  %v9128_v38 = vmul.f32 -1.442695, %v14785_v61  ;;  %v11140_v44 = vpop.eup %11139  ;;  %4224 = vmatpush1.bf16.msra.mxu1 %v10513_v60 }
 0x3fd   : > { %v2237_v63 = vsel %vm2021_vm0, %v2172_v39, 0.0  ;;  %v11142_v7 = vpop.eup %11141  ;;  %4225 = vmatprep.subr.bf16.mxu1 %v10518_v15  ;;  %v1918_v3 = vadd.f32 1.0, %v11140_v44  ;;  %v2202_v14 = vpop.permute.xlu0 %2201 }
 0x3fe   : > { %v2514_v30 = vpack.c.bf16 %v2460_v17, %v2459_v28  ;;  %v2517_v28 = vpack.c.bf16 %v1580_v10, %v1579_v16  ;;  %v10516_v17 = vld [vmem:[#allocation7 + $0x160] ss:$16 sps:$4 sm:$0xff]   ;;  %v11144_v39 = vpop.eup %11143  ;;  %11157 = vpow2.f32 %v9128_v38  ;;  %v1488_v8 = vadd.f32 1.0, %v11142_v7  ;;  %v10530_v7 = vld [vmem:[#allocation7 + $0x1e4] ss:$16 sps:$4 sm:$0xff]  }
 0x3ff   : > { %v11146_v62 = vpop.eup %11145  ;;  %11159 = vpow2.f32 %v9095_v43  ;;  %v1582_v45 = vmul.f32 %v11144_v39, %v14682_v55  ;;  %v10525_v55 = vld [vmem:[#allocation7 + $0x1c0] ss:$16 sps:$4 sm:$0xff]  }
 0x400   : > { %v2341_v26 = vpop.permute.xlu1 %2340  ;;  %3256 = vmatprep.mubr.bf16.mxu0 %v2514_v30  ;;  %4226 = vmatpush1.bf16.msra.mxu1 %v10516_v17  ;;  %v11148_v33 = vpop.eup %11147  ;;  %v10521_v30 = vld [vmem:[#allocation7 + $0x184] ss:$16 sps:$4 sm:$0xff]   ;;  %11161 = vpow2.f32 %v9094_v27  ;;  %v1917_v20 = vadd.f32 1.0, %v11146_v62  ;;  %v10528_v27 = vld [vmem:[#allocation7 + $0x1e0] ss:$16 sps:$4 sm:$0xff]  }
 0x401   : > { %v2398_v5 = vsel %vm2246_vm1, %v2341_v26, 0.0  ;;  %3257 = vmatmul.mubr.bf16.gmra.mrb[40].mxu0 %v2513_v52  ;;  %v11150_v41 = vpop.eup %11149  ;;  %4227 = vmatprep.subr.bf16.mxu1 %v10521_v30  ;;  %11163 = vpow2.f32 %v9131_v29  ;;  %v2011_v22 = vmul.f32 %v11148_v33, %v14709_v49  ;;  %v2365_v33 = vpop.permute.xlu0 %2364 }
 0x402   : > { %v2430_v4 = vadd.f32 %v2398_v5, %v2237_v63  ;;  %v2012_v5 = vmul.f32 %v11150_v41, %v14712_v40  ;;  %11165 = vpow2.f32 %v9130_v42 }
 0x403   : > { %v11152_v12 = vpop.eup %11151  ;;  %11167 = vrcp.f32 %v1918_v3 }
 0x404   : > { %v2462_v58 = vadd.f32 %v2430_v4, %v2010_v1  ;;  %v2182_v59 = vpop.permute.xlu1 %2181  ;;  %4228 = vmatpush1.bf16.msra.mxu1 %v10519_v31  ;;  %v11154_v63 = vpop.eup %11153  ;;  %v10522_v1 = vld [vmem:[#allocation7 + $0x1a0] ss:$16 sps:$4 sm:$0xff]   ;;  %v1487_v54 = vadd.f32 1.0, %v11152_v12  ;;  %11169 = vrcp.f32 %v1917_v20 }
 0x405   : > { %v2239_v6 = vsel %vm2021_vm0, %v2182_v59, 0.0  ;;  %v11156_v4 = vpop.eup %11155  ;;  %4229 = vmatprep.subr.bf16.mxu1 %v10524_v13  ;;  %v1581_v38 = vmul.f32 %v11154_v63, %v14721_v2  ;;  %11171 = vrcp.f32 %v1488_v8 }
 0x406   : > { %v2518_v21 = vpack.c.bf16 %v2462_v58, %v18472_v0  ;;  %v10527_v58 = vld [vmem:[#allocation7 + $0x1c4] ss:$16 sps:$4 sm:$0xff]   ;;  %v1920_v44 = vadd.f32 1.0, %v11156_v4  ;;  %11173 = vrcp.f32 %v1487_v54 }
 0x407   : > { %v2521_v43 = vpack.c.bf16 %v1582_v45, %v1581_v38  ;;  %v2243_v45 = vsel %vm2021_vm0, %v2202_v14, 0.0 }
 0x408   : > { %v2345_v19 = vpop.permute.xlu1 %2344  ;;  %3266 = vmatprep.mubr.bf16.mxu0 %v2518_v21  ;;  %4230 = vmatpush1.bf16.msra.mxu1 %v10522_v1  ;;  %v11158_v40 = vpop.eup %11157  ;;  %11175 = vrcp.f32 %v1920_v44 }
 0x409   : > { %v2399_v24 = vsel %vm2246_vm1, %v2345_v19, 0.0  ;;  %3267 = vmatmul.mubr.bf16.gmra.mrb[44].mxu0 %v2517_v28  ;;  %v11160_v59 = vpop.eup %11159  ;;  %4231 = vmatprep.subr.bf16.mxu1 %v10527_v58  ;;  %v1919_v15 = vadd.f32 1.0, %v11158_v40 }
 0x40a   : > { %v2431_v52 = vadd.f32 %v2399_v24, %v2238_v18  ;;  %v11162_v21 = vpop.eup %11161  ;;  %v1490_v2 = vadd.f32 1.0, %v11160_v59 }
 0x40b   : > { %v11164_v28 = vpop.eup %11163  ;;  %v1489_v17 = vadd.f32 1.0, %v11162_v21  ;;  %11177 = vrcp.f32 %v1919_v15 }
 0x40c   : > { %v2349_v50 = vpop.permute.xlu1 %2348  ;;  %v2463_v16 = vadd.f32 %v2431_v52, %v2011_v22  ;;  %4232 = vmatpush1.bf16.msra.mxu1 %v10525_v55  ;;  %v11166_v19 = vpop.eup %11165  ;;  %11179 = vrcp.f32 %v1490_v2  ;;  %v1922_v57 = vadd.f32 1.0, %v11164_v28 }
 0x40d   : > { %v2400_v26 = vsel %vm2246_vm1, %v2349_v50, 0.0  ;;  %4233 = vmatprep.subr.bf16.mxu1 %v10530_v7  ;;  %v11168_v24 = vpop.eup %11167  ;;  %11181 = vrcp.f32 %v1489_v17  ;;  %v1921_v31 = vadd.f32 1.0, %v11166_v19 }
 0x40e   : > { %v2432_v35 = vadd.f32 %v2400_v26, %v2239_v6  ;;  %v11170_v29 = vpop.eup %11169  ;;  %v2014_v12 = vmul.f32 %v11168_v24, %v14739_v9  ;;  %11183 = vrcp.f32 %v1922_v57  ;;  %v2212_v26 = vpop.permute.xlu0 %2211  ;;  %v2404_v9 = vsel %vm2246_vm1, %v2365_v33, 0.0  ;;  %v18473_v33 = vld [vmem:[#allocation119_spill] sm:$0xff] }
 0x40f   : > { %v11172_v41 = vpop.eup %11171  ;;  %v2013_v8 = vmul.f32 %v11170_v29, %v14755_v48  ;;  %11185 = vrcp.f32 %v1921_v31  ;;  %v18474_v29 = vld [vmem:[#allocation120_spill] sm:$0xff]  ;;  %v10533_v57 = vld [vmem:[#allocation7 + $0xc] ss:$16 sps:$4 sm:$0xff]  }
 0x410   : > { %v2464_v10 = vadd.f32 %v2432_v35, %v2012_v5  ;;  %v2187_v60 = vpop.permute.xlu1 %2186  ;;  %4234 = vmatpush1.bf16.msra.mxu1 %v10528_v27  ;;  %v11174_v50 = vpop.eup %11173  ;;  %v1584_v6 = vmul.f32 %v11172_v41, %v14744_v37 }
 0x411   : > { %v2240_v30 = vsel %vm2021_vm0, %v2187_v60, 0.0  ;;  %v1583_v13 = vmul.f32 %v11174_v50, %v14768_v36  ;;  %4396 = vmatprep.subr.bf16.mxu1 %v10533_v57  ;;  %v18487_v57 = vld [vmem:[#allocation40_spill] sm:$0xff] }
 0x412   : > { %v2522_v49 = vpack.c.bf16 %v2464_v10, %v2463_v16  ;;  %v11176_v35 = vpop.eup %11175  ;;  %v2436_v16 = vadd.f32 %v2404_v9, %v2243_v45 }
 0x413   : > { %v2525_v4 = vpack.c.bf16 %v1584_v6, %v1583_v13  ;;  %v2016_v37 = vmul.f32 %v11176_v35, %v14777_v32 }
 0x414   : > { %v2192_v0 = vpop.permute.xlu1 %2191  ;;  %3276 = vmatprep.mubr.bf16.mxu0 %v2522_v49  ;;  %v2373_v49 = vpop.permute.xlu0 %2372 }
 0x415   : > { %3277 = vmatmul.mubr.bf16.gmra.mrb[48].mxu0 %v2521_v43  ;;  %v2241_v3 = vsel %vm2021_vm0, %v2192_v0, 0.0  ;;  %v11178_v48 = vpop.eup %11177  ;;  %v2468_v44 = vadd.f32 %v2436_v16, %v2016_v37  ;;  %v2245_v0 = vsel %vm2021_vm0, %v2212_v26, 0.0  ;;  %v2406_v21 = vsel %vm2246_vm1, %v2373_v49, 0.0  ;;  %v18481_v26 = vld [vmem:[#allocation27_spill] sm:$0xff] }
 0x416   : > { %v11180_v54 = vpop.eup %11179  ;;  %v2015_v40 = vmul.f32 %v11178_v48, %v14785_v61  ;;  %v2438_v27 = vadd.f32 %v2406_v21, %v2245_v0 }
 0x417   : > { %v11182_v38 = vpop.eup %11181  ;;  %v1586_v59 = vmul.f32 %v11180_v54, %v14788_v47 }
 0x418   : > { %v2353_v39 = vpop.permute.xlu1 %2352  ;;  %v11184_v55 = vpop.eup %11183  ;;  %v1585_v14 = vmul.f32 %v11182_v38, %v14803_v23  ;;  %v18483_v38 = vld [vmem:[#allocation31_spill] sm:$0xff] }
 0x419   : > { %v2401_v62 = vsel %vm2246_vm1, %v2353_v39, 0.0  ;;  %v11186_v2 = vpop.eup %11185  ;;  %v2018_v61 = vmul.f32 %v11184_v55, %v14810_v46  ;;  %v18475_v46 = vpack.c.bf16 %v18473_v33, %v18474_v29  ;;  %v18486_v33 = vld [vmem:[#allocation38_spill] sm:$0xff] }
 0x41a   : > { %v2433_v42 = vadd.f32 %v2401_v62, %v2240_v30  ;;  %v2529_v7 = vpack.c.bf16 %v1586_v59, %v1585_v14  ;;  %v2017_v17 = vmul.f32 %v11186_v2, %v14813_v34  ;;  %v2599_v30 = vld [vmem:[%s18130_s2 + $0x8] sm:$0x3] }
 0x41b   : > { %v2470_v19 = vadd.f32 %v2438_v27, %v2018_v61  ;;  %v14871_v41 = vrot.slane %v2599_v30, %v18476_v25 }
 0x41c   : > { %v2357_v18 = vpop.permute.xlu1 %2356  ;;  %v2465_v63 = vadd.f32 %v2433_v42, %v2013_v8  ;;  %v18477_v42 = vld [vmem:[#allocation29_spill] sm:$0xff] }
 0x41d   : > { %v2402_v52 = vsel %vm2246_vm1, %v2357_v18, 0.0  ;;  %v14874_v34 = vrot.slane %v2599_v30, %v18477_v42  ;;  %v18478_v18 = vld [vmem:[#allocation23_spill] sm:$0xff]  ;;  %v2986_v29 = vadd.f32 %v18486_v33, %v14871_v41 }
 0x41e   : > { %v2434_v20 = vadd.f32 %v2402_v52, %v2241_v3  ;;  %v2966_v31 = vadd.f32 %v18478_v18, %v14871_v41  ;;  %v18479_v3 = vld [vmem:[#allocation22_spill] sm:$0xff] }
 0x41f   : > { %v2968_v52 = vadd.f32 %v18479_v3, %v14874_v34  ;;  %v2988_v30 = vadd.f32 %v18487_v57, %v14874_v34 }
 0x420   : > { %v2466_v5 = vadd.f32 %v2434_v20, %v2014_v12  ;;  %v2197_v22 = vpop.permute.xlu1 %2196  ;;  %v18480_v12 = vld [vmem:[#allocation26_spill] sm:$0xff] }
 0x421   : > { %v2242_v60 = vsel %vm2021_vm0, %v2197_v22, 0.0  ;;  %v2970_v8 = vadd.f32 %v18480_v12, %v14871_v41  ;;  %v18489_v12 = vld [vmem:[#allocation43_spill] sm:$0xff] }
 0x422   : > { %v2526_v1 = vpack.c.bf16 %v2466_v5, %v2465_v63  ;;  %v2972_v63 = vadd.f32 %v18481_v26, %v14874_v34 }
 0x424   : > { %v2361_v10 = vpop.permute.xlu1 %2360  ;;  %3286 = vmatprep.mubr.bf16.mxu0 %v2526_v1 }
 0x425   : > { %v2403_v36 = vsel %vm2246_vm1, %v2361_v10, 0.0  ;;  %3287 = vmatmul.mubr.bf16.gmra.mrb[52].mxu0 %v2525_v4  ;;  %v18482_v10 = vld [vmem:[#allocation32_spill] sm:$0xff] }
 0x426   : > { %v2435_v58 = vadd.f32 %v2403_v36, %v2242_v60  ;;  %v2976_v60 = vadd.f32 %v18482_v10, %v14871_v41 }
 0x428   : > { %v2467_v43 = vadd.f32 %v2435_v58, %v2015_v40  ;;  %v2207_v32 = vpop.permute.xlu1 %2206  ;;  %v2978_v40 = vadd.f32 %v18483_v38, %v14874_v34  ;;  %v18484_v58 = vld [vmem:[#allocation30_spill] sm:$0xff] }
 0x429   : > { %v2244_v47 = vsel %vm2021_vm0, %v2207_v32, 0.0  ;;  %v2980_v59 = vadd.f32 %v18484_v58, %v14871_v41  ;;  %v18485_v32 = vld [vmem:[#allocation34_spill] sm:$0xff] }
 0x42a   : > { %v2530_v15 = vpack.c.bf16 %v2468_v44, %v2467_v43  ;;  %v2982_v55 = vadd.f32 %v18485_v32, %v14874_v34 }
 0x42c   : > { %v2369_v28 = vpop.permute.xlu1 %2368  ;;  %3296 = vmatprep.mubr.bf16.mxu0 %v2530_v15 }
 0x42d   : > { %v2405_v23 = vsel %vm2246_vm1, %v2369_v28, 0.0  ;;  %3297 = vmatmul.mubr.bf16.gmra.mrb[56].mxu0 %v2529_v7 }
 0x42e   : > { %v2437_v39 = vadd.f32 %v2405_v23, %v2244_v47 }
 0x430   : > { %v2469_v62 = vadd.f32 %v2437_v39, %v2017_v17 }
 0x432   : > { %v2534_v24 = vpack.c.bf16 %v2470_v19, %v2469_v62 }
 0x434   : > { %3306 = vmatprep.mubr.bf16.mxu0 %v2534_v24 }
 0x435   : > { %3307 = vmatmul.mubr.bf16.gmra.mrb[60].mxu0 %v18475_v46 }
 0x46c   : > { %v3158_v50 = vpop.f32.mrb[0].mxu0 }
 0x46d   : > { %v14882_v20 = vadd.f32 %v3158_v50, %v2966_v31  ;;  %v3160_v6 = vpop.f32.mrb[1].mxu0  ;;  %v18488_v31 = vld [vmem:[#allocation41_spill] sm:$0xff] }
 0x46e   : > { %v14886_v5 = vadd.f32 %v3160_v6, %v2968_v52  ;;  %v3162_v22 = vpop.f32.mrb[2].mxu0  ;;  %v2990_v3 = vadd.f32 %v18488_v31, %v14871_v41 }
 0x46f   : > { %v9196_v35 = vmul.f32 -1.442695, %v14882_v20  ;;  %v14889_v13 = vadd.f32 %v3162_v22, %v2970_v8  ;;  %v3164_v45 = vpop.f32.mrb[3].mxu0  ;;  %v2992_v8 = vadd.f32 %v18489_v12, %v14874_v34  ;;  %v10536_v12 = vld [vmem:[#allocation7 + $0x2c] ss:$16 sps:$4 sm:$0xff]  }
 0x470   : > { %v9197_v9 = vmul.f32 -1.442695, %v14886_v5  ;;  %v14892_v1 = vadd.f32 %v3164_v45, %v2972_v63  ;;  %v14894_v48 = vpop.f32.mrb[60].mxu1 }
 0x471   : > { %11187 = vpow2.f32 %v9196_v35  ;;  %v9198_v4 = vmul.f32 -1.442695, %v14889_v13  ;;  %v14897_v54 = vpop.f32.mrb[61].mxu1 }
 0x472   : > { %11189 = vpow2.f32 %v9197_v9  ;;  %v9199_v37 = vmul.f32 -1.442695, %v14892_v1  ;;  %v14900_v16 = vpop.f32.mrb[62].mxu1 }
 0x473   : > { %11191 = vpow2.f32 %v9198_v4  ;;  %v14904_v36 = vpop.f32.mrb[63].mxu1 }
 0x474   : > { %11193 = vpow2.f32 %v9199_v37  ;;  %v3168_v49 = vpop.f32.mrb[4].mxu0 }
 0x475   : > { %v14910_v44 = vadd.f32 %v3168_v49, %v2976_v60  ;;  %v3170_v43 = vpop.f32.mrb[5].mxu0 }
 0x476   : > { %v14914_v14 = vadd.f32 %v3170_v43, %v2978_v40  ;;  %v3172_v0 = vpop.f32.mrb[6].mxu0 }
 0x477   : > { %v9200_v21 = vmul.f32 -1.442695, %v14910_v44  ;;  %v14917_v15 = vadd.f32 %v3172_v0, %v2980_v59  ;;  %v3174_v2 = vpop.f32.mrb[7].mxu0 }
 0x478   : > { %v9201_v7 = vmul.f32 -1.442695, %v14914_v14  ;;  %v14920_v61 = vadd.f32 %v3174_v2, %v2982_v55  ;;  %v18490_v2 = vld [vmem:[#allocation46_spill] sm:$0xff] }
 0x479   : > { %11195 = vpow2.f32 %v9200_v21  ;;  %v9202_v27 = vmul.f32 -1.442695, %v14917_v15 }
 0x47a   : > { %11197 = vpow2.f32 %v9201_v7  ;;  %v9203_v28 = vmul.f32 -1.442695, %v14920_v61  ;;  %v2996_v7 = vadd.f32 %v18490_v2, %v14871_v41 }
 0x47b   : > { %v11188_v47 = vpop.eup %11187  ;;  %11199 = vpow2.f32 %v9202_v27 }
 0x47c   : > { %v11190_v23 = vpop.eup %11189  ;;  %v3509_v17 = vadd.f32 1.0, %v11188_v47  ;;  %11201 = vpow2.f32 %v9203_v28  ;;  %v18491_v47 = vld [vmem:[#allocation47_spill] sm:$0xff] }
 0x47d   : > { %v11192_v39 = vpop.eup %11191  ;;  %v3510_v19 = vadd.f32 1.0, %v11190_v23  ;;  %v2998_v23 = vadd.f32 %v18491_v47, %v14874_v34 }
 0x47e   : > { %v11194_v62 = vpop.eup %11193  ;;  %11203 = vrcp.f32 %v3509_v17  ;;  %v3511_v24 = vadd.f32 1.0, %v11192_v39 }
 0x47f   : > { %11205 = vrcp.f32 %v3510_v19  ;;  %v3512_v46 = vadd.f32 1.0, %v11194_v62  ;;  %v18492_v62 = vld [vmem:[#allocation48_spill] sm:$0xff] }
 0x480   : > { %11207 = vrcp.f32 %v3511_v24  ;;  %v3178_v18 = vpop.f32.mrb[8].mxu0  ;;  %v3000_v24 = vadd.f32 %v18492_v62, %v14871_v41 }
 0x481   : > { %11209 = vrcp.f32 %v3512_v46  ;;  %v14930_v52 = vadd.f32 %v3178_v18, %v2986_v29  ;;  %v3180_v50 = vpop.f32.mrb[9].mxu0 }
 0x482   : > { %v14934_v6 = vadd.f32 %v3180_v50, %v2988_v30  ;;  %v3182_v26 = vpop.f32.mrb[10].mxu0 }
 0x483   : > { %v11196_v63 = vpop.eup %11195  ;;  %v9204_v22 = vmul.f32 -1.442695, %v14930_v52  ;;  %v14937_v35 = vadd.f32 %v3182_v26, %v2990_v3  ;;  %v3184_v45 = vpop.f32.mrb[11].mxu0 }
 0x484   : > { %v11198_v9 = vpop.eup %11197  ;;  %v3513_v4 = vadd.f32 1.0, %v11196_v63  ;;  %v14939_v37 = vadd.f32 %v3184_v45, %v2992_v8  ;;  %v9205_v49 = vmul.f32 -1.442695, %v14934_v6 }
 0x485   : > { %v11200_v10 = vpop.eup %11199  ;;  %v3514_v60 = vadd.f32 1.0, %v11198_v9  ;;  %11211 = vpow2.f32 %v9204_v22  ;;  %v9206_v59 = vmul.f32 -1.442695, %v14937_v35 }
 0x486   : > { %v11202_v38 = vpop.eup %11201  ;;  %11213 = vrcp.f32 %v3513_v4  ;;  %v3515_v40 = vadd.f32 1.0, %v11200_v10  ;;  %v9207_v32 = vmul.f32 -1.442695, %v14939_v37 }
 0x487   : > { %11215 = vrcp.f32 %v3514_v60  ;;  %v3516_v58 = vadd.f32 1.0, %v11202_v38  ;;  %v10534_v60 = vld [vmem:[#allocation7 + $0x28] ss:$16 sps:$4 sm:$0xff]  }
 0x488   : > { %v11204_v43 = vpop.eup %11203  ;;  %11217 = vrcp.f32 %v3515_v40 }
 0x489   : > { %v11206_v55 = vpop.eup %11205  ;;  %11219 = vrcp.f32 %v3516_v58  ;;  %v3701_v27 = vmul.f32 %v11204_v43, %v14882_v20  ;;  %v10539_v58 = vld [vmem:[#allocation7 + $0x4c] ss:$16 sps:$4 sm:$0xff]  }
 0x48a   : > { %v11208_v0 = vpop.eup %11207  ;;  %11221 = vpow2.f32 %v9205_v49  ;;  %v3702_v17 = vmul.f32 %v11206_v55, %v14886_v5  ;;  %v10531_v5 = vld [vmem:[#allocation7 + $0x8] ss:$16 sps:$4 sm:$0xff]  }
 0x48b   : > { %v11210_v21 = vpop.eup %11209  ;;  %v3703_v28 = vmul.f32 %v11208_v0, %v14889_v13  ;;  %11223 = vpow2.f32 %v9206_v59  ;;  %v18493_v13 = vld [vmem:[#allocation50_spill] sm:$0xff] }
 0x48c   : > { %v3704_v39 = vmul.f32 %v11210_v21, %v14892_v1  ;;  %11225 = vpow2.f32 %v9207_v32  ;;  %v3188_v19 = vpop.f32.mrb[12].mxu0  ;;  %v3002_v46 = vadd.f32 %v18493_v13, %v14874_v34 }
 0x48d   : > { %v14954_v33 = vpack.c.bf16 %v3703_v28, %v3701_v27  ;;  %v14956_v29 = vadd.f32 %v3188_v19, %v2996_v7  ;;  %v3190_v20 = vpop.f32.mrb[13].mxu0 }
 0x48e   : > { %v14960_v57 = vadd.f32 %v3190_v20, %v2998_v23  ;;  %v3192_v30 = vpop.f32.mrb[14].mxu0  ;;  %v14962_v18 = vpack.c.bf16 %v3704_v39, %v3702_v17  ;;  %v18496_v39 = vld [vmem:[#allocation55_spill] sm:$0xff]  ;;  %v18497_v20 = vld [vmem:[#allocation58_spill] sm:$0xff] }
 0x48f   : > { %v11212_v1 = vpop.eup %11211  ;;  %v9208_v31 = vmul.f32 -1.442695, %v14956_v29  ;;  %v14965_v3 = vadd.f32 %v3192_v30, %v3000_v24  ;;  %v3194_v50 = vpop.f32.mrb[15].mxu0  ;;  %v3010_v19 = vadd.f32 %v18496_v39, %v14871_v41  ;;  %v3012_v13 = vadd.f32 %v18497_v20, %v14874_v34 }
 0x490   : > { %v11214_v8 = vpop.eup %11213  ;;  %v3517_v26 = vadd.f32 1.0, %v11212_v1  ;;  %v9209_v63 = vmul.f32 -1.442695, %v14960_v57  ;;  %v14968_v22 = vadd.f32 %v3194_v50, %v3002_v46  ;;  %4235 = vmatprep.mubr.bf16.mxu1 %v14962_v18 }
 0x491   : > { %v11216_v45 = vpop.eup %11215  ;;  %11227 = vpow2.f32 %v9208_v31  ;;  %v9210_v9 = vmul.f32 -1.442695, %v14965_v3  ;;  %4236 = vmatmul.mubr.bf16.vlgmr.msra.gmra.mrb[64].mxu1 %v14954_v33  ;;  %v3705_v40 = vmul.f32 %v11214_v8, %v14910_v44  ;;  %v10537_v44 = vld [vmem:[#allocation7 + $0x48] ss:$16 sps:$4 sm:$0xff]   ;;  %v10545_v8 = vld [vmem:[#allocation7 + $0x8c] ss:$16 sps:$4 sm:$0xff]  }
 0x492   : > { %v11218_v4 = vpop.eup %11217  ;;  %11229 = vrcp.f32 %v3517_v26  ;;  %v9211_v10 = vmul.f32 -1.442695, %v14968_v22  ;;  %4397 = vmatpush1.bf16.msra.mxu1 %v10531_v5  ;;  %v3706_v43 = vmul.f32 %v11216_v45, %v14914_v14  ;;  %v10542_v14 = vld [vmem:[#allocation7 + $0x6c] ss:$16 sps:$4 sm:$0xff]   ;;  %v10540_v5 = vld [vmem:[#allocation7 + $0x68] ss:$16 sps:$4 sm:$0xff]  }
 0x493   : > { %v11220_v38 = vpop.eup %11219  ;;  %v3707_v49 = vmul.f32 %v11218_v4, %v14917_v15  ;;  %11231 = vpow2.f32 %v9209_v63  ;;  %4398 = vmatprep.subr.bf16.mxu1 %v10536_v12  ;;  %v18494_v15 = vld [vmem:[#allocation53_spill] sm:$0xff] }
 0x494   : > { %v11222_v59 = vpop.eup %11221  ;;  %v3708_v32 = vmul.f32 %v11220_v38, %v14920_v61  ;;  %11233 = vpow2.f32 %v9210_v9  ;;  %v3006_v28 = vadd.f32 %v18494_v15, %v14871_v41  ;;  %v18495_v61 = vld [vmem:[#allocation54_spill] sm:$0xff]  ;;  %v10543_v38 = vld [vmem:[#allocation7 + $0x88] ss:$16 sps:$4 sm:$0xff]  }
 0x495   : > { %v11224_v55 = vpop.eup %11223  ;;  %v3518_v0 = vadd.f32 1.0, %v11222_v59  ;;  %11235 = vpow2.f32 %v9211_v10  ;;  %v14978_v21 = vpack.c.bf16 %v3707_v49, %v3705_v40  ;;  %v3008_v23 = vadd.f32 %v18495_v61, %v14874_v34  ;;  %v18498_v49 = vld [vmem:[#allocation59_spill] sm:$0xff] }
 0x496   : > { %v11226_v2 = vpop.eup %11225  ;;  %v3519_v7 = vadd.f32 1.0, %v11224_v55  ;;  %v14980_v27 = vpack.c.bf16 %v3708_v32, %v3706_v43  ;;  %4399 = vmatpush1.bf16.msra.mxu1 %v10534_v60  ;;  %v10548_v32 = vld [vmem:[#allocation7 + $0xac] ss:$16 sps:$4 sm:$0xff]  }
 0x497   : > { %11237 = vrcp.f32 %v3518_v0  ;;  %v3520_v47 = vadd.f32 1.0, %v11226_v2  ;;  %4400 = vmatprep.subr.bf16.mxu1 %v10539_v58  ;;  %v3016_v58 = vadd.f32 %v18498_v49, %v14871_v41  ;;  %v18499_v55 = vld [vmem:[#allocation61_spill] sm:$0xff] }
 0x498   : > { %11239 = vrcp.f32 %v3519_v7  ;;  %v3198_v17 = vpop.f32.mrb[16].mxu0  ;;  %4245 = vmatprep.mubr.bf16.mxu1 %v14980_v27  ;;  %v3018_v0 = vadd.f32 %v18499_v55, %v14874_v34  ;;  %v18502_v55 = vld [vmem:[#allocation67_spill] sm:$0xff] }
 0x499   : > { %11241 = vrcp.f32 %v3520_v47  ;;  %v14989_v62 = vadd.f32 %v3198_v17, %v3006_v28  ;;  %v3200_v24 = vpop.f32.mrb[17].mxu0  ;;  %4246 = vmatmul.mubr.bf16.gmra.mrb[68].mxu1 %v14978_v21  ;;  %v18500_v28 = vld [vmem:[#allocation62_spill] sm:$0xff] }
 0x49a   : > { %v14994_v46 = vadd.f32 %v3200_v24, %v3008_v23  ;;  %v3202_v30 = vpop.f32.mrb[18].mxu0  ;;  %4401 = vmatpush1.bf16.msra.mxu1 %v10537_v44  ;;  %v3020_v47 = vadd.f32 %v18500_v28, %v14871_v41 }
 0x49b   : > { %v11228_v1 = vpop.eup %11227  ;;  %v9212_v31 = vmul.f32 -1.442695, %v14989_v62  ;;  %v14997_v50 = vadd.f32 %v3202_v30, %v3010_v19  ;;  %v3204_v12 = vpop.f32.mrb[19].mxu0  ;;  %4402 = vmatprep.subr.bf16.mxu1 %v10542_v14  ;;  %v18501_v14 = vld [vmem:[#allocation63_spill] sm:$0xff] }
 0x49c   : > { %v11230_v26 = vpop.eup %11229  ;;  %v3521_v63 = vadd.f32 1.0, %v11228_v1  ;;  %v9213_v45 = vmul.f32 -1.442695, %v14994_v46  ;;  %v15000_v9 = vadd.f32 %v3204_v12, %v3012_v13  ;;  %v3022_v61 = vadd.f32 %v18501_v14, %v14874_v34  ;;  %v10546_v30 = vld [vmem:[#allocation7 + $0xa8] ss:$16 sps:$4 sm:$0xff]  }
 0x49d   : > { %v11232_v4 = vpop.eup %11231  ;;  %11243 = vpow2.f32 %v9212_v31  ;;  %v9214_v43 = vmul.f32 -1.442695, %v14997_v50  ;;  %v3709_v19 = vmul.f32 %v11230_v26, %v14930_v52 }
 0x49e   : > { %v11234_v10 = vpop.eup %11233  ;;  %11245 = vrcp.f32 %v3521_v63  ;;  %v3522_v60 = vadd.f32 1.0, %v11232_v4  ;;  %4403 = vmatpush1.bf16.msra.mxu1 %v10540_v5  ;;  %v9215_v7 = vmul.f32 -1.442695, %v15000_v9  ;;  %v10551_v63 = vld [vmem:[#allocation7 + $0xcc] ss:$16 sps:$4 sm:$0xff]  }
 0x49f   : > { %v11236_v40 = vpop.eup %11235  ;;  %v3523_v59 = vadd.f32 1.0, %v11234_v10  ;;  %11247 = vpow2.f32 %v9213_v45  ;;  %4404 = vmatprep.subr.bf16.mxu1 %v10545_v8 }
 0x4a0   : > { %11249 = vrcp.f32 %v3522_v60  ;;  %v3524_v2 = vadd.f32 1.0, %v11236_v40  ;;  %v3208_v44 = vpop.f32.mrb[20].mxu0  ;;  %v10549_v60 = vld [vmem:[#allocation7 + $0xc8] ss:$16 sps:$4 sm:$0xff]  }
 0x4a1   : > { %v11238_v15 = vpop.eup %11237  ;;  %11251 = vrcp.f32 %v3523_v59  ;;  %v15012_v23 = vadd.f32 %v3208_v44, %v3016_v58  ;;  %v3210_v17 = vpop.f32.mrb[21].mxu0 }
 0x4a2   : > { %v11240_v39 = vpop.eup %11239  ;;  %v3710_v24 = vmul.f32 %v11238_v15, %v14934_v6  ;;  %11253 = vrcp.f32 %v3524_v2  ;;  %v15016_v20 = vadd.f32 %v3210_v17, %v3018_v0  ;;  %v3212_v13 = vpop.f32.mrb[22].mxu0  ;;  %4405 = vmatpush1.bf16.msra.mxu1 %v10543_v38  ;;  %v3026_v0 = vadd.f32 %v18502_v55, %v14871_v41  ;;  %v18503_v15 = vld [vmem:[#allocation68_spill] sm:$0xff] }
 0x4a3   : > { %v11242_v5 = vpop.eup %11241  ;;  %v3711_v1 = vmul.f32 %v11240_v39, %v14937_v35  ;;  %11255 = vpow2.f32 %v9214_v43  ;;  %v9216_v31 = vmul.f32 -1.442695, %v15012_v23  ;;  %v15020_v12 = vadd.f32 %v3212_v13, %v3020_v47  ;;  %v3214_v8 = vpop.f32.mrb[23].mxu0  ;;  %4406 = vmatprep.subr.bf16.mxu1 %v10548_v32  ;;  %v10552_v43 = vld [vmem:[#allocation7 + $0xe8] ss:$16 sps:$4 sm:$0xff]  }
 0x4a4   : > { %v3712_v52 = vmul.f32 %v11242_v5, %v14939_v37  ;;  %11257 = vpow2.f32 %v9215_v7  ;;  %v9217_v6 = vmul.f32 -1.442695, %v15016_v20  ;;  %v15024_v26 = vadd.f32 %v3214_v8, %v3022_v61  ;;  %v10554_v37 = vld [vmem:[#allocation7 + $0xec] ss:$16 sps:$4 sm:$0xff]  }
 0x4a5   : > { %11259 = vpow2.f32 %v9216_v31  ;;  %v9218_v45 = vmul.f32 -1.442695, %v15020_v12  ;;  %v15027_v4 = vpack.c.bf16 %v3711_v1, %v3709_v19  ;;  %v10557_v7 = vld [vmem:[#allocation7 + $0x10c] ss:$16 sps:$4 sm:$0xff]   ;;  %v3028_v28 = vadd.f32 %v18503_v15, %v14874_v34  ;;  %v18506_v15 = vld [vmem:[#allocation74_spill] sm:$0xff] }
 0x4a6   : > { %11261 = vpow2.f32 %v9217_v6  ;;  %v9219_v35 = vmul.f32 -1.442695, %v15024_v26  ;;  %v15030_v10 = vpack.c.bf16 %v3712_v52, %v3710_v24  ;;  %4407 = vmatpush1.bf16.msra.mxu1 %v10546_v30  ;;  %v18504_v47 = vld [vmem:[#allocation69_spill] sm:$0xff]  ;;  %v18505_v24 = vld [vmem:[#allocation71_spill] sm:$0xff] }
 0x4a7   : > { %v11244_v38 = vpop.eup %11243  ;;  %11263 = vpow2.f32 %v9218_v45  ;;  %4408 = vmatprep.subr.bf16.mxu1 %v10551_v63  ;;  %v3030_v14 = vadd.f32 %v18504_v47, %v14871_v41  ;;  %v3032_v13 = vadd.f32 %v18505_v24, %v14874_v34 }
 0x4a8   : > { %v11246_v40 = vpop.eup %11245  ;;  %11265 = vpow2.f32 %v9219_v35  ;;  %4255 = vmatprep.mubr.bf16.mxu1 %v15030_v10  ;;  %v3525_v59 = vadd.f32 1.0, %v11244_v38 }
 0x4a9   : > { %v11248_v49 = vpop.eup %11247  ;;  %4256 = vmatmul.mubr.bf16.gmra.mrb[72].mxu1 %v15027_v4  ;;  %v3713_v61 = vmul.f32 %v11246_v40, %v14956_v29 }
 0x4aa   : > { %v11250_v58 = vpop.eup %11249  ;;  %4409 = vmatpush1.bf16.msra.mxu1 %v10549_v60  ;;  %v3526_v2 = vadd.f32 1.0, %v11248_v49  ;;  %11267 = vrcp.f32 %v3525_v59  ;;  %v10560_v59 = vld [vmem:[#allocation7 + $0x12c] ss:$16 sps:$4 sm:$0xff]  }
 0x4ab   : > { %v11252_v32 = vpop.eup %11251  ;;  %4410 = vmatprep.subr.bf16.mxu1 %v10554_v37  ;;  %v3714_v30 = vmul.f32 %v11250_v58, %v14960_v57  ;;  %v10581_v57 = vld [vmem:[%s18133_s5 + $0x4] ss:$16 sps:$4 sm:$0xff]   ;;  %v10555_v37 = vld [vmem:[#allocation7 + $0x108] ss:$16 sps:$4 sm:$0xff]  }
 0x4ac   : > { %v11254_v44 = vpop.eup %11253  ;;  %v3715_v17 = vmul.f32 %v11252_v32, %v14965_v3  ;;  %v3218_v39 = vpop.f32.mrb[24].mxu0  ;;  %v10579_v3 = vld [vmem:[%s18133_s5] ss:$16 sps:$4 sm:$0xff]   ;;  %11269 = vrcp.f32 %v3526_v2  ;;  %6339 = vmatprep.subr.bf16.mxu0 %v10581_v57 }
 0x4ad   : > { %v11256_v19 = vpop.eup %11255  ;;  %v3716_v5 = vmul.f32 %v11254_v44, %v14968_v22  ;;  %v15046_v1 = vadd.f32 %v3218_v39, %v3026_v0  ;;  %v3220_v31 = vpop.f32.mrb[25].mxu0  ;;  %6340 = vmatpush1.bf16.msra.mxu0 %v10579_v3  ;;  %v10582_v0 = vld [vmem:[%s18133_s5 + $0x20] ss:$16 sps:$4 sm:$0xff]  }
 0x4ae   : > { %v11258_v8 = vpop.eup %11257  ;;  %v3527_v63 = vadd.f32 1.0, %v11256_v19  ;;  %v15048_v52 = vadd.f32 %v3220_v31, %v3028_v28  ;;  %v3222_v29 = vpop.f32.mrb[26].mxu0  ;;  %v15050_v6 = vpack.c.bf16 %v3715_v17, %v3713_v61  ;;  %4411 = vmatpush1.bf16.msra.mxu1 %v10552_v43  ;;  %v10584_v43 = vld [vmem:[%s18133_s5 + $0x24] ss:$16 sps:$4 sm:$0xff]   ;;  %v3036_v28 = vadd.f32 %v18506_v15, %v14871_v41  ;;  %v10558_v61 = vld [vmem:[#allocation7 + $0x128] ss:$16 sps:$4 sm:$0xff]  }
 0x4af   : > { %v11260_v22 = vpop.eup %11259  ;;  %v3528_v45 = vadd.f32 1.0, %v11258_v8  ;;  %v15058_v35 = vadd.f32 %v3222_v29, %v3030_v14  ;;  %v3224_v60 = vpop.f32.mrb[27].mxu0  ;;  %v15060_v38 = vpack.c.bf16 %v3716_v5, %v3714_v30  ;;  %4412 = vmatprep.subr.bf16.mxu1 %v10557_v7  ;;  %v9220_v44 = vmul.f32 -1.442695, %v15046_v1  ;;  %6341 = vmatprep.subr.bf16.mxu0 %v10584_v43  ;;  %v18507_v17 = vld [vmem:[#allocation75_spill] sm:$0xff]  ;;  %v18508_v30 = vld [vmem:[#allocation76_spill] sm:$0xff] }
 0x4b0   : > { %v11262_v40 = vpop.eup %11261  ;;  %11271 = vrcp.f32 %v3527_v63  ;;  %v3529_v49 = vadd.f32 1.0, %v11260_v22  ;;  %v15062_v58 = vadd.f32 %v3224_v60, %v3032_v13  ;;  %v9221_v14 = vmul.f32 -1.442695, %v15048_v52  ;;  %v10563_v13 = vld [vmem:[#allocation7 + $0x14c] ss:$16 sps:$4 sm:$0xff]  }
 0x4b1   : > { %v11264_v32 = vpop.eup %11263  ;;  %11273 = vrcp.f32 %v3528_v45  ;;  %v3530_v55 = vadd.f32 1.0, %v11262_v40  ;;  %4265 = vmatprep.mubr.bf16.mxu1 %v15060_v38  ;;  %v3038_v39 = vadd.f32 %v18507_v17, %v14874_v34  ;;  %v9222_v19 = vmul.f32 -1.442695, %v15058_v35  ;;  %6342 = vmatpush1.bf16.msra.mxu0 %v10582_v0  ;;  %v18509_v29 = vld [vmem:[#allocation79_spill] sm:$0xff]  ;;  %v10587_v0 = vld [vmem:[%s18133_s5 + $0x44] ss:$16 sps:$4 sm:$0xff]  }
 0x4b2   : > { %v11266_v2 = vpop.eup %11265  ;;  %11275 = vrcp.f32 %v3529_v49  ;;  %v3531_v7 = vadd.f32 1.0, %v11264_v32  ;;  %4266 = vmatmul.mubr.bf16.gmra.mrb[76].mxu1 %v15050_v6  ;;  %v3040_v5 = vadd.f32 %v18508_v30, %v14871_v41  ;;  %v9223_v31 = vmul.f32 -1.442695, %v15062_v58  ;;  %v10561_v45 = vld [vmem:[#allocation7 + $0x148] ss:$16 sps:$4 sm:$0xff]   ;;  %6343 = vmatprep.subr.bf16.mxu0 %v10587_v0 }
 0x4b3   : > { %11277 = vrcp.f32 %v3530_v55  ;;  %v3532_v47 = vadd.f32 1.0, %v11266_v2  ;;  %4413 = vmatpush1.bf16.msra.mxu1 %v10555_v37  ;;  %v3042_v3 = vadd.f32 %v18509_v29, %v14874_v34  ;;  %v10585_v49 = vld [vmem:[%s18133_s5 + $0x40] ss:$16 sps:$4 sm:$0xff]   ;;  %v10566_v55 = vld [vmem:[#allocation7 + $0x16c] ss:$16 sps:$4 sm:$0xff]  }
 0x4b4   : > { %11279 = vrcp.f32 %v3531_v7  ;;  %v3228_v24 = vpop.f32.mrb[28].mxu0  ;;  %4414 = vmatprep.subr.bf16.mxu1 %v10560_v59  ;;  %v11268_v59 = vpop.eup %11267 }
 0x4b5   : > { %11281 = vrcp.f32 %v3532_v47  ;;  %v15082_v8 = vadd.f32 %v3228_v24, %v3036_v28  ;;  %v3230_v63 = vpop.f32.mrb[29].mxu0  ;;  %v3717_v47 = vmul.f32 %v11268_v59, %v14989_v62  ;;  %6344 = vmatpush1.bf16.msra.mxu0 %v10585_v49  ;;  %v10569_v24 = vld [vmem:[#allocation7 + $0x18c] ss:$16 sps:$4 sm:$0xff]  }
 0x4b6   : > { %11283 = vpow2.f32 %v9220_v44  ;;  %v15086_v57 = vadd.f32 %v3230_v63, %v3038_v39  ;;  %v3232_v22 = vpop.f32.mrb[30].mxu0  ;;  %v11270_v2 = vpop.eup %11269  ;;  %v10572_v59 = vld [vmem:[#allocation7 + $0x1ac] ss:$16 sps:$4 sm:$0xff]  }
 0x4b7   : > { %11285 = vpow2.f32 %v9221_v14  ;;  %v9224_v60 = vmul.f32 -1.442695, %v15082_v8  ;;  %v15089_v37 = vadd.f32 %v3232_v22, %v3040_v5  ;;  %v3234_v40 = vpop.f32.mrb[31].mxu0  ;;  %4415 = vmatpush1.bf16.msra.mxu1 %v10558_v61  ;;  %v10564_v61 = vld [vmem:[#allocation7 + $0x168] ss:$16 sps:$4 sm:$0xff]   ;;  %v3718_v39 = vmul.f32 %v11270_v2, %v14994_v46 }
 0x4b8   : > { %11287 = vpow2.f32 %v9222_v19  ;;  %v9225_v43 = vmul.f32 -1.442695, %v15086_v57  ;;  %v15095_v32 = vadd.f32 %v3234_v40, %v3042_v3  ;;  %4416 = vmatprep.subr.bf16.mxu1 %v10563_v13  ;;  %v10588_v3 = vld [vmem:[%s18133_s5 + $0x60] ss:$16 sps:$4 sm:$0xff]   ;;  %v10590_v22 = vld [vmem:[%s18133_s5 + $0x64] ss:$16 sps:$4 sm:$0xff]  }
 0x4b9   : > { %11289 = vpow2.f32 %v9223_v31  ;;  %v9226_v7 = vmul.f32 -1.442695, %v15089_v37  ;;  %v18510_v31 = vld [vmem:[#allocation36_spill] sm:$0xff]  ;;  %6345 = vmatprep.subr.bf16.mxu0 %v10590_v22 }
 0x4ba   : > { %v11272_v44 = vpop.eup %11271  ;;  %11291 = vpow2.f32 %v9224_v60  ;;  %v9227_v15 = vmul.f32 -1.442695, %v15095_v32  ;;  %v3046_v63 = vadd.f32 %v18510_v31, %v14871_v41  ;;  %v18511_v60 = vld [vmem:[#allocation81_spill] sm:$0xff]  ;;  %6346 = vmatpush1.bf16.msra.mxu0 %v10588_v3 }
 0x4bb   : > { %v11274_v28 = vpop.eup %11273  ;;  %v3719_v14 = vmul.f32 %v11272_v44, %v14997_v50  ;;  %11293 = vpow2.f32 %v9225_v43  ;;  %4417 = vmatpush1.bf16.msra.mxu1 %v10561_v45  ;;  %v3048_v40 = vadd.f32 %v18511_v60, %v14874_v34 }
 0x4bc   : > { %v11276_v17 = vpop.eup %11275  ;;  %v3720_v19 = vmul.f32 %v11274_v28, %v15000_v9  ;;  %11295 = vpow2.f32 %v9226_v7  ;;  %4418 = vmatprep.subr.bf16.mxu1 %v10566_v55  ;;  %v10567_v9 = vld [vmem:[#allocation7 + $0x188] ss:$16 sps:$4 sm:$0xff]   ;;  %v18512_v55 = vld [vmem:[#allocation82_spill] sm:$0xff] }
 0x4bd   : > { %v11278_v13 = vpop.eup %11277  ;;  %11297 = vpow2.f32 %v9227_v15  ;;  %v15106_v30 = vpack.c.bf16 %v3719_v14, %v3717_v47  ;;  %v3721_v29 = vmul.f32 %v11276_v17, %v15012_v23  ;;  %v3050_v0 = vadd.f32 %v18512_v55, %v14871_v41  ;;  %v18515_v55 = vld [vmem:[#allocation87_spill] sm:$0xff] }
 0x4be   : > { %v11280_v5 = vpop.eup %11279  ;;  %v15108_v62 = vpack.c.bf16 %v3720_v19, %v3718_v39  ;;  %v3722_v49 = vmul.f32 %v11278_v13, %v15016_v20 }
 0x4bf   : > { %v11282_v50 = vpop.eup %11281  ;;  %v3723_v46 = vmul.f32 %v11280_v5, %v15020_v12  ;;  %4419 = vmatpush1.bf16.msra.mxu1 %v10564_v61  ;;  %v10570_v5 = vld [vmem:[#allocation7 + $0x1a8] ss:$16 sps:$4 sm:$0xff]  }
 0x4c0   : > { %v11284_v45 = vpop.eup %11283  ;;  %v3724_v23 = vmul.f32 %v11282_v50, %v15024_v26  ;;  %4275 = vmatprep.mubr.bf16.mxu1 %v15108_v62  ;;  %v3238_v12 = vpop.f32.mrb[32].mxu0  ;;  %4420 = vmatprep.subr.bf16.mxu1 %v10569_v24  ;;  %v18513_v26 = vld [vmem:[#allocation83_spill] sm:$0xff] }
 0x4c1   : > { %v11286_v43 = vpop.eup %11285  ;;  %v3533_v2 = vadd.f32 1.0, %v11284_v45  ;;  %4276 = vmatmul.mubr.bf16.gmra.mrb[80].mxu1 %v15106_v30  ;;  %v15128_v7 = vadd.f32 %v3238_v12, %v3046_v63  ;;  %v3240_v44 = vpop.f32.mrb[33].mxu0  ;;  %v15130_v15 = vpack.c.bf16 %v3723_v46, %v3721_v29  ;;  %v3052_v28 = vadd.f32 %v18513_v26, %v14874_v34  ;;  %v10575_v29 = vld [vmem:[#allocation7 + $0x1cc] ss:$16 sps:$4 sm:$0xff]  }
 0x4c2   : > { %v11288_v20 = vpop.eup %11287  ;;  %v3534_v47 = vadd.f32 1.0, %v11286_v43  ;;  %v15134_v14 = vadd.f32 %v3240_v44, %v3048_v40  ;;  %v3242_v61 = vpop.f32.mrb[34].mxu0  ;;  %v15136_v17 = vpack.c.bf16 %v3724_v23, %v3722_v49  ;;  %v10573_v40 = vld [vmem:[#allocation7 + $0x1c8] ss:$16 sps:$4 sm:$0xff]   ;;  %v18514_v49 = vld [vmem:[#allocation86_spill] sm:$0xff] }
 0x4c3   : > { %v11290_v39 = vpop.eup %11289  ;;  %11299 = vrcp.f32 %v3533_v2  ;;  %v3535_v19 = vadd.f32 1.0, %v11288_v20  ;;  %v15138_v24 = vadd.f32 %v3242_v61, %v3050_v0  ;;  %v3244_v13 = vpop.f32.mrb[35].mxu0  ;;  %4421 = vmatpush1.bf16.msra.mxu1 %v10567_v9  ;;  %v9228_v60 = vmul.f32 -1.442695, %v15128_v7  ;;  %v10593_v43 = vld [vmem:[%s18133_s5 + $0x84] ss:$16 sps:$4 sm:$0xff]  }
 0x4c4   : > { %v11292_v50 = vpop.eup %11291  ;;  %11301 = vrcp.f32 %v3534_v47  ;;  %v3536_v31 = vadd.f32 1.0, %v11290_v39  ;;  %v15140_v63 = vadd.f32 %v3244_v13, %v3052_v28  ;;  %4285 = vmatprep.mubr.bf16.mxu1 %v15136_v17  ;;  %4422 = vmatprep.subr.bf16.mxu1 %v10572_v59  ;;  %v3056_v23 = vadd.f32 %v18514_v49, %v14871_v41  ;;  %v10591_v59 = vld [vmem:[%s18133_s5 + $0x80] ss:$16 sps:$4 sm:$0xff]   ;;  %v10578_v26 = vld [vmem:[#allocation7 + $0x1ec] ss:$16 sps:$4 sm:$0xff]  }
 0x4c5   : > { %v11294_v46 = vpop.eup %11293  ;;  %11303 = vrcp.f32 %v3535_v19  ;;  %v3537_v3 = vadd.f32 1.0, %v11292_v50  ;;  %v3058_v0 = vadd.f32 %v18515_v55, %v14874_v34  ;;  %v9229_v44 = vmul.f32 -1.442695, %v15134_v14  ;;  %v18516_v28 = vld [vmem:[#allocation88_spill] sm:$0xff]  ;;  %6347 = vmatprep.subr.bf16.mxu0 %v10593_v43  ;;  %v18517_v13 = vld [vmem:[#allocation89_spill] sm:$0xff] }
 0x4c6   : > { %v11296_v22 = vpop.eup %11295  ;;  %11305 = vrcp.f32 %v3536_v31  ;;  %v3538_v45 = vadd.f32 1.0, %v11294_v46  ;;  %v3060_v47 = vadd.f32 %v18516_v28, %v14871_v41  ;;  %v9230_v61 = vmul.f32 -1.442695, %v15138_v24  ;;  %6348 = vmatpush1.bf16.msra.mxu0 %v10591_v59  ;;  %v10596_v55 = vld [vmem:[%s18133_s5 + $0xa4] ss:$16 sps:$4 sm:$0xff]  }
 0x4c7   : > { %v11298_v9 = vpop.eup %11297  ;;  %11307 = vrcp.f32 %v3537_v3  ;;  %v3539_v12 = vadd.f32 1.0, %v11296_v22  ;;  %4423 = vmatpush1.bf16.msra.mxu1 %v10570_v5  ;;  %v3062_v5 = vadd.f32 %v18517_v13, %v14874_v34  ;;  %v9231_v50 = vmul.f32 -1.442695, %v15140_v63  ;;  %6349 = vmatprep.subr.bf16.mxu0 %v10596_v55  ;;  %v18518_v13 = vld [vmem:[#allocation90_spill] sm:$0xff] }
 0x4c8   : > { %11309 = vrcp.f32 %v3538_v45  ;;  %v3540_v2 = vadd.f32 1.0, %v11298_v9  ;;  %v3248_v20 = vpop.f32.mrb[36].mxu0  ;;  %4424 = vmatprep.subr.bf16.mxu1 %v10575_v29  ;;  %v10576_v45 = vld [vmem:[#allocation7 + $0x1e8] ss:$16 sps:$4 sm:$0xff]  }
 0x4c9   : > { %11311 = vrcp.f32 %v3539_v12  ;;  %4286 = vmatmul.mubr.bf16.gmra.mrb[84].mxu1 %v15130_v15  ;;  %v15159_v39 = vadd.f32 %v3248_v20, %v3056_v23  ;;  %v3250_v19 = vpop.f32.mrb[37].mxu0 }
 0x4ca   : > { %11313 = vrcp.f32 %v3540_v2  ;;  %v15164_v31 = vadd.f32 %v3250_v19, %v3058_v0  ;;  %v3252_v29 = vpop.f32.mrb[38].mxu0 }
 0x4cb   : > { %11315 = vpow2.f32 %v9228_v60  ;;  %v9232_v46 = vmul.f32 -1.442695, %v15159_v39  ;;  %v15167_v3 = vadd.f32 %v3252_v29, %v3060_v47  ;;  %v3254_v22 = vpop.f32.mrb[39].mxu0  ;;  %4425 = vmatpush1.bf16.msra.mxu1 %v10573_v40  ;;  %v10594_v40 = vld [vmem:[%s18133_s5 + $0xa0] ss:$16 sps:$4 sm:$0xff]  }
 0x4cc   : > { %11317 = vpow2.f32 %v9229_v44  ;;  %v9233_v9 = vmul.f32 -1.442695, %v15164_v31  ;;  %v15170_v49 = vadd.f32 %v3254_v22, %v3062_v5  ;;  %4426 = vmatprep.subr.bf16.mxu1 %v10578_v26  ;;  %6350 = vmatpush1.bf16.msra.mxu0 %v10594_v40  ;;  %v3066_v5 = vadd.f32 %v18518_v13, %v14871_v41  ;;  %v18521_v40 = vld [vmem:[#allocation93_spill] sm:$0xff] }
 0x4cd   : > { %v11300_v23 = vpop.eup %11299  ;;  %11319 = vpow2.f32 %v9230_v61  ;;  %v9234_v12 = vmul.f32 -1.442695, %v15167_v3 }
 0x4ce   : > { %v11302_v43 = vpop.eup %11301  ;;  %11321 = vpow2.f32 %v9231_v50  ;;  %v9235_v60 = vmul.f32 -1.442695, %v15170_v49  ;;  %v3725_v2 = vmul.f32 %v11300_v23, %v15046_v1  ;;  %v18519_v50 = vld [vmem:[#allocation91_spill] sm:$0xff] }
 0x4cf   : > { %v11304_v59 = vpop.eup %11303  ;;  %11323 = vpow2.f32 %v9232_v46  ;;  %4427 = vmatpush1.bf16.msra.mxu1 %v10576_v45  ;;  %v3726_v26 = vmul.f32 %v11302_v43, %v15048_v52  ;;  %v3068_v29 = vadd.f32 %v18519_v50, %v14874_v34  ;;  %v18520_v45 = vld [vmem:[#allocation92_spill] sm:$0xff] }
 0x4d0   : > { %v11306_v0 = vpop.eup %11305  ;;  %v3727_v44 = vmul.f32 %v11304_v59, %v15058_v35  ;;  %11325 = vpow2.f32 %v9233_v9  ;;  %v3070_v9 = vadd.f32 %v18520_v45, %v14871_v41  ;;  %v18523_v45 = vld [vmem:[#allocation95_spill] sm:$0xff] }
 0x4d1   : > { %v11308_v20 = vpop.eup %11307  ;;  %v3728_v28 = vmul.f32 %v11306_v0, %v15062_v58  ;;  %11327 = vpow2.f32 %v9234_v12 }
 0x4d2   : > { %v11310_v47 = vpop.eup %11309  ;;  %11329 = vpow2.f32 %v9235_v60  ;;  %v15184_v61 = vpack.c.bf16 %v3727_v44, %v3725_v2  ;;  %v3729_v52 = vmul.f32 %v11308_v20, %v15082_v8  ;;  %v3072_v8 = vadd.f32 %v18521_v40, %v14874_v34 }
 0x4d3   : > { %v11312_v19 = vpop.eup %11311  ;;  %v15188_v1 = vpack.c.bf16 %v3728_v28, %v3726_v26  ;;  %v3730_v23 = vmul.f32 %v11310_v47, %v15086_v57  ;;  %v10597_v28 = vld [vmem:[%s18133_s5 + $0xc0] ss:$16 sps:$4 sm:$0xff]  }
 0x4d4   : > { %v11314_v35 = vpop.eup %11313  ;;  %v3731_v58 = vmul.f32 %v11312_v19, %v15089_v37  ;;  %v3258_v46 = vpop.f32.mrb[40].mxu0 }
 0x4d5   : > { %v11316_v22 = vpop.eup %11315  ;;  %v3732_v12 = vmul.f32 %v11314_v35, %v15095_v32  ;;  %4295 = vmatprep.mubr.bf16.mxu1 %v15188_v1  ;;  %v15199_v43 = vadd.f32 %v3258_v46, %v3066_v5  ;;  %v3260_v60 = vpop.f32.mrb[41].mxu0  ;;  %v10599_v5 = vld [vmem:[%s18133_s5 + $0xc4] ss:$16 sps:$4 sm:$0xff]  }
 0x4d6   : > { %v11318_v59 = vpop.eup %11317  ;;  %v3541_v55 = vadd.f32 1.0, %v11316_v22  ;;  %4296 = vmatmul.mubr.bf16.gmra.mrb[88].mxu1 %v15184_v61  ;;  %v15204_v37 = vadd.f32 %v3260_v60, %v3068_v29  ;;  %v3262_v0 = vpop.f32.mrb[42].mxu0  ;;  %v15206_v2 = vpack.c.bf16 %v3731_v58, %v3729_v52  ;;  %6351 = vmatprep.subr.bf16.mxu0 %v10599_v5  ;;  %v18522_v46 = vld [vmem:[#allocation94_spill] sm:$0xff]  ;;  %v18524_v60 = vld [vmem:[#allocation96_spill] sm:$0xff] }
 0x4d7   : > { %v11320_v57 = vpop.eup %11319  ;;  %v3542_v44 = vadd.f32 1.0, %v11318_v59  ;;  %v15208_v32 = vadd.f32 %v3262_v0, %v3070_v9  ;;  %v3264_v20 = vpop.f32.mrb[43].mxu0  ;;  %v15210_v26 = vpack.c.bf16 %v3732_v12, %v3730_v23  ;;  %v3076_v22 = vadd.f32 %v18522_v46, %v14871_v41  ;;  %6352 = vmatpush1.bf16.msra.mxu0 %v10597_v28 }
 0x4d8   : > { %v11322_v47 = vpop.eup %11321  ;;  %11331 = vrcp.f32 %v3541_v55  ;;  %v3543_v19 = vadd.f32 1.0, %v11320_v57  ;;  %v15215_v13 = vadd.f32 %v3264_v20, %v3072_v8  ;;  %v3078_v9 = vadd.f32 %v18523_v45, %v14874_v34 }
 0x4d9   : > { %v11324_v35 = vpop.eup %11323  ;;  %11333 = vrcp.f32 %v3542_v44  ;;  %v3544_v50 = vadd.f32 1.0, %v11322_v47  ;;  %4305 = vmatprep.mubr.bf16.mxu1 %v15210_v26  ;;  %v3080_v59 = vadd.f32 %v18524_v60, %v14871_v41  ;;  %v9236_v8 = vmul.f32 -1.442695, %v15199_v43  ;;  %v18525_v47 = vld [vmem:[#allocation97_spill] sm:$0xff] }
 0x4da   : > { %v11326_v29 = vpop.eup %11325  ;;  %11335 = vrcp.f32 %v3543_v19  ;;  %v3545_v52 = vadd.f32 1.0, %v11324_v35  ;;  %v9237_v57 = vmul.f32 -1.442695, %v15204_v37  ;;  %v3082_v19 = vadd.f32 %v18525_v47, %v14874_v34  ;;  %v18526_v47 = vld [vmem:[#allocation98_spill] sm:$0xff] }
 0x4db   : > { %v11328_v58 = vpop.eup %11327  ;;  %11337 = vrcp.f32 %v3544_v50  ;;  %v3546_v23 = vadd.f32 1.0, %v11326_v29  ;;  %v9238_v28 = vmul.f32 -1.442695, %v15208_v32  ;;  %v9239_v50 = vmul.f32 -1.442695, %v15215_v13 }
 0x4dc   : > { %v11330_v12 = vpop.eup %11329  ;;  %11339 = vrcp.f32 %v3545_v52  ;;  %v3547_v40 = vadd.f32 1.0, %v11328_v58  ;;  %v3268_v55 = vpop.f32.mrb[44].mxu0 }
 0x4dd   : > { %11341 = vrcp.f32 %v3546_v23  ;;  %v3548_v0 = vadd.f32 1.0, %v11330_v12  ;;  %v15229_v44 = vadd.f32 %v3268_v55, %v3076_v22  ;;  %v3270_v20 = vpop.f32.mrb[45].mxu0 }
 0x4de   : > { %11343 = vrcp.f32 %v3547_v40  ;;  %4306 = vmatmul.mubr.bf16.gmra.mrb[92].mxu1 %v15206_v2  ;;  %v15235_v5 = vadd.f32 %v3270_v20, %v3078_v9  ;;  %v3272_v35 = vpop.f32.mrb[46].mxu0 }
 0x4df   : > { %11345 = vrcp.f32 %v3548_v0  ;;  %v15238_v29 = vadd.f32 %v3272_v35, %v3080_v59  ;;  %v3274_v52 = vpop.f32.mrb[47].mxu0  ;;  %v9240_v58 = vmul.f32 -1.442695, %v15229_v44 }
 0x4e0   : > { %11347 = vpow2.f32 %v9236_v8  ;;  %v15241_v46 = vadd.f32 %v3274_v52, %v3082_v19  ;;  %v9241_v22 = vmul.f32 -1.442695, %v15235_v5  ;;  %v3086_v19 = vadd.f32 %v18526_v47, %v14871_v41 }
 0x4e1   : > { %11349 = vpow2.f32 %v9237_v57  ;;  %v9242_v9 = vmul.f32 -1.442695, %v15238_v29 }
 0x4e2   : > { %v11332_v45 = vpop.eup %11331  ;;  %11351 = vpow2.f32 %v9238_v28  ;;  %v9243_v12 = vmul.f32 -1.442695, %v15241_v46 }
 0x4e3   : > { %v11334_v23 = vpop.eup %11333  ;;  %11353 = vpow2.f32 %v9239_v50  ;;  %v3733_v40 = vmul.f32 %v11332_v45, %v15128_v7  ;;  %v18527_v50 = vld [vmem:[#allocation99_spill] sm:$0xff] }
 0x4e4   : > { %v11336_v60 = vpop.eup %11335  ;;  %11355 = vpow2.f32 %v9240_v58  ;;  %v3734_v0 = vmul.f32 %v11334_v23, %v15134_v14  ;;  %v3088_v7 = vadd.f32 %v18527_v50, %v14874_v34  ;;  %v18528_v14 = vld [vmem:[#allocation100_spill] sm:$0xff] }
 0x4e5   : > { %v11338_v59 = vpop.eup %11337  ;;  %v3735_v8 = vmul.f32 %v11336_v60, %v15138_v24  ;;  %11357 = vpow2.f32 %v9241_v22  ;;  %v3090_v22 = vadd.f32 %v18528_v14, %v14871_v41  ;;  %v18529_v60 = vld [vmem:[#allocation101_spill] sm:$0xff]  ;;  %v10602_v14 = vld [vmem:[%s18133_s5 + $0xe4] ss:$16 sps:$4 sm:$0xff]  }
 0x4e6   : > { %v11340_v55 = vpop.eup %11339  ;;  %v3736_v57 = vmul.f32 %v11338_v59, %v15140_v63  ;;  %11359 = vpow2.f32 %v9242_v9  ;;  %v3092_v59 = vadd.f32 %v18529_v60, %v14874_v34  ;;  %6353 = vmatprep.subr.bf16.mxu0 %v10602_v14 }
 0x4e7   : > { %v11342_v20 = vpop.eup %11341  ;;  %11361 = vpow2.f32 %v9243_v12  ;;  %v15252_v28 = vpack.c.bf16 %v3735_v8, %v3733_v40  ;;  %v3737_v63 = vmul.f32 %v11340_v55, %v15159_v39 }
 0x4e8   : > { %v11344_v35 = vpop.eup %11343  ;;  %v15256_v52 = vpack.c.bf16 %v3736_v57, %v3734_v0  ;;  %v3278_v24 = vpop.f32.mrb[48].mxu0  ;;  %v3738_v40 = vmul.f32 %v11342_v20, %v15164_v31 }
 0x4e9   : > { %v11346_v58 = vpop.eup %11345  ;;  %v3739_v45 = vmul.f32 %v11344_v35, %v15167_v3  ;;  %v15262_v9 = vadd.f32 %v3278_v24, %v3086_v19  ;;  %v3280_v23 = vpop.f32.mrb[49].mxu0 }
 0x4ea   : > { %v11348_v12 = vpop.eup %11347  ;;  %v3740_v8 = vmul.f32 %v11346_v58, %v15170_v49  ;;  %4315 = vmatprep.mubr.bf16.mxu1 %v15256_v52  ;;  %v15269_v0 = vadd.f32 %v3280_v23, %v3088_v7  ;;  %v3282_v57 = vpop.f32.mrb[50].mxu0 }
 0x4eb   : > { %v11350_v47 = vpop.eup %11349  ;;  %v3549_v39 = vadd.f32 1.0, %v11348_v12  ;;  %4316 = vmatmul.mubr.bf16.gmra.mrb[96].mxu1 %v15252_v28  ;;  %v15272_v3 = vadd.f32 %v3282_v57, %v3090_v22  ;;  %v3284_v55 = vpop.f32.mrb[51].mxu0  ;;  %v15274_v19 = vpack.c.bf16 %v3739_v45, %v3737_v63  ;;  %v10600_v45 = vld [vmem:[%s18133_s5 + $0xe0] ss:$16 sps:$4 sm:$0xff]  }
 0x4ec   : > { %v11352_v35 = vpop.eup %11351  ;;  %v3550_v50 = vadd.f32 1.0, %v11350_v47  ;;  %v15276_v24 = vadd.f32 %v3284_v55, %v3092_v59  ;;  %v15278_v31 = vpack.c.bf16 %v3740_v8, %v3738_v40  ;;  %v9244_v40 = vmul.f32 -1.442695, %v15262_v9  ;;  %6354 = vmatpush1.bf16.msra.mxu0 %v10600_v45  ;;  %v10605_v47 = vld [vmem:[%s18133_s5 + $0x104] ss:$16 sps:$4 sm:$0xff]  }
 0x4ed   : > { %v11354_v49 = vpop.eup %11353  ;;  %11363 = vrcp.f32 %v3549_v39  ;;  %v3551_v20 = vadd.f32 1.0, %v11352_v35  ;;  %v9245_v57 = vmul.f32 -1.442695, %v15269_v0  ;;  %v9246_v39 = vmul.f32 -1.442695, %v15272_v3  ;;  %6355 = vmatprep.subr.bf16.mxu0 %v10605_v47 }
 0x4ee   : > { %v11356_v7 = vpop.eup %11355  ;;  %11365 = vrcp.f32 %v3550_v50  ;;  %v3552_v58 = vadd.f32 1.0, %v11354_v49  ;;  %4325 = vmatprep.mubr.bf16.mxu1 %v15278_v31  ;;  %v10603_v55 = vld [vmem:[%s18133_s5 + $0x100] ss:$16 sps:$4 sm:$0xff]   ;;  %v9247_v35 = vmul.f32 -1.442695, %v15276_v24 }
 0x4ef   : > { %v11358_v22 = vpop.eup %11357  ;;  %11367 = vrcp.f32 %v3551_v20  ;;  %v3553_v63 = vadd.f32 1.0, %v11356_v7  ;;  %v10608_v50 = vld [vmem:[%s18133_s5 + $0x124] ss:$16 sps:$4 sm:$0xff]   ;;  %v18530_v20 = vld [vmem:[#allocation113_spill] sm:$0xff] }
 0x4f0   : > { %v11360_v23 = vpop.eup %11359  ;;  %11369 = vrcp.f32 %v3552_v58  ;;  %v3554_v12 = vadd.f32 1.0, %v11358_v22  ;;  %6356 = vmatpush1.bf16.msra.mxu0 %v10603_v55  ;;  %v3096_v7 = vadd.f32 %v18530_v20, %v14871_v41  ;;  %v10606_v58 = vld [vmem:[%s18133_s5 + $0x120] ss:$16 sps:$4 sm:$0xff]   ;;  %v18531_v22 = vld [vmem:[#allocation115_spill] sm:$0xff] }
 0x4f1   : > { %v11362_v60 = vpop.eup %11361  ;;  %11371 = vrcp.f32 %v3553_v63  ;;  %v3555_v59 = vadd.f32 1.0, %v11360_v23  ;;  %v3098_v63 = vadd.f32 %v18531_v22, %v14874_v34  ;;  %6357 = vmatprep.subr.bf16.mxu0 %v10608_v50  ;;  %v10611_v50 = vld [vmem:[%s18133_s5 + $0x144] ss:$16 sps:$4 sm:$0xff]  }
 0x4f2   : > { %11373 = vrcp.f32 %v3554_v12  ;;  %v3556_v8 = vadd.f32 1.0, %v11362_v60  ;;  %v18532_v12 = vld [vmem:[#allocation116_spill] sm:$0xff] }
 0x4f3   : > { %11375 = vrcp.f32 %v3555_v59  ;;  %4326 = vmatmul.mubr.bf16.gmra.mrb[100].mxu1 %v15274_v19  ;;  %v3100_v60 = vadd.f32 %v18532_v12, %v14871_v41 }
 0x4f4   : > { %11377 = vrcp.f32 %v3556_v8  ;;  %6358 = vmatpush1.bf16.msra.mxu0 %v10606_v58 }
 0x4f5   : > { %11379 = vpow2.f32 %v9244_v40  ;;  %6359 = vmatprep.subr.bf16.mxu0 %v10611_v50  ;;  %v3106_v50 = vadd.f32 %v14679_v56, %v14871_v41 }
 0x4f6   : > { %11381 = vpow2.f32 %v9245_v57  ;;  %v18533_v57 = vld [vmem:[#allocation117_spill] sm:$0xff] }
 0x4f7   : > { %v11364_v49 = vpop.eup %11363  ;;  %11383 = vpow2.f32 %v9246_v39  ;;  %v3102_v47 = vadd.f32 %v18533_v57, %v14874_v34 }
 0x4f8   : > { %v11366_v14 = vpop.eup %11365  ;;  %11385 = vpow2.f32 %v9247_v35  ;;  %v3288_v45 = vpop.f32.mrb[52].mxu0  ;;  %v3741_v39 = vmul.f32 %v11364_v49, %v15199_v43  ;;  %v10609_v43 = vld [vmem:[%s18133_s5 + $0x140] ss:$16 sps:$4 sm:$0xff]  }
 0x4f9   : > { %v11368_v23 = vpop.eup %11367  ;;  %v15310_v59 = vadd.f32 %v3288_v45, %v3096_v7  ;;  %v3290_v40 = vpop.f32.mrb[53].mxu0  ;;  %v3742_v7 = vmul.f32 %v11366_v14, %v15204_v37  ;;  %6360 = vmatpush1.bf16.msra.mxu0 %v10609_v43 }
 0x4fa   : > { %v11370_v8 = vpop.eup %11369  ;;  %v3743_v55 = vmul.f32 %v11368_v23, %v15208_v32  ;;  %v15316_v20 = vadd.f32 %v3290_v40, %v3098_v63  ;;  %v3292_v35 = vpop.f32.mrb[54].mxu0 }
 0x4fb   : > { %v11372_v22 = vpop.eup %11371  ;;  %v3744_v58 = vmul.f32 %v11370_v8, %v15215_v13  ;;  %v9248_v45 = vmul.f32 -1.442695, %v15310_v59  ;;  %v15324_v12 = vadd.f32 %v3292_v35, %v3100_v60  ;;  %v3294_v57 = vpop.f32.mrb[55].mxu0 }
 0x4fc   : > { %v11374_v32 = vpop.eup %11373  ;;  %v9249_v49 = vmul.f32 -1.442695, %v15316_v20  ;;  %v15330_v63 = vpack.c.bf16 %v3743_v55, %v3741_v39  ;;  %v15332_v23 = vadd.f32 %v3294_v57, %v3102_v47  ;;  %v3745_v40 = vmul.f32 %v11372_v22, %v15229_v44  ;;  %v10614_v47 = vld [vmem:[%s18133_s5 + $0x164] ss:$16 sps:$4 sm:$0xff]   ;;  %v10617_v39 = vld [vmem:[%s18133_s5 + $0xc] ss:$16 sps:$4 sm:$0xff]  }
 0x4fd   : > { %v11376_v37 = vpop.eup %11375  ;;  %11387 = vpow2.f32 %v9248_v45  ;;  %v15334_v13 = vpack.c.bf16 %v3744_v58, %v3742_v7  ;;  %v9250_v14 = vmul.f32 -1.442695, %v15324_v12  ;;  %v3746_v7 = vmul.f32 %v11374_v32, %v15235_v5  ;;  %6361 = vmatprep.subr.bf16.mxu0 %v10614_v47  ;;  %6725 = vmatprep.subr.bf16.mxu1 %v10617_v39 }
 0x4fe   : > { %v11378_v60 = vpop.eup %11377  ;;  %v3747_v8 = vmul.f32 %v11376_v37, %v15238_v29  ;;  %11389 = vpow2.f32 %v9249_v49  ;;  %v9251_v35 = vmul.f32 -1.442695, %v15332_v23  ;;  %v10612_v29 = vld [vmem:[%s18133_s5 + $0x160] ss:$16 sps:$4 sm:$0xff]   ;;  %v3108_v58 = vadd.f32 %v14689_v53, %v14874_v34 }
 0x4ff   : > { %v11380_v55 = vpop.eup %11379  ;;  %v3748_v44 = vmul.f32 %v11378_v60, %v15241_v46  ;;  %4335 = vmatprep.mubr.bf16.mxu1 %v15334_v13  ;;  %11391 = vpow2.f32 %v9250_v14  ;;  %v3110_v46 = vadd.f32 %v14693_v51, %v14871_v41  ;;  %6362 = vmatpush1.bf16.msra.mxu0 %v10612_v29  ;;  %v3112_v14 = vadd.f32 %v14700_v11, %v14874_v34  ;;  %v10620_v51 = vld [vmem:[%s18133_s5 + $0x184] ss:$16 sps:$4 sm:$0xff]   ;;  %v10618_v11 = vld [vmem:[%s18133_s5 + $0x180] ss:$16 sps:$4 sm:$0xff]  }
 0x500   : > { %v11382_v22 = vpop.eup %11381  ;;  %v3557_v45 = vadd.f32 1.0, %v11380_v55  ;;  %4336 = vmatmul.mubr.bf16.gmra.mrb[104].mxu1 %v15330_v63  ;;  %11393 = vpow2.f32 %v9251_v35  ;;  %v3298_v56 = vpop.f32.mrb[56].mxu0  ;;  %v15357_v57 = vpack.c.bf16 %v3747_v8, %v3745_v40  ;;  %6363 = vmatprep.subr.bf16.mxu0 %v10620_v51 }
 0x501   : > { %v11384_v5 = vpop.eup %11383  ;;  %v3558_v43 = vadd.f32 1.0, %v11382_v22  ;;  %v15361_v32 = vadd.f32 %v3298_v56, %v3106_v50  ;;  %v15363_v49 = vpack.c.bf16 %v3748_v44, %v3746_v7  ;;  %v3300_v37 = vpop.f32.mrb[57].mxu0  ;;  %v10626_v22 = vld [vmem:[%s18133_s5 + $0x1a4] ss:$16 sps:$4 sm:$0xff]   ;;  %v10624_v56 = vld [vmem:[%s18133_s5 + $0x1a0] ss:$16 sps:$4 sm:$0xff]  }
 0x502   : > { %v11386_v53 = vpop.eup %11385  ;;  %11395 = vrcp.f32 %v3557_v45  ;;  %v3559_v60 = vadd.f32 1.0, %v11384_v5  ;;  %v15367_v40 = vadd.f32 %v3300_v37, %v3108_v58  ;;  %v3302_v8 = vpop.f32.mrb[58].mxu0  ;;  %v3116_v45 = vadd.f32 %v14894_v48, %v14871_v41 }
 0x503   : > { %11397 = vrcp.f32 %v3558_v43  ;;  %v3560_v35 = vadd.f32 1.0, %v11386_v53  ;;  %v9252_v47 = vmul.f32 -1.442695, %v15361_v32  ;;  %4345 = vmatprep.mubr.bf16.mxu1 %v15363_v49  ;;  %v15374_v39 = vadd.f32 %v3302_v8, %v3110_v46  ;;  %v3304_v55 = vpop.f32.mrb[59].mxu0  ;;  %6364 = vmatpush1.bf16.msra.mxu0 %v10618_v11  ;;  %v10632_v11 = vld [vmem:[%s18133_s5 + $0x1c4] ss:$16 sps:$4 sm:$0xff]  }
 0x504   : > { %11399 = vrcp.f32 %v3559_v60  ;;  %v9253_v50 = vmul.f32 -1.442695, %v15367_v40  ;;  %v15380_v7 = vadd.f32 %v3304_v55, %v3112_v14  ;;  %v3118_v46 = vadd.f32 %v14897_v54, %v14874_v34  ;;  %6365 = vmatprep.subr.bf16.mxu0 %v10626_v22 }
 0x505   : > { %11401 = vrcp.f32 %v3560_v35  ;;  %v9254_v44 = vmul.f32 -1.442695, %v15374_v39  ;;  %v3120_v14 = vadd.f32 %v14900_v16, %v14871_v41  ;;  %v3122_v54 = vadd.f32 %v14904_v36, %v14874_v34  ;;  %v10630_v34 = vld [vmem:[%s18133_s5 + $0x1c0] ss:$16 sps:$4 sm:$0xff]  }
 0x506   : > { %11403 = vpow2.f32 %v9252_v47  ;;  %v9255_v29 = vmul.f32 -1.442695, %v15380_v7 }
 0x507   : > { %v11388_v58 = vpop.eup %11387  ;;  %11405 = vpow2.f32 %v9253_v50  ;;  %6366 = vmatpush1.bf16.msra.mxu0 %v10624_v56 }
 0x508   : > { %v11390_v5 = vpop.eup %11389  ;;  %v3561_v43 = vadd.f32 1.0, %v11388_v58  ;;  %4346 = vmatmul.mubr.bf16.gmra.mrb[108].mxu1 %v15357_v57  ;;  %11407 = vpow2.f32 %v9254_v44  ;;  %v3308_v37 = vpop.f32.mrb[60].mxu0  ;;  %6367 = vmatprep.subr.bf16.mxu0 %v10632_v11 }
 0x509   : > { %v11392_v53 = vpop.eup %11391  ;;  %v3562_v48 = vadd.f32 1.0, %v11390_v5  ;;  %11409 = vpow2.f32 %v9255_v29  ;;  %v15397_v60 = vadd.f32 %v3308_v37, %v3116_v45  ;;  %v3310_v8 = vpop.f32.mrb[61].mxu0 }
 0x50a   : > { %v11394_v51 = vpop.eup %11393  ;;  %11411 = vrcp.f32 %v3561_v43  ;;  %v3563_v35 = vadd.f32 1.0, %v11392_v53  ;;  %v15401_v47 = vadd.f32 %v3310_v8, %v3118_v46  ;;  %v3312_v55 = vpop.f32.mrb[62].mxu0  ;;  %v10638_v46 = vld [vmem:[%s18133_s5 + $0x1e4] ss:$16 sps:$4 sm:$0xff]  }
 0x50b   : > { %11413 = vrcp.f32 %v3562_v48  ;;  %v3564_v41 = vadd.f32 1.0, %v11394_v51  ;;  %v9256_v16 = vmul.f32 -1.442695, %v15397_v60  ;;  %v15407_v50 = vadd.f32 %v3312_v55, %v3120_v14  ;;  %v3314_v44 = vpop.f32.mrb[63].mxu0  ;;  %6368 = vmatpush1.bf16.msra.mxu0 %v10630_v34  ;;  %v10636_v14 = vld [vmem:[%s18133_s5 + $0x1e0] ss:$16 sps:$4 sm:$0xff]  }
 0x50c   : > { %v11396_v36 = vpop.eup %11395  ;;  %11415 = vrcp.f32 %v3563_v35  ;;  %v9257_v29 = vmul.f32 -1.442695, %v15401_v47  ;;  %v15413_v22 = vadd.f32 %v3314_v44, %v3122_v54  ;;  %6369 = vmatprep.subr.bf16.mxu0 %v10638_v46 }
 0x50d   : > { %v11398_v58 = vpop.eup %11397  ;;  %11417 = vrcp.f32 %v3564_v41  ;;  %v9258_v45 = vmul.f32 -1.442695, %v15407_v50  ;;  %v3749_v37 = vmul.f32 %v11396_v36, %v15262_v9 }
 0x50e   : > { %v11400_v56 = vpop.eup %11399  ;;  %11419 = vpow2.f32 %v9256_v16  ;;  %v9259_v5 = vmul.f32 -1.442695, %v15413_v22  ;;  %v3750_v8 = vmul.f32 %v11398_v58, %v15269_v0 }
 0x50f   : > { %v11402_v43 = vpop.eup %11401  ;;  %v3751_v53 = vmul.f32 %v11400_v56, %v15272_v3  ;;  %11421 = vpow2.f32 %v9257_v29  ;;  %6370 = vmatpush1.bf16.msra.mxu0 %v10636_v14 }
 0x510   : > { %v11404_v48 = vpop.eup %11403  ;;  %v3752_v51 = vmul.f32 %v11402_v43, %v15276_v24  ;;  %11423 = vpow2.f32 %v9258_v45 }
 0x511   : > { %v11406_v54 = vpop.eup %11405  ;;  %v3565_v35 = vadd.f32 1.0, %v11404_v48  ;;  %11425 = vpow2.f32 %v9259_v5  ;;  %v15427_v55 = vpack.c.bf16 %v3751_v53, %v3749_v37 }
 0x512   : > { %v11408_v9 = vpop.eup %11407  ;;  %v3566_v3 = vadd.f32 1.0, %v11406_v54  ;;  %v15429_v11 = vpack.c.bf16 %v3752_v51, %v3750_v8 }
 0x513   : > { %v11410_v41 = vpop.eup %11409  ;;  %11427 = vrcp.f32 %v3565_v35  ;;  %v3567_v16 = vadd.f32 1.0, %v11408_v9 }
 0x514   : > { %v11412_v44 = vpop.eup %11411  ;;  %11429 = vrcp.f32 %v3566_v3  ;;  %v3568_v0 = vadd.f32 1.0, %v11410_v41  ;;  %4355 = vmatprep.mubr.bf16.mxu1 %v15429_v11 }
 0x515   : > { %v11414_v24 = vpop.eup %11413  ;;  %11431 = vrcp.f32 %v3567_v16  ;;  %4356 = vmatmul.mubr.bf16.gmra.mrb[112].mxu1 %v15427_v55  ;;  %v3753_v29 = vmul.f32 %v11412_v44, %v15310_v59 }
 0x516   : > { %v11416_v34 = vpop.eup %11415  ;;  %11433 = vrcp.f32 %v3568_v0  ;;  %v3754_v56 = vmul.f32 %v11414_v24, %v15316_v20 }
 0x517   : > { %v11418_v36 = vpop.eup %11417  ;;  %v3755_v58 = vmul.f32 %v11416_v34, %v15324_v12 }
 0x518   : > { %v11420_v45 = vpop.eup %11419  ;;  %v3756_v5 = vmul.f32 %v11418_v36, %v15332_v23 }
 0x519   : > { %v11422_v46 = vpop.eup %11421  ;;  %v3569_v43 = vadd.f32 1.0, %v11420_v45  ;;  %v15437_v37 = vpack.c.bf16 %v3755_v58, %v3753_v29  ;;  %v10641_v45 = vld [vmem:[%s18133_s5 + $0x8c] ss:$16 sps:$4 sm:$0xff]  }
 0x51a   : > { %v11424_v53 = vpop.eup %11423  ;;  %v3570_v14 = vadd.f32 1.0, %v11422_v46  ;;  %v15439_v48 = vpack.c.bf16 %v3756_v5, %v3754_v56  ;;  %v10639_v56 = vld [vmem:[%s18133_s5 + $0x88] ss:$16 sps:$4 sm:$0xff]   ;;  %v10647_v5 = vld [vmem:[%s18133_s5 + $0xcc] ss:$16 sps:$4 sm:$0xff]  }
 0x51b   : > { %v11426_v8 = vpop.eup %11425  ;;  %11435 = vrcp.f32 %v3569_v43  ;;  %v3571_v51 = vadd.f32 1.0, %v11424_v53  ;;  %v10645_v46 = vld [vmem:[%s18133_s5 + $0xc8] ss:$16 sps:$4 sm:$0xff]   ;;  %v10653_v53 = vld [vmem:[%s18133_s5 + $0x10c] ss:$16 sps:$4 sm:$0xff]  }
 0x51c   : > { %11437 = vrcp.f32 %v3570_v14  ;;  %v3572_v59 = vadd.f32 1.0, %v11426_v8  ;;  %4365 = vmatprep.mubr.bf16.mxu1 %v15439_v48  ;;  %v10648_v43 = vld [vmem:[%s18133_s5 + $0xe8] ss:$16 sps:$4 sm:$0xff]   ;;  %v10659_v8 = vld [vmem:[%s18133_s5 + $0x14c] ss:$16 sps:$4 sm:$0xff]  }
 0x51d   : > { %v11428_v12 = vpop.eup %11427  ;;  %11439 = vrcp.f32 %v3571_v51  ;;  %4366 = vmatmul.mubr.bf16.gmra.mrb[116].mxu1 %v15437_v37  ;;  %v10654_v14 = vld [vmem:[%s18133_s5 + $0x128] ss:$16 sps:$4 sm:$0xff]  }
 0x51e   : > { %v11430_v20 = vpop.eup %11429  ;;  %11441 = vrcp.f32 %v3572_v59  ;;  %v3757_v35 = vmul.f32 %v11428_v12, %v15361_v32  ;;  %v10657_v51 = vld [vmem:[%s18133_s5 + $0x148] ss:$16 sps:$4 sm:$0xff]   ;;  %v10665_v12 = vld [vmem:[%s18133_s5 + $0x18c] ss:$16 sps:$4 sm:$0xff]  }
 0x51f   : > { %v11432_v23 = vpop.eup %11431  ;;  %v3758_v3 = vmul.f32 %v11430_v20, %v15367_v40  ;;  %v10660_v59 = vld [vmem:[%s18133_s5 + $0x168] ss:$16 sps:$4 sm:$0xff]  }
 0x520   : > { %v11434_v54 = vpop.eup %11433  ;;  %v3759_v9 = vmul.f32 %v11432_v23, %v15374_v39 }
 0x521   : > { %v3760_v41 = vmul.f32 %v11434_v54, %v15380_v7  ;;  %v10668_v54 = vld [vmem:[%s18133_s5 + $0x1ac] ss:$16 sps:$4 sm:$0xff]  }
 0x522   : > { %v15447_v16 = vpack.c.bf16 %v3759_v9, %v3757_v35 }
 0x523   : > { %v15449_v44 = vpack.c.bf16 %v3760_v41, %v3758_v3 }
 0x525   : > { %v11436_v0 = vpop.eup %11435  ;;  %4375 = vmatprep.mubr.bf16.mxu1 %v15449_v44 }
 0x526   : > { %v11438_v24 = vpop.eup %11437  ;;  %4376 = vmatmul.mubr.bf16.gmra.mrb[120].mxu1 %v15447_v16  ;;  %v3761_v32 = vmul.f32 %v11436_v0, %v15397_v60  ;;  %v10615_v60 = vld [vmem:[%s18133_s5 + $0x8] ss:$16 sps:$4 sm:$0xff]  }
 0x527   : > { %v11440_v34 = vpop.eup %11439  ;;  %v3762_v40 = vmul.f32 %v11438_v24, %v15401_v47  ;;  %v10623_v47 = vld [vmem:[%s18133_s5 + $0x2c] ss:$16 sps:$4 sm:$0xff]  }
 0x528   : > { %v11442_v36 = vpop.eup %11441  ;;  %v3763_v39 = vmul.f32 %v11440_v34, %v15407_v50  ;;  %v10621_v50 = vld [vmem:[%s18133_s5 + $0x28] ss:$16 sps:$4 sm:$0xff]  }
 0x529   : > { %v3764_v7 = vmul.f32 %v11442_v36, %v15413_v22  ;;  %v10627_v22 = vld [vmem:[%s18133_s5 + $0x48] ss:$16 sps:$4 sm:$0xff]  }
 0x52a   : > { %v15457_v29 = vpack.c.bf16 %v3763_v39, %v3761_v32  ;;  %v10666_v36 = vld [vmem:[%s18133_s5 + $0x1a8] ss:$16 sps:$4 sm:$0xff]  }
 0x52b   : > { %v15459_v58 = vpack.c.bf16 %v3764_v7, %v3762_v40  ;;  %v10672_v7 = vld [vmem:[%s18133_s5 + $0x1c8] ss:$16 sps:$4 sm:$0xff]  }
 0x52d   : > { %4385 = vmatprep.mubr.bf16.mxu1 %v15459_v58 }
 0x52e   : > { %4386 = vmatmul.mubr.bf16.gmra.mrb[124].mxu1 %v15457_v29 }
 0x52f   : > { %4428 = vmatprep.mubr.bf16.mxu1 %v14962_v18  ;;  %v10629_v18 = vld [vmem:[%s18133_s5 + $0x4c] ss:$16 sps:$4 sm:$0xff]  }
 0x536   : > { %4429 = vmatmul.mubr.bf16.vlgmr.msra.gmra.mrb[128].mxu1 %v14954_v33  ;;  %v10635_v33 = vld [vmem:[%s18133_s5 + $0x6c] ss:$16 sps:$4 sm:$0xff]  }
 0x537   : > { %4438 = vmatprep.mubr.bf16.mxu1 %v14980_v27  ;;  %6726 = vmatpush1.bf16.msra.mxu1 %v10615_v60  ;;  %v10633_v27 = vld [vmem:[%s18133_s5 + $0x68] ss:$16 sps:$4 sm:$0xff]  }
 0x538   : > { %6727 = vmatprep.subr.bf16.mxu1 %v10623_v47  ;;  %v10677_v47 = vld [vmem:[%s18133_s5 + $0x1ec] ss:$16 sps:$4 sm:$0xff]  }
 0x53b   : > { %6728 = vmatpush1.bf16.msra.mxu1 %v10621_v50 }
 0x53c   : > { %6729 = vmatprep.subr.bf16.mxu1 %v10629_v18 }
 0x53e   : > { %4439 = vmatmul.mubr.bf16.gmra.mrb[132].mxu1 %v14978_v21  ;;  %v10644_v21 = vld [vmem:[%s18133_s5 + $0xac] ss:$16 sps:$4 sm:$0xff]  }
 0x53f   : > { %4448 = vmatprep.mubr.bf16.mxu1 %v15030_v10  ;;  %6730 = vmatpush1.bf16.msra.mxu1 %v10627_v22  ;;  %v10642_v10 = vld [vmem:[%s18133_s5 + $0xa8] ss:$16 sps:$4 sm:$0xff]  }
 0x540   : > { %6731 = vmatprep.subr.bf16.mxu1 %v10635_v33 }
 0x543   : > { %6732 = vmatpush1.bf16.msra.mxu1 %v10633_v27 }
 0x544   : > { %6733 = vmatprep.subr.bf16.mxu1 %v10641_v45 }
 0x546   : > { %4449 = vmatmul.mubr.bf16.gmra.mrb[136].mxu1 %v15027_v4  ;;  %v10650_v4 = vld [vmem:[%s18133_s5 + $0xec] ss:$16 sps:$4 sm:$0xff]  }
 0x547   : > { %4458 = vmatprep.mubr.bf16.mxu1 %v15060_v38  ;;  %6734 = vmatpush1.bf16.msra.mxu1 %v10639_v56  ;;  %v10671_v38 = vld [vmem:[%s18133_s5 + $0x204] ss:$16 sps:$4 sm:$0xff]  }
 0x548   : > { %6735 = vmatprep.subr.bf16.mxu1 %v10644_v21  ;;  %6532 = vmatprep.subr.bf16.mxu0 %v10671_v38  ;;  %v10675_v21 = vld [vmem:[%s18133_s5 + $0x1e8] ss:$16 sps:$4 sm:$0xff]  }
 0x54b   : > { %6736 = vmatpush1.bf16.msra.mxu1 %v10642_v10 }
 0x54c   : > { %6737 = vmatprep.subr.bf16.mxu1 %v10647_v5 }
 0x54e   : > { %4459 = vmatmul.mubr.bf16.gmra.mrb[140].mxu1 %v15050_v6  ;;  %v10651_v6 = vld [vmem:[%s18133_s5 + $0x108] ss:$16 sps:$4 sm:$0xff]  }
 0x54f   : > { %4468 = vmatprep.mubr.bf16.mxu1 %v15108_v62  ;;  %6738 = vmatpush1.bf16.msra.mxu1 %v10645_v46  ;;  %v10656_v62 = vld [vmem:[%s18133_s5 + $0x12c] ss:$16 sps:$4 sm:$0xff]  }
 0x550   : > { %6739 = vmatprep.subr.bf16.mxu1 %v10650_v4 }
 0x553   : > { %6740 = vmatpush1.bf16.msra.mxu1 %v10648_v43 }
 0x554   : > { %6741 = vmatprep.subr.bf16.mxu1 %v10653_v53 }
 0x556   : > { %4469 = vmatmul.mubr.bf16.gmra.mrb[144].mxu1 %v15106_v30  ;;  %v10662_v30 = vld [vmem:[%s18133_s5 + $0x16c] ss:$16 sps:$4 sm:$0xff]  }
 0x557   : > { %4478 = vmatprep.mubr.bf16.mxu1 %v15136_v17  ;;  %6742 = vmatpush1.bf16.msra.mxu1 %v10651_v6  ;;  %v3861_v17 = vld [vmem:[%s18130_s2 + $0xa] sm:$0xf] }
 0x558   : > { %6743 = vmatprep.subr.bf16.mxu1 %v10656_v62  ;;  %v15555_v20 = vrot.slane %v3861_v17, %v18476_v25 }
 0x55b   : > { %6744 = vmatpush1.bf16.msra.mxu1 %v10654_v14 }
 0x55c   : > { %6745 = vmatprep.subr.bf16.mxu1 %v10659_v8 }
 0x55e   : > { %4479 = vmatmul.mubr.bf16.gmra.mrb[148].mxu1 %v15130_v15  ;;  %v15558_v15 = vrot.slane %v3861_v17, %v18477_v42 }
 0x55f   : > { %4488 = vmatprep.mubr.bf16.mxu1 %v15188_v1  ;;  %6746 = vmatpush1.bf16.msra.mxu1 %v10657_v51  ;;  %v10663_v1 = vld [vmem:[%s18133_s5 + $0x188] ss:$16 sps:$4 sm:$0xff]  }
 0x560   : > { %6747 = vmatprep.subr.bf16.mxu1 %v10662_v30 }
 0x563   : > { %6748 = vmatpush1.bf16.msra.mxu1 %v10660_v59 }
 0x564   : > { %v4237_v23 = vpop.f32.mrb[64].mxu1  ;;  %6749 = vmatprep.subr.bf16.mxu1 %v10665_v12 }
 0x565   : > { %v15567_v35 = vadd.f32 %v4237_v23, %v15555_v20  ;;  %v4239_v9 = vpop.f32.mrb[65].mxu1 }
 0x566   : > { %v15570_v3 = vadd.f32 %v4239_v9, %v15558_v15  ;;  %4489 = vmatmul.mubr.bf16.gmra.mrb[152].mxu1 %v15184_v61  ;;  %v4241_v41 = vpop.f32.mrb[66].mxu1  ;;  %v10674_v61 = vld [vmem:[%s18133_s5 + $0x1cc] ss:$16 sps:$4 sm:$0xff]  }
 0x567   : > { %v9324_v0 = vmul.f32 -1.442695, %v15567_v35  ;;  %v15575_v24 = vadd.f32 %v4241_v41, %v15555_v20  ;;  %4498 = vmatprep.mubr.bf16.mxu1 %v15210_v26  ;;  %v4243_v34 = vpop.f32.mrb[67].mxu1  ;;  %6750 = vmatpush1.bf16.msra.mxu1 %v10663_v1 }
 0x568   : > { %v9325_v32 = vmul.f32 -1.442695, %v15570_v3  ;;  %v15583_v39 = vadd.f32 %v4243_v34, %v15558_v15  ;;  %6751 = vmatprep.subr.bf16.mxu1 %v10668_v54 }
 0x569   : > { %11443 = vpow2.f32 %v9324_v0  ;;  %v9328_v40 = vmul.f32 -1.442695, %v15575_v24 }
 0x56a   : > { %11445 = vpow2.f32 %v9325_v32  ;;  %v9329_v26 = vmul.f32 -1.442695, %v15583_v39  ;;  %v10707_v32 = vld [vmem:[%s18133_s5 + $0x20c] ss:$16 sps:$4 sm:$0xff]  }
 0x56b   : > { %11447 = vpow2.f32 %v9328_v40  ;;  %6752 = vmatpush1.bf16.msra.mxu1 %v10666_v36 }
 0x56c   : > { %11449 = vpow2.f32 %v9329_v26  ;;  %v4247_v60 = vpop.f32.mrb[68].mxu1  ;;  %6753 = vmatprep.subr.bf16.mxu1 %v10674_v61 }
 0x56d   : > { %v15597_v50 = vadd.f32 %v4247_v60, %v15555_v20  ;;  %v4249_v18 = vpop.f32.mrb[69].mxu1 }
 0x56e   : > { %v15600_v22 = vadd.f32 %v4249_v18, %v15558_v15  ;;  %4499 = vmatmul.mubr.bf16.gmra.mrb[156].mxu1 %v15206_v2  ;;  %v4251_v33 = vpop.f32.mrb[70].mxu1 }
 0x56f   : > { %v9332_v27 = vmul.f32 -1.442695, %v15597_v50  ;;  %v15605_v45 = vadd.f32 %v4251_v33, %v15555_v20  ;;  %4508 = vmatprep.mubr.bf16.mxu1 %v15256_v52  ;;  %v4253_v56 = vpop.f32.mrb[71].mxu1  ;;  %6754 = vmatpush1.bf16.msra.mxu1 %v10672_v7 }
 0x570   : > { %v9333_v10 = vmul.f32 -1.442695, %v15600_v22  ;;  %v15613_v5 = vadd.f32 %v4253_v56, %v15558_v15  ;;  %6755 = vmatprep.subr.bf16.mxu1 %v10677_v47 }
 0x571   : > { %11451 = vpow2.f32 %v9332_v27  ;;  %v9336_v2 = vmul.f32 -1.442695, %v15605_v45 }
 0x572   : > { %11453 = vpow2.f32 %v9333_v10  ;;  %v9337_v46 = vmul.f32 -1.442695, %v15613_v5 }
 0x573   : > { %v11444_v4 = vpop.eup %11443  ;;  %11455 = vpow2.f32 %v9336_v2  ;;  %6756 = vmatpush1.bf16.msra.mxu1 %v10675_v21 }
 0x574   : > { %v11446_v52 = vpop.eup %11445  ;;  %v4973_v38 = vadd.f32 1.0, %v11444_v4  ;;  %11457 = vpow2.f32 %v9337_v46  ;;  %6918 = vmatprep.subr.bf16.mxu1 %v10707_v32  ;;  %v10681_v32 = vld [vmem:[%s18133_s5 + $0x240] ss:$16 sps:$4 sm:$0xff]  }
 0x575   : > { %v11448_v43 = vpop.eup %11447  ;;  %v4974_v53 = vadd.f32 1.0, %v11446_v52 }
 0x576   : > { %v11450_v6 = vpop.eup %11449  ;;  %11459 = vrcp.f32 %v4973_v38  ;;  %v4977_v62 = vadd.f32 1.0, %v11448_v43  ;;  %4509 = vmatmul.mubr.bf16.gmra.mrb[160].mxu1 %v15252_v28 }
 0x577   : > { %11461 = vrcp.f32 %v4974_v53  ;;  %v4978_v14 = vadd.f32 1.0, %v11450_v6  ;;  %4518 = vmatprep.mubr.bf16.mxu1 %v15278_v31 }
 0x578   : > { %11463 = vrcp.f32 %v4977_v62 }
 0x579   : > { %11465 = vrcp.f32 %v4978_v14 }
 0x57b   : > { %v11452_v8 = vpop.eup %11451 }
 0x57c   : > { %v11454_v51 = vpop.eup %11453  ;;  %v4981_v30 = vadd.f32 1.0, %v11452_v8  ;;  %v4257_v17 = vpop.f32.mrb[72].mxu1  ;;  %v10678_v8 = vld [vmem:[%s18133_s5 + $0x220] ss:$16 sps:$4 sm:$0xff]  }
 0x57d   : > { %v11456_v59 = vpop.eup %11455  ;;  %v4982_v12 = vadd.f32 1.0, %v11454_v51  ;;  %v15620_v1 = vadd.f32 %v4257_v17, %v15555_v20  ;;  %v4259_v23 = vpop.f32.mrb[73].mxu1 }
 0x57e   : > { %v11458_v54 = vpop.eup %11457  ;;  %11467 = vrcp.f32 %v4981_v30  ;;  %v4985_v9 = vadd.f32 1.0, %v11456_v59  ;;  %v15623_v28 = vadd.f32 %v4259_v23, %v15558_v15  ;;  %v4261_v41 = vpop.f32.mrb[74].mxu1  ;;  %4519 = vmatmul.mubr.bf16.gmra.mrb[164].mxu1 %v15274_v19 }
 0x57f   : > { %11469 = vrcp.f32 %v4982_v12  ;;  %v4986_v31 = vadd.f32 1.0, %v11458_v54  ;;  %v9340_v0 = vmul.f32 -1.442695, %v15620_v1  ;;  %v15628_v34 = vadd.f32 %v4261_v41, %v15555_v20  ;;  %v4263_v36 = vpop.f32.mrb[75].mxu1  ;;  %4528 = vmatprep.mubr.bf16.mxu1 %v15334_v13  ;;  %v10683_v12 = vld [vmem:[%s18133_s5 + $0x244] ss:$16 sps:$4 sm:$0xff]  }
 0x580   : > { %v11460_v61 = vpop.eup %11459  ;;  %11471 = vrcp.f32 %v4985_v9  ;;  %v9341_v40 = vmul.f32 -1.442695, %v15623_v28  ;;  %v15636_v19 = vadd.f32 %v4263_v36, %v15558_v15 }
 0x581   : > { %v11462_v26 = vpop.eup %11461  ;;  %11473 = vrcp.f32 %v4986_v31  ;;  %v9344_v7 = vmul.f32 -1.442695, %v15628_v34  ;;  %v5357_v18 = vmul.f32 %v11460_v61, %v15567_v35  ;;  %v10669_v35 = vld [vmem:[%s18133_s5 + $0x200] ss:$16 sps:$4 sm:$0xff]   ;;  %v10686_v61 = vld [vmem:[%s18133_s5 + $0x264] ss:$16 sps:$4 sm:$0xff]  }
 0x582   : > { %v11464_v60 = vpop.eup %11463  ;;  %11475 = vpow2.f32 %v9340_v0  ;;  %v9345_v13 = vmul.f32 -1.442695, %v15636_v19  ;;  %v5358_v27 = vmul.f32 %v11462_v26, %v15570_v3 }
 0x583   : > { %v11466_v47 = vpop.eup %11465  ;;  %v5361_v33 = vmul.f32 %v11464_v60, %v15575_v24  ;;  %11477 = vpow2.f32 %v9341_v40 }
 0x584   : > { %v5362_v56 = vmul.f32 %v11466_v47, %v15583_v39  ;;  %11479 = vpow2.f32 %v9344_v7  ;;  %v10680_v39 = vld [vmem:[%s18133_s5 + $0x224] ss:$16 sps:$4 sm:$0xff]  }
 0x585   : > { %v15644_v21 = vpack.c.bf16 %v5361_v33, %v5357_v18  ;;  %11481 = vpow2.f32 %v9345_v13  ;;  %v4267_v10 = vpop.f32.mrb[76].mxu1 }
 0x586   : > { %v15647_v2 = vadd.f32 %v4267_v10, %v15555_v20  ;;  %v4269_v46 = vpop.f32.mrb[77].mxu1  ;;  %4529 = vmatmul.mubr.bf16.gmra.mrb[168].mxu1 %v15330_v63  ;;  %v15650_v4 = vpack.c.bf16 %v5362_v56, %v5358_v27 }
 0x587   : > { %v15656_v3 = vadd.f32 %v4269_v46, %v15558_v15  ;;  %v4271_v24 = vpop.f32.mrb[78].mxu1  ;;  %4538 = vmatprep.mubr.bf16.mxu1 %v15363_v49  ;;  %v10687_v46 = vld [vmem:[%s18133_s5 + $0x280] ss:$16 sps:$4 sm:$0xff]  }
 0x588   : > { %v11468_v52 = vpop.eup %11467  ;;  %v9348_v38 = vmul.f32 -1.442695, %v15647_v2  ;;  %v15664_v63 = vadd.f32 %v4271_v24, %v15555_v20  ;;  %v4273_v43 = vpop.f32.mrb[79].mxu1  ;;  %6371 = vmatprep.mubr.bf16.mxu0 %v15650_v4 }
 0x589   : > { %v11470_v53 = vpop.eup %11469  ;;  %v9349_v6 = vmul.f32 -1.442695, %v15656_v3  ;;  %v15669_v62 = vadd.f32 %v4273_v43, %v15558_v15  ;;  %6372 = vmatmul.mubr.bf16.vlgmr.msra.gmra.mrb[64].mxu0 %v15644_v21  ;;  %v5365_v30 = vmul.f32 %v11468_v52, %v15597_v50 }
 0x58a   : > { %v11472_v49 = vpop.eup %11471  ;;  %11483 = vpow2.f32 %v9348_v38  ;;  %v9352_v14 = vmul.f32 -1.442695, %v15664_v63  ;;  %6533 = vmatpush1.bf16.msra.mxu0 %v10669_v35  ;;  %v5366_v54 = vmul.f32 %v11470_v53, %v15600_v22 }
 0x58b   : > { %v11474_v51 = vpop.eup %11473  ;;  %v5369_v17 = vmul.f32 %v11472_v49, %v15605_v45  ;;  %11485 = vpow2.f32 %v9349_v6  ;;  %v9353_v59 = vmul.f32 -1.442695, %v15669_v62  ;;  %6534 = vmatprep.subr.bf16.mxu0 %v10680_v39 }
 0x58c   : > { %v11476_v23 = vpop.eup %11475  ;;  %v5370_v9 = vmul.f32 %v11474_v51, %v15613_v5  ;;  %11487 = vpow2.f32 %v9352_v14  ;;  %v10690_v51 = vld [vmem:[%s18133_s5 + $0x2a0] ss:$16 sps:$4 sm:$0xff]  }
 0x58d   : > { %v11478_v41 = vpop.eup %11477  ;;  %v4989_v31 = vadd.f32 1.0, %v11476_v23  ;;  %11489 = vpow2.f32 %v9353_v59  ;;  %v15684_v50 = vpack.c.bf16 %v5369_v17, %v5365_v30  ;;  %v10695_v17 = vld [vmem:[%s18133_s5 + $0x2c4] ss:$16 sps:$4 sm:$0xff]  }
 0x58e   : > { %v11480_v45 = vpop.eup %11479  ;;  %v4990_v0 = vadd.f32 1.0, %v11478_v41  ;;  %4539 = vmatmul.mubr.bf16.gmra.mrb[172].mxu1 %v15357_v57  ;;  %v15687_v36 = vpack.c.bf16 %v5370_v9, %v5366_v54  ;;  %6535 = vmatpush1.bf16.msra.mxu0 %v10678_v8  ;;  %v10684_v57 = vld [vmem:[%s18133_s5 + $0x260] ss:$16 sps:$4 sm:$0xff]  }
 0x58f   : > { %v11482_v22 = vpop.eup %11481  ;;  %11491 = vrcp.f32 %v4989_v31  ;;  %v4993_v5 = vadd.f32 1.0, %v11480_v45  ;;  %4548 = vmatprep.mubr.bf16.mxu1 %v15429_v11  ;;  %6536 = vmatprep.subr.bf16.mxu0 %v10683_v12  ;;  %v10689_v11 = vld [vmem:[%s18133_s5 + $0x284] ss:$16 sps:$4 sm:$0xff]  }
 0x590   : > { %11493 = vrcp.f32 %v4990_v0  ;;  %v4994_v40 = vadd.f32 1.0, %v11482_v22  ;;  %6381 = vmatprep.mubr.bf16.mxu0 %v15687_v36 }
 0x591   : > { %11495 = vrcp.f32 %v4993_v5  ;;  %6382 = vmatmul.mubr.bf16.gmra.mrb[68].mxu0 %v15684_v50  ;;  %v10693_v5 = vld [vmem:[%s18133_s5 + $0x2c0] ss:$16 sps:$4 sm:$0xff]  }
 0x592   : > { %11497 = vrcp.f32 %v4994_v40  ;;  %6537 = vmatpush1.bf16.msra.mxu0 %v10681_v32  ;;  %v10698_v40 = vld [vmem:[%s18133_s5 + $0x2e4] ss:$16 sps:$4 sm:$0xff]  }
 0x593   : > { %6538 = vmatprep.subr.bf16.mxu0 %v10686_v61 }
 0x594   : > { %v11484_v26 = vpop.eup %11483  ;;  %v4277_v7 = vpop.f32.mrb[80].mxu1 }
 0x595   : > { %v11486_v60 = vpop.eup %11485  ;;  %v4997_v13 = vadd.f32 1.0, %v11484_v26  ;;  %v15705_v47 = vadd.f32 %v4277_v7, %v15555_v20  ;;  %v4279_v18 = vpop.f32.mrb[81].mxu1 }
 0x596   : > { %v11488_v33 = vpop.eup %11487  ;;  %v4998_v27 = vadd.f32 1.0, %v11486_v60  ;;  %v15708_v56 = vadd.f32 %v4279_v18, %v15558_v15  ;;  %v4281_v10 = vpop.f32.mrb[82].mxu1  ;;  %4549 = vmatmul.mubr.bf16.gmra.mrb[176].mxu1 %v15427_v55  ;;  %6539 = vmatpush1.bf16.msra.mxu0 %v10684_v57  ;;  %v10692_v55 = vld [vmem:[%s18133_s5 + $0x2a4] ss:$16 sps:$4 sm:$0xff]   ;;  %v10696_v60 = vld [vmem:[%s18133_s5 + $0x2e0] ss:$16 sps:$4 sm:$0xff]  }
 0x597   : > { %v11490_v35 = vpop.eup %11489  ;;  %11499 = vrcp.f32 %v4997_v13  ;;  %v5001_v24 = vadd.f32 1.0, %v11488_v33  ;;  %v9356_v39 = vmul.f32 -1.442695, %v15705_v47  ;;  %v15716_v52 = vadd.f32 %v4281_v10, %v15555_v20  ;;  %v4283_v38 = vpop.f32.mrb[83].mxu1  ;;  %4558 = vmatprep.mubr.bf16.mxu1 %v15439_v48  ;;  %6540 = vmatprep.subr.bf16.mxu0 %v10689_v11 }
 0x598   : > { %11501 = vrcp.f32 %v4998_v27  ;;  %v5002_v43 = vadd.f32 1.0, %v11490_v35  ;;  %v9357_v53 = vmul.f32 -1.442695, %v15708_v56  ;;  %v15724_v6 = vadd.f32 %v4283_v38, %v15558_v15  ;;  %v10701_v27 = vld [vmem:[%s18133_s5 + $0x304] ss:$16 sps:$4 sm:$0xff]  }
 0x599   : > { %v11492_v49 = vpop.eup %11491  ;;  %11503 = vrcp.f32 %v5001_v24  ;;  %v9360_v14 = vmul.f32 -1.442695, %v15716_v52 }
 0x59a   : > { %v11494_v8 = vpop.eup %11493  ;;  %11505 = vrcp.f32 %v5002_v43  ;;  %v9361_v48 = vmul.f32 -1.442695, %v15724_v6  ;;  %6541 = vmatpush1.bf16.msra.mxu0 %v10687_v46  ;;  %v5373_v12 = vmul.f32 %v11492_v49, %v15620_v1  ;;  %v10699_v43 = vld [vmem:[%s18133_s5 + $0x300] ss:$16 sps:$4 sm:$0xff]  }
 0x59b   : > { %v11496_v30 = vpop.eup %11495  ;;  %11507 = vpow2.f32 %v9356_v39  ;;  %6542 = vmatprep.subr.bf16.mxu0 %v10692_v55  ;;  %v5374_v9 = vmul.f32 %v11494_v8, %v15623_v28 }
 0x59c   : > { %v11498_v59 = vpop.eup %11497  ;;  %v5377_v23 = vmul.f32 %v11496_v30, %v15628_v34  ;;  %11509 = vpow2.f32 %v9357_v53  ;;  %v4287_v54 = vpop.f32.mrb[84].mxu1  ;;  %v10702_v30 = vld [vmem:[%s18133_s5 + $0x320] ss:$16 sps:$4 sm:$0xff]  }
 0x59d   : > { %v5378_v41 = vmul.f32 %v11498_v59, %v15636_v19  ;;  %11511 = vpow2.f32 %v9360_v14  ;;  %v15739_v31 = vadd.f32 %v4287_v54, %v15555_v20  ;;  %v4289_v45 = vpop.f32.mrb[85].mxu1  ;;  %v10713_v54 = vld [vmem:[%s18133_s5 + $0x344] ss:$16 sps:$4 sm:$0xff]  }
 0x59e   : > { %11513 = vpow2.f32 %v9361_v48  ;;  %v15742_v0 = vadd.f32 %v4289_v45, %v15558_v15  ;;  %v4291_v32 = vpop.f32.mrb[86].mxu1  ;;  %4559 = vmatmul.mubr.bf16.gmra.mrb[180].mxu1 %v15437_v37  ;;  %v15745_v1 = vpack.c.bf16 %v5377_v23, %v5373_v12  ;;  %6543 = vmatpush1.bf16.msra.mxu0 %v10690_v51 }
 0x59f   : > { %v9364_v34 = vmul.f32 -1.442695, %v15739_v31  ;;  %v15749_v28 = vadd.f32 %v4291_v32, %v15555_v20  ;;  %v4293_v19 = vpop.f32.mrb[87].mxu1  ;;  %v15751_v22 = vpack.c.bf16 %v5378_v41, %v5374_v9  ;;  %4568 = vmatprep.mubr.bf16.mxu1 %v15449_v44  ;;  %6544 = vmatprep.subr.bf16.mxu0 %v10695_v17 }
 0x5a0   : > { %v9365_v37 = vmul.f32 -1.442695, %v15742_v0  ;;  %v15759_v61 = vadd.f32 %v4293_v19, %v15558_v15 }
 0x5a1   : > { %v11500_v57 = vpop.eup %11499  ;;  %11515 = vpow2.f32 %v9364_v34  ;;  %v9368_v11 = vmul.f32 -1.442695, %v15749_v28  ;;  %6391 = vmatprep.mubr.bf16.mxu0 %v15751_v22 }
 0x5a2   : > { %v11502_v44 = vpop.eup %11501  ;;  %11517 = vpow2.f32 %v9365_v37  ;;  %v9369_v26 = vmul.f32 -1.442695, %v15759_v61  ;;  %6392 = vmatmul.mubr.bf16.gmra.mrb[72].mxu0 %v15745_v1  ;;  %v5381_v18 = vmul.f32 %v11500_v57, %v15647_v2 }
 0x5a3   : > { %v11504_v7 = vpop.eup %11503  ;;  %11519 = vpow2.f32 %v9368_v11  ;;  %6545 = vmatpush1.bf16.msra.mxu0 %v10693_v5  ;;  %v5382_v46 = vmul.f32 %v11502_v44, %v15656_v3  ;;  %v10722_v11 = vld [vmem:[%s18133_s5 + $0x364] ss:$16 sps:$4 sm:$0xff]  }
 0x5a4   : > { %v11506_v13 = vpop.eup %11505  ;;  %v5385_v33 = vmul.f32 %v11504_v7, %v15664_v63  ;;  %11521 = vpow2.f32 %v9369_v26  ;;  %6546 = vmatprep.subr.bf16.mxu0 %v10698_v40  ;;  %v10711_v40 = vld [vmem:[%s18133_s5 + $0x340] ss:$16 sps:$4 sm:$0xff]  }
 0x5a5   : > { %v11508_v10 = vpop.eup %11507  ;;  %v5386_v35 = vmul.f32 %v11506_v13, %v15669_v62 }
 0x5a6   : > { %v11510_v24 = vpop.eup %11509  ;;  %v5005_v39 = vadd.f32 1.0, %v11508_v10  ;;  %4569 = vmatmul.mubr.bf16.gmra.mrb[184].mxu1 %v15447_v16  ;;  %v15779_v38 = vpack.c.bf16 %v5385_v33, %v5381_v18  ;;  %v10704_v16 = vld [vmem:[%s18133_s5 + $0x324] ss:$16 sps:$4 sm:$0xff]   ;;  %v10705_v33 = vld [vmem:[%s18133_s5 + $0x208] ss:$16 sps:$4 sm:$0xff]  }
 0x5a7   : > { %v11512_v2 = vpop.eup %11511  ;;  %v5006_v55 = vadd.f32 1.0, %v11510_v24  ;;  %4578 = vmatprep.mubr.bf16.mxu1 %v15459_v58  ;;  %v15782_v63 = vpack.c.bf16 %v5386_v35, %v5382_v46  ;;  %6547 = vmatpush1.bf16.msra.mxu0 %v10696_v60 }
 0x5a8   : > { %v11514_v3 = vpop.eup %11513  ;;  %11523 = vrcp.f32 %v5005_v39  ;;  %v5009_v62 = vadd.f32 1.0, %v11512_v2  ;;  %6548 = vmatprep.subr.bf16.mxu0 %v10701_v27  ;;  %v10710_v27 = vld [vmem:[%s18133_s5 + $0x22c] ss:$16 sps:$4 sm:$0xff]   ;;  %v10720_v2 = vld [vmem:[%s18133_s5 + $0x360] ss:$16 sps:$4 sm:$0xff]  }
 0x5a9   : > { %11525 = vrcp.f32 %v5006_v55  ;;  %v5010_v53 = vadd.f32 1.0, %v11514_v3  ;;  %v4297_v49 = vpop.f32.mrb[88].mxu1  ;;  %6401 = vmatprep.mubr.bf16.mxu0 %v15782_v63 }
 0x5aa   : > { %11527 = vrcp.f32 %v5009_v62  ;;  %v15792_v58 = vadd.f32 %v4297_v49, %v15555_v20  ;;  %v4299_v14 = vpop.f32.mrb[89].mxu1  ;;  %6402 = vmatmul.mubr.bf16.gmra.mrb[76].mxu0 %v15779_v38  ;;  %v10731_v62 = vld [vmem:[%s18133_s5 + $0x384] ss:$16 sps:$4 sm:$0xff]  }
 0x5ab   : > { %v11516_v8 = vpop.eup %11515  ;;  %11529 = vrcp.f32 %v5010_v53  ;;  %v15796_v48 = vadd.f32 %v4299_v14, %v15558_v15  ;;  %v4301_v51 = vpop.f32.mrb[90].mxu1  ;;  %6549 = vmatpush1.bf16.msra.mxu0 %v10699_v43 }
 0x5ac   : > { %v11518_v17 = vpop.eup %11517  ;;  %v5013_v59 = vadd.f32 1.0, %v11516_v8  ;;  %v15802_v12 = vadd.f32 %v4301_v51, %v15555_v20  ;;  %v4303_v23 = vpop.f32.mrb[91].mxu1  ;;  %6550 = vmatprep.subr.bf16.mxu0 %v10704_v16  ;;  %v9372_v19 = vmul.f32 -1.442695, %v15792_v58  ;;  %v10708_v8 = vld [vmem:[%s18133_s5 + $0x228] ss:$16 sps:$4 sm:$0xff]  }
 0x5ad   : > { %v11520_v9 = vpop.eup %11519  ;;  %v5014_v41 = vadd.f32 1.0, %v11518_v17  ;;  %v15808_v45 = vadd.f32 %v4303_v23, %v15558_v15  ;;  %v9373_v37 = vmul.f32 -1.442695, %v15796_v48  ;;  %v10729_v51 = vld [vmem:[%s18133_s5 + $0x380] ss:$16 sps:$4 sm:$0xff]  }
 0x5ae   : > { %v11522_v32 = vpop.eup %11521  ;;  %11531 = vrcp.f32 %v5013_v59  ;;  %v5017_v34 = vadd.f32 1.0, %v11520_v9  ;;  %4579 = vmatmul.mubr.bf16.gmra.mrb[188].mxu1 %v15457_v29  ;;  %v9376_v57 = vmul.f32 -1.442695, %v15802_v12  ;;  %v10714_v9 = vld [vmem:[%s18133_s5 + $0x248] ss:$16 sps:$4 sm:$0xff]  }
 0x5af   : > { %11533 = vrcp.f32 %v5014_v41  ;;  %v5018_v5 = vadd.f32 1.0, %v11522_v32  ;;  %6757 = vmatprep.mubr.bf16.mxu1 %v15650_v4  ;;  %6551 = vmatpush1.bf16.msra.mxu0 %v10702_v30  ;;  %v9377_v29 = vmul.f32 -1.442695, %v15808_v45  ;;  %v10740_v30 = vld [vmem:[%s18133_s5 + $0x3a4] ss:$16 sps:$4 sm:$0xff]  }
 0x5b0   : > { %11535 = vrcp.f32 %v5017_v34  ;;  %6552 = vmatprep.subr.bf16.mxu0 %v10713_v54 }
 0x5b1   : > { %11537 = vrcp.f32 %v5018_v5  ;;  %v4307_v44 = vpop.f32.mrb[92].mxu1 }
 0x5b2   : > { %v11524_v26 = vpop.eup %11523  ;;  %11539 = vpow2.f32 %v9372_v19  ;;  %v15823_v4 = vadd.f32 %v4307_v44, %v15555_v20  ;;  %v4309_v7 = vpop.f32.mrb[93].mxu1  ;;  %v10719_v19 = vld [vmem:[%s18133_s5 + $0x26c] ss:$16 sps:$4 sm:$0xff]  }
 0x5b3   : > { %v11526_v60 = vpop.eup %11525  ;;  %11541 = vpow2.f32 %v9373_v37  ;;  %v15826_v13 = vadd.f32 %v4309_v7, %v15558_v15  ;;  %v4311_v18 = vpop.f32.mrb[94].mxu1  ;;  %6553 = vmatpush1.bf16.msra.mxu0 %v10711_v40  ;;  %v5389_v46 = vmul.f32 %v11524_v26, %v15705_v47  ;;  %v10738_v37 = vld [vmem:[%s18133_s5 + $0x3a0] ss:$16 sps:$4 sm:$0xff]  }
 0x5b4   : > { %v11528_v10 = vpop.eup %11527  ;;  %11543 = vpow2.f32 %v9376_v57  ;;  %v9380_v35 = vmul.f32 -1.442695, %v15823_v4  ;;  %v15837_v24 = vadd.f32 %v4311_v18, %v15555_v20  ;;  %v4313_v39 = vpop.f32.mrb[95].mxu1  ;;  %6554 = vmatprep.subr.bf16.mxu0 %v10722_v11  ;;  %v5390_v16 = vmul.f32 %v11526_v60, %v15708_v56  ;;  %v10717_v60 = vld [vmem:[%s18133_s5 + $0x268] ss:$16 sps:$4 sm:$0xff]  }
 0x5b5   : > { %v11530_v55 = vpop.eup %11529  ;;  %v5393_v43 = vmul.f32 %v11528_v10, %v15716_v52  ;;  %11545 = vpow2.f32 %v9377_v29  ;;  %v9381_v3 = vmul.f32 -1.442695, %v15826_v13  ;;  %v15845_v47 = vadd.f32 %v4313_v39, %v15558_v15  ;;  %v10725_v10 = vld [vmem:[%s18133_s5 + $0x28c] ss:$16 sps:$4 sm:$0xff]  }
 0x5b6   : > { %v5394_v53 = vmul.f32 %v11530_v55, %v15724_v6  ;;  %11547 = vpow2.f32 %v9380_v35  ;;  %v9384_v49 = vmul.f32 -1.442695, %v15837_v24  ;;  %6758 = vmatmul.mubr.bf16.vlgmr.msra.gmra.mrb[192].mxu1 %v15644_v21  ;;  %v10716_v21 = vld [vmem:[%s18133_s5 + $0x24c] ss:$16 sps:$4 sm:$0xff]  }
 0x5b7   : > { %11549 = vpow2.f32 %v9381_v3  ;;  %v9385_v52 = vmul.f32 -1.442695, %v15845_v47  ;;  %v15855_v14 = vpack.c.bf16 %v5393_v43, %v5389_v46  ;;  %6767 = vmatprep.mubr.bf16.mxu1 %v15687_v36  ;;  %6919 = vmatpush1.bf16.msra.mxu1 %v10705_v33 }
 0x5b8   : > { %v11532_v56 = vpop.eup %11531  ;;  %11551 = vpow2.f32 %v9384_v49  ;;  %v15861_v6 = vpack.c.bf16 %v5394_v53, %v5390_v16  ;;  %6920 = vmatprep.subr.bf16.mxu1 %v10710_v27  ;;  %6555 = vmatpush1.bf16.msra.mxu0 %v10720_v2  ;;  %v10747_v2 = vld [vmem:[%s18133_s5 + $0x3c0] ss:$16 sps:$4 sm:$0xff]  }
 0x5b9   : > { %v11534_v36 = vpop.eup %11533  ;;  %11553 = vpow2.f32 %v9385_v52  ;;  %6556 = vmatprep.subr.bf16.mxu0 %v10731_v62  ;;  %v5397_v23 = vmul.f32 %v11532_v56, %v15739_v31  ;;  %v10758_v62 = vld [vmem:[%s18133_s5 + $0x3e4] ss:$16 sps:$4 sm:$0xff]   ;;  %v10723_v52 = vld [vmem:[%s18133_s5 + $0x288] ss:$16 sps:$4 sm:$0xff]  }
 0x5ba   : > { %v11536_v17 = vpop.eup %11535  ;;  %6411 = vmatprep.mubr.bf16.mxu0 %v15861_v6  ;;  %v5398_v32 = vmul.f32 %v11534_v36, %v15742_v0  ;;  %v10756_v36 = vld [vmem:[%s18133_s5 + $0x3e0] ss:$16 sps:$4 sm:$0xff]  }
 0x5bb   : > { %v11538_v59 = vpop.eup %11537  ;;  %v5401_v54 = vmul.f32 %v11536_v17, %v15749_v28  ;;  %6412 = vmatmul.mubr.bf16.gmra.mrb[80].mxu0 %v15855_v14  ;;  %6921 = vmatpush1.bf16.msra.mxu1 %v10708_v8 }
 0x5bc   : > { %v11540_v41 = vpop.eup %11539  ;;  %v5402_v34 = vmul.f32 %v11538_v59, %v15759_v61  ;;  %6922 = vmatprep.subr.bf16.mxu1 %v10716_v21  ;;  %6557 = vmatpush1.bf16.msra.mxu0 %v10729_v51  ;;  %v10749_v61 = vld [vmem:[%s18133_s5 + $0x3c4] ss:$16 sps:$4 sm:$0xff]   ;;  %v10728_v21 = vld [vmem:[%s18133_s5 + $0x2ac] ss:$16 sps:$4 sm:$0xff]  }
 0x5bd   : > { %v11542_v31 = vpop.eup %11541  ;;  %v5021_v28 = vadd.f32 1.0, %v11540_v41  ;;  %v15884_v5 = vpack.c.bf16 %v5401_v54, %v5397_v23  ;;  %6558 = vmatprep.subr.bf16.mxu0 %v10740_v30  ;;  %v10726_v54 = vld [vmem:[%s18133_s5 + $0x2a8] ss:$16 sps:$4 sm:$0xff]  }
 0x5be   : > { %v11544_v40 = vpop.eup %11543  ;;  %v5022_v57 = vadd.f32 1.0, %v11542_v31  ;;  %v4317_v0 = vpop.f32.mrb[96].mxu1  ;;  %v15889_v11 = vpack.c.bf16 %v5402_v34, %v5398_v32  ;;  %6768 = vmatmul.mubr.bf16.gmra.mrb[196].mxu1 %v15684_v50 }
 0x5bf   : > { %v11546_v29 = vpop.eup %11545  ;;  %11555 = vrcp.f32 %v5021_v28  ;;  %v5025_v44 = vadd.f32 1.0, %v11544_v40  ;;  %v15896_v26 = vadd.f32 %v4317_v0, %v15555_v20  ;;  %v4319_v7 = vpop.f32.mrb[97].mxu1  ;;  %6777 = vmatprep.mubr.bf16.mxu1 %v15751_v22  ;;  %6923 = vmatpush1.bf16.msra.mxu1 %v10714_v9  ;;  %v10732_v0 = vld [vmem:[%s18133_s5 + $0x2c8] ss:$16 sps:$4 sm:$0xff]  }
 0x5c0   : > { %v11548_v18 = vpop.eup %11547  ;;  %11557 = vrcp.f32 %v5022_v57  ;;  %v5026_v50 = vadd.f32 1.0, %v11546_v29  ;;  %v15903_v33 = vadd.f32 %v4319_v7, %v15558_v15  ;;  %v4321_v27 = vpop.f32.mrb[98].mxu1  ;;  %6421 = vmatprep.mubr.bf16.mxu0 %v15889_v11  ;;  %6924 = vmatprep.subr.bf16.mxu1 %v10719_v19 }
 0x5c1   : > { %v11550_v22 = vpop.eup %11549  ;;  %11559 = vrcp.f32 %v5025_v44  ;;  %v5029_v46 = vadd.f32 1.0, %v11548_v18  ;;  %v15910_v35 = vadd.f32 %v4321_v27, %v15555_v20  ;;  %v4323_v39 = vpop.f32.mrb[99].mxu1  ;;  %6559 = vmatpush1.bf16.msra.mxu0 %v10738_v37  ;;  %v9388_v49 = vmul.f32 -1.442695, %v15896_v26 }
 0x5c2   : > { %v11552_v55 = vpop.eup %11551  ;;  %11561 = vrcp.f32 %v5026_v50  ;;  %v5030_v43 = vadd.f32 1.0, %v11550_v22  ;;  %v15916_v3 = vadd.f32 %v4323_v39, %v15558_v15  ;;  %6560 = vmatprep.subr.bf16.mxu0 %v10749_v61  ;;  %v9389_v56 = vmul.f32 -1.442695, %v15903_v33 }
 0x5c3   : > { %v11554_v16 = vpop.eup %11553  ;;  %11563 = vrcp.f32 %v5029_v46  ;;  %v5033_v53 = vadd.f32 1.0, %v11552_v55  ;;  %6422 = vmatmul.mubr.bf16.gmra.mrb[84].mxu0 %v15884_v5  ;;  %6925 = vmatpush1.bf16.msra.mxu1 %v10717_v60  ;;  %v9392_v51 = vmul.f32 -1.442695, %v15910_v35  ;;  %v10737_v60 = vld [vmem:[%s18133_s5 + $0x2ec] ss:$16 sps:$4 sm:$0xff]  }
 0x5c4   : > { %11565 = vrcp.f32 %v5030_v43  ;;  %v5034_v8 = vadd.f32 1.0, %v11554_v16  ;;  %6926 = vmatprep.subr.bf16.mxu1 %v10725_v10  ;;  %v9393_v30 = vmul.f32 -1.442695, %v15916_v3  ;;  %v10735_v46 = vld [vmem:[%s18133_s5 + $0x2e8] ss:$16 sps:$4 sm:$0xff]  }
 0x5c5   : > { %11567 = vrcp.f32 %v5033_v53  ;;  %6561 = vmatpush1.bf16.msra.mxu0 %v10747_v2 }
 0x5c6   : > { %11569 = vrcp.f32 %v5034_v8  ;;  %v4327_v17 = vpop.f32.mrb[100].mxu1  ;;  %6778 = vmatmul.mubr.bf16.gmra.mrb[200].mxu1 %v15745_v1  ;;  %6562 = vmatprep.subr.bf16.mxu0 %v10758_v62  ;;  %v10734_v1 = vld [vmem:[%s18133_s5 + $0x2cc] ss:$16 sps:$4 sm:$0xff]  }
 0x5c7   : > { %11571 = vpow2.f32 %v9388_v49  ;;  %v15937_v59 = vadd.f32 %v4327_v17, %v15555_v20  ;;  %v4329_v23 = vpop.f32.mrb[101].mxu1  ;;  %6787 = vmatprep.mubr.bf16.mxu1 %v15782_v63  ;;  %6927 = vmatpush1.bf16.msra.mxu1 %v10723_v52 }
 0x5c8   : > { %11573 = vpow2.f32 %v9389_v56  ;;  %v15944_v9 = vadd.f32 %v4329_v23, %v15558_v15  ;;  %v4331_v41 = vpop.f32.mrb[102].mxu1  ;;  %6928 = vmatprep.subr.bf16.mxu1 %v10728_v21  ;;  %v10746_v21 = vld [vmem:[%s18133_s5 + $0x32c] ss:$16 sps:$4 sm:$0xff]  }
 0x5c9   : > { %v11556_v32 = vpop.eup %11555  ;;  %11575 = vpow2.f32 %v9392_v51  ;;  %v9396_v34 = vmul.f32 -1.442695, %v15937_v59  ;;  %v15951_v63 = vadd.f32 %v4331_v41, %v15555_v20  ;;  %v4333_v19 = vpop.f32.mrb[103].mxu1  ;;  %6563 = vmatpush1.bf16.msra.mxu0 %v10756_v36 }
 0x5ca   : > { %v11558_v31 = vpop.eup %11557  ;;  %11577 = vpow2.f32 %v9393_v30  ;;  %v9397_v28 = vmul.f32 -1.442695, %v15944_v9  ;;  %v15955_v37 = vadd.f32 %v4333_v19, %v15558_v15  ;;  %v5405_v29 = vmul.f32 %v11556_v32, %v15792_v58 }
 0x5cb   : > { %v11560_v40 = vpop.eup %11559  ;;  %11579 = vpow2.f32 %v9396_v34  ;;  %v9400_v57 = vmul.f32 -1.442695, %v15951_v63  ;;  %6929 = vmatpush1.bf16.msra.mxu1 %v10726_v54  ;;  %v5406_v50 = vmul.f32 %v11558_v31, %v15796_v48  ;;  %v10744_v31 = vld [vmem:[%s18133_s5 + $0x328] ss:$16 sps:$4 sm:$0xff]  }
 0x5cc   : > { %v11562_v61 = vpop.eup %11561  ;;  %v5409_v44 = vmul.f32 %v11560_v40, %v15802_v12  ;;  %11581 = vpow2.f32 %v9397_v28  ;;  %v9401_v7 = vmul.f32 -1.442695, %v15955_v37  ;;  %6930 = vmatprep.subr.bf16.mxu1 %v10734_v1 }
 0x5cd   : > { %v11564_v18 = vpop.eup %11563  ;;  %v5410_v27 = vmul.f32 %v11562_v61, %v15808_v45  ;;  %11583 = vpow2.f32 %v9400_v57 }
 0x5ce   : > { %v11566_v10 = vpop.eup %11565  ;;  %11585 = vpow2.f32 %v9401_v7  ;;  %v15969_v22 = vpack.c.bf16 %v5409_v44, %v5405_v29  ;;  %6788 = vmatmul.mubr.bf16.gmra.mrb[204].mxu1 %v15779_v38  ;;  %v5413_v45 = vmul.f32 %v11564_v18, %v15823_v4  ;;  %v10743_v38 = vld [vmem:[%s18133_s5 + $0x30c] ss:$16 sps:$4 sm:$0xff]   ;;  %v10750_v7 = vld [vmem:[%s18133_s5 + $0x348] ss:$16 sps:$4 sm:$0xff]  }
 0x5cf   : > { %v11568_v58 = vpop.eup %11567  ;;  %v15972_v12 = vpack.c.bf16 %v5410_v27, %v5406_v50  ;;  %6797 = vmatprep.mubr.bf16.mxu1 %v15861_v6  ;;  %6931 = vmatpush1.bf16.msra.mxu1 %v10732_v0  ;;  %v5414_v55 = vmul.f32 %v11566_v10, %v15826_v13  ;;  %v10741_v13 = vld [vmem:[%s18133_s5 + $0x308] ss:$16 sps:$4 sm:$0xff]   ;;  %v10755_v50 = vld [vmem:[%s18133_s5 + $0x36c] ss:$16 sps:$4 sm:$0xff]  }
 0x5d0   : > { %v11570_v48 = vpop.eup %11569  ;;  %v5417_v39 = vmul.f32 %v11568_v58, %v15837_v24  ;;  %6932 = vmatprep.subr.bf16.mxu1 %v10737_v60 }
 0x5d1   : > { %v11572_v2 = vpop.eup %11571  ;;  %v5418_v6 = vmul.f32 %v11570_v48, %v15845_v47  ;;  %6431 = vmatprep.mubr.bf16.mxu0 %v15972_v12 }
 0x5d2   : > { %v11574_v43 = vpop.eup %11573  ;;  %v5037_v62 = vadd.f32 1.0, %v11572_v2  ;;  %6432 = vmatmul.mubr.bf16.gmra.mrb[88].mxu0 %v15969_v22  ;;  %v15987_v16 = vpack.c.bf16 %v5417_v39, %v5413_v45 }
 0x5d3   : > { %v11576_v4 = vpop.eup %11575  ;;  %v5038_v24 = vadd.f32 1.0, %v11574_v43  ;;  %v4337_v53 = vpop.f32.mrb[104].mxu1  ;;  %v15989_v49 = vpack.c.bf16 %v5418_v6, %v5414_v55  ;;  %6933 = vmatpush1.bf16.msra.mxu1 %v10735_v46  ;;  %v10753_v55 = vld [vmem:[%s18133_s5 + $0x368] ss:$16 sps:$4 sm:$0xff]  }
 0x5d4   : > { %v11578_v52 = vpop.eup %11577  ;;  %11587 = vrcp.f32 %v5037_v62  ;;  %v5041_v47 = vadd.f32 1.0, %v11576_v4  ;;  %v15995_v8 = vadd.f32 %v4337_v53, %v15555_v20  ;;  %v4339_v56 = vpop.f32.mrb[105].mxu1  ;;  %6934 = vmatprep.subr.bf16.mxu1 %v10743_v38 }
 0x5d5   : > { %v11580_v51 = vpop.eup %11579  ;;  %11589 = vrcp.f32 %v5038_v24  ;;  %v5042_v36 = vadd.f32 1.0, %v11578_v52  ;;  %v16001_v30 = vadd.f32 %v4339_v56, %v15558_v15  ;;  %v4341_v17 = vpop.f32.mrb[106].mxu1  ;;  %6441 = vmatprep.mubr.bf16.mxu0 %v15989_v49 }
 0x5d6   : > { %v11582_v23 = vpop.eup %11581  ;;  %11591 = vrcp.f32 %v5041_v47  ;;  %v5045_v54 = vadd.f32 1.0, %v11580_v51  ;;  %v16005_v41 = vadd.f32 %v4341_v17, %v15555_v20  ;;  %v4343_v1 = vpop.f32.mrb[107].mxu1  ;;  %6798 = vmatmul.mubr.bf16.gmra.mrb[208].mxu1 %v15855_v14  ;;  %v9404_v57 = vmul.f32 -1.442695, %v15995_v8  ;;  %v10752_v14 = vld [vmem:[%s18133_s5 + $0x34c] ss:$16 sps:$4 sm:$0xff]  }
 0x5d7   : > { %v11584_v32 = vpop.eup %11583  ;;  %11593 = vrcp.f32 %v5042_v36  ;;  %v5046_v34 = vadd.f32 1.0, %v11582_v23  ;;  %v16009_v19 = vadd.f32 %v4343_v1, %v15558_v15  ;;  %6807 = vmatprep.mubr.bf16.mxu1 %v15889_v11  ;;  %6935 = vmatpush1.bf16.msra.mxu1 %v10741_v13  ;;  %v9405_v61 = vmul.f32 -1.442695, %v16001_v30 }
 0x5d8   : > { %v11586_v28 = vpop.eup %11585  ;;  %11595 = vrcp.f32 %v5045_v54  ;;  %v5049_v40 = vadd.f32 1.0, %v11584_v32  ;;  %6936 = vmatprep.subr.bf16.mxu1 %v10746_v21  ;;  %v9408_v11 = vmul.f32 -1.442695, %v16005_v41 }
 0x5d9   : > { %11597 = vrcp.f32 %v5046_v34  ;;  %v5050_v0 = vadd.f32 1.0, %v11586_v28  ;;  %v9409_v29 = vmul.f32 -1.442695, %v16009_v19 }
 0x5da   : > { %11599 = vrcp.f32 %v5049_v40  ;;  %6442 = vmatmul.mubr.bf16.gmra.mrb[92].mxu0 %v15987_v16 }
 0x5db   : > { %11601 = vrcp.f32 %v5050_v0  ;;  %v4347_v44 = vpop.f32.mrb[108].mxu1  ;;  %6937 = vmatpush1.bf16.msra.mxu1 %v10744_v31 }
 0x5dc   : > { %11603 = vpow2.f32 %v9404_v57  ;;  %v16027_v60 = vadd.f32 %v4347_v44, %v15555_v20  ;;  %v4349_v18 = vpop.f32.mrb[109].mxu1  ;;  %6938 = vmatprep.subr.bf16.mxu1 %v10752_v14 }
 0x5dd   : > { %11605 = vpow2.f32 %v9405_v61  ;;  %v16033_v27 = vadd.f32 %v4349_v18, %v15558_v15  ;;  %v4351_v10 = vpop.f32.mrb[110].mxu1 }
 0x5de   : > { %v11588_v58 = vpop.eup %11587  ;;  %11607 = vpow2.f32 %v9408_v11  ;;  %v9412_v46 = vmul.f32 -1.442695, %v16027_v60  ;;  %v16037_v48 = vadd.f32 %v4351_v10, %v15555_v20  ;;  %v4353_v45 = vpop.f32.mrb[111].mxu1  ;;  %6808 = vmatmul.mubr.bf16.gmra.mrb[212].mxu1 %v15884_v5  ;;  %v10761_v5 = vld [vmem:[%s18133_s5 + $0x38c] ss:$16 sps:$4 sm:$0xff]  }
 0x5df   : > { %v11590_v39 = vpop.eup %11589  ;;  %11609 = vpow2.f32 %v9409_v29  ;;  %v9413_v38 = vmul.f32 -1.442695, %v16033_v27  ;;  %v16042_v2 = vadd.f32 %v4353_v45, %v15558_v15  ;;  %6817 = vmatprep.mubr.bf16.mxu1 %v15972_v12  ;;  %6939 = vmatpush1.bf16.msra.mxu1 %v10750_v7  ;;  %v5421_v4 = vmul.f32 %v11588_v58, %v15896_v26  ;;  %v10759_v26 = vld [vmem:[%s18133_s5 + $0x388] ss:$16 sps:$4 sm:$0xff]  }
 0x5e0   : > { %v11592_v6 = vpop.eup %11591  ;;  %11611 = vpow2.f32 %v9412_v46  ;;  %v9416_v43 = vmul.f32 -1.442695, %v16037_v48  ;;  %6940 = vmatprep.subr.bf16.mxu1 %v10755_v50  ;;  %v5422_v13 = vmul.f32 %v11590_v39, %v15903_v33  ;;  %v10765_v46 = vld [vmem:[%s18133_s5 + $0x3c8] ss:$16 sps:$4 sm:$0xff]  }
 0x5e1   : > { %v11594_v62 = vpop.eup %11593  ;;  %v5425_v24 = vmul.f32 %v11592_v6, %v15910_v35  ;;  %11613 = vpow2.f32 %v9413_v38  ;;  %v9417_v12 = vmul.f32 -1.442695, %v16042_v2 }
 0x5e2   : > { %v11596_v53 = vpop.eup %11595  ;;  %v5426_v52 = vmul.f32 %v11594_v62, %v15916_v3  ;;  %11615 = vpow2.f32 %v9416_v43  ;;  %v10764_v3 = vld [vmem:[%s18133_s5 + $0x3ac] ss:$16 sps:$4 sm:$0xff]  }
 0x5e3   : > { %v11598_v47 = vpop.eup %11597  ;;  %11617 = vpow2.f32 %v9417_v12  ;;  %v16057_v56 = vpack.c.bf16 %v5425_v24, %v5421_v4  ;;  %6941 = vmatpush1.bf16.msra.mxu1 %v10753_v55  ;;  %v5429_v36 = vmul.f32 %v11596_v53, %v15937_v59  ;;  %v10770_v55 = vld [vmem:[%s18133_s5 + $0x3ec] ss:$16 sps:$4 sm:$0xff]   ;;  %v10768_v24 = vld [vmem:[%s18133_s5 + $0x3e8] ss:$16 sps:$4 sm:$0xff]  }
 0x5e4   : > { %v11600_v21 = vpop.eup %11599  ;;  %v5518_v51 = vpack.c.bf16 %v5426_v52, %v5422_v13  ;;  %6942 = vmatprep.subr.bf16.mxu1 %v10761_v5  ;;  %v5430_v23 = vmul.f32 %v11598_v47, %v15944_v9  ;;  %v10762_v9 = vld [vmem:[%s18133_s5 + $0x3a8] ss:$16 sps:$4 sm:$0xff]  }
 0x5e5   : > { %v11602_v35 = vpop.eup %11601  ;;  %v5433_v33 = vmul.f32 %v11600_v21, %v15951_v63 }
 0x5e6   : > { %v11604_v17 = vpop.eup %11603  ;;  %v5434_v54 = vmul.f32 %v11602_v35, %v15955_v37  ;;  %6451 = vmatprep.mubr.bf16.mxu0 %v5518_v51  ;;  %6818 = vmatmul.mubr.bf16.gmra.mrb[216].mxu1 %v15969_v22 }
 0x5e7   : > { %v11606_v1 = vpop.eup %11605  ;;  %v5053_v32 = vadd.f32 1.0, %v11604_v17  ;;  %6452 = vmatmul.mubr.bf16.gmra.mrb[96].mxu0 %v16057_v56  ;;  %v16071_v34 = vpack.c.bf16 %v5433_v33, %v5429_v36  ;;  %6827 = vmatprep.mubr.bf16.mxu1 %v15989_v49  ;;  %v10767_v49 = vld [vmem:[%s18133_s5 + $0x3cc] ss:$16 sps:$4 sm:$0xff]  }
 0x5e8   : > { %v11608_v59 = vpop.eup %11607  ;;  %v5054_v63 = vadd.f32 1.0, %v11606_v1  ;;  %v4357_v31 = vpop.f32.mrb[112].mxu1  ;;  %v16074_v28 = vpack.c.bf16 %v5434_v54, %v5430_v23  ;;  %6943 = vmatpush1.bf16.msra.mxu1 %v10759_v26 }
 0x5e9   : > { %v11610_v37 = vpop.eup %11609  ;;  %11619 = vrcp.f32 %v5053_v32  ;;  %v5057_v22 = vadd.f32 1.0, %v11608_v59  ;;  %v16080_v40 = vadd.f32 %v4357_v31, %v15555_v20  ;;  %v4359_v57 = vpop.f32.mrb[113].mxu1  ;;  %6944 = vmatprep.subr.bf16.mxu1 %v10764_v3 }
 0x5ea   : > { %v11612_v14 = vpop.eup %11611  ;;  %11621 = vrcp.f32 %v5054_v63  ;;  %v5058_v0 = vadd.f32 1.0, %v11610_v37  ;;  %v16086_v61 = vadd.f32 %v4359_v57, %v15558_v15  ;;  %v4361_v11 = vpop.f32.mrb[114].mxu1  ;;  %6461 = vmatprep.mubr.bf16.mxu0 %v16074_v28 }
 0x5eb   : > { %v11614_v29 = vpop.eup %11613  ;;  %11623 = vrcp.f32 %v5057_v22  ;;  %v5061_v44 = vadd.f32 1.0, %v11612_v14  ;;  %v16090_v7 = vadd.f32 %v4361_v11, %v15555_v20  ;;  %v4363_v18 = vpop.f32.mrb[115].mxu1  ;;  %v9420_v38 = vmul.f32 -1.442695, %v16080_v40 }
 0x5ec   : > { %v11616_v50 = vpop.eup %11615  ;;  %11625 = vrcp.f32 %v5058_v0  ;;  %v5062_v10 = vadd.f32 1.0, %v11614_v29  ;;  %v16093_v58 = vadd.f32 %v4363_v18, %v15558_v15  ;;  %6945 = vmatpush1.bf16.msra.mxu1 %v10762_v9  ;;  %v9421_v43 = vmul.f32 -1.442695, %v16086_v61 }
 0x5ed   : > { %v11618_v45 = vpop.eup %11617  ;;  %11627 = vrcp.f32 %v5061_v44  ;;  %v5065_v39 = vadd.f32 1.0, %v11616_v50  ;;  %6946 = vmatprep.subr.bf16.mxu1 %v10767_v49  ;;  %v9424_v5 = vmul.f32 -1.442695, %v16090_v7 }
 0x5ee   : > { %11629 = vrcp.f32 %v5062_v10  ;;  %v5066_v6 = vadd.f32 1.0, %v11618_v45  ;;  %6828 = vmatmul.mubr.bf16.gmra.mrb[220].mxu1 %v15987_v16  ;;  %v9425_v62 = vmul.f32 -1.442695, %v16093_v58 }
 0x5ef   : > { %11631 = vrcp.f32 %v5065_v39  ;;  %6462 = vmatmul.mubr.bf16.gmra.mrb[100].mxu0 %v16071_v34  ;;  %6837 = vmatprep.mubr.bf16.mxu1 %v5518_v51 }
 0x5f0   : > { %11633 = vrcp.f32 %v5066_v6  ;;  %v4367_v4 = vpop.f32.mrb[116].mxu1  ;;  %6947 = vmatpush1.bf16.msra.mxu1 %v10765_v46  ;;  %v18534_v6 = vld [vmem:[#allocation28_spill] sm:$0xff] }
 0x5f1   : > { %11635 = vpow2.f32 %v9420_v38  ;;  %v16111_v12 = vadd.f32 %v4367_v4, %v15555_v20  ;;  %v4369_v16 = vpop.f32.mrb[117].mxu1  ;;  %6948 = vmatprep.subr.bf16.mxu1 %v10770_v55 }
 0x5f2   : > { %11637 = vpow2.f32 %v9421_v43  ;;  %v16114_v53 = vadd.f32 %v4369_v16, %v15558_v15  ;;  %v4371_v13 = vpop.f32.mrb[118].mxu1  ;;  %v3873_v43 = vsub.s32 2, %v18534_v6 }
 0x5f3   : > { %v11620_v52 = vpop.eup %11619  ;;  %11639 = vpow2.f32 %v9424_v5  ;;  %v9428_v47 = vmul.f32 -1.442695, %v16111_v12  ;;  %v16118_v21 = vadd.f32 %v4371_v13, %v15555_v20  ;;  %v4373_v51 = vpop.f32.mrb[119].mxu1 }
 0x5f4   : > { %v11622_v26 = vpop.eup %11621  ;;  %11641 = vpow2.f32 %v9425_v62  ;;  %v9429_v35 = vmul.f32 -1.442695, %v16114_v53  ;;  %v16122_v36 = vadd.f32 %v4373_v51, %v15558_v15  ;;  %6949 = vmatpush1.bf16.msra.mxu1 %v10768_v24  ;;  %v5437_v23 = vmul.f32 %v11620_v52, %v15995_v8 }
 0x5f5   : > { %v11624_v33 = vpop.eup %11623  ;;  %11643 = vpow2.f32 %v9428_v47  ;;  %v9432_v3 = vmul.f32 -1.442695, %v16118_v21  ;;  %v5438_v59 = vmul.f32 %v11622_v26, %v16001_v30  ;;  %v3877_v24 = vsub.s32 3, %v18534_v6 }
 0x5f6   : > { %v11626_v17 = vpop.eup %11625  ;;  %v5441_v54 = vmul.f32 %v11624_v33, %v16005_v41  ;;  %11645 = vpow2.f32 %v9429_v35  ;;  %v9433_v1 = vmul.f32 -1.442695, %v16122_v36  ;;  %6838 = vmatmul.mubr.bf16.gmra.mrb[224].mxu1 %v16057_v56 }
 0x5f7   : > { %v11628_v32 = vpop.eup %11627  ;;  %v5442_v63 = vmul.f32 %v11626_v17, %v16009_v19  ;;  %11647 = vpow2.f32 %v9432_v3  ;;  %6847 = vmatprep.mubr.bf16.mxu1 %v16074_v28 }
 0x5f8   : > { %v11630_v31 = vpop.eup %11629  ;;  %v16132_v9 = vpack.c.bf16 %v5441_v54, %v5437_v23  ;;  %11649 = vpow2.f32 %v9433_v1  ;;  %v5445_v57 = vmul.f32 %v11628_v32, %v16027_v60 }
 0x5f9   : > { %v11632_v8 = vpop.eup %11631  ;;  %v5526_v37 = vpack.c.bf16 %v5442_v63, %v5438_v59  ;;  %v4377_v41 = vpop.f32.mrb[120].mxu1  ;;  %v5446_v30 = vmul.f32 %v11630_v31, %v16033_v27  ;;  %v12533_v63 = vld [vmem:[%s18130_s2 + $0xa] sm:$0xf] }
 0x5fa   : > { %v11634_v22 = vpop.eup %11633  ;;  %v5449_v56 = vmul.f32 %v11632_v8, %v16037_v48  ;;  %v4379_v49 = vpop.f32.mrb[121].mxu1  ;;  %v16142_v46 = vadd.f32 %v4377_v41, %v15555_v20 }
 0x5fb   : > { %v11636_v14 = vpop.eup %11635  ;;  %v5450_v19 = vmul.f32 %v11634_v22, %v16042_v2  ;;  %6471 = vmatprep.mubr.bf16.mxu0 %v5526_v37  ;;  %v4381_v28 = vpop.f32.mrb[122].mxu1  ;;  %v16146_v45 = vadd.f32 %v4379_v49, %v15558_v15 }
 0x5fc   : > { %v11638_v0 = vpop.eup %11637  ;;  %v5069_v11 = vadd.f32 1.0, %v11636_v14  ;;  %6472 = vmatmul.mubr.bf16.gmra.mrb[104].mxu0 %v16132_v9  ;;  %v16139_v29 = vpack.c.bf16 %v5449_v56, %v5445_v57  ;;  %v4383_v44 = vpop.f32.mrb[123].mxu1  ;;  %v16149_v55 = vadd.f32 %v4381_v28, %v15555_v20  ;;  %v9436_v52 = vmul.f32 -1.442695, %v16142_v46 }
 0x5fd   : > { %v11640_v18 = vpop.eup %11639  ;;  %v5070_v50 = vadd.f32 1.0, %v11638_v0  ;;  %v5530_v60 = vpack.c.bf16 %v5450_v19, %v5446_v30  ;;  %v9437_v35 = vmul.f32 -1.442695, %v16146_v45 }
 0x5fe   : > { %v11642_v10 = vpop.eup %11641  ;;  %11651 = vrcp.f32 %v5069_v11  ;;  %v5073_v48 = vadd.f32 1.0, %v11640_v18  ;;  %6848 = vmatmul.mubr.bf16.gmra.mrb[228].mxu1 %v16071_v34  ;;  %v16153_v34 = vadd.f32 %v4383_v44, %v15558_v15  ;;  %v9440_v17 = vmul.f32 -1.442695, %v16149_v55 }
 0x5ff   : > { %v11644_v27 = vpop.eup %11643  ;;  %11653 = vrcp.f32 %v5070_v50  ;;  %v5074_v2 = vadd.f32 1.0, %v11642_v10  ;;  %6481 = vmatprep.mubr.bf16.mxu0 %v5530_v60  ;;  %6857 = vmatprep.mubr.bf16.mxu1 %v5526_v37 }
 0x600   : > { %v11646_v39 = vpop.eup %11645  ;;  %11655 = vrcp.f32 %v5073_v48  ;;  %v5077_v38 = vadd.f32 1.0, %v11644_v27  ;;  %v9441_v1 = vmul.f32 -1.442695, %v16153_v34 }
 0x601   : > { %v11648_v5 = vpop.eup %11647  ;;  %11657 = vrcp.f32 %v5074_v2  ;;  %v5078_v62 = vadd.f32 1.0, %v11646_v39  ;;  %v4387_v4 = vpop.f32.mrb[124].mxu1 }
 0x602   : > { %v11650_v16 = vpop.eup %11649  ;;  %11659 = vrcp.f32 %v5077_v38  ;;  %v5081_v13 = vadd.f32 1.0, %v11648_v5  ;;  %v16158_v47 = vadd.f32 %v4387_v4, %v15555_v20  ;;  %v4389_v51 = vpop.f32.mrb[125].mxu1 }
 0x603   : > { %11661 = vrcp.f32 %v5078_v62  ;;  %v5082_v26 = vadd.f32 1.0, %v11650_v16  ;;  %v16162_v33 = vadd.f32 %v4389_v51, %v15558_v15  ;;  %v4391_v3 = vpop.f32.mrb[126].mxu1 }
 0x604   : > { %11663 = vrcp.f32 %v5081_v13  ;;  %6482 = vmatmul.mubr.bf16.gmra.mrb[108].mxu0 %v16139_v29  ;;  %v16167_v23 = vadd.f32 %v4391_v3, %v15555_v20  ;;  %v4393_v54 = vpop.f32.mrb[127].mxu1  ;;  %v9444_v59 = vmul.f32 -1.442695, %v16158_v47  ;;  %v16180_v20 = vrot.slane %v12533_v63, %v3873_v43 }
 0x605   : > { %11665 = vrcp.f32 %v5082_v26  ;;  %v16171_v32 = vadd.f32 %v4393_v54, %v15558_v15  ;;  %v9445_v31 = vmul.f32 -1.442695, %v16162_v33  ;;  %v16185_v15 = vrot.slane %v12533_v63, %v3877_v24 }
 0x606   : > { %11667 = vpow2.f32 %v9436_v52  ;;  %6858 = vmatmul.mubr.bf16.gmra.mrb[232].mxu1 %v16132_v9  ;;  %v9448_v9 = vmul.f32 -1.442695, %v16167_v23 }
 0x607   : > { %11669 = vpow2.f32 %v9437_v35  ;;  %6867 = vmatprep.mubr.bf16.mxu1 %v5530_v60  ;;  %v9449_v41 = vmul.f32 -1.442695, %v16171_v32 }
 0x608   : > { %v11652_v8 = vpop.eup %11651  ;;  %11671 = vpow2.f32 %v9440_v17 }
 0x609   : > { %v11654_v37 = vpop.eup %11653  ;;  %11673 = vpow2.f32 %v9441_v1  ;;  %v4430_v22 = vpop.f32.mrb[128].mxu1  ;;  %v5453_v56 = vmul.f32 %v11652_v8, %v16080_v40 }
 0x60a   : > { %v11656_v57 = vpop.eup %11655  ;;  %11675 = vpow2.f32 %v9444_v59  ;;  %v16191_v49 = vadd.f32 %v4430_v22, %v16180_v20  ;;  %v4432_v14 = vpop.f32.mrb[129].mxu1  ;;  %v5454_v19 = vmul.f32 %v11654_v37, %v16086_v61 }
 0x60b   : > { %v11658_v30 = vpop.eup %11657  ;;  %v5457_v28 = vmul.f32 %v11656_v57, %v16090_v7  ;;  %11677 = vpow2.f32 %v9445_v31  ;;  %v16196_v0 = vadd.f32 %v4432_v14, %v16185_v15  ;;  %v4434_v11 = vpop.f32.mrb[130].mxu1 }
 0x60c   : > { %v11660_v44 = vpop.eup %11659  ;;  %v5458_v18 = vmul.f32 %v11658_v30, %v16093_v58  ;;  %11679 = vpow2.f32 %v9448_v9  ;;  %v9326_v40 = vmul.f32 -1.442695, %v16191_v49  ;;  %v16201_v50 = vadd.f32 %v4434_v11, %v16180_v20  ;;  %v4436_v60 = vpop.f32.mrb[131].mxu1 }
 0x60d   : > { %v11662_v10 = vpop.eup %11661  ;;  %11681 = vpow2.f32 %v9449_v41  ;;  %v5533_v61 = vpack.c.bf16 %v5457_v28, %v5453_v56  ;;  %v9327_v7 = vmul.f32 -1.442695, %v16196_v0  ;;  %v5461_v39 = vmul.f32 %v11660_v44, %v16111_v12 }
 0x60e   : > { %v11664_v48 = vpop.eup %11663  ;;  %v5534_v27 = vpack.c.bf16 %v5458_v18, %v5454_v19  ;;  %11683 = vpow2.f32 %v9326_v40  ;;  %v9330_v2 = vmul.f32 -1.442695, %v16201_v50  ;;  %6868 = vmatmul.mubr.bf16.gmra.mrb[236].mxu1 %v16139_v29  ;;  %v5462_v62 = vmul.f32 %v11662_v10, %v16114_v53 }
 0x60f   : > { %v11666_v58 = vpop.eup %11665  ;;  %v5465_v38 = vmul.f32 %v11664_v48, %v16118_v21  ;;  %11685 = vpow2.f32 %v9327_v7  ;;  %v16211_v63 = vadd.f32 %v4436_v60, %v16185_v15 }
 0x610   : > { %v11668_v5 = vpop.eup %11667  ;;  %v5466_v4 = vmul.f32 %v11666_v58, %v16122_v36  ;;  %6491 = vmatprep.mubr.bf16.mxu0 %v5534_v27  ;;  %11687 = vpow2.f32 %v9330_v2  ;;  %6877 = vmatprep.mubr.bf16.mxu1 %v5534_v27 }
 0x611   : > { %v11670_v16 = vpop.eup %11669  ;;  %v5085_v13 = vadd.f32 1.0, %v11668_v5  ;;  %6492 = vmatmul.mubr.bf16.gmra.mrb[112].mxu0 %v5533_v61  ;;  %v4440_v52 = vpop.f32.mrb[132].mxu1  ;;  %v5537_v51 = vpack.c.bf16 %v5465_v38, %v5461_v39  ;;  %v9331_v19 = vmul.f32 -1.442695, %v16211_v63 }
 0x612   : > { %v11672_v29 = vpop.eup %11671  ;;  %v5086_v26 = vadd.f32 1.0, %v11670_v16  ;;  %v4442_v35 = vpop.f32.mrb[133].mxu1  ;;  %v5538_v12 = vpack.c.bf16 %v5466_v4, %v5462_v62  ;;  %v16214_v9 = vadd.f32 %v4440_v52, %v16180_v20 }
 0x613   : > { %v11674_v3 = vpop.eup %11673  ;;  %11689 = vrcp.f32 %v5085_v13  ;;  %v5089_v21 = vadd.f32 1.0, %v11672_v29  ;;  %v4444_v17 = vpop.f32.mrb[134].mxu1  ;;  %v16217_v56 = vadd.f32 %v4442_v35, %v16185_v15 }
 0x614   : > { %v11676_v54 = vpop.eup %11675  ;;  %11691 = vrcp.f32 %v5086_v26  ;;  %v5090_v53 = vadd.f32 1.0, %v11674_v3  ;;  %v4446_v36 = vpop.f32.mrb[135].mxu1  ;;  %6501 = vmatprep.mubr.bf16.mxu0 %v5538_v12  ;;  %v16221_v28 = vadd.f32 %v4444_v17, %v16180_v20  ;;  %v9334_v40 = vmul.f32 -1.442695, %v16214_v9 }
 0x615   : > { %v11678_v1 = vpop.eup %11677  ;;  %11693 = vrcp.f32 %v5089_v21  ;;  %v5093_v59 = vadd.f32 1.0, %v11676_v54  ;;  %v16225_v60 = vadd.f32 %v4446_v36, %v16185_v15  ;;  %v9335_v2 = vmul.f32 -1.442695, %v16217_v56 }
 0x616   : > { %v11680_v31 = vpop.eup %11679  ;;  %11695 = vrcp.f32 %v5090_v53  ;;  %v5094_v8 = vadd.f32 1.0, %v11678_v1  ;;  %6878 = vmatmul.mubr.bf16.gmra.mrb[240].mxu1 %v5533_v61  ;;  %v9338_v5 = vmul.f32 -1.442695, %v16221_v28 }
 0x617   : > { %v11682_v37 = vpop.eup %11681  ;;  %11697 = vrcp.f32 %v5093_v59  ;;  %v5097_v41 = vadd.f32 1.0, %v11680_v31  ;;  %6887 = vmatprep.mubr.bf16.mxu1 %v5538_v12  ;;  %v9339_v16 = vmul.f32 -1.442695, %v16225_v60 }
 0x618   : > { %v11684_v22 = vpop.eup %11683  ;;  %11699 = vrcp.f32 %v5094_v8  ;;  %v5098_v57 = vadd.f32 1.0, %v11682_v37 }
 0x619   : > { %v11686_v14 = vpop.eup %11685  ;;  %11701 = vrcp.f32 %v5097_v41  ;;  %v4975_v30 = vadd.f32 1.0, %v11684_v22  ;;  %6502 = vmatmul.mubr.bf16.gmra.mrb[116].mxu0 %v5537_v51  ;;  %v4450_v11 = vpop.f32.mrb[136].mxu1 }
 0x61a   : > { %v11688_v44 = vpop.eup %11687  ;;  %11703 = vrcp.f32 %v5098_v57  ;;  %v4976_v18 = vadd.f32 1.0, %v11686_v14  ;;  %v4452_v10 = vpop.f32.mrb[137].mxu1  ;;  %v16228_v7 = vadd.f32 %v4450_v11, %v16180_v20 }
 0x61b   : > { %11705 = vrcp.f32 %v4975_v30  ;;  %v4979_v61 = vadd.f32 1.0, %v11688_v44  ;;  %v16231_v48 = vadd.f32 %v4452_v10, %v16185_v15  ;;  %v4454_v27 = vpop.f32.mrb[138].mxu1 }
 0x61c   : > { %11707 = vrcp.f32 %v4976_v18  ;;  %v16235_v58 = vadd.f32 %v4454_v27, %v16180_v20  ;;  %v4456_v39 = vpop.f32.mrb[139].mxu1  ;;  %v9342_v52 = vmul.f32 -1.442695, %v16228_v7 }
 0x61d   : > { %v11690_v38 = vpop.eup %11689  ;;  %11709 = vrcp.f32 %v4979_v61  ;;  %v16239_v62 = vadd.f32 %v4456_v39, %v16185_v15  ;;  %v9343_v29 = vmul.f32 -1.442695, %v16231_v48 }
 0x61e   : > { %v11692_v4 = vpop.eup %11691  ;;  %11711 = vpow2.f32 %v9331_v19  ;;  %6888 = vmatmul.mubr.bf16.gmra.mrb[244].mxu1 %v5537_v51  ;;  %v5469_v35 = vmul.f32 %v11690_v38, %v16142_v46  ;;  %v9346_v3 = vmul.f32 -1.442695, %v16235_v58 }
 0x61f   : > { %v11694_v13 = vpop.eup %11693  ;;  %11713 = vpow2.f32 %v9334_v40  ;;  %v5470_v17 = vmul.f32 %v11692_v4, %v16146_v45  ;;  %v9347_v51 = vmul.f32 -1.442695, %v16239_v62 }
 0x620   : > { %v11696_v26 = vpop.eup %11695  ;;  %v5473_v12 = vmul.f32 %v11694_v13, %v16149_v55  ;;  %11715 = vpow2.f32 %v9335_v2 }
 0x621   : > { %v11698_v21 = vpop.eup %11697  ;;  %v5474_v54 = vmul.f32 %v11696_v26, %v16153_v34  ;;  %11717 = vpow2.f32 %v9338_v5  ;;  %v4460_v53 = vpop.f32.mrb[140].mxu1 }
 0x622   : > { %v11700_v36 = vpop.eup %11699  ;;  %v5477_v1 = vmul.f32 %v11698_v21, %v16158_v47  ;;  %11719 = vpow2.f32 %v9339_v16  ;;  %v5541_v59 = vpack.c.bf16 %v5473_v12, %v5469_v35  ;;  %v16252_v46 = vadd.f32 %v4460_v53, %v16180_v20  ;;  %v4462_v55 = vpop.f32.mrb[141].mxu1 }
 0x623   : > { %v11702_v31 = vpop.eup %11701  ;;  %v5478_v8 = vmul.f32 %v11700_v36, %v16162_v33  ;;  %11721 = vpow2.f32 %v9342_v52  ;;  %v5542_v45 = vpack.c.bf16 %v5474_v54, %v5470_v17  ;;  %v16256_v34 = vadd.f32 %v4462_v55, %v16185_v15  ;;  %v4464_v37 = vpop.f32.mrb[142].mxu1  ;;  %v10773_v17 = vld [vmem:[#allocation8 + $0x4] ss:$8 sps:$4 sm:$0xff]  }
 0x624   : > { %v11704_v41 = vpop.eup %11703  ;;  %v5481_v22 = vmul.f32 %v11702_v31, %v16167_v23  ;;  %11723 = vpow2.f32 %v9343_v29  ;;  %v9350_v47 = vmul.f32 -1.442695, %v16252_v46  ;;  %v16261_v57 = vadd.f32 %v4464_v37, %v16180_v20  ;;  %v4466_v14 = vpop.f32.mrb[143].mxu1  ;;  %8467 = vmatprep.subr.bf16.mxu0 %v10773_v17 }
 0x625   : > { %v11706_v30 = vpop.eup %11705  ;;  %v5482_v19 = vmul.f32 %v11704_v41, %v16171_v32  ;;  %11725 = vpow2.f32 %v9346_v3  ;;  %6511 = vmatprep.mubr.bf16.mxu0 %v5542_v45  ;;  %6897 = vmatprep.mubr.bf16.mxu1 %v5542_v45  ;;  %v9351_v33 = vmul.f32 -1.442695, %v16256_v34  ;;  %v16266_v11 = vadd.f32 %v4466_v14, %v16185_v15 }
 0x626   : > { %v16268_v44 = vpop.eup %11707  ;;  %11727 = vpow2.f32 %v9347_v51  ;;  %6512 = vmatmul.mubr.bf16.gmra.mrb[120].mxu0 %v5541_v59  ;;  %v9354_v23 = vmul.f32 -1.442695, %v16261_v57  ;;  %v5545_v18 = vpack.c.bf16 %v5481_v22, %v5477_v1  ;;  %6898 = vmatmul.mubr.bf16.gmra.mrb[248].mxu1 %v5541_v59  ;;  %v5359_v27 = vmul.f32 %v11706_v30, %v16191_v49 }
 0x627   : > { %v11710_v40 = vpop.eup %11709  ;;  %11729 = vpow2.f32 %v9350_v47  ;;  %v9355_v32 = vmul.f32 -1.442695, %v16266_v11  ;;  %v5546_v10 = vpack.c.bf16 %v5482_v19, %v5478_v8 }
 0x628   : > { %v11712_v61 = vpop.eup %11711  ;;  %v5363_v2 = vmul.f32 %v11710_v40, %v16201_v50  ;;  %11731 = vpow2.f32 %v9351_v33 }
 0x629   : > { %v11714_v39 = vpop.eup %11713  ;;  %v4980_v38 = vadd.f32 1.0, %v11712_v61  ;;  %11733 = vpow2.f32 %v9354_v23  ;;  %6521 = vmatprep.mubr.bf16.mxu0 %v5546_v10  ;;  %6907 = vmatprep.mubr.bf16.mxu1 %v5546_v10  ;;  %v4470_v5 = vpop.f32.mrb[144].mxu1 }
 0x62a   : > { %v11716_v4 = vpop.eup %11715  ;;  %v16274_v16 = vpack.c.bf16 %v5363_v2, %v5359_v27  ;;  %v4983_v13 = vadd.f32 1.0, %v11714_v39  ;;  %11735 = vpow2.f32 %v9355_v32  ;;  %v4472_v52 = vpop.f32.mrb[145].mxu1  ;;  %v16277_v1 = vadd.f32 %v4470_v5, %v16180_v20 }
 0x62b   : > { %v11718_v29 = vpop.eup %11717  ;;  %11737 = vrcp.f32 %v4980_v38  ;;  %v4984_v26 = vadd.f32 1.0, %v11716_v4  ;;  %v4474_v35 = vpop.f32.mrb[146].mxu1  ;;  %v16280_v45 = vadd.f32 %v4472_v52, %v16185_v15 }
 0x62c   : > { %v11720_v49 = vpop.eup %11719  ;;  %11739 = vrcp.f32 %v4983_v13  ;;  %v4987_v50 = vadd.f32 1.0, %v11718_v29  ;;  %v4476_v12 = vpop.f32.mrb[147].mxu1  ;;  %v16283_v47 = vadd.f32 %v4474_v35, %v16180_v20  ;;  %v9358_v33 = vmul.f32 -1.442695, %v16277_v1 }
 0x62d   : > { %v11722_v3 = vpop.eup %11721  ;;  %11741 = vrcp.f32 %v4984_v26  ;;  %v4988_v21 = vadd.f32 1.0, %v11720_v49  ;;  %v16287_v23 = vadd.f32 %v4476_v12, %v16185_v15  ;;  %v9359_v38 = vmul.f32 -1.442695, %v16280_v45 }
 0x62e   : > { %v11724_v54 = vpop.eup %11723  ;;  %11743 = vrcp.f32 %v4987_v50  ;;  %v4991_v51 = vadd.f32 1.0, %v11722_v3  ;;  %6522 = vmatmul.mubr.bf16.gmra.mrb[124].mxu0 %v5545_v18  ;;  %6908 = vmatmul.mubr.bf16.gmra.mrb[252].mxu1 %v5545_v18  ;;  %v5360_v13 = vmul.f32 %v16268_v44, %v16196_v0  ;;  %v9362_v29 = vmul.f32 -1.442695, %v16283_v47  ;;  %v10771_v0 = vld [vmem:[#allocation8] ss:$8 sps:$4 sm:$0xff]  }
 0x62f   : > { %v11726_v53 = vpop.eup %11725  ;;  %11745 = vrcp.f32 %v4988_v21  ;;  %v4992_v36 = vadd.f32 1.0, %v11724_v54  ;;  %v9363_v35 = vmul.f32 -1.442695, %v16287_v23 }
 0x630   : > { %v11728_v59 = vpop.eup %11727  ;;  %11747 = vrcp.f32 %v4991_v51  ;;  %v4995_v55 = vadd.f32 1.0, %v11726_v53  ;;  %v10776_v53 = vld [vmem:[#allocation8 + $0x14] ss:$8 sps:$4 sm:$0xff]  }
 0x631   : > { %v11730_v31 = vpop.eup %11729  ;;  %11749 = vrcp.f32 %v4992_v36  ;;  %v4996_v8 = vadd.f32 1.0, %v11728_v59  ;;  %v4480_v37 = vpop.f32.mrb[148].mxu1 }
 0x632   : > { %v11732_v41 = vpop.eup %11731  ;;  %11751 = vrcp.f32 %v4995_v55  ;;  %v4999_v22 = vadd.f32 1.0, %v11730_v31  ;;  %v4482_v14 = vpop.f32.mrb[149].mxu1  ;;  %v16290_v10 = vadd.f32 %v4480_v37, %v16180_v20 }
 0x633   : > { %v11734_v30 = vpop.eup %11733  ;;  %11753 = vrcp.f32 %v4996_v8  ;;  %v5000_v19 = vadd.f32 1.0, %v11732_v41  ;;  %v4484_v18 = vpop.f32.mrb[150].mxu1  ;;  %v16293_v61 = vadd.f32 %v4482_v14, %v16185_v15 }
 0x634   : > { %v11736_v40 = vpop.eup %11735  ;;  %11755 = vrcp.f32 %v4999_v22  ;;  %v5003_v32 = vadd.f32 1.0, %v11734_v30  ;;  %v4486_v27 = vpop.f32.mrb[151].mxu1  ;;  %v16297_v5 = vadd.f32 %v4484_v18, %v16180_v20  ;;  %v9366_v3 = vmul.f32 -1.442695, %v16290_v10 }
 0x635   : > { %v11738_v2 = vpop.eup %11737  ;;  %11757 = vrcp.f32 %v5000_v19  ;;  %v5004_v39 = vadd.f32 1.0, %v11736_v40  ;;  %v16305_v49 = vadd.f32 %v4486_v27, %v16185_v15  ;;  %v9367_v21 = vmul.f32 -1.442695, %v16293_v61  ;;  %v10779_v27 = vld [vmem:[#allocation8 + $0x24] ss:$8 sps:$4 sm:$0xff]  }
 0x636   : > { %v11740_v4 = vpop.eup %11739  ;;  %v5364_v52 = vmul.f32 %v11738_v2, %v16211_v63  ;;  %11759 = vrcp.f32 %v5003_v32  ;;  %v9370_v54 = vmul.f32 -1.442695, %v16297_v5 }
 0x637   : > { %v11742_v26 = vpop.eup %11741  ;;  %11761 = vrcp.f32 %v5004_v39  ;;  %v5367_v63 = vmul.f32 %v11740_v4, %v16214_v9 }
 0x638   : > { %v11744_v50 = vpop.eup %11743  ;;  %11763 = vpow2.f32 %v9358_v33  ;;  %v5488_v12 = vpack.c.bf16 %v5364_v52, %v5360_v13  ;;  %v5368_v59 = vmul.f32 %v11742_v26, %v16217_v56  ;;  %v10774_v33 = vld [vmem:[#allocation8 + $0x10] ss:$8 sps:$4 sm:$0xff]  }
 0x639   : > { %v11746_v44 = vpop.eup %11745  ;;  %v5371_v17 = vmul.f32 %v11744_v50, %v16221_v28  ;;  %11765 = vpow2.f32 %v9359_v38  ;;  %v4490_v51 = vpop.f32.mrb[152].mxu1  ;;  %v9371_v28 = vmul.f32 -1.442695, %v16305_v49 }
 0x63a   : > { %v11748_v36 = vpop.eup %11747  ;;  %v5372_v55 = vmul.f32 %v11746_v44, %v16225_v60  ;;  %11767 = vpow2.f32 %v9362_v29  ;;  %6564 = vmatprep.mubr.bf16.mxu0 %v5488_v12  ;;  %6950 = vmatprep.mubr.bf16.mxu1 %v5488_v12  ;;  %v16315_v31 = vadd.f32 %v4490_v51, %v16180_v20  ;;  %v4492_v8 = vpop.f32.mrb[153].mxu1  ;;  %v10777_v12 = vld [vmem:[#allocation8 + $0x20] ss:$8 sps:$4 sm:$0xff]  }
 0x63b   : > { %v11750_v9 = vpop.eup %11749  ;;  %11769 = vpow2.f32 %v9363_v35  ;;  %6565 = vmatmul.mubr.bf16.vlgmr.msra.gmra.mrb[64].mxu0 %v16274_v16  ;;  %v5491_v37 = vpack.c.bf16 %v5371_v17, %v5367_v63  ;;  %6951 = vmatmul.mubr.bf16.vlgmr.msra.gmra.mrb[192].mxu1 %v16274_v16  ;;  %v16321_v56 = vadd.f32 %v4492_v8, %v16185_v15  ;;  %v4494_v60 = vpop.f32.mrb[154].mxu1  ;;  %v5375_v22 = vmul.f32 %v11748_v36, %v16228_v7  ;;  %v10782_v63 = vld [vmem:[#allocation8 + $0x34] ss:$8 sps:$4 sm:$0xff]  }
 0x63c   : > { %v11752_v41 = vpop.eup %11751  ;;  %11771 = vpow2.f32 %v9366_v3  ;;  %v5492_v14 = vpack.c.bf16 %v5372_v55, %v5368_v59  ;;  %v9374_v30 = vmul.f32 -1.442695, %v16315_v31  ;;  %v4496_v19 = vpop.f32.mrb[155].mxu1  ;;  %8468 = vmatpush1.bf16.msra.mxu0 %v10771_v0  ;;  %v16328_v32 = vadd.f32 %v4494_v60, %v16180_v20  ;;  %v10780_v55 = vld [vmem:[#allocation8 + $0x30] ss:$8 sps:$4 sm:$0xff]  }
 0x63d   : > { %v11754_v18 = vpop.eup %11753  ;;  %v5379_v40 = vmul.f32 %v11752_v41, %v16235_v58  ;;  %11773 = vpow2.f32 %v9367_v21  ;;  %v9375_v16 = vmul.f32 -1.442695, %v16321_v56  ;;  %8469 = vmatprep.subr.bf16.mxu0 %v10776_v53  ;;  %v5376_v7 = vmul.f32 %v11750_v9, %v16231_v48 }
 0x63e   : > { %v11756_v2 = vpop.eup %11755  ;;  %v5380_v39 = vmul.f32 %v11754_v18, %v16239_v62  ;;  %11775 = vpow2.f32 %v9370_v54  ;;  %6574 = vmatprep.mubr.bf16.mxu0 %v5492_v14  ;;  %6960 = vmatprep.mubr.bf16.mxu1 %v5492_v14  ;;  %v16333_v38 = vadd.f32 %v4496_v19, %v16185_v15  ;;  %v9378_v4 = vmul.f32 -1.442695, %v16328_v32  ;;  %v10783_v18 = vld [vmem:[#allocation8 + $0x40] ss:$8 sps:$4 sm:$0xff]  }
 0x63f   : > { %v11758_v58 = vpop.eup %11757  ;;  %11777 = vpow2.f32 %v9371_v28  ;;  %v16336_v13 = vpack.c.bf16 %v5379_v40, %v5375_v22  ;;  %v5383_v62 = vmul.f32 %v11756_v2, %v16252_v46  ;;  %v10785_v28 = vld [vmem:[#allocation8 + $0x44] ss:$8 sps:$4 sm:$0xff]  }
 0x640   : > { %v11760_v52 = vpop.eup %11759  ;;  %11779 = vpow2.f32 %v9374_v30  ;;  %v9379_v29 = vmul.f32 -1.442695, %v16333_v38  ;;  %v5496_v26 = vpack.c.bf16 %v5380_v39, %v5376_v7  ;;  %8470 = vmatpush1.bf16.msra.mxu0 %v10774_v33  ;;  %v5384_v21 = vmul.f32 %v11758_v58, %v16256_v34  ;;  %v10788_v7 = vld [vmem:[#allocation8 + $0x54] ss:$8 sps:$4 sm:$0xff]  }
 0x641   : > { %v11762_v48 = vpop.eup %11761  ;;  %v5387_v35 = vmul.f32 %v11760_v52, %v16261_v57  ;;  %11781 = vpow2.f32 %v9375_v16  ;;  %v4500_v50 = vpop.f32.mrb[156].mxu1  ;;  %8471 = vmatprep.subr.bf16.mxu0 %v10779_v27 }
 0x642   : > { %v11764_v3 = vpop.eup %11763  ;;  %v5388_v0 = vmul.f32 %v11762_v48, %v16266_v11  ;;  %11783 = vpow2.f32 %v9378_v4  ;;  %v4502_v44 = vpop.f32.mrb[157].mxu1  ;;  %v16346_v41 = vadd.f32 %v4500_v50, %v16180_v20 }
 0x643   : > { %v11766_v17 = vpop.eup %11765  ;;  %v5007_v54 = vadd.f32 1.0, %v11764_v3  ;;  %6575 = vmatmul.mubr.bf16.gmra.mrb[68].mxu0 %v5491_v37  ;;  %11785 = vpow2.f32 %v9379_v29  ;;  %6961 = vmatmul.mubr.bf16.gmra.mrb[196].mxu1 %v5491_v37  ;;  %v4504_v46 = vpop.f32.mrb[158].mxu1  ;;  %v16343_v51 = vpack.c.bf16 %v5387_v35, %v5383_v62  ;;  %v16349_v27 = vadd.f32 %v4502_v44, %v16185_v15 }
 0x644   : > { %v11768_v57 = vpop.eup %11767  ;;  %v5008_v53 = vadd.f32 1.0, %v11766_v17  ;;  %6584 = vmatprep.mubr.bf16.mxu0 %v5496_v26  ;;  %6970 = vmatprep.mubr.bf16.mxu1 %v5496_v26  ;;  %v4506_v36 = vpop.f32.mrb[159].mxu1  ;;  %v5500_v59 = vpack.c.bf16 %v5388_v0, %v5384_v21  ;;  %v9382_v4 = vmul.f32 -1.442695, %v16346_v41  ;;  %v16354_v52 = vadd.f32 %v4504_v46, %v16180_v20  ;;  %v10786_v0 = vld [vmem:[#allocation8 + $0x50] ss:$8 sps:$4 sm:$0xff]  }
 0x645   : > { %v11770_v34 = vpop.eup %11769  ;;  %11787 = vrcp.f32 %v5007_v54  ;;  %v5011_v11 = vadd.f32 1.0, %v11768_v57  ;;  %8472 = vmatpush1.bf16.msra.mxu0 %v10777_v12  ;;  %v16358_v62 = vadd.f32 %v4506_v36, %v16185_v15  ;;  %v10791_v17 = vld [vmem:[#allocation8 + $0x64] ss:$8 sps:$4 sm:$0xff]  }
 0x646   : > { %v11772_v8 = vpop.eup %11771  ;;  %11789 = vrcp.f32 %v5008_v53  ;;  %v5012_v9 = vadd.f32 1.0, %v11770_v34  ;;  %8473 = vmatprep.subr.bf16.mxu0 %v10782_v63  ;;  %v9383_v63 = vmul.f32 -1.442695, %v16349_v27  ;;  %v9386_v46 = vmul.f32 -1.442695, %v16354_v52 }
 0x647   : > { %v11774_v37 = vpop.eup %11773  ;;  %11791 = vrcp.f32 %v5011_v11  ;;  %v5015_v60 = vadd.f32 1.0, %v11772_v8  ;;  %v9387_v53 = vmul.f32 -1.442695, %v16358_v62  ;;  %v10789_v34 = vld [vmem:[#allocation8 + $0x60] ss:$8 sps:$4 sm:$0xff]  }
 0x648   : > { %v11776_v22 = vpop.eup %11775  ;;  %11793 = vrcp.f32 %v5012_v9  ;;  %v5016_v14 = vadd.f32 1.0, %v11774_v37 }
 0x649   : > { %v11778_v30 = vpop.eup %11777  ;;  %11795 = vrcp.f32 %v5015_v60  ;;  %v5019_v19 = vadd.f32 1.0, %v11776_v22  ;;  %v4510_v33 = vpop.f32.mrb[160].mxu1  ;;  %8474 = vmatpush1.bf16.msra.mxu0 %v10780_v55 }
 0x64a   : > { %v11780_v40 = vpop.eup %11779  ;;  %11797 = vrcp.f32 %v5016_v14  ;;  %v5020_v16 = vadd.f32 1.0, %v11778_v30  ;;  %v4512_v2 = vpop.f32.mrb[161].mxu1  ;;  %8475 = vmatprep.subr.bf16.mxu0 %v10785_v28  ;;  %v16361_v35 = vadd.f32 %v4510_v33, %v16180_v20  ;;  %v10794_v30 = vld [vmem:[#allocation8 + $0x74] ss:$8 sps:$4 sm:$0xff]  }
 0x64b   : > { %v11782_v39 = vpop.eup %11781  ;;  %11799 = vrcp.f32 %v5019_v19  ;;  %v5023_v58 = vadd.f32 1.0, %v11780_v40  ;;  %6585 = vmatmul.mubr.bf16.gmra.mrb[72].mxu0 %v16336_v13  ;;  %6971 = vmatmul.mubr.bf16.gmra.mrb[200].mxu1 %v16336_v13  ;;  %v4514_v29 = vpop.f32.mrb[162].mxu1  ;;  %v16364_v21 = vadd.f32 %v4512_v2, %v16185_v15 }
 0x64c   : > { %v11784_v26 = vpop.eup %11783  ;;  %11801 = vrcp.f32 %v5020_v16  ;;  %v5024_v48 = vadd.f32 1.0, %v11782_v39  ;;  %6594 = vmatprep.mubr.bf16.mxu0 %v5500_v59  ;;  %6980 = vmatprep.mubr.bf16.mxu1 %v5500_v59  ;;  %v4516_v50 = vpop.f32.mrb[163].mxu1  ;;  %v16367_v13 = vadd.f32 %v4514_v29, %v16180_v20  ;;  %v9390_v36 = vmul.f32 -1.442695, %v16361_v35 }
 0x64d   : > { %v11786_v12 = vpop.eup %11785  ;;  %11803 = vrcp.f32 %v5023_v58  ;;  %v5027_v3 = vadd.f32 1.0, %v11784_v26  ;;  %8476 = vmatpush1.bf16.msra.mxu0 %v10783_v18  ;;  %v16374_v59 = vadd.f32 %v4516_v50, %v16185_v15  ;;  %v9391_v55 = vmul.f32 -1.442695, %v16364_v21  ;;  %v10797_v50 = vld [vmem:[#allocation8 + $0x84] ss:$8 sps:$4 sm:$0xff]  }
 0x64e   : > { %11805 = vrcp.f32 %v5024_v48  ;;  %v5028_v44 = vadd.f32 1.0, %v11786_v12  ;;  %8477 = vmatprep.subr.bf16.mxu0 %v10788_v7  ;;  %v9394_v8 = vmul.f32 -1.442695, %v16367_v13 }
 0x64f   : > { %v11788_v54 = vpop.eup %11787  ;;  %11807 = vrcp.f32 %v5027_v3  ;;  %v9395_v16 = vmul.f32 -1.442695, %v16374_v59 }
 0x650   : > { %v11790_v57 = vpop.eup %11789  ;;  %11809 = vrcp.f32 %v5028_v44  ;;  %v5391_v37 = vmul.f32 %v11788_v54, %v16277_v1 }
 0x651   : > { %v11792_v11 = vpop.eup %11791  ;;  %11811 = vpow2.f32 %v9382_v4  ;;  %v4520_v9 = vpop.f32.mrb[164].mxu1  ;;  %8478 = vmatpush1.bf16.msra.mxu0 %v10786_v0  ;;  %v5392_v33 = vmul.f32 %v11790_v57, %v16280_v45  ;;  %v10792_v4 = vld [vmem:[#allocation8 + $0x70] ss:$8 sps:$4 sm:$0xff]  }
 0x652   : > { %v11794_v28 = vpop.eup %11793  ;;  %v5395_v60 = vmul.f32 %v11792_v11, %v16283_v47  ;;  %11813 = vpow2.f32 %v9383_v63  ;;  %v16381_v22 = vadd.f32 %v4520_v9, %v16180_v20  ;;  %v4522_v14 = vpop.f32.mrb[165].mxu1  ;;  %8479 = vmatprep.subr.bf16.mxu0 %v10791_v17 }
 0x653   : > { %v11796_v19 = vpop.eup %11795  ;;  %v5396_v18 = vmul.f32 %v11794_v28, %v16287_v23  ;;  %11815 = vpow2.f32 %v9386_v46  ;;  %6595 = vmatmul.mubr.bf16.gmra.mrb[76].mxu0 %v16343_v51  ;;  %6981 = vmatmul.mubr.bf16.gmra.mrb[204].mxu1 %v16343_v51  ;;  %v16388_v1 = vadd.f32 %v4522_v14, %v16185_v15  ;;  %v4524_v47 = vpop.f32.mrb[166].mxu1 }
 0x654   : > { %v11798_v40 = vpop.eup %11797  ;;  %11817 = vpow2.f32 %v9387_v53  ;;  %v5503_v2 = vpack.c.bf16 %v5395_v60, %v5391_v37  ;;  %v4526_v7 = vpop.f32.mrb[167].mxu1  ;;  %v9398_v23 = vmul.f32 -1.442695, %v16381_v22  ;;  %v16395_v26 = vadd.f32 %v4524_v47, %v16180_v20  ;;  %v10803_v47 = vld [vmem:[#allocation8 + $0xa4] ss:$8 sps:$4 sm:$0xff]  }
 0x655   : > { %v11800_v39 = vpop.eup %11799  ;;  %11819 = vpow2.f32 %v9390_v36  ;;  %v5504_v45 = vpack.c.bf16 %v5396_v18, %v5392_v33  ;;  %v9399_v58 = vmul.f32 -1.442695, %v16388_v1  ;;  %8480 = vmatpush1.bf16.msra.mxu0 %v10789_v34  ;;  %v16398_v48 = vadd.f32 %v4526_v7, %v16185_v15  ;;  %v10800_v34 = vld [vmem:[#allocation8 + $0x94] ss:$8 sps:$4 sm:$0xff]   ;;  %v10798_v33 = vld [vmem:[#allocation8 + $0x90] ss:$8 sps:$4 sm:$0xff]  }
 0x656   : > { %v11802_v51 = vpop.eup %11801  ;;  %v5403_v29 = vmul.f32 %v11800_v39, %v16297_v5  ;;  %11821 = vpow2.f32 %v9391_v55  ;;  %8481 = vmatprep.subr.bf16.mxu0 %v10794_v30  ;;  %v5399_v3 = vmul.f32 %v11796_v19, %v16290_v10  ;;  %v5400_v0 = vmul.f32 %v11798_v40, %v16293_v61  ;;  %v10795_v10 = vld [vmem:[#allocation8 + $0x80] ss:$8 sps:$4 sm:$0xff]  }
 0x657   : > { %v11804_v12 = vpop.eup %11803  ;;  %v5404_v44 = vmul.f32 %v11802_v51, %v16305_v49  ;;  %11823 = vpow2.f32 %v9394_v8  ;;  %6604 = vmatprep.mubr.bf16.mxu0 %v5504_v45  ;;  %6990 = vmatprep.mubr.bf16.mxu1 %v5504_v45  ;;  %v9402_v63 = vmul.f32 -1.442695, %v16395_v26  ;;  %v9403_v17 = vmul.f32 -1.442695, %v16398_v48 }
 0x658   : > { %v11806_v5 = vpop.eup %11805  ;;  %11825 = vpow2.f32 %v9395_v16  ;;  %v5507_v57 = vpack.c.bf16 %v5403_v29, %v5399_v3  ;;  %v5407_v37 = vmul.f32 %v11804_v12, %v16315_v31 }
 0x659   : > { %v11808_v54 = vpop.eup %11807  ;;  %11827 = vpow2.f32 %v9398_v23  ;;  %v5508_v46 = vpack.c.bf16 %v5404_v44, %v5400_v0  ;;  %v4530_v53 = vpop.f32.mrb[168].mxu1  ;;  %8482 = vmatpush1.bf16.msra.mxu0 %v10792_v4  ;;  %v5408_v55 = vmul.f32 %v11806_v5, %v16321_v56 }
 0x65a   : > { %v11810_v36 = vpop.eup %11809  ;;  %v5411_v61 = vmul.f32 %v11808_v54, %v16328_v32  ;;  %11829 = vpow2.f32 %v9399_v58  ;;  %v4532_v49 = vpop.f32.mrb[169].mxu1  ;;  %8483 = vmatprep.subr.bf16.mxu0 %v10797_v50  ;;  %v16412_v7 = vadd.f32 %v4530_v53, %v16180_v20  ;;  %v10801_v58 = vld [vmem:[#allocation8 + $0xa0] ss:$8 sps:$4 sm:$0xff]   ;;  %v10806_v50 = vld [vmem:[#allocation8 + $0xb4] ss:$8 sps:$4 sm:$0xff]  }
 0x65b   : > { %v11812_v11 = vpop.eup %11811  ;;  %v5412_v8 = vmul.f32 %v11810_v36, %v16333_v38  ;;  %6605 = vmatmul.mubr.bf16.gmra.mrb[80].mxu0 %v5503_v2  ;;  %11831 = vpow2.f32 %v9402_v63  ;;  %6991 = vmatmul.mubr.bf16.gmra.mrb[208].mxu1 %v5503_v2  ;;  %v4534_v9 = vpop.f32.mrb[170].mxu1  ;;  %v16415_v0 = vadd.f32 %v4532_v49, %v16185_v15 }
 0x65c   : > { %v11814_v28 = vpop.eup %11813  ;;  %v5031_v60 = vadd.f32 1.0, %v11812_v11  ;;  %11833 = vpow2.f32 %v9403_v17  ;;  %6614 = vmatprep.mubr.bf16.mxu0 %v5508_v46  ;;  %7000 = vmatprep.mubr.bf16.mxu1 %v5508_v46  ;;  %v4536_v32 = vpop.f32.mrb[171].mxu1  ;;  %v16409_v18 = vpack.c.bf16 %v5411_v61, %v5407_v37  ;;  %v9406_v17 = vmul.f32 -1.442695, %v16412_v7  ;;  %v10804_v61 = vld [vmem:[#allocation8 + $0xb0] ss:$8 sps:$4 sm:$0xff]  }
 0x65d   : > { %v11816_v14 = vpop.eup %11815  ;;  %v5032_v30 = vadd.f32 1.0, %v11814_v28  ;;  %v5512_v19 = vpack.c.bf16 %v5412_v8, %v5408_v55  ;;  %8484 = vmatpush1.bf16.msra.mxu0 %v10795_v10  ;;  %v16419_v54 = vadd.f32 %v4534_v9, %v16180_v20  ;;  %v16422_v36 = vadd.f32 %v4536_v32, %v16185_v15 }
 0x65e   : > { %v11818_v56 = vpop.eup %11817  ;;  %11835 = vrcp.f32 %v5031_v60  ;;  %v5035_v38 = vadd.f32 1.0, %v11816_v14  ;;  %8485 = vmatprep.subr.bf16.mxu0 %v10800_v34  ;;  %v9407_v9 = vmul.f32 -1.442695, %v16415_v0 }
 0x65f   : > { %v11820_v40 = vpop.eup %11819  ;;  %11837 = vrcp.f32 %v5032_v30  ;;  %v5036_v31 = vadd.f32 1.0, %v11818_v56  ;;  %v9410_v37 = vmul.f32 -1.442695, %v16419_v54  ;;  %v9411_v32 = vmul.f32 -1.442695, %v16422_v36 }
 0x660   : > { %v11822_v16 = vpop.eup %11821  ;;  %11839 = vrcp.f32 %v5035_v38  ;;  %v5039_v2 = vadd.f32 1.0, %v11820_v40 }
 0x661   : > { %v11824_v39 = vpop.eup %11823  ;;  %11841 = vrcp.f32 %v5036_v31  ;;  %v5040_v45 = vadd.f32 1.0, %v11822_v16  ;;  %v4540_v23 = vpop.f32.mrb[172].mxu1  ;;  %8486 = vmatpush1.bf16.msra.mxu0 %v10798_v33 }
 0x662   : > { %v11826_v4 = vpop.eup %11825  ;;  %11843 = vrcp.f32 %v5039_v2  ;;  %v5043_v51 = vadd.f32 1.0, %v11824_v39  ;;  %v4542_v29 = vpop.f32.mrb[173].mxu1  ;;  %8487 = vmatprep.subr.bf16.mxu0 %v10803_v47 }
 0x663   : > { %v11828_v12 = vpop.eup %11827  ;;  %11845 = vrcp.f32 %v5040_v45  ;;  %v5044_v3 = vadd.f32 1.0, %v11826_v4  ;;  %6615 = vmatmul.mubr.bf16.gmra.mrb[84].mxu0 %v5507_v57  ;;  %7001 = vmatmul.mubr.bf16.gmra.mrb[212].mxu1 %v5507_v57  ;;  %v4544_v44 = vpop.f32.mrb[174].mxu1  ;;  %v16425_v57 = vadd.f32 %v4540_v23, %v16180_v20  ;;  %v16428_v11 = vadd.f32 %v4542_v29, %v16185_v15 }
 0x664   : > { %v11830_v5 = vpop.eup %11829  ;;  %11847 = vrcp.f32 %v5043_v51  ;;  %v5047_v63 = vadd.f32 1.0, %v11828_v12  ;;  %6624 = vmatprep.mubr.bf16.mxu0 %v5512_v19  ;;  %7010 = vmatprep.mubr.bf16.mxu1 %v5512_v19  ;;  %v4546_v46 = vpop.f32.mrb[175].mxu1  ;;  %v16431_v55 = vadd.f32 %v4544_v44, %v16180_v20 }
 0x665   : > { %v11832_v53 = vpop.eup %11831  ;;  %11849 = vrcp.f32 %v5044_v3  ;;  %v5048_v10 = vadd.f32 1.0, %v11830_v5  ;;  %8488 = vmatpush1.bf16.msra.mxu0 %v10801_v58  ;;  %v9414_v14 = vmul.f32 -1.442695, %v16425_v57  ;;  %v16438_v30 = vadd.f32 %v4546_v46, %v16185_v15 }
 0x666   : > { %v11834_v49 = vpop.eup %11833  ;;  %11851 = vrcp.f32 %v5047_v63  ;;  %v5051_v34 = vadd.f32 1.0, %v11832_v53  ;;  %8489 = vmatprep.subr.bf16.mxu0 %v10806_v50  ;;  %v9415_v56 = vmul.f32 -1.442695, %v16428_v11  ;;  %v9418_v38 = vmul.f32 -1.442695, %v16431_v55 }
 0x667   : > { %11853 = vrcp.f32 %v5048_v10  ;;  %v5052_v8 = vadd.f32 1.0, %v11834_v49  ;;  %v9419_v29 = vmul.f32 -1.442695, %v16438_v30 }
 0x668   : > { %v11836_v28 = vpop.eup %11835  ;;  %11855 = vrcp.f32 %v5051_v34 }
 0x669   : > { %v11838_v60 = vpop.eup %11837  ;;  %11857 = vrcp.f32 %v5052_v8  ;;  %v4550_v19 = vpop.f32.mrb[176].mxu1  ;;  %8490 = vmatpush1.bf16.msra.mxu0 %v10804_v61  ;;  %v5415_v16 = vmul.f32 %v11836_v28, %v16346_v41 }
 0x66a   : > { %v11840_v33 = vpop.eup %11839  ;;  %11859 = vpow2.f32 %v9406_v17  ;;  %v16443_v47 = vadd.f32 %v4550_v19, %v16180_v20  ;;  %v4552_v40 = vpop.f32.mrb[177].mxu1  ;;  %v5416_v58 = vmul.f32 %v11838_v60, %v16349_v27 }
 0x66b   : > { %v11842_v31 = vpop.eup %11841  ;;  %v5419_v2 = vmul.f32 %v11840_v33, %v16354_v52  ;;  %11861 = vpow2.f32 %v9407_v9  ;;  %6625 = vmatmul.mubr.bf16.gmra.mrb[88].mxu0 %v16409_v18  ;;  %7011 = vmatmul.mubr.bf16.gmra.mrb[216].mxu1 %v16409_v18  ;;  %v16450_v39 = vadd.f32 %v4552_v40, %v16185_v15  ;;  %v4554_v45 = vpop.f32.mrb[178].mxu1 }
 0x66c   : > { %v11844_v23 = vpop.eup %11843  ;;  %v5420_v4 = vmul.f32 %v11842_v31, %v16358_v62  ;;  %11863 = vpow2.f32 %v9410_v37  ;;  %v16455_v51 = vadd.f32 %v4554_v45, %v16180_v20  ;;  %v4556_v41 = vpop.f32.mrb[179].mxu1  ;;  %v9422_v44 = vmul.f32 -1.442695, %v16443_v47 }
 0x66d   : > { %v11846_v52 = vpop.eup %11845  ;;  %11865 = vpow2.f32 %v9411_v32  ;;  %v5515_v50 = vpack.c.bf16 %v5419_v2, %v5415_v16  ;;  %v5423_v12 = vmul.f32 %v11844_v23, %v16361_v35  ;;  %v9423_v5 = vmul.f32 -1.442695, %v16450_v39 }
 0x66e   : > { %v11848_v18 = vpop.eup %11847  ;;  %11867 = vpow2.f32 %v9414_v14  ;;  %v5516_v3 = vpack.c.bf16 %v5420_v4, %v5416_v58  ;;  %v16463_v63 = vadd.f32 %v4556_v41, %v16185_v15  ;;  %v5424_v46 = vmul.f32 %v11846_v52, %v16364_v21 }
 0x66f   : > { %v11850_v27 = vpop.eup %11849  ;;  %v5427_v62 = vmul.f32 %v11848_v18, %v16367_v13  ;;  %11869 = vpow2.f32 %v9415_v56  ;;  %v9426_v35 = vmul.f32 -1.442695, %v16455_v51 }
 0x670   : > { %v11852_v17 = vpop.eup %11851  ;;  %v5428_v53 = vmul.f32 %v11850_v27, %v16374_v59  ;;  %11871 = vpow2.f32 %v9418_v38  ;;  %6634 = vmatprep.mubr.bf16.mxu0 %v5516_v3  ;;  %7020 = vmatprep.mubr.bf16.mxu1 %v5516_v3  ;;  %v9427_v13 = vmul.f32 -1.442695, %v16463_v63 }
 0x671   : > { %v11854_v10 = vpop.eup %11853  ;;  %11873 = vpow2.f32 %v9419_v29  ;;  %v5519_v61 = vpack.c.bf16 %v5427_v62, %v5423_v12  ;;  %v4560_v49 = vpop.f32.mrb[180].mxu1  ;;  %v5431_v38 = vmul.f32 %v11852_v17, %v16381_v22 }
 0x672   : > { %v11856_v34 = vpop.eup %11855  ;;  %11875 = vpow2.f32 %v9422_v44  ;;  %v5520_v8 = vpack.c.bf16 %v5428_v53, %v5424_v46  ;;  %v16470_v9 = vadd.f32 %v4560_v49, %v16180_v20  ;;  %v4562_v21 = vpop.f32.mrb[181].mxu1  ;;  %v5432_v32 = vmul.f32 %v11854_v10, %v16388_v1 }
 0x673   : > { %v11858_v28 = vpop.eup %11857  ;;  %v5435_v59 = vmul.f32 %v11856_v34, %v16395_v26  ;;  %6635 = vmatmul.mubr.bf16.gmra.mrb[92].mxu0 %v5515_v50  ;;  %11877 = vpow2.f32 %v9423_v5  ;;  %7021 = vmatmul.mubr.bf16.gmra.mrb[220].mxu1 %v5515_v50  ;;  %v4564_v37 = vpop.f32.mrb[182].mxu1  ;;  %v16478_v27 = vadd.f32 %v4562_v21, %v16185_v15 }
 0x674   : > { %v11860_v60 = vpop.eup %11859  ;;  %v5436_v14 = vmul.f32 %v11858_v28, %v16398_v48  ;;  %11879 = vpow2.f32 %v9426_v35  ;;  %6644 = vmatprep.mubr.bf16.mxu0 %v5520_v8  ;;  %7030 = vmatprep.mubr.bf16.mxu1 %v5520_v8  ;;  %v9430_v19 = vmul.f32 -1.442695, %v16470_v9  ;;  %v4566_v33 = vpop.f32.mrb[183].mxu1  ;;  %v16481_v46 = vadd.f32 %v4564_v37, %v16180_v20 }
 0x675   : > { %v11862_v56 = vpop.eup %11861  ;;  %v5055_v40 = vadd.f32 1.0, %v11860_v60  ;;  %11881 = vpow2.f32 %v9427_v13  ;;  %v5523_v45 = vpack.c.bf16 %v5435_v59, %v5431_v38  ;;  %v16484_v10 = vadd.f32 %v4566_v33, %v16185_v15 }
 0x676   : > { %v11864_v26 = vpop.eup %11863  ;;  %v5056_v31 = vadd.f32 1.0, %v11862_v56  ;;  %11883 = vpow2.f32 %v9430_v19  ;;  %v5524_v16 = vpack.c.bf16 %v5436_v14, %v5432_v32  ;;  %v9431_v59 = vmul.f32 -1.442695, %v16478_v27 }
 0x677   : > { %v11866_v2 = vpop.eup %11865  ;;  %11885 = vrcp.f32 %v5055_v40  ;;  %v5059_v1 = vadd.f32 1.0, %v11864_v26  ;;  %v9434_v60 = vmul.f32 -1.442695, %v16481_v46  ;;  %v9435_v19 = vmul.f32 -1.442695, %v16484_v10 }
 0x678   : > { %v11868_v48 = vpop.eup %11867  ;;  %11887 = vrcp.f32 %v5056_v31  ;;  %v5060_v23 = vadd.f32 1.0, %v11866_v2 }
 0x679   : > { %v11870_v58 = vpop.eup %11869  ;;  %11889 = vrcp.f32 %v5059_v1  ;;  %v5063_v4 = vadd.f32 1.0, %v11868_v48  ;;  %v4570_v41 = vpop.f32.mrb[184].mxu1 }
 0x67a   : > { %v11872_v52 = vpop.eup %11871  ;;  %11891 = vrcp.f32 %v5060_v23  ;;  %v5064_v22 = vadd.f32 1.0, %v11870_v58  ;;  %v4572_v29 = vpop.f32.mrb[185].mxu1  ;;  %v16487_v13 = vadd.f32 %v4570_v41, %v16180_v20 }
 0x67b   : > { %v11874_v50 = vpop.eup %11873  ;;  %11893 = vrcp.f32 %v5063_v4  ;;  %v5067_v18 = vadd.f32 1.0, %v11872_v52  ;;  %6645 = vmatmul.mubr.bf16.gmra.mrb[96].mxu0 %v5519_v61  ;;  %7031 = vmatmul.mubr.bf16.gmra.mrb[224].mxu1 %v5519_v61  ;;  %v4574_v12 = vpop.f32.mrb[186].mxu1  ;;  %v16490_v34 = vadd.f32 %v4572_v29, %v16185_v15 }
 0x67c   : > { %v11876_v3 = vpop.eup %11875  ;;  %11895 = vrcp.f32 %v5064_v22  ;;  %v5068_v44 = vadd.f32 1.0, %v11874_v50  ;;  %6654 = vmatprep.mubr.bf16.mxu0 %v5524_v16  ;;  %7040 = vmatprep.mubr.bf16.mxu1 %v5524_v16  ;;  %v4576_v62 = vpop.f32.mrb[187].mxu1  ;;  %v16493_v8 = vadd.f32 %v4574_v12, %v16180_v20  ;;  %v9438_v33 = vmul.f32 -1.442695, %v16487_v13 }
 0x67d   : > { %v11878_v5 = vpop.eup %11877  ;;  %11897 = vrcp.f32 %v5067_v18  ;;  %v5071_v17 = vadd.f32 1.0, %v11876_v3  ;;  %v16502_v56 = vadd.f32 %v4576_v62, %v16185_v15  ;;  %v9439_v26 = vmul.f32 -1.442695, %v16490_v34 }
 0x67e   : > { %v11880_v53 = vpop.eup %11879  ;;  %11899 = vrcp.f32 %v5068_v44  ;;  %v5072_v35 = vadd.f32 1.0, %v11878_v5  ;;  %v9442_v31 = vmul.f32 -1.442695, %v16493_v8 }
 0x67f   : > { %v11882_v61 = vpop.eup %11881  ;;  %11901 = vrcp.f32 %v5071_v17  ;;  %v5075_v49 = vadd.f32 1.0, %v11880_v53 }
 0x680   : > { %v16495_v21 = vpop.eup %11883  ;;  %11903 = vrcp.f32 %v5072_v35  ;;  %v5076_v28 = vadd.f32 1.0, %v11882_v61 }
 0x681   : > { %v11886_v37 = vpop.eup %11885  ;;  %11905 = vrcp.f32 %v5075_v49  ;;  %v4580_v32 = vpop.f32.mrb[188].mxu1 }
 0x682   : > { %v11888_v14 = vpop.eup %11887  ;;  %11907 = vrcp.f32 %v5076_v28  ;;  %v4582_v38 = vpop.f32.mrb[189].mxu1  ;;  %v16507_v16 = vadd.f32 %v4580_v32, %v16180_v20  ;;  %v5439_v48 = vmul.f32 %v11886_v37, %v16412_v7  ;;  %v9443_v7 = vmul.f32 -1.442695, %v16502_v56 }
 0x683   : > { %v11890_v40 = vpop.eup %11889  ;;  %6655 = vmatmul.mubr.bf16.gmra.mrb[100].mxu0 %v5523_v45  ;;  %7041 = vmatmul.mubr.bf16.gmra.mrb[228].mxu1 %v5523_v45  ;;  %v4584_v2 = vpop.f32.mrb[190].mxu1  ;;  %11909 = vpow2.f32 %v9431_v59  ;;  %v16512_v58 = vadd.f32 %v4582_v38, %v16185_v15  ;;  %v5440_v52 = vmul.f32 %v11888_v14, %v16415_v0  ;;  %v5079_v28 = vadd.f32 1.0, %v16495_v21 }
 0x684   : > { %v11892_v1 = vpop.eup %11891  ;;  %v5443_v23 = vmul.f32 %v11890_v40, %v16419_v54  ;;  %v4586_v4 = vpop.f32.mrb[191].mxu1  ;;  %11911 = vpow2.f32 %v9434_v60  ;;  %v16517_v45 = vadd.f32 %v4584_v2, %v16180_v20  ;;  %v9446_v3 = vmul.f32 -1.442695, %v16507_v16 }
 0x685   : > { %v11894_v41 = vpop.eup %11893  ;;  %v5444_v22 = vmul.f32 %v11892_v1, %v16422_v36  ;;  %11913 = vpow2.f32 %v9435_v19  ;;  %v16521_v54 = vadd.f32 %v4586_v4, %v16185_v15  ;;  %v9447_v20 = vmul.f32 -1.442695, %v16512_v58 }
 0x686   : > { %v11896_v29 = vpop.eup %11895  ;;  %v5527_v50 = vpack.c.bf16 %v5443_v23, %v5439_v48  ;;  %11915 = vpow2.f32 %v9438_v33  ;;  %v5447_v36 = vmul.f32 %v11894_v41, %v16425_v57  ;;  %v9450_v15 = vmul.f32 -1.442695, %v16517_v45 }
 0x687   : > { %v11898_v18 = vpop.eup %11897  ;;  %v5528_v12 = vpack.c.bf16 %v5444_v22, %v5440_v52  ;;  %11917 = vpow2.f32 %v9439_v26  ;;  %v5448_v5 = vmul.f32 %v11896_v29, %v16428_v11  ;;  %v9451_v35 = vmul.f32 -1.442695, %v16521_v54 }
 0x688   : > { %v11900_v0 = vpop.eup %11899  ;;  %v5451_v44 = vmul.f32 %v11898_v18, %v16431_v55  ;;  %11919 = vpow2.f32 %v9442_v31 }
 0x689   : > { %v11902_v62 = vpop.eup %11901  ;;  %v5452_v17 = vmul.f32 %v11900_v0, %v16438_v30  ;;  %6664 = vmatprep.mubr.bf16.mxu0 %v5528_v12  ;;  %7050 = vmatprep.mubr.bf16.mxu1 %v5528_v12  ;;  %11921 = vpow2.f32 %v9443_v7 }
 0x68a   : > { %v11904_v53 = vpop.eup %11903  ;;  %v5531_v57 = vpack.c.bf16 %v5451_v44, %v5447_v36  ;;  %11923 = vpow2.f32 %v9446_v3  ;;  %v5455_v11 = vmul.f32 %v11902_v62, %v16443_v47 }
 0x68b   : > { %v11906_v61 = vpop.eup %11905  ;;  %6665 = vmatmul.mubr.bf16.gmra.mrb[104].mxu0 %v5527_v50  ;;  %v5532_v55 = vpack.c.bf16 %v5452_v17, %v5448_v5  ;;  %7051 = vmatmul.mubr.bf16.gmra.mrb[232].mxu1 %v5527_v50  ;;  %11925 = vpow2.f32 %v9447_v20  ;;  %v5456_v59 = vmul.f32 %v11904_v53, %v16450_v39 }
 0x68c   : > { %v11908_v49 = vpop.eup %11907  ;;  %v5459_v30 = vmul.f32 %v11906_v61, %v16455_v51  ;;  %11927 = vpow2.f32 %v9450_v15 }
 0x68d   : > { %v5460_v37 = vmul.f32 %v11908_v49, %v16463_v63  ;;  %6674 = vmatprep.mubr.bf16.mxu0 %v5532_v55  ;;  %7060 = vmatprep.mubr.bf16.mxu1 %v5532_v55  ;;  %v11910_v60 = vpop.eup %11909  ;;  %11929 = vpow2.f32 %v9451_v35  ;;  %v10809_v55 = vld [vmem:[#allocation8 + $0xc4] ss:$8 sps:$4 sm:$0xff]  }
 0x68e   : > { %v5535_v32 = vpack.c.bf16 %v5459_v30, %v5455_v11  ;;  %v11912_v14 = vpop.eup %11911  ;;  %v5080_v19 = vadd.f32 1.0, %v11910_v60  ;;  %11931 = vrcp.f32 %v5079_v28  ;;  %8491 = vmatprep.subr.bf16.mxu0 %v10809_v55  ;;  %v10810_v60 = vld [vmem:[#allocation8 + $0xd0] ss:$8 sps:$4 sm:$0xff]  }
 0x68f   : > { %v5536_v33 = vpack.c.bf16 %v5460_v37, %v5456_v59  ;;  %v11914_v38 = vpop.eup %11913  ;;  %v5083_v47 = vadd.f32 1.0, %v11912_v14  ;;  %v10812_v37 = vld [vmem:[#allocation8 + $0xd4] ss:$8 sps:$4 sm:$0xff]  }
 0x690   : > { %v11916_v51 = vpop.eup %11915  ;;  %11933 = vrcp.f32 %v5080_v19  ;;  %v5084_v21 = vadd.f32 1.0, %v11914_v38  ;;  %v10816_v19 = vld [vmem:[#allocation8 + $0xf0] ss:$8 sps:$4 sm:$0xff]  }
 0x691   : > { %v11918_v40 = vpop.eup %11917  ;;  %11935 = vrcp.f32 %v5083_v47  ;;  %v5087_v39 = vadd.f32 1.0, %v11916_v51 }
 0x692   : > { %v11920_v26 = vpop.eup %11919  ;;  %11937 = vrcp.f32 %v5084_v21  ;;  %v5088_v63 = vadd.f32 1.0, %v11918_v40 }
 0x693   : > { %6675 = vmatmul.mubr.bf16.gmra.mrb[108].mxu0 %v5531_v57  ;;  %7061 = vmatmul.mubr.bf16.gmra.mrb[236].mxu1 %v5531_v57  ;;  %v11922_v31 = vpop.eup %11921  ;;  %11939 = vrcp.f32 %v5087_v39  ;;  %v5091_v2 = vadd.f32 1.0, %v11920_v26 }
 0x694   : > { %6684 = vmatprep.mubr.bf16.mxu0 %v5536_v33  ;;  %7070 = vmatprep.mubr.bf16.mxu1 %v5536_v33  ;;  %v11924_v1 = vpop.eup %11923  ;;  %11941 = vrcp.f32 %v5088_v63  ;;  %v5092_v48 = vadd.f32 1.0, %v11922_v31  ;;  %v5677_v33 = vld [vmem:[%s18130_s2 + $0xe] sm:$0xf] }
 0x695   : > { %v11926_v23 = vpop.eup %11925  ;;  %11943 = vrcp.f32 %v5091_v2  ;;  %v5095_v4 = vadd.f32 1.0, %v11924_v1  ;;  %v16552_v38 = vrot.slane %v5677_v33, %v18476_v25  ;;  %v16556_v47 = vrot.slane %v5677_v33, %v3873_v43 }
 0x696   : > { %v11928_v41 = vpop.eup %11927  ;;  %11945 = vrcp.f32 %v5092_v48  ;;  %v5096_v52 = vadd.f32 1.0, %v11926_v23  ;;  %v16559_v51 = vrot.slane %v5677_v33, %v18477_v42  ;;  %v16563_v21 = vrot.slane %v5677_v33, %v3877_v24 }
 0x697   : > { %v11930_v22 = vpop.eup %11929  ;;  %11947 = vrcp.f32 %v5095_v4  ;;  %v5099_v29 = vadd.f32 1.0, %v11928_v41  ;;  %18535 = vst [vmem:[#allocation37_spill] sm:$0xff] %v16552_v38  ;;  %18536 = vst [vmem:[#allocation19_spill] sm:$0xff] %v16556_v47 }
 0x698   : > { %11949 = vrcp.f32 %v5096_v52  ;;  %v5100_v7 = vadd.f32 1.0, %v11930_v22  ;;  %v11932_v50 = vpop.eup %11931  ;;  %18537 = vst [vmem:[#allocation18_spill] sm:$0xff] %v16563_v21 }
 0x699   : > { %11951 = vrcp.f32 %v5099_v29  ;;  %v5463_v0 = vmul.f32 %v11932_v50, %v16470_v9 }
 0x69a   : > { %v11934_v18 = vpop.eup %11933  ;;  %11953 = vrcp.f32 %v5100_v7 }
 0x69b   : > { %6685 = vmatmul.mubr.bf16.gmra.mrb[112].mxu0 %v5535_v32  ;;  %7071 = vmatmul.mubr.bf16.gmra.mrb[240].mxu1 %v5535_v32  ;;  %v11936_v12 = vpop.eup %11935  ;;  %v5464_v20 = vmul.f32 %v11934_v18, %v16478_v27  ;;  %v10807_v27 = vld [vmem:[#allocation8 + $0xc0] ss:$8 sps:$4 sm:$0xff]  }
 0x69c   : > { %v11938_v3 = vpop.eup %11937  ;;  %v5467_v36 = vmul.f32 %v11936_v12, %v16481_v46  ;;  %8492 = vmatpush1.bf16.msra.mxu0 %v10807_v27 }
 0x69d   : > { %v11940_v44 = vpop.eup %11939  ;;  %v5468_v62 = vmul.f32 %v11938_v3, %v16484_v10  ;;  %8493 = vmatprep.subr.bf16.mxu0 %v10812_v37 }
 0x69e   : > { %v11942_v5 = vpop.eup %11941  ;;  %v5539_v17 = vpack.c.bf16 %v5467_v36, %v5463_v0  ;;  %v5471_v57 = vmul.f32 %v11940_v44, %v16487_v13 }
 0x69f   : > { %v11944_v15 = vpop.eup %11943  ;;  %v5540_v53 = vpack.c.bf16 %v5468_v62, %v5464_v20  ;;  %v5472_v9 = vmul.f32 %v11942_v5, %v16490_v34 }
 0x6a0   : > { %v11946_v35 = vpop.eup %11945  ;;  %v5475_v61 = vmul.f32 %v11944_v15, %v16493_v8  ;;  %8494 = vmatpush1.bf16.msra.mxu0 %v10810_v60 }
 0x6a1   : > { %v11948_v49 = vpop.eup %11947  ;;  %v5476_v46 = vmul.f32 %v11946_v35, %v16502_v56  ;;  %6694 = vmatprep.mubr.bf16.mxu0 %v5540_v53  ;;  %7080 = vmatprep.mubr.bf16.mxu1 %v5540_v53 }
 0x6a2   : > { %v11950_v11 = vpop.eup %11949  ;;  %v5543_v10 = vpack.c.bf16 %v5475_v61, %v5471_v57  ;;  %v5479_v13 = vmul.f32 %v11948_v49, %v16507_v16  ;;  %v10815_v16 = vld [vmem:[#allocation8 + $0xe4] ss:$8 sps:$4 sm:$0xff]  }
 0x6a3   : > { %6695 = vmatmul.mubr.bf16.gmra.mrb[116].mxu0 %v5539_v17  ;;  %7081 = vmatmul.mubr.bf16.gmra.mrb[244].mxu1 %v5539_v17  ;;  %v11952_v30 = vpop.eup %11951  ;;  %v5544_v28 = vpack.c.bf16 %v5476_v46, %v5472_v9  ;;  %v5480_v34 = vmul.f32 %v11950_v11, %v16512_v58  ;;  %v10818_v58 = vld [vmem:[#allocation8 + $0xf4] ss:$8 sps:$4 sm:$0xff]  }
 0x6a4   : > { %v11954_v59 = vpop.eup %11953  ;;  %v5483_v8 = vmul.f32 %v11952_v30, %v16517_v45  ;;  %v10813_v45 = vld [vmem:[#allocation8 + $0xe0] ss:$8 sps:$4 sm:$0xff]   ;;  %8495 = vmatprep.subr.bf16.mxu0 %v10815_v16 }
 0x6a5   : > { %v5484_v56 = vmul.f32 %v11954_v59, %v16521_v54  ;;  %6704 = vmatprep.mubr.bf16.mxu0 %v5544_v28  ;;  %7090 = vmatprep.mubr.bf16.mxu1 %v5544_v28  ;;  %v10821_v54 = vld [vmem:[#allocation8 + $0x104] ss:$8 sps:$4 sm:$0xff]  }
 0x6a6   : > { %v5547_v32 = vpack.c.bf16 %v5483_v8, %v5479_v13  ;;  %8496 = vmatpush1.bf16.msra.mxu0 %v10813_v45 }
 0x6a7   : > { %v5548_v14 = vpack.c.bf16 %v5484_v56, %v5480_v34  ;;  %8497 = vmatprep.subr.bf16.mxu0 %v10818_v58 }
 0x6aa   : > { %8498 = vmatpush1.bf16.msra.mxu0 %v10816_v19 }
 0x6ab   : > { %6705 = vmatmul.mubr.bf16.gmra.mrb[120].mxu0 %v5543_v10  ;;  %7091 = vmatmul.mubr.bf16.gmra.mrb[248].mxu1 %v5543_v10 }
 0x6ac   : > { %6714 = vmatprep.mubr.bf16.mxu0 %v5548_v14  ;;  %7100 = vmatprep.mubr.bf16.mxu1 %v5548_v14 }
 0x6ad   : > { %8660 = vmatprep.subr.bf16.mxu0 %v10821_v54 }
 0x6b3   : > { %6715 = vmatmul.mubr.bf16.gmra.mrb[124].mxu0 %v5547_v32  ;;  %7101 = vmatmul.mubr.bf16.gmra.mrb[252].mxu1 %v5547_v32 }
 0x70e   : > { %v6566_v40 = vpop.f32.mrb[64].mxu0  ;;  %v6952_v39 = vpop.f32.mrb[192].mxu1 }
 0x70f   : > { %v16566_v26 = vadd.f32 %v6566_v40, %v16552_v38  ;;  %v6568_v63 = vpop.f32.mrb[65].mxu0  ;;  %v16569_v31 = vadd.f32 %v6952_v39, %v16556_v47  ;;  %v6954_v2 = vpop.f32.mrb[193].mxu1 }
 0x710   : > { %v16572_v43 = vadd.f32 %v6568_v63, %v16559_v51  ;;  %v6570_v1 = vpop.f32.mrb[66].mxu0  ;;  %v16575_v48 = vadd.f32 %v6954_v2, %v16563_v21  ;;  %v6956_v6 = vpop.f32.mrb[194].mxu1 }
 0x711   : > { %v9580_v24 = vmul.f32 -1.442695, %v16566_v26  ;;  %v16579_v23 = vadd.f32 %v6570_v1, %v16552_v38  ;;  %v6572_v4 = vpop.f32.mrb[67].mxu0  ;;  %v16582_v41 = vadd.f32 %v6956_v6, %v16556_v47  ;;  %v6958_v52 = vpop.f32.mrb[195].mxu1  ;;  %v9582_v18 = vmul.f32 -1.442695, %v16569_v31 }
 0x712   : > { %v9581_v22 = vmul.f32 -1.442695, %v16572_v43  ;;  %v16586_v29 = vadd.f32 %v6572_v4, %v16559_v51  ;;  %v16589_v7 = vadd.f32 %v6958_v52, %v16563_v21  ;;  %v9583_v3 = vmul.f32 -1.442695, %v16575_v48 }
 0x713   : > { %11955 = vpow2.f32 %v9580_v24  ;;  %v9584_v50 = vmul.f32 -1.442695, %v16579_v23  ;;  %v9586_v0 = vmul.f32 -1.442695, %v16582_v41 }
 0x714   : > { %11957 = vpow2.f32 %v9581_v22  ;;  %v9585_v12 = vmul.f32 -1.442695, %v16586_v29  ;;  %v9587_v44 = vmul.f32 -1.442695, %v16589_v7 }
 0x715   : > { %11959 = vpow2.f32 %v9584_v50 }
 0x716   : > { %11961 = vpow2.f32 %v9585_v12  ;;  %v6576_v36 = vpop.f32.mrb[68].mxu0  ;;  %v6962_v20 = vpop.f32.mrb[196].mxu1 }
 0x717   : > { %v16598_v62 = vadd.f32 %v6576_v36, %v16552_v38  ;;  %11963 = vpow2.f32 %v9582_v18  ;;  %v6578_v5 = vpop.f32.mrb[69].mxu0  ;;  %v16601_v17 = vadd.f32 %v6962_v20, %v16556_v47  ;;  %v6964_v15 = vpop.f32.mrb[197].mxu1 }
 0x718   : > { %v16604_v53 = vadd.f32 %v6578_v5, %v16559_v51  ;;  %11965 = vpow2.f32 %v9583_v3  ;;  %v6580_v35 = vpop.f32.mrb[70].mxu0  ;;  %v16606_v57 = vpop.f32.mrb[198].mxu1  ;;  %v16638_v20 = vadd.f32 %v6964_v15, %v16563_v21 }
 0x719   : > { %18538 = vst [vmem:[#allocation42_spill] sm:$0xff] %v16601_v17  ;;  %v9588_v61 = vmul.f32 -1.442695, %v16598_v62  ;;  %v16610_v55 = vadd.f32 %v6580_v35, %v16552_v38  ;;  %11967 = vpow2.f32 %v9586_v0  ;;  %v6582_v49 = vpop.f32.mrb[71].mxu0  ;;  %v16612_v9 = vpop.f32.mrb[199].mxu1  ;;  %v16650_v15 = vadd.f32 %v16606_v57, %v16556_v47 }
 0x71a   : > { %v9589_v46 = vmul.f32 -1.442695, %v16604_v53  ;;  %v16616_v27 = vadd.f32 %v6582_v49, %v16559_v51  ;;  %11969 = vpow2.f32 %v9587_v44  ;;  %v9590_v10 = vmul.f32 -1.442695, %v16601_v17  ;;  %18539 = vst [vmem:[#allocation102_spill] sm:$0xff] %v16638_v20 }
 0x71b   : > { %11971 = vpow2.f32 %v9588_v61  ;;  %v9592_v11 = vmul.f32 -1.442695, %v16610_v55  ;;  %18540 = vst [vmem:[#allocation24_spill] sm:$0xff] %v16650_v15  ;;  %v16663_v57 = vadd.f32 %v16612_v9, %v16563_v21  ;;  %v9594_v9 = vmul.f32 -1.442695, %v16650_v15 }
 0x71c   : > { %11973 = vpow2.f32 %v9589_v46  ;;  %v9593_v30 = vmul.f32 -1.442695, %v16616_v27 }
 0x71d   : > { %v11956_v28 = vpop.eup %11955  ;;  %11975 = vpow2.f32 %v9592_v11  ;;  %18541 = vst [vmem:[#allocation124_spill] sm:$0xff] %v16663_v57 }
 0x71e   : > { %v11958_v59 = vpop.eup %11957  ;;  %v7495_v13 = vadd.f32 1.0, %v11956_v28  ;;  %11977 = vpow2.f32 %v9593_v30  ;;  %v6586_v8 = vpop.f32.mrb[72].mxu0 }
 0x71f   : > { %v16621_v37 = vpop.f32.mrb[200].mxu1  ;;  %v11960_v34 = vpop.eup %11959  ;;  %v7496_v56 = vadd.f32 1.0, %v11958_v59  ;;  %11979 = vpow2.f32 %v9590_v10  ;;  %v16630_v4 = vadd.f32 %v6586_v8, %v16552_v38 }
 0x720   : > { %v6588_v60 = vpop.f32.mrb[73].mxu0  ;;  %v16623_v32 = vpop.f32.mrb[201].mxu1  ;;  %11981 = vrcp.f32 %v7495_v13  ;;  %v7499_v16 = vadd.f32 1.0, %v11960_v34 }
 0x721   : > { %v11962_v14 = vpop.eup %11961  ;;  %v6590_v45 = vpop.f32.mrb[74].mxu0  ;;  %11983 = vrcp.f32 %v7496_v56  ;;  %v16633_v12 = vadd.f32 %v6588_v60, %v16559_v51  ;;  %v9596_v46 = vmul.f32 -1.442695, %v16630_v4 }
 0x722   : > { %v16625_v58 = vpop.f32.mrb[202].mxu1  ;;  %v11964_v19 = vpop.eup %11963  ;;  %v7500_v54 = vadd.f32 1.0, %v11962_v14  ;;  %11985 = vrcp.f32 %v7499_v16  ;;  %v16644_v11 = vadd.f32 %v6590_v45, %v16552_v38  ;;  %v9591_v45 = vmul.f32 -1.442695, %v16638_v20  ;;  %v10825_v20 = vld [vmem:[#allocation8 + $0x120] ss:$8 sps:$4 sm:$0xff]  }
 0x723   : > { %v6592_v33 = vpop.f32.mrb[75].mxu0  ;;  %v16627_v40 = vpop.f32.mrb[203].mxu1  ;;  %v7497_v63 = vadd.f32 1.0, %v11964_v19  ;;  %v9597_v60 = vmul.f32 -1.442695, %v16633_v12 }
 0x724   : > { %v11966_v39 = vpop.eup %11965  ;;  %11987 = vrcp.f32 %v7500_v54  ;;  %v16658_v14 = vadd.f32 %v6592_v33, %v16559_v51  ;;  %v9600_v54 = vmul.f32 -1.442695, %v16644_v11 }
 0x725   : > { %v11968_v2 = vpop.eup %11967  ;;  %v7498_v1 = vadd.f32 1.0, %v11966_v39  ;;  %11989 = vrcp.f32 %v7497_v63  ;;  %v16671_v63 = vadd.f32 %v16621_v37, %v16556_v47 }
 0x726   : > { %v11970_v6 = vpop.eup %11969  ;;  %v7501_v24 = vadd.f32 1.0, %v11968_v2  ;;  %v6596_v3 = vpop.f32.mrb[76].mxu0 }
 0x727   : > { %v11972_v52 = vpop.eup %11971  ;;  %11991 = vrcp.f32 %v7498_v1  ;;  %v7502_v22 = vadd.f32 1.0, %v11970_v6  ;;  %v16635_v0 = vpop.f32.mrb[204].mxu1  ;;  %v16667_v39 = vadd.f32 %v6596_v3, %v16552_v38  ;;  %18542 = vst [vmem:[#allocation126_spill] sm:$0xff] %v16671_v63 }
 0x728   : > { %v11974_v50 = vpop.eup %11973  ;;  %v7503_v18 = vadd.f32 1.0, %v11972_v52  ;;  %11993 = vrcp.f32 %v7501_v24  ;;  %v6598_v5 = vpop.f32.mrb[77].mxu0  ;;  %v9601_v24 = vmul.f32 -1.442695, %v16658_v14 }
 0x729   : > { %v11976_v36 = vpop.eup %11975  ;;  %v7504_v44 = vadd.f32 1.0, %v11974_v50  ;;  %11995 = vrcp.f32 %v7502_v22  ;;  %v16640_v35 = vpop.f32.mrb[205].mxu1  ;;  %v16678_v52 = vadd.f32 %v6598_v5, %v16559_v51  ;;  %v9604_v5 = vmul.f32 -1.442695, %v16667_v39 }
 0x72a   : > { %v11978_v61 = vpop.eup %11977  ;;  %11997 = vrcp.f32 %v7503_v18  ;;  %v7507_v49 = vadd.f32 1.0, %v11976_v36  ;;  %v6600_v10 = vpop.f32.mrb[78].mxu0 }
 0x72b   : > { %v16646_v30 = vpop.f32.mrb[206].mxu1  ;;  %v11980_v28 = vpop.eup %11979  ;;  %11999 = vrcp.f32 %v7504_v44  ;;  %v7508_v59 = vadd.f32 1.0, %v11978_v61  ;;  %v9598_v61 = vmul.f32 -1.442695, %v16671_v63 }
 0x72c   : > { %v16652_v13 = vpop.f32.mrb[79].mxu0  ;;  %v16654_v8 = vpop.f32.mrb[207].mxu1  ;;  %12001 = vrcp.f32 %v7507_v49  ;;  %v7505_v56 = vadd.f32 1.0, %v11980_v28  ;;  %v16698_v49 = vadd.f32 %v6600_v10, %v16552_v38 }
 0x72d   : > { %v11982_v34 = vpop.eup %11981  ;;  %12003 = vrcp.f32 %v7508_v59 }
 0x72e   : > { %v11984_v16 = vpop.eup %11983  ;;  %12005 = vpow2.f32 %v9596_v46  ;;  %v7879_v2 = vmul.f32 %v11982_v34, %v16566_v26  ;;  %v16680_v22 = vpop.f32.mrb[80].mxu0  ;;  %v9595_v26 = vmul.f32 -1.442695, %v16663_v57 }
 0x72f   : > { %v11986_v19 = vpop.eup %11985  ;;  %12007 = vrcp.f32 %v7505_v56  ;;  %v16682_v50 = vpop.f32.mrb[208].mxu1 }
 0x730   : > { %v11988_v33 = vpop.eup %11987  ;;  %v7883_v1 = vmul.f32 %v11986_v19, %v16579_v23  ;;  %12009 = vpow2.f32 %v9597_v60  ;;  %v16689_v23 = vadd.f32 %v16623_v32, %v16563_v21  ;;  %v16691_v3 = vpop.f32.mrb[81].mxu0  ;;  %v9605_v19 = vmul.f32 -1.442695, %v16678_v52 }
 0x731   : > { %v11990_v6 = vpop.eup %11989  ;;  %12011 = vpow2.f32 %v9591_v45  ;;  %v16693_v36 = vpop.f32.mrb[209].mxu1  ;;  %v7884_v32 = vmul.f32 %v11988_v33, %v16586_v29 }
 0x732   : > { %v16684_v37 = vpop.eup %11991  ;;  %v8007_v18 = vpack.c.bf16 %v7883_v1, %v7879_v2  ;;  %18543 = vst [vmem:[#allocation122_spill] sm:$0xff] %v16689_v23  ;;  %12013 = vpow2.f32 %v9600_v54  ;;  %v16700_v46 = vpop.f32.mrb[82].mxu0  ;;  %v16708_v34 = vmul.f32 %v11990_v6, %v16569_v31  ;;  %v16720_v54 = vadd.f32 %v16625_v58, %v16556_v47 }
 0x733   : > { %v11994_v44 = vpop.eup %11993  ;;  %v16702_v28 = vpop.f32.mrb[210].mxu1  ;;  %12015 = vpow2.f32 %v9594_v9  ;;  %v7880_v31 = vmul.f32 %v11984_v16, %v16572_v43  ;;  %v9599_v33 = vmul.f32 -1.442695, %v16689_v23  ;;  %v9608_v1 = vmul.f32 -1.442695, %v16698_v49 }
 0x734   : > { %v16704_v59 = vpop.eup %11995  ;;  %18545 = vst [vmem:[#allocation121_spill] sm:$0xff] %v16708_v34  ;;  %v16711_v56 = vmul.f32 %v11994_v44, %v16582_v41  ;;  %v16713_v60 = vpop.f32.mrb[83].mxu0  ;;  %12017 = vpow2.f32 %v9601_v24  ;;  %18547 = vst [vmem:[#allocation44_spill] sm:$0xff] %v16720_v54  ;;  %v10819_v24 = vld [vmem:[#allocation8 + $0x100] ss:$8 sps:$4 sm:$0xff]  }
 0x735   : > { %18544 = vst [vmem:[#allocation20_spill] sm:$0xff] %v16704_v59  ;;  %v16715_v45 = vpop.f32.mrb[211].mxu1  ;;  %v11998_v10 = vpop.eup %11997  ;;  %12019 = vpow2.f32 %v9595_v26  ;;  %v8008_v6 = vpack.c.bf16 %v7884_v32, %v7880_v31  ;;  %v9602_v58 = vmul.f32 -1.442695, %v16720_v54  ;;  %v10824_v43 = vld [vmem:[#allocation8 + $0x114] ss:$8 sps:$4 sm:$0xff]  }
 0x736   : > { %18546 = vst [vmem:[#allocation25_spill] sm:$0xff] %v16711_v56  ;;  %v12000_v29 = vpop.eup %11999  ;;  %12021 = vpow2.f32 %v9604_v5  ;;  %v16728_v42 = vpop.f32.mrb[84].mxu0  ;;  %v7887_v63 = vmul.f32 %v11998_v10, %v16598_v62  ;;  %v10830_v10 = vld [vmem:[#allocation8 + $0x134] ss:$8 sps:$4 sm:$0xff]  }
 0x737   : > { %v12002_v2 = vpop.eup %12001  ;;  %12023 = vpow2.f32 %v9598_v61  ;;  %v16730_v16 = vpop.f32.mrb[212].mxu1  ;;  %8499 = vmatprep.mubr.bf16.mxu0 %v8008_v6  ;;  %v10822_v6 = vld [vmem:[#allocation8 + $0x110] ss:$8 sps:$4 sm:$0xff]   ;;  %v16834_v59 = vadd.f32 %v16728_v42, %v16552_v38 }
 0x738   : > { %v12004_v9 = vpop.eup %12003  ;;  %12025 = vpow2.f32 %v9605_v19  ;;  %v16734_v5 = vpop.f32.mrb[85].mxu0  ;;  %8500 = vmatmul.mubr.bf16.vlgmr.msra.gmra.mrb[128].mxu0 %v8007_v18  ;;  %v7891_v56 = vmul.f32 %v12002_v2, %v16610_v55  ;;  %v10827_v18 = vld [vmem:[#allocation8 + $0x124] ss:$8 sps:$4 sm:$0xff]  }
 0x739   : > { %v12006_v44 = vpop.eup %12005  ;;  %12027 = vpow2.f32 %v9599_v33  ;;  %v16736_v25 = vpop.f32.mrb[213].mxu1  ;;  %v7892_v32 = vmul.f32 %v12004_v9, %v16616_v27  ;;  %8661 = vmatpush1.bf16.msra.mxu0 %v10819_v24  ;;  %v7888_v27 = vmul.f32 %v12000_v29, %v16604_v53  ;;  %v16752_v29 = vadd.f32 %v16652_v13, %v16559_v51 }
 0x73a   : > { %v16732_v26 = vpop.eup %12007  ;;  %v7511_v41 = vadd.f32 1.0, %v12006_v44  ;;  %12029 = vpow2.f32 %v9608_v1  ;;  %v16739_v19 = vpop.f32.mrb[86].mxu0  ;;  %8662 = vmatprep.subr.bf16.mxu0 %v10824_v43  ;;  %v8011_v15 = vpack.c.bf16 %v7891_v56, %v7887_v63  ;;  %v16764_v13 = vadd.f32 %v16627_v40, %v16563_v21  ;;  %v10828_v40 = vld [vmem:[#allocation8 + $0x130] ss:$8 sps:$4 sm:$0xff]  }
 0x73b   : > { %18548 = vst [vmem:[#allocation103_spill] sm:$0xff] %v16732_v26  ;;  %v12010_v61 = vpop.eup %12009  ;;  %v16741_v31 = vpop.f32.mrb[214].mxu1  ;;  %v8012_v24 = vpack.c.bf16 %v7892_v32, %v7888_v27 }
 0x73c   : > { %v12012_v34 = vpop.eup %12011  ;;  %12031 = vrcp.f32 %v7511_v41  ;;  %v7512_v44 = vadd.f32 1.0, %v12010_v61  ;;  %v16744_v33 = vpop.f32.mrb[87].mxu0  ;;  %18549 = vst [vmem:[#allocation123_spill] sm:$0xff] %v16764_v13 }
 0x73d   : > { %v16746_v54 = vpop.f32.mrb[215].mxu1  ;;  %v12014_v23 = vpop.eup %12013  ;;  %v7506_v1 = vadd.f32 1.0, %v12012_v34  ;;  %12033 = vpow2.f32 %v9602_v58  ;;  %8663 = vmatpush1.bf16.msra.mxu0 %v10822_v6  ;;  %8509 = vmatprep.mubr.bf16.mxu0 %v8012_v24  ;;  %v16768_v6 = vadd.f32 %v16635_v0, %v16556_v47 }
 0x73e   : > { %v12016_v9 = vpop.eup %12015  ;;  %12035 = vrcp.f32 %v7512_v44  ;;  %v7515_v55 = vadd.f32 1.0, %v12014_v23  ;;  %v16754_v62 = vpop.f32.mrb[88].mxu0  ;;  %8664 = vmatprep.subr.bf16.mxu0 %v10827_v18 }
 0x73f   : > { %v12018_v41 = vpop.eup %12017  ;;  %12037 = vrcp.f32 %v7506_v1  ;;  %v7509_v2 = vadd.f32 1.0, %v12016_v9  ;;  %v16756_v23 = vpop.f32.mrb[216].mxu1  ;;  %18550 = vst [vmem:[#allocation104_spill] sm:$0xff] %v16768_v6  ;;  %v16776_v9 = vadd.f32 %v16680_v22, %v16552_v38 }
 0x740   : > { %v12020_v61 = vpop.eup %12019  ;;  %12039 = vrcp.f32 %v7515_v55  ;;  %v7516_v57 = vadd.f32 1.0, %v12018_v41  ;;  %v16758_v63 = vpop.f32.mrb[89].mxu0  ;;  %8510 = vmatmul.mubr.bf16.gmra.mrb[132].mxu0 %v8011_v15  ;;  %v9609_v15 = vmul.f32 -1.442695, %v16752_v29 }
 0x741   : > { %v12022_v53 = vpop.eup %12021  ;;  %12041 = vrcp.f32 %v7509_v2  ;;  %v7510_v34 = vadd.f32 1.0, %v12020_v61  ;;  %v16760_v56 = vpop.f32.mrb[217].mxu1  ;;  %8665 = vmatpush1.bf16.msra.mxu0 %v10825_v20  ;;  %v16783_v2 = vadd.f32 %v16640_v35, %v16563_v21  ;;  %v10833_v61 = vld [vmem:[#allocation8 + $0x144] ss:$8 sps:$4 sm:$0xff]   ;;  %v16789_v20 = vadd.f32 %v16691_v3, %v16559_v51  ;;  %v10831_v3 = vld [vmem:[#allocation8 + $0x140] ss:$8 sps:$4 sm:$0xff]  }
 0x742   : > { %v12024_v58 = vpop.eup %12023  ;;  %12043 = vrcp.f32 %v7516_v57  ;;  %v7519_v43 = vadd.f32 1.0, %v12022_v53  ;;  %v16770_v27 = vpop.f32.mrb[90].mxu0  ;;  %8666 = vmatprep.subr.bf16.mxu0 %v10830_v10  ;;  %v16795_v35 = vadd.f32 %v16646_v30, %v16556_v47 }
 0x743   : > { %v12026_v32 = vpop.eup %12025  ;;  %12045 = vrcp.f32 %v7510_v34  ;;  %v7513_v44 = vadd.f32 1.0, %v12024_v58  ;;  %v16772_v57 = vpop.f32.mrb[218].mxu1  ;;  %18551 = vst [vmem:[#allocation125_spill] sm:$0xff] %v16783_v2  ;;  %v9603_v58 = vmul.f32 -1.442695, %v16764_v13 }
 0x744   : > { %v12028_v1 = vpop.eup %12027  ;;  %12047 = vrcp.f32 %v7519_v43  ;;  %v7520_v18 = vadd.f32 1.0, %v12026_v32  ;;  %v16778_v55 = vpop.f32.mrb[91].mxu0  ;;  %v9606_v43 = vmul.f32 -1.442695, %v16768_v6  ;;  %18552 = vst [vmem:[#allocation35_spill] sm:$0xff] %v16795_v35 }
 0x745   : > { %v12030_v41 = vpop.eup %12029  ;;  %12049 = vrcp.f32 %v7513_v44  ;;  %v7514_v0 = vadd.f32 1.0, %v12028_v1  ;;  %v16785_v24 = vpop.f32.mrb[219].mxu1  ;;  %v9612_v44 = vmul.f32 -1.442695, %v16776_v9  ;;  %v16800_v1 = vadd.f32 %v16700_v46, %v16552_v38  ;;  %8667 = vmatpush1.bf16.msra.mxu0 %v10828_v40 }
 0x746   : > { %v12032_v53 = vpop.eup %12031  ;;  %12051 = vrcp.f32 %v7520_v18  ;;  %v7523_v22 = vadd.f32 1.0, %v12030_v41  ;;  %v9607_v41 = vmul.f32 -1.442695, %v16783_v2  ;;  %v16807_v30 = vpop.f32.mrb[220].mxu1  ;;  %8668 = vmatprep.subr.bf16.mxu0 %v10833_v61  ;;  %v9613_v6 = vmul.f32 -1.442695, %v16789_v20 }
 0x747   : > { %v12034_v34 = vpop.eup %12033  ;;  %12053 = vrcp.f32 %v7514_v0  ;;  %v16805_v0 = vpop.f32.mrb[92].mxu0  ;;  %v16812_v46 = vadd.f32 %v16713_v60, %v16559_v51  ;;  %v16816_v40 = vadd.f32 %v16654_v8, %v16563_v21  ;;  %v7895_v61 = vmul.f32 %v12032_v53, %v16630_v4 }
 0x748   : > { %v12036_v32 = vpop.eup %12035  ;;  %12055 = vrcp.f32 %v7523_v22  ;;  %v7517_v10 = vadd.f32 1.0, %v12034_v34  ;;  %v10836_v22 = vld [vmem:[#allocation8 + $0x154] ss:$8 sps:$4 sm:$0xff]   ;;  %v16820_v2 = vpop.f32.mrb[221].mxu1  ;;  %v9616_v8 = vmul.f32 -1.442695, %v16800_v1  ;;  %v16838_v4 = vadd.f32 %v16682_v50, %v16556_v47 }
 0x749   : > { %v16802_v18 = vpop.eup %12037  ;;  %12057 = vpow2.f32 %v9609_v15  ;;  %18554 = vst [vmem:[#allocation105_spill] sm:$0xff] %v16816_v40  ;;  %v16818_v15 = vpop.f32.mrb[93].mxu0  ;;  %8669 = vmatpush1.bf16.msra.mxu0 %v10831_v3  ;;  %v9617_v50 = vmul.f32 -1.442695, %v16812_v46  ;;  %v16854_v3 = vadd.f32 %v16734_v5, %v16559_v51 }
 0x74a   : > { %18553 = vst [vmem:[#allocation52_spill] sm:$0xff] %v16802_v18  ;;  %v12040_v34 = vpop.eup %12039  ;;  %12059 = vrcp.f32 %v7517_v10  ;;  %v9610_v18 = vmul.f32 -1.442695, %v16795_v35  ;;  %v16827_v26 = vpop.f32.mrb[94].mxu0  ;;  %18557 = vst [vmem:[#allocation45_spill] sm:$0xff] %v16838_v4  ;;  %8670 = vmatprep.subr.bf16.mxu0 %v10836_v22 }
 0x74b   : > { %v16822_v13 = vpop.eup %12041  ;;  %v7899_v10 = vmul.f32 %v12040_v34, %v16644_v11  ;;  %12061 = vpow2.f32 %v9603_v58  ;;  %v16829_v60 = vpop.f32.mrb[222].mxu1  ;;  %v10834_v58 = vld [vmem:[#allocation8 + $0x150] ss:$8 sps:$4 sm:$0xff]  }
 0x74c   : > { %18555 = vst [vmem:[#allocation39_spill] sm:$0xff] %v16822_v13  ;;  %18556 = vst [vmem:[#allocation49_spill] sm:$0xff] %v16829_v60  ;;  %v12044_v17 = vpop.eup %12043  ;;  %12063 = vpow2.f32 %v9612_v44  ;;  %v16840_v11 = vpop.f32.mrb[95].mxu0  ;;  %v7896_v44 = vmul.f32 %v12036_v32, %v16633_v12  ;;  %v10839_v12 = vld [vmem:[#allocation8 + $0x164] ss:$8 sps:$4 sm:$0xff]  }
 0x74d   : > { %v16842_v53 = vpop.f32.mrb[223].mxu1  ;;  %v16844_v34 = vpop.eup %12045  ;;  %v7900_v35 = vmul.f32 %v12044_v17, %v16658_v14  ;;  %12065 = vpow2.f32 %v9606_v43  ;;  %v8015_v60 = vpack.c.bf16 %v7899_v10, %v7895_v61  ;;  %v9620_v17 = vmul.f32 -1.442695, %v16834_v59  ;;  %8671 = vmatpush1.bf16.msra.mxu0 %v10834_v58  ;;  %v10837_v14 = vld [vmem:[#allocation8 + $0x160] ss:$8 sps:$4 sm:$0xff]  }
 0x74e   : > { %18558 = vst [vmem:[#allocation51_spill] sm:$0xff] %v16842_v53  ;;  %18559 = vst [vmem:[#allocation56_spill] sm:$0xff] %v16844_v34  ;;  %v12048_v42 = vpop.eup %12047  ;;  %12067 = vpow2.f32 %v9613_v6  ;;  %v9611_v53 = vmul.f32 -1.442695, %v16816_v40  ;;  %v9614_v43 = vmul.f32 -1.442695, %v16838_v4  ;;  %8672 = vmatprep.subr.bf16.mxu0 %v10839_v12 }
 0x74f   : > { %v16849_v13 = vpop.eup %12049  ;;  %12069 = vpow2.f32 %v9607_v41  ;;  %v8016_v34 = vpack.c.bf16 %v7900_v35, %v7896_v44  ;;  %v16862_v41 = vpop.f32.mrb[96].mxu0  ;;  %v9621_v58 = vmul.f32 -1.442695, %v16854_v3 }
 0x750   : > { %v16856_v32 = vpop.eup %12051  ;;  %12071 = vpow2.f32 %v9616_v8  ;;  %v16864_v22 = vpop.f32.mrb[224].mxu1  ;;  %v16871_v8 = vmul.f32 %v12048_v42, %v16667_v39 }
 0x751   : > { %v16859_v6 = vpop.eup %12053  ;;  %12073 = vpow2.f32 %v9610_v18  ;;  %8519 = vmatprep.mubr.bf16.mxu0 %v8016_v34  ;;  %18560 = vst [vmem:[#allocation106_spill] sm:$0xff] %v16864_v22  ;;  %v16866_v35 = vpop.f32.mrb[97].mxu0  ;;  %8673 = vmatpush1.bf16.msra.mxu0 %v10837_v14 }
 0x752   : > { %v12056_v5 = vpop.eup %12055  ;;  %12075 = vpow2.f32 %v9617_v50  ;;  %8520 = vmatmul.mubr.bf16.gmra.mrb[136].mxu0 %v8015_v60  ;;  %v16868_v61 = vpop.f32.mrb[225].mxu1 }
 0x753   : > { %18561 = vst [vmem:[#allocation107_spill] sm:$0xff] %v16868_v61  ;;  %v12058_v10 = vpop.eup %12057  ;;  %v16874_v18 = vmul.f32 %v12056_v5, %v16698_v49  ;;  %12077 = vpow2.f32 %v9611_v53  ;;  %v16877_v34 = vpop.f32.mrb[98].mxu0 }
 0x754   : > { %v16879_v44 = vpop.f32.mrb[226].mxu1  ;;  %v16881_v50 = vpop.eup %12059  ;;  %v7524_v60 = vadd.f32 1.0, %v12058_v10  ;;  %12079 = vpow2.f32 %v9620_v17 }
 0x755   : > { %18562 = vst [vmem:[#allocation21_spill] sm:$0xff] %v16879_v44  ;;  %v16883_v12 = vpop.f32.mrb[99].mxu0  ;;  %v12062_v4 = vpop.eup %12061  ;;  %12081 = vpow2.f32 %v9614_v43 }
 0x756   : > { %v16887_v49 = vpop.f32.mrb[227].mxu1  ;;  %v12064_v53 = vpop.eup %12063  ;;  %12083 = vrcp.f32 %v7524_v60  ;;  %v7518_v42 = vadd.f32 1.0, %v12062_v4 }
 0x757   : > { %18563 = vst [vmem:[#allocation108_spill] sm:$0xff] %v16887_v49  ;;  %v12066_v5 = vpop.eup %12065  ;;  %v7527_v40 = vadd.f32 1.0, %v12064_v53  ;;  %12085 = vpow2.f32 %v9621_v58  ;;  %v16889_v14 = vpop.f32.mrb[100].mxu0  ;;  %v16897_v58 = vadd.f32 %v16693_v36, %v16563_v21 }
 0x758   : > { %v12068_v44 = vpop.eup %12067  ;;  %12087 = vrcp.f32 %v7518_v42  ;;  %v7521_v10 = vadd.f32 1.0, %v12066_v5  ;;  %v16891_v39 = vpop.f32.mrb[101].mxu0 }
 0x759   : > { %v12070_v17 = vpop.eup %12069  ;;  %12089 = vrcp.f32 %v7527_v40  ;;  %v7528_v61 = vadd.f32 1.0, %v12068_v44  ;;  %v16893_v49 = vpop.f32.mrb[228].mxu1  ;;  %18565 = vst [vmem:[#allocation64_spill] sm:$0xff] %v16897_v58  ;;  %v16901_v40 = vadd.f32 %v16702_v28, %v16556_v47 }
 0x75a   : > { %v12072_v43 = vpop.eup %12071  ;;  %12091 = vrcp.f32 %v7521_v10  ;;  %v7522_v22 = vadd.f32 1.0, %v12070_v17  ;;  %18564 = vst [vmem:[#allocation57_spill] sm:$0xff] %v16893_v49  ;;  %v16903_v44 = vpop.f32.mrb[102].mxu0  ;;  %v16909_v10 = vadd.f32 %v16739_v19, %v16552_v38 }
 0x75b   : > { %v12074_v60 = vpop.eup %12073  ;;  %12093 = vrcp.f32 %v7528_v61  ;;  %v7531_v4 = vadd.f32 1.0, %v12072_v43  ;;  %18566 = vst [vmem:[#allocation66_spill] sm:$0xff] %v16901_v40  ;;  %18567 = vst [vmem:[#allocation65_spill] sm:$0xff] %v16903_v44  ;;  %v16905_v53 = vpop.f32.mrb[229].mxu1  ;;  %v9615_v44 = vmul.f32 -1.442695, %v16897_v58 }
 0x75c   : > { %18568 = vst [vmem:[#allocation109_spill] sm:$0xff] %v16905_v53  ;;  %v12076_v42 = vpop.eup %12075  ;;  %12095 = vrcp.f32 %v7522_v22  ;;  %v7525_v5 = vadd.f32 1.0, %v12074_v60  ;;  %v16911_v61 = vpop.f32.mrb[103].mxu0  ;;  %v16917_v53 = vadd.f32 %v16744_v33, %v16559_v51  ;;  %v10842_v58 = vld [vmem:[#allocation8 + $0x174] ss:$8 sps:$4 sm:$0xff]  }
 0x75d   : > { %18569 = vst [vmem:[#allocation110_spill] sm:$0xff] %v16911_v61  ;;  %v12078_v17 = vpop.eup %12077  ;;  %12097 = vrcp.f32 %v7531_v4  ;;  %v7532_v36 = vadd.f32 1.0, %v12076_v42  ;;  %v16913_v43 = vpop.f32.mrb[230].mxu1  ;;  %v9618_v61 = vmul.f32 -1.442695, %v16901_v40  ;;  %8674 = vmatprep.subr.bf16.mxu0 %v10842_v58 }
 0x75e   : > { %18570 = vst [vmem:[#allocation60_spill] sm:$0xff] %v16913_v43  ;;  %v12080_v28 = vpop.eup %12079  ;;  %12099 = vrcp.f32 %v7525_v5  ;;  %v7526_v49 = vadd.f32 1.0, %v12078_v17  ;;  %v16919_v22 = vpop.f32.mrb[231].mxu1  ;;  %v9624_v43 = vmul.f32 -1.442695, %v16909_v10  ;;  %v16926_v5 = vadd.f32 %v16715_v45, %v16563_v21 }
 0x75f   : > { %18571 = vst [vmem:[#allocation73_spill] sm:$0xff] %v16919_v22  ;;  %v12082_v60 = vpop.eup %12081  ;;  %12101 = vrcp.f32 %v7532_v36  ;;  %v7535_v19 = vadd.f32 1.0, %v12080_v28  ;;  %v7904_v17 = vmul.f32 %v16856_v32, %v16678_v52  ;;  %v16933_v28 = vadd.f32 %v16754_v62, %v16552_v38  ;;  %v16935_v22 = vpop.f32.mrb[104].mxu0 }
 0x760   : > { %v12084_v4 = vpop.eup %12083  ;;  %12103 = vrcp.f32 %v7526_v49  ;;  %v7529_v42 = vadd.f32 1.0, %v12082_v60  ;;  %v16937_v49 = vpop.f32.mrb[232].mxu1  ;;  %v9625_v40 = vmul.f32 -1.442695, %v16917_v53  ;;  %v16944_v52 = vadd.f32 %v16730_v16, %v16556_v47 }
 0x761   : > { %v12086_v33 = vpop.eup %12085  ;;  %v7908_v36 = vmul.f32 %v12084_v4, %v16752_v29  ;;  %12105 = vrcp.f32 %v7535_v19  ;;  %18572 = vst [vmem:[#allocation70_spill] sm:$0xff] %v16937_v49  ;;  %v16946_v29 = vpop.f32.mrb[105].mxu0  ;;  %v16952_v19 = vadd.f32 %v16758_v63, %v16559_v51  ;;  %v9619_v16 = vmul.f32 -1.442695, %v16926_v5 }
 0x762   : > { %v16939_v60 = vpop.eup %12087  ;;  %12107 = vrcp.f32 %v7529_v42  ;;  %v7536_v45 = vadd.f32 1.0, %v12086_v33  ;;  %18574 = vst [vmem:[#allocation78_spill] sm:$0xff] %v16946_v29  ;;  %v16948_v32 = vpop.f32.mrb[233].mxu1  ;;  %v10840_v33 = vld [vmem:[#allocation8 + $0x170] ss:$8 sps:$4 sm:$0xff]  }
 0x763   : > { %18573 = vst [vmem:[#allocation17_spill] sm:$0xff] %v16939_v60  ;;  %18575 = vst [vmem:[#allocation111_spill] sm:$0xff] %v16948_v32  ;;  %v12090_v62 = vpop.eup %12089  ;;  %12109 = vpow2.f32 %v9615_v44  ;;  %v8020_v4 = vpack.c.bf16 %v7908_v36, %v7904_v17  ;;  %v16954_v49 = vpop.f32.mrb[106].mxu0  ;;  %v16963_v32 = vadd.f32 %v16736_v25, %v16563_v21  ;;  %v9628_v36 = vmul.f32 -1.442695, %v16933_v28  ;;  %8675 = vmatpush1.bf16.msra.mxu0 %v10840_v33 }
 0x764   : > { %18576 = vst [vmem:[#allocation72_spill] sm:$0xff] %v16954_v49  ;;  %v16956_v42 = vpop.f32.mrb[234].mxu1  ;;  %v16958_v60 = vpop.eup %12091  ;;  %12111 = vrcp.f32 %v7536_v45  ;;  %v16976_v45 = vadd.f32 %v16741_v31, %v16556_v47  ;;  %v16987_v49 = vadd.f32 %v16778_v55, %v16559_v51  ;;  %v7911_v58 = vmul.f32 %v12090_v62, %v16776_v9 }
 0x765   : > { %18577 = vst [vmem:[#allocation77_spill] sm:$0xff] %v16956_v42  ;;  %v16965_v44 = vpop.f32.mrb[107].mxu0  ;;  %v16967_v63 = vpop.f32.mrb[235].mxu1  ;;  %12113 = vpow2.f32 %v9624_v43  ;;  %v16972_v42 = vadd.f32 %v16770_v27, %v16552_v38  ;;  %8529 = vmatprep.mubr.bf16.mxu0 %v8020_v4  ;;  %v18581_v43 = vpack.c.bf16 %v16874_v18, %v16871_v8  ;;  %v9629_v27 = vmul.f32 -1.442695, %v16952_v19 }
 0x766   : > { %18578 = vst [vmem:[#allocation114_spill] sm:$0xff] %v16965_v44  ;;  %18579 = vst [vmem:[#allocation112_spill] sm:$0xff] %v16967_v63  ;;  %v12094_v17 = vpop.eup %12093  ;;  %12115 = vpow2.f32 %v9618_v61  ;;  %v9622_v44 = vmul.f32 -1.442695, %v16944_v52  ;;  %v9623_v4 = vmul.f32 -1.442695, %v16963_v32  ;;  %v16998_v55 = vadd.f32 %v16746_v54, %v16563_v21 }
 0x767   : > { %18580 = vst [vmem:[#allocation85_spill] sm:$0xff] %v16976_v45  ;;  %v16978_v25 = vpop.eup %12095  ;;  %8530 = vmatmul.mubr.bf16.gmra.mrb[140].mxu0 %v18581_v43  ;;  %12117 = vpow2.f32 %v9625_v40  ;;  %v9632_v18 = vmul.f32 -1.442695, %v16972_v42  ;;  %v9626_v40 = vmul.f32 -1.442695, %v16976_v45  ;;  %v17000_v33 = vpop.f32.mrb[108].mxu0 }
 0x768   : > { %v12098_v63 = vpop.eup %12097  ;;  %12119 = vpow2.f32 %v9619_v16  ;;  %18582 = vst [vmem:[#allocation80_spill] sm:$0xff] %v17000_v33  ;;  %v17002_v43 = vpop.f32.mrb[236].mxu1  ;;  %v9633_v54 = vmul.f32 -1.442695, %v16987_v49 }
 0x769   : > { %v16989_v31 = vpop.eup %12099  ;;  %v7915_v61 = vmul.f32 %v12098_v63, %v16800_v1  ;;  %12121 = vpow2.f32 %v9628_v36  ;;  %18583 = vst [vmem:[#allocation16_spill] sm:$0xff] %v17002_v43  ;;  %v7912_v1 = vmul.f32 %v12094_v17, %v16789_v20  ;;  %v17008_v63 = vpop.f32.mrb[109].mxu0  ;;  %v10843_v17 = vld [vmem:[#allocation8 + $0x180] ss:$8 sps:$4 sm:$0xff]  }
 0x76a   : > { %v12102_v8 = vpop.eup %12101  ;;  %12123 = vpow2.f32 %v9622_v44  ;;  %18584 = vst [vmem:[#allocation118_spill] sm:$0xff] %v17008_v63  ;;  %v17010_v36 = vpop.f32.mrb[237].mxu1 }
 0x76b   : > { %v17004_v9 = vpop.eup %12103  ;;  %v7916_v62 = vmul.f32 %v12102_v8, %v16812_v46  ;;  %v8023_v16 = vpack.c.bf16 %v7915_v61, %v7911_v58  ;;  %18585 = vst [vmem:[#allocation84_spill] sm:$0xff] %v17010_v36  ;;  %12125 = vpow2.f32 %v9629_v27  ;;  %v17015_v33 = vpop.f32.mrb[110].mxu0  ;;  %v9627_v61 = vmul.f32 -1.442695, %v16998_v55  ;;  %v10845_v27 = vld [vmem:[#allocation8 + $0x184] ss:$8 sps:$4 sm:$0xff]  }
 0x76c   : > { %v17012_v29 = vpop.eup %12105  ;;  %18586 = vst [vmem:[#allocation119_spill] sm:$0xff] %v17015_v33  ;;  %v17017_v43 = vpop.f32.mrb[238].mxu1  ;;  %12127 = vpow2.f32 %v9623_v4  ;;  %8676 = vmatprep.subr.bf16.mxu0 %v10845_v27 }
 0x76d   : > { %18587 = vst [vmem:[#allocation120_spill] sm:$0xff] %v17017_v43  ;;  %v17019_v45 = vpop.eup %12107  ;;  %v8024_v20 = vpack.c.bf16 %v7916_v62, %v7912_v1  ;;  %v17021_v46 = vpop.f32.mrb[111].mxu0  ;;  %12129 = vpow2.f32 %v9632_v18  ;;  %8677 = vmatpush1.bf16.msra.mxu0 %v10843_v17 }
 0x76e   : > { %18588 = vst [vmem:[#allocation23_spill] sm:$0xff] %v17021_v46  ;;  %v17023_v44 = vpop.f32.mrb[239].mxu1  ;;  %v12110_v58 = vpop.eup %12109  ;;  %12131 = vpow2.f32 %v9626_v40 }
 0x76f   : > { %18589 = vst [vmem:[#allocation22_spill] sm:$0xff] %v17023_v44  ;;  %v17026_v8 = vpop.eup %12111  ;;  %v7530_v36 = vadd.f32 1.0, %v12110_v58  ;;  %8539 = vmatprep.mubr.bf16.mxu0 %v8024_v20  ;;  %12133 = vpow2.f32 %v9633_v54  ;;  %v17028_v18 = vpop.f32.mrb[112].mxu0 }
 0x770   : > { %v12114_v43 = vpop.eup %12113  ;;  %8540 = vmatmul.mubr.bf16.gmra.mrb[144].mxu0 %v8023_v16  ;;  %18590 = vst [vmem:[#allocation26_spill] sm:$0xff] %v17028_v18  ;;  %v17030_v46 = vpop.f32.mrb[240].mxu1 }
 0x771   : > { %v12116_v4 = vpop.eup %12115  ;;  %12135 = vrcp.f32 %v7530_v36  ;;  %v7539_v1 = vadd.f32 1.0, %v12114_v43  ;;  %18591 = vst [vmem:[#allocation27_spill] sm:$0xff] %v17030_v46  ;;  %v17032_v40 = vpop.f32.mrb[113].mxu0 }
 0x772   : > { %v12118_v62 = vpop.eup %12117  ;;  %v7533_v44 = vadd.f32 1.0, %v12116_v4  ;;  %12137 = vpow2.f32 %v9627_v61  ;;  %18592 = vst [vmem:[#allocation32_spill] sm:$0xff] %v17032_v40  ;;  %v17034_v20 = vpop.f32.mrb[241].mxu1  ;;  %v7919_v40 = vmul.f32 %v17012_v29, %v16834_v59  ;;  %v17111_v59 = vadd.f32 %v16807_v30, %v16556_v47 }
 0x773   : > { %v12120_v33 = vpop.eup %12119  ;;  %12139 = vrcp.f32 %v7539_v1  ;;  %v7540_v58 = vadd.f32 1.0, %v12118_v62  ;;  %18593 = vst [vmem:[#allocation31_spill] sm:$0xff] %v17034_v20  ;;  %v17036_v36 = vpop.f32.mrb[114].mxu0  ;;  %v17044_v62 = vadd.f32 %v16805_v0, %v16552_v38  ;;  %v17058_v0 = vadd.f32 %v16760_v56, %v16563_v21 }
 0x774   : > { %v12122_v16 = vpop.eup %12121  ;;  %12141 = vrcp.f32 %v7533_v44  ;;  %v7534_v54 = vadd.f32 1.0, %v12120_v33  ;;  %18594 = vst [vmem:[#allocation30_spill] sm:$0xff] %v17036_v36  ;;  %v17038_v43 = vpop.f32.mrb[242].mxu1  ;;  %18609 = vst [vmem:[#allocation61_spill] sm:$0xff] %v17111_v59  ;;  %v17125_v30 = vadd.f32 %v16866_v35, %v16559_v51  ;;  %v18614_v35 = vld [vmem:[#allocation20_spill] sm:$0xff] }
 0x775   : > { %18595 = vst [vmem:[#allocation34_spill] sm:$0xff] %v17038_v43  ;;  %v12124_v17 = vpop.eup %12123  ;;  %12143 = vrcp.f32 %v7540_v58  ;;  %v7543_v61 = vadd.f32 1.0, %v12122_v16  ;;  %v17040_v27 = vpop.f32.mrb[115].mxu0  ;;  %v17050_v43 = vadd.f32 %v16756_v23, %v16556_v47  ;;  %18599 = vst [vmem:[#allocation43_spill] sm:$0xff] %v17058_v0  ;;  %v9638_v63 = vmul.f32 -1.442695, %v17111_v59 }
 0x776   : > { %18596 = vst [vmem:[#allocation38_spill] sm:$0xff] %v17040_v27  ;;  %v12126_v4 = vpop.eup %12125  ;;  %12145 = vrcp.f32 %v7534_v54  ;;  %v7537_v1 = vadd.f32 1.0, %v12124_v17  ;;  %v17046_v20 = vpop.f32.mrb[243].mxu1  ;;  %v17054_v54 = vadd.f32 %v16818_v15, %v16559_v51  ;;  %18610 = vst [vmem:[#allocation62_spill] sm:$0xff] %v17125_v30  ;;  %v18663_v59 = vld [vmem:[#allocation104_spill] sm:$0xff] }
 0x777   : > { %18597 = vst [vmem:[#allocation40_spill] sm:$0xff] %v17046_v20  ;;  %v12128_v44 = vpop.eup %12127  ;;  %12147 = vrcp.f32 %v7543_v61  ;;  %v7544_v33 = vadd.f32 1.0, %v12126_v4  ;;  %18598 = vst [vmem:[#allocation41_spill] sm:$0xff] %v17050_v43  ;;  %v17062_v61 = vadd.f32 %v16827_v26, %v16552_v38  ;;  %v17067_v15 = vpop.f32.mrb[244].mxu1 }
 0x778   : > { %v12130_v58 = vpop.eup %12129  ;;  %12149 = vrcp.f32 %v7537_v1  ;;  %v7538_v16 = vadd.f32 1.0, %v12128_v44  ;;  %v9636_v1 = vmul.f32 -1.442695, %v17044_v62  ;;  %v17065_v44 = vpop.f32.mrb[116].mxu0  ;;  %18601 = vst [vmem:[#allocation47_spill] sm:$0xff] %v17067_v15 }
 0x779   : > { %v12132_v17 = vpop.eup %12131  ;;  %12151 = vrcp.f32 %v7544_v33  ;;  %v7547_v20 = vadd.f32 1.0, %v12130_v58  ;;  %18600 = vst [vmem:[#allocation46_spill] sm:$0xff] %v17065_v44  ;;  %v9630_v33 = vmul.f32 -1.442695, %v17050_v43  ;;  %v17074_v58 = vadd.f32 %v16772_v57, %v16556_v47  ;;  %v17076_v26 = vpop.f32.mrb[117].mxu0 }
 0x77a   : > { %v12134_v23 = vpop.eup %12133  ;;  %12153 = vrcp.f32 %v7538_v16  ;;  %v7541_v4 = vadd.f32 1.0, %v12132_v17  ;;  %18602 = vst [vmem:[#allocation48_spill] sm:$0xff] %v17076_v26  ;;  %v17078_v16 = vpop.f32.mrb[245].mxu1  ;;  %v9637_v44 = vmul.f32 -1.442695, %v17054_v54  ;;  %v17089_v26 = vadd.f32 %v16840_v11, %v16559_v51 }
 0x77b   : > { %v17069_v46 = vpop.eup %12135  ;;  %12155 = vrcp.f32 %v7547_v20  ;;  %v7548_v56 = vadd.f32 1.0, %v12134_v23  ;;  %18603 = vst [vmem:[#allocation50_spill] sm:$0xff] %v17078_v16  ;;  %v9631_v15 = vmul.f32 -1.442695, %v17058_v0  ;;  %v17082_v27 = vpop.f32.mrb[118].mxu0 }
 0x77c   : > { %v12138_v17 = vpop.eup %12137  ;;  %12157 = vrcp.f32 %v7541_v4  ;;  %18604 = vst [vmem:[#allocation53_spill] sm:$0xff] %v17082_v27  ;;  %v17084_v20 = vpop.f32.mrb[246].mxu1  ;;  %v9640_v57 = vmul.f32 -1.442695, %v17062_v61  ;;  %v9634_v11 = vmul.f32 -1.442695, %v17074_v58 }
 0x77d   : > { %18605 = vst [vmem:[#allocation54_spill] sm:$0xff] %v17084_v20  ;;  %v12140_v23 = vpop.eup %12139  ;;  %12159 = vrcp.f32 %v7548_v56  ;;  %v7542_v36 = vadd.f32 1.0, %v12138_v17  ;;  %v17091_v16 = vpop.f32.mrb[119].mxu0  ;;  %v17100_v56 = vadd.f32 %v16785_v24, %v16563_v21  ;;  %v7920_v24 = vmul.f32 %v17026_v8, %v16854_v3 }
 0x77e   : > { %18606 = vst [vmem:[#allocation55_spill] sm:$0xff] %v17091_v16  ;;  %v17093_v4 = vpop.eup %12141  ;;  %v7923_v27 = vmul.f32 %v12140_v23, %v16909_v10  ;;  %12161 = vpow2.f32 %v9636_v1  ;;  %v17102_v17 = vpop.f32.mrb[247].mxu1  ;;  %v17107_v16 = vadd.f32 %v16862_v41, %v16552_v38  ;;  %v17120_v23 = vmul.f32 %v16684_v37, %v16575_v48  ;;  %v10846_v48 = vld [vmem:[#allocation8 + $0x190] ss:$8 sps:$4 sm:$0xff]  }
 0x77f   : > { %18607 = vst [vmem:[#allocation58_spill] sm:$0xff] %v17102_v17  ;;  %v12144_v20 = vpop.eup %12143  ;;  %12163 = vrcp.f32 %v7542_v36  ;;  %v9641_v41 = vmul.f32 -1.442695, %v17089_v26  ;;  %v10848_v17 = vld [vmem:[#allocation8 + $0x194] ss:$8 sps:$4 sm:$0xff]   ;;  %v17134_v37 = vpop.f32.mrb[120].mxu0 }
 0x780   : > { %18608 = vst [vmem:[#allocation59_spill] sm:$0xff] %v17107_v16  ;;  %v17113_v10 = vpop.eup %12145  ;;  %v7924_v29 = vmul.f32 %v12144_v20, %v16917_v53  ;;  %12165 = vpow2.f32 %v9630_v33  ;;  %v8027_v1 = vpack.c.bf16 %v7923_v27, %v7919_v40  ;;  %v9635_v3 = vmul.f32 -1.442695, %v17100_v56  ;;  %18612 = vst [vmem:[#allocation67_spill] sm:$0xff] %v17134_v37  ;;  %v17136_v40 = vpop.f32.mrb[248].mxu1  ;;  %8678 = vmatprep.subr.bf16.mxu0 %v10848_v17 }
 0x781   : > { %v12148_v36 = vpop.eup %12147  ;;  %12167 = vpow2.f32 %v9637_v44  ;;  %v17132_v53 = vadd.f32 %v16820_v2, %v16563_v21  ;;  %18613 = vst [vmem:[#allocation68_spill] sm:$0xff] %v17136_v40  ;;  %v17140_v44 = vmul.f32 %v18614_v35, %v16589_v7  ;;  %v17145_v33 = vadd.f32 %v16877_v34, %v16552_v38  ;;  %v17147_v2 = vpop.f32.mrb[121].mxu0  ;;  %v18618_v40 = vld [vmem:[#allocation103_spill] sm:$0xff]  ;;  %v18619_v7 = vld [vmem:[#allocation102_spill] sm:$0xff]  ;;  %v18620_v35 = vld [vmem:[#allocation52_spill] sm:$0xff]  ;;  %8679 = vmatpush1.bf16.msra.mxu0 %v10846_v48 }
 0x782   : > { %v17127_v18 = vpop.eup %12149  ;;  %12169 = vpow2.f32 %v9631_v15  ;;  %v8028_v8 = vpack.c.bf16 %v7924_v29, %v7920_v24  ;;  %v9644_v15 = vmul.f32 -1.442695, %v17107_v16  ;;  %18615 = vst [vmem:[#allocation69_spill] sm:$0xff] %v17147_v2  ;;  %v17149_v20 = vpop.f32.mrb[249].mxu1  ;;  %v18617_v29 = vld [vmem:[#allocation42_spill] sm:$0xff]  ;;  %v18623_v2 = vld [vmem:[#allocation24_spill] sm:$0xff] }
 0x783   : > { %18611 = vst [vmem:[#allocation63_spill] sm:$0xff] %v17132_v53  ;;  %v12152_v27 = vpop.eup %12151  ;;  %12171 = vpow2.f32 %v9640_v57  ;;  %18616 = vst [vmem:[#allocation71_spill] sm:$0xff] %v17149_v20  ;;  %v17155_v37 = vmul.f32 %v18618_v40, %v18617_v29  ;;  %v17159_v57 = vmul.f32 %v18620_v35, %v18619_v7  ;;  %v17162_v34 = vpop.f32.mrb[122].mxu0  ;;  %v18624_v16 = vld [vmem:[#allocation39_spill] sm:$0xff]  ;;  %v18625_v40 = vld [vmem:[#allocation124_spill] sm:$0xff]  ;;  %v7927_v35 = vmul.f32 %v12148_v36, %v16933_v28 }
 0x784   : > { %v17151_v24 = vpop.eup %12153  ;;  %12173 = vpow2.f32 %v9634_v11  ;;  %8549 = vmatprep.mubr.bf16.mxu0 %v8028_v8  ;;  %18621 = vst [vmem:[#allocation74_spill] sm:$0xff] %v17162_v34  ;;  %v17164_v17 = vpop.f32.mrb[250].mxu1  ;;  %v17168_v0 = vmul.f32 %v18624_v16, %v18623_v2  ;;  %v18626_v29 = vld [vmem:[#allocation56_spill] sm:$0xff]  ;;  %v9645_v11 = vmul.f32 -1.442695, %v17125_v30 }
 0x785   : > { %18622 = vst [vmem:[#allocation75_spill] sm:$0xff] %v17164_v17  ;;  %v12156_v20 = vpop.eup %12155  ;;  %v17172_v43 = vmul.f32 %v18626_v29, %v18625_v40  ;;  %12175 = vpow2.f32 %v9641_v41  ;;  %8550 = vmatmul.mubr.bf16.gmra.mrb[148].mxu0 %v8027_v1  ;;  %v17175_v7 = vpop.f32.mrb[123].mxu0  ;;  %v9639_v16 = vmul.f32 -1.442695, %v17132_v53  ;;  %v10849_v2 = vld [vmem:[#allocation8 + $0x1a0] ss:$8 sps:$4 sm:$0xff]  }
 0x786   : > { %18627 = vst [vmem:[#allocation76_spill] sm:$0xff] %v17175_v7  ;;  %v17177_v8 = vpop.f32.mrb[251].mxu1  ;;  %v17179_v48 = vpop.eup %12157  ;;  %v7931_v17 = vmul.f32 %v12156_v20, %v16972_v42  ;;  %12177 = vpow2.f32 %v9635_v3  ;;  %v10851_v40 = vld [vmem:[#allocation8 + $0x1a4] ss:$8 sps:$4 sm:$0xff]   ;;  %v9648_v41 = vmul.f32 -1.442695, %v17145_v33  ;;  %v7928_v42 = vmul.f32 %v12152_v27, %v16952_v19 }
 0x787   : > { %18628 = vst [vmem:[#allocation79_spill] sm:$0xff] %v17177_v8  ;;  %v12160_v29 = vpop.eup %12159  ;;  %12179 = vpow2.f32 %v9644_v15  ;;  %v18629_v1 = vld [vmem:[#allocation49_spill] sm:$0xff]  ;;  %v17191_v8 = vadd.f32 %v16883_v12, %v16559_v51  ;;  %8680 = vmatprep.subr.bf16.mxu0 %v10851_v40  ;;  %v18632_v15 = vld [vmem:[#allocation126_spill] sm:$0xff]  ;;  %v18633_v53 = vld [vmem:[#allocation51_spill] sm:$0xff] }
 0x788   : > { %v17187_v7 = vadd.f32 %v18629_v1, %v16556_v47  ;;  %v12162_v28 = vpop.eup %12161  ;;  %v7932_v36 = vmul.f32 %v12160_v29, %v16987_v49  ;;  %12181 = vpow2.f32 %v9638_v63  ;;  %v8031_v3 = vpack.c.bf16 %v7931_v17, %v7927_v35  ;;  %8681 = vmatpush1.bf16.msra.mxu0 %v10849_v2  ;;  %v18635_v19 = vld [vmem:[#allocation122_spill] sm:$0xff]  ;;  %v17215_v17 = vpop.f32.mrb[252].mxu1  ;;  %v18639_v35 = vld [vmem:[#allocation44_spill] sm:$0xff] }
 0x789   : > { %18631 = vst [vmem:[#allocation81_spill] sm:$0xff] %v17191_v8  ;;  %v17195_v20 = vpop.eup %12163  ;;  %v17199_v34 = vmul.f32 %v16849_v13, %v18632_v15  ;;  %v7551_v1 = vadd.f32 1.0, %v12162_v28  ;;  %12183 = vpow2.f32 %v9645_v11  ;;  %v17203_v12 = vadd.f32 %v18633_v53, %v16563_v21  ;;  %v17213_v13 = vpop.f32.mrb[124].mxu0  ;;  %18638 = vst [vmem:[#allocation87_spill] sm:$0xff] %v17215_v17 }
 0x78a   : > { %18630 = vst [vmem:[#allocation36_spill] sm:$0xff] %v17187_v7  ;;  %v12166_v30 = vpop.eup %12165  ;;  %v17207_v49 = vmul.f32 %v16859_v6, %v18635_v19  ;;  %12185 = vpow2.f32 %v9639_v16  ;;  %v17211_v63 = vadd.f32 %v16889_v14, %v16552_v38  ;;  %v8032_v27 = vpack.c.bf16 %v7932_v36, %v7928_v42  ;;  %18637 = vst [vmem:[#allocation86_spill] sm:$0xff] %v17213_v13  ;;  %v17224_v16 = vpop.f32.mrb[125].mxu0  ;;  %v18642_v42 = vld [vmem:[#allocation106_spill] sm:$0xff]  ;;  %v18657_v13 = vld [vmem:[#allocation108_spill] sm:$0xff] }
 0x78b   : > { %18634 = vst [vmem:[#allocation82_spill] sm:$0xff] %v17203_v12  ;;  %v12168_v11 = vpop.eup %12167  ;;  %v17219_v53 = vmul.f32 %v16881_v50, %v18639_v35  ;;  %12187 = vrcp.f32 %v7551_v1  ;;  %v7545_v2 = vadd.f32 1.0, %v12166_v30  ;;  %v17222_v6 = vmul.f32 -1.442695, %v17187_v7  ;;  %18640 = vst [vmem:[#allocation88_spill] sm:$0xff] %v17224_v16  ;;  %v17226_v40 = vpop.f32.mrb[253].mxu1 }
 0x78c   : > { %18636 = vst [vmem:[#allocation83_spill] sm:$0xff] %v17211_v63  ;;  %18641 = vst [vmem:[#allocation89_spill] sm:$0xff] %v17226_v40  ;;  %v12170_v14 = vpop.eup %12169  ;;  %v7552_v29 = vadd.f32 1.0, %v12168_v11  ;;  %12189 = vpow2.f32 %v9648_v41  ;;  %v17229_v28 = vmul.f32 -1.442695, %v17191_v8  ;;  %v17233_v36 = vadd.f32 %v18642_v42, %v16556_v47  ;;  %8559 = vmatprep.mubr.bf16.mxu0 %v8032_v27  ;;  %v17235_v50 = vpop.f32.mrb[126].mxu0 }
 0x78d   : > { %18644 = vst [vmem:[#allocation91_spill] sm:$0xff] %v17235_v50  ;;  %v17237_v30 = vpop.f32.mrb[254].mxu1  ;;  %v12172_v15 = vpop.eup %12171  ;;  %12191 = vrcp.f32 %v7545_v2  ;;  %v7546_v1 = vadd.f32 1.0, %v12170_v14  ;;  %v17240_v19 = vmul.f32 -1.442695, %v17203_v12  ;;  %v17244_v41 = vadd.f32 %v16891_v39, %v16559_v51  ;;  %8560 = vmatmul.mubr.bf16.gmra.mrb[152].mxu0 %v8031_v3  ;;  %v18651_v39 = vld [vmem:[#allocation65_spill] sm:$0xff] }
 0x78e   : > { %18643 = vst [vmem:[#allocation90_spill] sm:$0xff] %v17233_v36  ;;  %18645 = vst [vmem:[#allocation92_spill] sm:$0xff] %v17237_v30  ;;  %v17246_v11 = vpop.f32.mrb[127].mxu0  ;;  %v12174_v35 = vpop.eup %12173  ;;  %12193 = vrcp.f32 %v7552_v29  ;;  %v7555_v27 = vadd.f32 1.0, %v12172_v15  ;;  %v17249_v42 = vmul.f32 -1.442695, %v17211_v63  ;;  %v17259_v3 = vadd.f32 %v18651_v39, %v16552_v38 }
 0x78f   : > { %18646 = vst [vmem:[#allocation93_spill] sm:$0xff] %v17244_v41  ;;  %18647 = vst [vmem:[#allocation94_spill] sm:$0xff] %v17246_v11  ;;  %v18648_v30 = vld [vmem:[#allocation107_spill] sm:$0xff]  ;;  %v17255_v14 = vpop.f32.mrb[255].mxu1  ;;  %v12176_v40 = vpop.eup %12175  ;;  %12195 = vrcp.f32 %v7546_v1  ;;  %v7549_v17 = vadd.f32 1.0, %v12174_v35  ;;  %v18653_v11 = vld [vmem:[#allocation21_spill] sm:$0xff] }
 0x790   : > { %v17253_v2 = vadd.f32 %v18648_v30, %v16563_v21  ;;  %18650 = vst [vmem:[#allocation96_spill] sm:$0xff] %v17255_v14  ;;  %18652 = vst [vmem:[#allocation97_spill] sm:$0xff] %v17259_v3  ;;  %v17263_v29 = vadd.f32 %v18653_v11, %v16556_v47  ;;  %v12178_v15 = vpop.eup %12177  ;;  %12197 = vrcp.f32 %v7555_v27  ;;  %v7556_v50 = vadd.f32 1.0, %v12176_v40  ;;  %v18655_v30 = vld [vmem:[#allocation110_spill] sm:$0xff]  ;;  %v18660_v12 = vld [vmem:[#allocation123_spill] sm:$0xff] }
 0x791   : > { %v17266_v16 = vmul.f32 -1.442695, %v17233_v36  ;;  %v17270_v14 = vadd.f32 %v18655_v30, %v16559_v51  ;;  %v12180_v1 = vpop.eup %12179  ;;  %12199 = vrcp.f32 %v7549_v17  ;;  %v7550_v35 = vadd.f32 1.0, %v12178_v15 }
 0x792   : > { %18649 = vst [vmem:[#allocation95_spill] sm:$0xff] %v17253_v2  ;;  %18654 = vst [vmem:[#allocation98_spill] sm:$0xff] %v17263_v29  ;;  %v17273_v39 = vmul.f32 -1.442695, %v17244_v41  ;;  %v17277_v11 = vadd.f32 %v18657_v13, %v16563_v21  ;;  %v12182_v63 = vpop.eup %12181  ;;  %12201 = vrcp.f32 %v7556_v50  ;;  %v7559_v40 = vadd.f32 1.0, %v12180_v1  ;;  %v18661_v50 = vld [vmem:[#allocation17_spill] sm:$0xff] }
 0x793   : > { %18656 = vst [vmem:[#allocation99_spill] sm:$0xff] %v17270_v14  ;;  %v17280_v27 = vmul.f32 -1.442695, %v17253_v2  ;;  %v17284_v30 = vadd.f32 %v16935_v22, %v16552_v38  ;;  %v12184_v36 = vpop.eup %12183  ;;  %12203 = vrcp.f32 %v7550_v35  ;;  %v7553_v17 = vadd.f32 1.0, %v12182_v63  ;;  %v18673_v21 = vld [vmem:[#allocation66_spill] sm:$0xff] }
 0x794   : > { %18658 = vst [vmem:[#allocation100_spill] sm:$0xff] %v17277_v11  ;;  %v17287_v15 = vmul.f32 -1.442695, %v17259_v3  ;;  %v17290_v41 = vmul.f32 -1.442695, %v17263_v29  ;;  %v12186_v13 = vpop.eup %12185  ;;  %v17294_v1 = vmul.f32 %v18661_v50, %v18660_v12  ;;  %12205 = vrcp.f32 %v7559_v40  ;;  %v18662_v3 = vld [vmem:[#allocation57_spill] sm:$0xff] }
 0x795   : > { %18659 = vst [vmem:[#allocation101_spill] sm:$0xff] %v17284_v30  ;;  %v7560_v2 = vadd.f32 1.0, %v12184_v36  ;;  %v17297_v8 = vmul.f32 -1.442695, %v17270_v14  ;;  %v12188_v22 = vpop.eup %12187  ;;  %12207 = vrcp.f32 %v7553_v17  ;;  %v7554_v35 = vadd.f32 1.0, %v12186_v13  ;;  %v18665_v40 = vld [vmem:[#allocation125_spill] sm:$0xff] }
 0x796   : > { %v17300_v63 = vmul.f32 -1.442695, %v17277_v11  ;;  %v17304_v29 = vadd.f32 %v18662_v3, %v16556_v47  ;;  %v12190_v7 = vpop.eup %12189  ;;  %v17308_v12 = vmul.f32 %v16958_v60, %v18663_v59  ;;  %v17312_v36 = vmul.f32 %v16978_v25, %v18665_v40  ;;  %v10854_v13 = vld [vmem:[#allocation8 + $0x1b4] ss:$8 sps:$4 sm:$0xff]   ;;  %v18668_v3 = vld [vmem:[#allocation105_spill] sm:$0xff]  ;;  %v18671_v40 = vld [vmem:[#allocation64_spill] sm:$0xff] }
 0x797   : > { %12209 = vrcp.f32 %v7560_v2  ;;  %v17315_v17 = vmul.f32 -1.442695, %v17284_v30  ;;  %v12192_v50 = vpop.eup %12191  ;;  %v18666_v11 = vld [vmem:[#allocation35_spill] sm:$0xff]  ;;  %v17323_v47 = vmul.f32 %v17004_v9, %v18668_v3  ;;  %v7563_v60 = vadd.f32 1.0, %v12190_v7  ;;  %v18669_v25 = vld [vmem:[#allocation45_spill] sm:$0xff]  ;;  %8682 = vmatprep.subr.bf16.mxu0 %v10854_v13 }
 0x798   : > { %18664 = vst [vmem:[#allocation113_spill] sm:$0xff] %v17308_v12  ;;  %v17319_v14 = vmul.f32 %v16989_v31, %v18666_v11  ;;  %12211 = vrcp.f32 %v7554_v35  ;;  %v10852_v59 = vld [vmem:[#allocation8 + $0x1b0] ss:$8 sps:$4 sm:$0xff]   ;;  %v12194_v38 = vpop.eup %12193  ;;  %v17327_v2 = vmul.f32 %v17019_v45, %v18669_v25  ;;  %v17331_v30 = vmul.f32 %v17069_v46, %v18671_v40 }
 0x799   : > { %v17335_v31 = vmul.f32 %v17093_v4, %v18673_v21  ;;  %12213 = vpow2.f32 %v17222_v6  ;;  %v12196_v9 = vpop.eup %12195  ;;  %v17340_v7 = vmul.f32 %v17113_v10, %v16926_v5  ;;  %v17344_v45 = vmul.f32 %v17127_v18, %v16944_v52  ;;  %8683 = vmatpush1.bf16.msra.mxu0 %v10852_v59  ;;  %v18678_v4 = vld [vmem:[#allocation85_spill] sm:$0xff]  ;;  %v10858_v59 = vld [vmem:[#allocation8 + $0x1d0] ss:$8 sps:$4 sm:$0xff]  }
 0x79a   : > { %18667 = vst [vmem:[#allocation115_spill] sm:$0xff] %v17319_v14  ;;  %18670 = vst [vmem:[#allocation116_spill] sm:$0xff] %v17327_v2  ;;  %v17348_v46 = vmul.f32 %v17151_v24, %v16963_v32  ;;  %12215 = vrcp.f32 %v7563_v60  ;;  %v12198_v21 = vpop.eup %12197  ;;  %v17352_v6 = vmul.f32 %v17179_v48, %v18678_v4  ;;  %v17356_v11 = vmul.f32 %v17195_v20, %v16998_v55  ;;  %v10857_v52 = vld [vmem:[#allocation8 + $0x1c4] ss:$8 sps:$4 sm:$0xff]   ;;  %v10855_v10 = vld [vmem:[#allocation8 + $0x1c0] ss:$8 sps:$4 sm:$0xff]  }
 0x79b   : > { %18672 = vst [vmem:[#allocation117_spill] sm:$0xff] %v17331_v30  ;;  %18674 = vst [vmem:[#allocation28_spill] sm:$0xff] %v17335_v31  ;;  %v7935_v5 = vmul.f32 %v12188_v22, %v17044_v62  ;;  %12217 = vpow2.f32 %v17229_v28  ;;  %v12200_v18 = vpop.eup %12199  ;;  %v7939_v32 = vmul.f32 %v12198_v21, %v17062_v61  ;;  %v7936_v55 = vmul.f32 %v12194_v38, %v17054_v54  ;;  %v18685_v25 = vld [vmem:[#allocation43_spill] sm:$0xff]  ;;  %v18703_v48 = vld [vmem:[#allocation118_spill] sm:$0xff] }
 0x79c   : > { %18675 = vst [vmem:[#allocation20_spill] sm:$0xff] %v17340_v7  ;;  %18676 = vst [vmem:[#allocation42_spill] sm:$0xff] %v17344_v45  ;;  %12219 = vpow2.f32 %v17240_v19  ;;  %v12202_v35 = vpop.eup %12201  ;;  %v17368_v62 = vmul.f32 %v12200_v18, %v17074_v58  ;;  %8684 = vmatprep.subr.bf16.mxu0 %v10857_v52  ;;  %v10860_v58 = vld [vmem:[#allocation8 + $0x1d4] ss:$8 sps:$4 sm:$0xff]   ;;  %v17396_v40 = vmul.f32 %v12196_v9, %v18685_v25  ;;  %v10863_v52 = vld [vmem:[#allocation8 + $0x1e4] ss:$8 sps:$4 sm:$0xff]  }
 0x79d   : > { %18677 = vst [vmem:[#allocation103_spill] sm:$0xff] %v17348_v46  ;;  %18679 = vst [vmem:[#allocation102_spill] sm:$0xff] %v17352_v6  ;;  %12221 = vpow2.f32 %v17249_v42  ;;  %v12204_v20 = vpop.eup %12203  ;;  %v7940_v28 = vmul.f32 %v12202_v35, %v17089_v26  ;;  %v8035_v19 = vpack.c.bf16 %v7939_v32, %v7935_v5  ;;  %8685 = vmatpush1.bf16.msra.mxu0 %v10855_v10  ;;  %v9654_v5 = vmul.f32 -1.442695, %v17304_v29  ;;  %v10861_v35 = vld [vmem:[#allocation8 + $0x1e0] ss:$8 sps:$4 sm:$0xff]  }
 0x79e   : > { %18680 = vst [vmem:[#allocation52_spill] sm:$0xff] %v17356_v11  ;;  %18681 = vst [vmem:[#allocation24_spill] sm:$0xff] %v17368_v62  ;;  %12223 = vpow2.f32 %v17266_v16  ;;  %v12206_v38 = vpop.eup %12205  ;;  %v17378_v54 = vmul.f32 %v12204_v20, %v17100_v56  ;;  %v18683_v16 = vld [vmem:[#allocation41_spill] sm:$0xff]  ;;  %8686 = vmatprep.subr.bf16.mxu0 %v10860_v58  ;;  %v18687_v20 = vld [vmem:[#allocation59_spill] sm:$0xff] }
 0x79f   : > { %12225 = vpow2.f32 %v17273_v39  ;;  %v17385_v13 = vpop.eup %12207  ;;  %v17388_v3 = vmul.f32 %v12192_v50, %v18683_v16  ;;  %v8036_v60 = vpack.c.bf16 %v7940_v28, %v7936_v55  ;;  %18686 = vst [vmem:[#allocation56_spill] sm:$0xff] %v17396_v40  ;;  %v17418_v28 = vmul.f32 %v12206_v38, %v18687_v20  ;;  %v18690_v20 = vld [vmem:[#allocation109_spill] sm:$0xff]  ;;  %v18704_v24 = vld [vmem:[#allocation111_spill] sm:$0xff]  ;;  %v18736_v46 = vld [vmem:[#allocation46_spill] sm:$0xff] }
 0x7a0   : > { %18682 = vst [vmem:[#allocation39_spill] sm:$0xff] %v17378_v54  ;;  %12227 = vpow2.f32 %v17280_v27  ;;  %v18698_v42 = vld [vmem:[#allocation61_spill] sm:$0xff]  ;;  %v18719_v54 = vld [vmem:[#allocation98_spill] sm:$0xff] }
 0x7a1   : > { %18684 = vst [vmem:[#allocation124_spill] sm:$0xff] %v17388_v3  ;;  %v17393_v39 = vpop.eup %12209  ;;  %12229 = vpow2.f32 %v17287_v15  ;;  %8569 = vmatprep.mubr.bf16.mxu0 %v8036_v60  ;;  %8687 = vmatpush1.bf16.msra.mxu0 %v10858_v59  ;;  %v10864_v60 = vld [vmem:[#allocation8 + $0x1f0] ss:$8 sps:$4 sm:$0xff]   ;;  %v18737_v31 = vld [vmem:[#allocation101_spill] sm:$0xff] }
 0x7a2   : > { %v17403_v27 = vpop.eup %12211  ;;  %12231 = vpow2.f32 %v17290_v41  ;;  %8570 = vmatmul.mubr.bf16.gmra.mrb[156].mxu0 %v8035_v19  ;;  %8688 = vmatprep.subr.bf16.mxu0 %v10863_v52  ;;  %v10866_v19 = vld [vmem:[#allocation8 + $0x1f4] ss:$8 sps:$4 sm:$0xff]   ;;  %v18692_v41 = vld [vmem:[#allocation72_spill] sm:$0xff] }
 0x7a3   : > { %v12214_v15 = vpop.eup %12213  ;;  %12233 = vpow2.f32 %v17297_v8  ;;  %v18688_v52 = vld [vmem:[#allocation78_spill] sm:$0xff] }
 0x7a4   : > { %v12216_v32 = vpop.eup %12215  ;;  %v7557_v10 = vadd.f32 1.0, %v12214_v15  ;;  %12235 = vpow2.f32 %v17300_v63 }
 0x7a5   : > { %v12218_v55 = vpop.eup %12217  ;;  %v17421_v8 = vmul.f32 %v12216_v32, %v17145_v33  ;;  %12237 = vpow2.f32 %v17315_v17  ;;  %8689 = vmatpush1.bf16.msra.mxu0 %v10861_v35  ;;  %v17428_v32 = vadd.f32 %v18688_v52, %v16559_v51 }
 0x7a6   : > { %v12220_v58 = vpop.eup %12219  ;;  %12239 = vrcp.f32 %v7557_v10  ;;  %v7564_v16 = vadd.f32 1.0, %v12218_v55  ;;  %8690 = vmatprep.subr.bf16.mxu0 %v10866_v19  ;;  %v18689_v55 = vld [vmem:[#allocation18_spill] sm:$0xff] }
 0x7a7   : > { %v12222_v59 = vpop.eup %12221  ;;  %v7558_v25 = vadd.f32 1.0, %v12220_v58  ;;  %12241 = vpow2.f32 %v9654_v5  ;;  %v17432_v5 = vadd.f32 %v18690_v20, %v18689_v55  ;;  %v18691_v58 = vld [vmem:[#allocation37_spill] sm:$0xff]  ;;  %v17476_v63 = vadd.f32 %v18704_v24, %v18689_v55  ;;  %v18711_v24 = vld [vmem:[#allocation119_spill] sm:$0xff] }
 0x7a8   : > { %v12224_v38 = vpop.eup %12223  ;;  %12243 = vrcp.f32 %v7564_v16  ;;  %v7567_v33 = vadd.f32 1.0, %v12222_v59  ;;  %v17436_v19 = vadd.f32 %v18692_v41, %v18691_v58  ;;  %v9661_v41 = vmul.f32 -1.442695, %v17428_v32 }
 0x7a9   : > { %v12226_v15 = vpop.eup %12225  ;;  %12245 = vrcp.f32 %v7558_v25  ;;  %v7561_v17 = vadd.f32 1.0, %v12224_v38  ;;  %8691 = vmatpush1.bf16.msra.mxu0 %v10864_v60  ;;  %v18693_v25 = vld [vmem:[#allocation19_spill] sm:$0xff]  ;;  %v18694_v38 = vld [vmem:[#allocation60_spill] sm:$0xff]  ;;  %v17492_v40 = vadd.f32 %v18711_v24, %v18691_v58  ;;  %v18713_v24 = vpack.c.bf16 %v17421_v8, %v17418_v28 }
 0x7aa   : > { %v12228_v10 = vpop.eup %12227  ;;  %12247 = vrcp.f32 %v7567_v33  ;;  %v7568_v35 = vadd.f32 1.0, %v12226_v15  ;;  %v17440_v18 = vadd.f32 %v18694_v38, %v18693_v25  ;;  %v18695_v15 = vld [vmem:[#allocation114_spill] sm:$0xff]  ;;  %v9664_v38 = vmul.f32 -1.442695, %v17436_v19 }
 0x7ab   : > { %v12230_v16 = vpop.eup %12229  ;;  %12249 = vrcp.f32 %v7561_v17  ;;  %v7562_v59 = vadd.f32 1.0, %v12228_v10  ;;  %v17444_v9 = vadd.f32 %v18695_v15, %v16559_v51  ;;  %v9655_v10 = vmul.f32 -1.442695, %v17432_v5  ;;  %v18696_v15 = vld [vmem:[#allocation73_spill] sm:$0xff] }
 0x7ac   : > { %v12232_v52 = vpop.eup %12231  ;;  %12251 = vrcp.f32 %v7568_v35  ;;  %v7571_v33 = vadd.f32 1.0, %v12230_v16  ;;  %v9658_v16 = vmul.f32 -1.442695, %v17440_v18  ;;  %v17452_v21 = vadd.f32 %v18696_v15, %v18689_v55  ;;  %v18702_v15 = vld [vmem:[#allocation70_spill] sm:$0xff] }
 0x7ad   : > { %v12234_v20 = vpop.eup %12233  ;;  %12253 = vrcp.f32 %v7562_v59  ;;  %v7565_v4 = vadd.f32 1.0, %v12232_v52  ;;  %v9665_v56 = vmul.f32 -1.442695, %v17444_v9  ;;  %v17468_v61 = vadd.f32 %v18702_v15, %v18693_v25  ;;  %v18714_v15 = vld [vmem:[#allocation83_spill] sm:$0xff] }
 0x7ae   : > { %v12236_v60 = vpop.eup %12235  ;;  %12255 = vrcp.f32 %v7571_v33  ;;  %v7572_v17 = vadd.f32 1.0, %v12234_v20  ;;  %v18697_v33 = vld [vmem:[#allocation80_spill] sm:$0xff]  ;;  %v17585_v11 = vadd.f32 %v18736_v46, %v18691_v58 }
 0x7af   : > { %v12238_v50 = vpop.eup %12237  ;;  %12257 = vrcp.f32 %v7565_v4  ;;  %v7566_v35 = vadd.f32 1.0, %v12236_v60  ;;  %v17457_v20 = vadd.f32 %v18697_v33, %v18691_v58  ;;  %v17461_v4 = vmul.f32 %v17385_v13, %v18698_v42  ;;  %v18700_v60 = vld [vmem:[#allocation36_spill] sm:$0xff]  ;;  %v18705_v13 = vld [vmem:[#allocation62_spill] sm:$0xff] }
 0x7b0   : > { %v12240_v59 = vpop.eup %12239  ;;  %12259 = vrcp.f32 %v7572_v17  ;;  %v7575_v52 = vadd.f32 1.0, %v12238_v50  ;;  %v17472_v33 = vadd.f32 %v18703_v48, %v16559_v51  ;;  %v18709_v48 = vld [vmem:[#allocation82_spill] sm:$0xff]  ;;  %v18741_v46 = vld [vmem:[#allocation48_spill] sm:$0xff] }
 0x7b1   : > { %v12242_v26 = vpop.eup %12241  ;;  %18699 = vst [vmem:[#allocation49_spill] sm:$0xff] %v17461_v4  ;;  %v17464_v22 = vmul.f32 %v12240_v59, %v18700_v60  ;;  %12261 = vrcp.f32 %v7566_v35  ;;  %v7944_v59 = vmul.f32 %v17393_v39, %v18705_v13  ;;  %v18706_v35 = vld [vmem:[#allocation81_spill] sm:$0xff]  ;;  %v17603_v14 = vadd.f32 %v18741_v46, %v16559_v51 }
 0x7b2   : > { %v12244_v50 = vpop.eup %12243  ;;  %12263 = vrcp.f32 %v7575_v52  ;;  %v7569_v17 = vadd.f32 1.0, %v12242_v26  ;;  %v18707_v26 = vld [vmem:[#allocation63_spill] sm:$0xff]  ;;  %v18715_v4 = vld [vmem:[#allocation97_spill] sm:$0xff] }
 0x7b3   : > { %18701 = vst [vmem:[#allocation126_spill] sm:$0xff] %v17464_v22  ;;  %v12246_v42 = vpop.eup %12245  ;;  %v7948_v60 = vmul.f32 %v12244_v50, %v18706_v35  ;;  %12265 = vpow2.f32 %v9661_v41  ;;  %v17485_v3 = vmul.f32 %v17403_v27, %v18707_v26  ;;  %v9659_v41 = vmul.f32 -1.442695, %v17452_v21  ;;  %v18712_v27 = vld [vmem:[#allocation77_spill] sm:$0xff] }
 0x7b4   : > { %v12248_v52 = vpop.eup %12247  ;;  %v17488_v62 = vmul.f32 %v12246_v42, %v18709_v48  ;;  %12267 = vrcp.f32 %v7569_v17  ;;  %v9668_v35 = vmul.f32 -1.442695, %v17457_v20  ;;  %v17498_v26 = vadd.f32 %v18712_v27, %v18693_v25 }
 0x7b5   : > { %18708 = vst [vmem:[#allocation51_spill] sm:$0xff] %v17485_v3  ;;  %v12250_v39 = vpop.eup %12249  ;;  %12269 = vpow2.f32 %v9655_v10  ;;  %v8040_v50 = vpack.c.bf16 %v7948_v60, %v7944_v59  ;;  %v9662_v48 = vmul.f32 -1.442695, %v17468_v61  ;;  %v9669_v59 = vmul.f32 -1.442695, %v17472_v33  ;;  %v18717_v3 = vld [vmem:[#allocation90_spill] sm:$0xff] }
 0x7b6   : > { %18710 = vst [vmem:[#allocation122_spill] sm:$0xff] %v17488_v62  ;;  %v12252_v13 = vpop.eup %12251  ;;  %12271 = vpow2.f32 %v9664_v38  ;;  %v9663_v38 = vmul.f32 -1.442695, %v17476_v63  ;;  %v9672_v60 = vmul.f32 -1.442695, %v17492_v40  ;;  %v7951_v17 = vmul.f32 %v12248_v52, %v18714_v15  ;;  %v18722_v52 = vld [vmem:[#allocation99_spill] sm:$0xff] }
 0x7b7   : > { %v12254_v42 = vpop.eup %12253  ;;  %12273 = vpow2.f32 %v9658_v16  ;;  %8579 = vmatprep.mubr.bf16.mxu0 %v8040_v50  ;;  %v18716_v50 = vld [vmem:[#allocation23_spill] sm:$0xff]  ;;  %v17516_v62 = vmul.f32 %v12250_v39, %v18717_v3  ;;  %v9666_v28 = vmul.f32 -1.442695, %v17498_v26  ;;  %v18725_v3 = vld [vmem:[#allocation100_spill] sm:$0xff] }
 0x7b8   : > { %v12256_v10 = vpop.eup %12255  ;;  %12275 = vpow2.f32 %v9665_v56  ;;  %8580 = vmatmul.mubr.bf16.gmra.mrb[160].mxu0 %v18713_v24  ;;  %v17513_v22 = vadd.f32 %v18716_v50, %v16559_v51  ;;  %v18721_v24 = vld [vmem:[#allocation93_spill] sm:$0xff]  ;;  %v18723_v50 = vld [vmem:[#allocation95_spill] sm:$0xff] }
 0x7b9   : > { %v12258_v27 = vpop.eup %12257  ;;  %v7955_v16 = vmul.f32 %v12256_v10, %v18715_v4  ;;  %12277 = vpow2.f32 %v9659_v41  ;;  %18718 = vst [vmem:[#allocation44_spill] sm:$0xff] %v17516_v62  ;;  %v7952_v15 = vmul.f32 %v12252_v13, %v18721_v24  ;;  %v17527_v6 = vmul.f32 %v12254_v42, %v18723_v50 }
 0x7ba   : > { %v12260_v56 = vpop.eup %12259  ;;  %v17519_v45 = vmul.f32 %v12258_v27, %v18719_v54  ;;  %12279 = vpow2.f32 %v9668_v35  ;;  %v9673_v13 = vmul.f32 -1.442695, %v17513_v22  ;;  %v18734_v54 = vld [vmem:[#allocation38_spill] sm:$0xff] }
 0x7bb   : > { %v12262_v8 = vpop.eup %12261  ;;  %v7956_v4 = vmul.f32 %v12260_v56, %v18722_v52  ;;  %12281 = vpow2.f32 %v9662_v48  ;;  %v8043_v41 = vpack.c.bf16 %v7955_v16, %v7951_v17  ;;  %18724 = vst [vmem:[#allocation107_spill] sm:$0xff] %v17527_v6 }
 0x7bc   : > { %18720 = vst [vmem:[#allocation106_spill] sm:$0xff] %v17519_v45  ;;  %v17524_v10 = vpop.eup %12263  ;;  %v17530_v39 = vmul.f32 %v12262_v8, %v18725_v3  ;;  %12283 = vpow2.f32 %v9669_v59  ;;  %v18727_v3 = vld [vmem:[#allocation112_spill] sm:$0xff] }
 0x7bd   : > { %v12266_v35 = vpop.eup %12265  ;;  %12285 = vpow2.f32 %v9663_v38  ;;  %v8044_v27 = vpack.c.bf16 %v7956_v4, %v7952_v15 }
 0x7be   : > { %18726 = vst [vmem:[#allocation65_spill] sm:$0xff] %v17530_v39  ;;  %v17535_v56 = vpop.eup %12267  ;;  %v7576_v17 = vadd.f32 1.0, %v12266_v35  ;;  %12287 = vpow2.f32 %v9672_v60 }
 0x7bf   : > { %v12270_v48 = vpop.eup %12269  ;;  %12289 = vpow2.f32 %v9666_v28  ;;  %8589 = vmatprep.mubr.bf16.mxu0 %v8044_v27  ;;  %v17541_v28 = vadd.f32 %v18727_v3, %v18689_v55  ;;  %v17596_v7 = vmul.f32 %v17535_v56, %v17304_v29 }
 0x7c0   : > { %v12272_v16 = vpop.eup %12271  ;;  %12291 = vrcp.f32 %v7576_v17  ;;  %v7570_v59 = vadd.f32 1.0, %v12270_v48  ;;  %8590 = vmatmul.mubr.bf16.gmra.mrb[164].mxu0 %v8043_v41 }
 0x7c1   : > { %v12274_v8 = vpop.eup %12273  ;;  %v7579_v24 = vadd.f32 1.0, %v12272_v16  ;;  %12293 = vpow2.f32 %v9673_v13  ;;  %v18728_v13 = vld [vmem:[#allocation26_spill] sm:$0xff]  ;;  %v18729_v16 = vld [vmem:[#allocation16_spill] sm:$0xff]  ;;  %v9667_v3 = vmul.f32 -1.442695, %v17541_v28  ;;  %18739 = vst [vmem:[#allocation21_spill] sm:$0xff] %v17596_v7 }
 0x7c2   : > { %v12276_v38 = vpop.eup %12275  ;;  %12295 = vrcp.f32 %v7570_v59  ;;  %v7573_v15 = vadd.f32 1.0, %v12274_v8  ;;  %v17545_v48 = vadd.f32 %v18728_v13, %v18691_v58  ;;  %v17549_v59 = vadd.f32 %v18729_v16, %v18693_v25  ;;  %v18761_v7 = vld [vmem:[#allocation86_spill] sm:$0xff] }
 0x7c3   : > { %v12278_v52 = vpop.eup %12277  ;;  %12297 = vrcp.f32 %v7579_v24  ;;  %v7580_v4 = vadd.f32 1.0, %v12276_v38  ;;  %v18730_v38 = vld [vmem:[#allocation32_spill] sm:$0xff] }
 0x7c4   : > { %v12280_v60 = vpop.eup %12279  ;;  %12299 = vrcp.f32 %v7573_v15  ;;  %v7574_v50 = vadd.f32 1.0, %v12278_v52  ;;  %v17553_v15 = vadd.f32 %v18730_v38, %v16559_v51  ;;  %v18731_v52 = vld [vmem:[#allocation84_spill] sm:$0xff] }
 0x7c5   : > { %v12282_v35 = vpop.eup %12281  ;;  %12301 = vrcp.f32 %v7580_v4  ;;  %v7583_v27 = vadd.f32 1.0, %v12280_v60  ;;  %v17557_v4 = vadd.f32 %v18731_v52, %v18689_v55  ;;  %v17570_v52 = vadd.f32 %v18734_v54, %v16559_v51  ;;  %v18735_v54 = vld [vmem:[#allocation22_spill] sm:$0xff] }
 0x7c6   : > { %v12284_v41 = vpop.eup %12283  ;;  %12303 = vrcp.f32 %v7574_v50  ;;  %v7577_v17 = vadd.f32 1.0, %v12282_v35  ;;  %v18732_v35 = vld [vmem:[#allocation30_spill] sm:$0xff]  ;;  %v17579_v39 = vadd.f32 %v18735_v54, %v18689_v55  ;;  %v18738_v54 = vld [vmem:[#allocation27_spill] sm:$0xff] }
 0x7c7   : > { %v12286_v8 = vpop.eup %12285  ;;  %12305 = vrcp.f32 %v7583_v27  ;;  %v7584_v24 = vadd.f32 1.0, %v12284_v41  ;;  %v17562_v13 = vadd.f32 %v18732_v35, %v18691_v58  ;;  %v18733_v41 = vld [vmem:[#allocation120_spill] sm:$0xff]  ;;  %v9670_v35 = vmul.f32 -1.442695, %v17549_v59 }
 0x7c8   : > { %v12288_v60 = vpop.eup %12287  ;;  %12307 = vrcp.f32 %v7577_v17  ;;  %v7578_v50 = vadd.f32 1.0, %v12286_v8  ;;  %v17566_v38 = vadd.f32 %v18733_v41, %v18693_v25  ;;  %v9676_v8 = vmul.f32 -1.442695, %v17545_v48 }
 0x7c9   : > { %v12290_v16 = vpop.eup %12289  ;;  %12309 = vrcp.f32 %v7584_v24  ;;  %v7587_v27 = vadd.f32 1.0, %v12288_v60  ;;  %v9677_v24 = vmul.f32 -1.442695, %v17553_v15  ;;  %v9671_v60 = vmul.f32 -1.442695, %v17557_v4 }
 0x7ca   : > { %v12292_v42 = vpop.eup %12291  ;;  %12311 = vrcp.f32 %v7578_v50  ;;  %v7581_v17 = vadd.f32 1.0, %v12290_v16  ;;  %v9680_v6 = vmul.f32 -1.442695, %v17562_v13  ;;  %v9674_v16 = vmul.f32 -1.442695, %v17566_v38 }
 0x7cb   : > { %v12294_v62 = vpop.eup %12293  ;;  %12313 = vrcp.f32 %v7587_v27  ;;  %v9681_v27 = vmul.f32 -1.442695, %v17570_v52  ;;  %v17592_v30 = vadd.f32 %v18738_v54, %v18693_v25  ;;  %v9675_v56 = vmul.f32 -1.442695, %v17579_v39 }
 0x7cc   : > { %v12296_v45 = vpop.eup %12295  ;;  %12315 = vrcp.f32 %v7581_v17  ;;  %v7588_v41 = vadd.f32 1.0, %v12294_v62  ;;  %v7959_v62 = vmul.f32 %v17524_v10, %v18737_v31 }
 0x7cd   : > { %v12298_v50 = vpop.eup %12297  ;;  %12317 = vpow2.f32 %v9667_v3  ;;  %v17608_v54 = vmul.f32 %v12296_v45, %v17432_v5 }
 0x7ce   : > { %v12300_v2 = vpop.eup %12299  ;;  %v7963_v17 = vmul.f32 %v12298_v50, %v17436_v19  ;;  %12319 = vrcp.f32 %v7588_v41  ;;  %v7960_v19 = vmul.f32 %v12292_v42, %v17428_v32 }
 0x7cf   : > { %v12302_v3 = vpop.eup %12301  ;;  %v17599_v12 = vmul.f32 %v12300_v2, %v17440_v18  ;;  %12321 = vpow2.f32 %v9676_v8  ;;  %v18742_v8 = vld [vmem:[#allocation31_spill] sm:$0xff] }
 0x7d0   : > { %v12304_v31 = vpop.eup %12303  ;;  %v7964_v10 = vmul.f32 %v12302_v3, %v17444_v9  ;;  %12323 = vpow2.f32 %v9670_v35  ;;  %v8047_v41 = vpack.c.bf16 %v7963_v17, %v7959_v62  ;;  %v9684_v9 = vmul.f32 -1.442695, %v17585_v11 }
 0x7d1   : > { %18740 = vst [vmem:[#allocation110_spill] sm:$0xff] %v17599_v12  ;;  %v12306_v50 = vpop.eup %12305  ;;  %v17611_v29 = vmul.f32 %v12304_v31, %v17452_v21  ;;  %12325 = vpow2.f32 %v9677_v24  ;;  %v17619_v45 = vadd.f32 %v18742_v8, %v18689_v55  ;;  %v9678_v35 = vmul.f32 -1.442695, %v17592_v30 }
 0x7d2   : > { %v12308_v18 = vpop.eup %12307  ;;  %12327 = vpow2.f32 %v9671_v60  ;;  %v8048_v32 = vpack.c.bf16 %v7964_v10, %v7960_v19  ;;  %v9685_v60 = vmul.f32 -1.442695, %v17603_v14  ;;  %v7967_v62 = vmul.f32 %v12306_v50, %v17457_v20 }
 0x7d3   : > { %v12310_v42 = vpop.eup %12309  ;;  %12329 = vpow2.f32 %v9680_v6  ;;  %v17630_v46 = vmul.f32 %v12308_v18, %v17468_v61  ;;  %v9679_v31 = vmul.f32 -1.442695, %v17619_v45  ;;  %v17718_v12 = vadd.f32 %v18761_v7, %v18691_v58  ;;  %v18770_v7 = vld [vmem:[#allocation87_spill] sm:$0xff] }
 0x7d4   : > { %v17623_v5 = vpop.eup %12311  ;;  %12331 = vpow2.f32 %v9674_v16  ;;  %8599 = vmatprep.mubr.bf16.mxu0 %v8048_v32  ;;  %v7968_v20 = vmul.f32 %v12310_v42, %v17472_v33  ;;  %v18745_v33 = vld [vmem:[#allocation53_spill] sm:$0xff] }
 0x7d5   : > { %v12314_v24 = vpop.eup %12313  ;;  %12333 = vpow2.f32 %v9681_v27  ;;  %8600 = vmatmul.mubr.bf16.gmra.mrb[168].mxu0 %v8047_v41  ;;  %18743 = vst [vmem:[#allocation108_spill] sm:$0xff] %v17630_v46 }
 0x7d6   : > { %v12316_v6 = vpop.eup %12315  ;;  %v7971_v17 = vmul.f32 %v12314_v24, %v17492_v40  ;;  %12335 = vpow2.f32 %v9675_v56 }
 0x7d7   : > { %v12318_v3 = vpop.eup %12317  ;;  %v17633_v16 = vmul.f32 %v12316_v6, %v17498_v26  ;;  %12337 = vpow2.f32 %v9684_v9  ;;  %v18746_v6 = vld [vmem:[#allocation34_spill] sm:$0xff] }
 0x7d8   : > { %v12320_v27 = vpop.eup %12319  ;;  %v7582_v19 = vadd.f32 1.0, %v12318_v3  ;;  %12339 = vpow2.f32 %v9678_v35  ;;  %v8051_v10 = vpack.c.bf16 %v7971_v17, %v7967_v62  ;;  %v17646_v62 = vadd.f32 %v18746_v6, %v18693_v25  ;;  %v18747_v17 = vld [vmem:[#allocation55_spill] sm:$0xff] }
 0x7d9   : > { %18744 = vst [vmem:[#allocation123_spill] sm:$0xff] %v17633_v16  ;;  %v12322_v41 = vpop.eup %12321  ;;  %v7972_v40 = vmul.f32 %v12320_v27, %v17513_v22  ;;  %12341 = vpow2.f32 %v9685_v60  ;;  %v17642_v22 = vadd.f32 %v18745_v33, %v18691_v58  ;;  %v17650_v3 = vadd.f32 %v18747_v17, %v16559_v51 }
 0x7da   : > { %v12324_v50 = vpop.eup %12323  ;;  %12343 = vrcp.f32 %v7582_v19  ;;  %v7591_v26 = vadd.f32 1.0, %v12322_v41 }
 0x7db   : > { %v12326_v18 = vpop.eup %12325  ;;  %v7585_v56 = vadd.f32 1.0, %v12324_v50  ;;  %12345 = vpow2.f32 %v9679_v31  ;;  %v8052_v32 = vpack.c.bf16 %v7972_v40, %v7968_v20  ;;  %v9688_v50 = vmul.f32 -1.442695, %v17642_v22 }
 0x7dc   : > { %v12328_v9 = vpop.eup %12327  ;;  %12347 = vrcp.f32 %v7591_v26  ;;  %v7592_v8 = vadd.f32 1.0, %v12326_v18  ;;  %v18748_v26 = vld [vmem:[#allocation40_spill] sm:$0xff] }
 0x7dd   : > { %v12330_v35 = vpop.eup %12329  ;;  %12349 = vrcp.f32 %v7585_v56  ;;  %v7586_v24 = vadd.f32 1.0, %v12328_v9  ;;  %8609 = vmatprep.mubr.bf16.mxu0 %v8052_v32  ;;  %v17655_v18 = vadd.f32 %v18748_v26, %v18689_v55  ;;  %v9689_v9 = vmul.f32 -1.442695, %v17650_v3 }
 0x7de   : > { %v12332_v42 = vpop.eup %12331  ;;  %12351 = vrcp.f32 %v7592_v8  ;;  %v7595_v60 = vadd.f32 1.0, %v12330_v35  ;;  %8610 = vmatmul.mubr.bf16.gmra.mrb[172].mxu0 %v8051_v10  ;;  %v9682_v10 = vmul.f32 -1.442695, %v17646_v62 }
 0x7df   : > { %v12334_v31 = vpop.eup %12333  ;;  %12353 = vrcp.f32 %v7586_v24  ;;  %v7589_v27 = vadd.f32 1.0, %v12332_v42  ;;  %v18749_v24 = vld [vmem:[#allocation67_spill] sm:$0xff] }
 0x7e0   : > { %v12336_v19 = vpop.eup %12335  ;;  %12355 = vrcp.f32 %v7595_v60  ;;  %v7596_v41 = vadd.f32 1.0, %v12334_v31  ;;  %v17661_v33 = vadd.f32 %v18749_v24, %v18691_v58  ;;  %v18750_v42 = vld [vmem:[#allocation47_spill] sm:$0xff]  ;;  %v18751_v31 = vld [vmem:[#allocation69_spill] sm:$0xff] }
 0x7e1   : > { %v12338_v20 = vpop.eup %12337  ;;  %12357 = vrcp.f32 %v7589_v27  ;;  %v7590_v40 = vadd.f32 1.0, %v12336_v19  ;;  %v17665_v60 = vadd.f32 %v18750_v42, %v18693_v25  ;;  %v17669_v27 = vadd.f32 %v18751_v31, %v16559_v51  ;;  %v18752_v19 = vld [vmem:[#allocation50_spill] sm:$0xff] }
 0x7e2   : > { %v12340_v56 = vpop.eup %12339  ;;  %12359 = vrcp.f32 %v7596_v41  ;;  %v7599_v32 = vadd.f32 1.0, %v12338_v20  ;;  %v17673_v41 = vadd.f32 %v18752_v19, %v18689_v55  ;;  %v18756_v42 = vld [vmem:[#allocation54_spill] sm:$0xff]  ;;  %v18757_v19 = vld [vmem:[#allocation76_spill] sm:$0xff] }
 0x7e3   : > { %v12342_v8 = vpop.eup %12341  ;;  %12361 = vrcp.f32 %v7590_v40  ;;  %v7593_v35 = vadd.f32 1.0, %v12340_v56  ;;  %v17677_v40 = vmul.f32 %v17623_v5, %v17476_v63  ;;  %v18755_v56 = vld [vmem:[#allocation74_spill] sm:$0xff]  ;;  %v17688_v31 = vadd.f32 %v18756_v42, %v18693_v25 }
 0x7e4   : > { %v12344_v6 = vpop.eup %12343  ;;  %12363 = vrcp.f32 %v7599_v32  ;;  %v7600_v17 = vadd.f32 1.0, %v12342_v8  ;;  %v17684_v32 = vadd.f32 %v18755_v56, %v18691_v58  ;;  %v17692_v61 = vadd.f32 %v18757_v19, %v16559_v51 }
 0x7e5   : > { %v12346_v20 = vpop.eup %12345  ;;  %18753 = vst [vmem:[#allocation17_spill] sm:$0xff] %v17677_v40  ;;  %v17680_v26 = vmul.f32 %v12344_v6, %v17541_v28  ;;  %12365 = vrcp.f32 %v7593_v35  ;;  %v9683_v28 = vmul.f32 -1.442695, %v17655_v18  ;;  %v9692_v6 = vmul.f32 -1.442695, %v17661_v33 }
 0x7e6   : > { %v12348_v8 = vpop.eup %12347  ;;  %12367 = vrcp.f32 %v7600_v17  ;;  %v7594_v24 = vadd.f32 1.0, %v12346_v20  ;;  %v9686_v20 = vmul.f32 -1.442695, %v17665_v60  ;;  %v9693_v56 = vmul.f32 -1.442695, %v17669_v27 }
 0x7e7   : > { %18754 = vst [vmem:[#allocation57_spill] sm:$0xff] %v17680_v26  ;;  %v12350_v63 = vpop.eup %12349  ;;  %12369 = vpow2.f32 %v9688_v50  ;;  %v9687_v42 = vmul.f32 -1.442695, %v17673_v41  ;;  %v9696_v50 = vmul.f32 -1.442695, %v17684_v32 }
 0x7e8   : > { %v12352_v35 = vpop.eup %12351  ;;  %12371 = vrcp.f32 %v7594_v24  ;;  %v9690_v2 = vmul.f32 -1.442695, %v17688_v31  ;;  %v9697_v5 = vmul.f32 -1.442695, %v17692_v61  ;;  %v7975_v24 = vmul.f32 %v12348_v8, %v17545_v48 }
 0x7e9   : > { %v12354_v17 = vpop.eup %12353  ;;  %12373 = vpow2.f32 %v9682_v10  ;;  %v18758_v10 = vld [vmem:[#allocation58_spill] sm:$0xff]  ;;  %v17711_v26 = vmul.f32 %v12350_v63, %v17549_v59 }
 0x7ea   : > { %v12356_v19 = vpop.eup %12355  ;;  %12375 = vpow2.f32 %v9689_v9  ;;  %v17708_v16 = vadd.f32 %v18758_v10, %v18689_v55  ;;  %v17725_v59 = vmul.f32 %v12354_v17, %v17557_v4  ;;  %v17781_v4 = vadd.f32 %v18770_v7, %v18693_v25 }
 0x7eb   : > { %v12358_v21 = vpop.eup %12357  ;;  %v7979_v46 = vmul.f32 %v12356_v19, %v17562_v13  ;;  %12377 = vpow2.f32 %v9683_v28  ;;  %18759 = vst [vmem:[#allocation104_spill] sm:$0xff] %v17711_v26  ;;  %v7976_v13 = vmul.f32 %v12352_v35, %v17553_v15 }
 0x7ec   : > { %v12360_v40 = vpop.eup %12359  ;;  %v17714_v9 = vmul.f32 %v12358_v21, %v17566_v38  ;;  %12379 = vpow2.f32 %v9692_v6  ;;  %18762 = vst [vmem:[#allocation35_spill] sm:$0xff] %v17725_v59  ;;  %v9691_v15 = vmul.f32 -1.442695, %v17708_v16 }
 0x7ed   : > { %v12362_v48 = vpop.eup %12361  ;;  %v7980_v8 = vmul.f32 %v12360_v40, %v17570_v52  ;;  %12381 = vpow2.f32 %v9686_v20  ;;  %v8055_v28 = vpack.c.bf16 %v7979_v46, %v7975_v24 }
 0x7ee   : > { %18760 = vst [vmem:[#allocation125_spill] sm:$0xff] %v17714_v9  ;;  %v17722_v19 = vpop.eup %12363  ;;  %v17728_v38 = vmul.f32 %v12362_v48, %v17579_v39  ;;  %12383 = vpow2.f32 %v9693_v56  ;;  %v9700_v39 = vmul.f32 -1.442695, %v17718_v12  ;;  %v18772_v9 = vld [vmem:[#allocation92_spill] sm:$0xff] }
 0x7ef   : > { %v17732_v21 = vpop.eup %12365  ;;  %12385 = vpow2.f32 %v9687_v42  ;;  %v8056_v52 = vpack.c.bf16 %v7980_v8, %v7976_v13  ;;  %v17799_v59 = vadd.f32 %v18772_v9, %v18693_v25 }
 0x7f0   : > { %v17735_v40 = vpop.eup %12367  ;;  %12387 = vpow2.f32 %v9696_v50 }
 0x7f1   : > { %v12370_v46 = vpop.eup %12369  ;;  %12389 = vpow2.f32 %v9690_v2  ;;  %8619 = vmatprep.mubr.bf16.mxu0 %v8056_v52  ;;  %v18764_v52 = vld [vmem:[#allocation88_spill] sm:$0xff] }
 0x7f2   : > { %v17740_v63 = vpop.eup %12371  ;;  %v7603_v35 = vadd.f32 1.0, %v12370_v46  ;;  %12391 = vpow2.f32 %v9697_v5  ;;  %8620 = vmatmul.mubr.bf16.gmra.mrb[176].mxu0 %v8055_v28  ;;  %v18763_v28 = vld [vmem:[#allocation68_spill] sm:$0xff]  ;;  %v17748_v46 = vadd.f32 %v18764_v52, %v16559_v51 }
 0x7f3   : > { %v12374_v6 = vpop.eup %12373  ;;  %12393 = vpow2.f32 %v9691_v15  ;;  %v17744_v15 = vadd.f32 %v18763_v28, %v18693_v25 }
 0x7f4   : > { %v12376_v17 = vpop.eup %12375  ;;  %12395 = vrcp.f32 %v7603_v35  ;;  %v7597_v20 = vadd.f32 1.0, %v12374_v6  ;;  %v18765_v6 = vld [vmem:[#allocation71_spill] sm:$0xff] }
 0x7f5   : > { %v12378_v56 = vpop.eup %12377  ;;  %v7604_v42 = vadd.f32 1.0, %v12376_v17  ;;  %12397 = vpow2.f32 %v9700_v39  ;;  %v17752_v17 = vadd.f32 %v18765_v6, %v18689_v55  ;;  %v9701_v6 = vmul.f32 -1.442695, %v17748_v46 }
 0x7f6   : > { %v12380_v50 = vpop.eup %12379  ;;  %12399 = vrcp.f32 %v7597_v20  ;;  %v7598_v24 = vadd.f32 1.0, %v12378_v56  ;;  %v18766_v20 = vld [vmem:[#allocation91_spill] sm:$0xff] }
 0x7f7   : > { %v12382_v2 = vpop.eup %12381  ;;  %12401 = vrcp.f32 %v7604_v42  ;;  %v7607_v10 = vadd.f32 1.0, %v12380_v50  ;;  %v17756_v56 = vadd.f32 %v18766_v20, %v18691_v58  ;;  %v9694_v58 = vmul.f32 -1.442695, %v17744_v15 }
 0x7f8   : > { %v12384_v48 = vpop.eup %12383  ;;  %12403 = vrcp.f32 %v7598_v24  ;;  %v7601_v13 = vadd.f32 1.0, %v12382_v2  ;;  %v18767_v24 = vld [vmem:[#allocation75_spill] sm:$0xff]  ;;  %v9695_v20 = vmul.f32 -1.442695, %v17752_v17 }
 0x7f9   : > { %v12386_v8 = vpop.eup %12385  ;;  %12405 = vrcp.f32 %v7607_v10  ;;  %v7608_v5 = vadd.f32 1.0, %v12384_v48  ;;  %v17760_v2 = vadd.f32 %v18767_v24, %v18693_v25  ;;  %v9704_v24 = vmul.f32 -1.442695, %v17756_v56 }
 0x7fa   : > { %v12388_v39 = vpop.eup %12387  ;;  %12407 = vrcp.f32 %v7601_v13  ;;  %v7602_v35 = vadd.f32 1.0, %v12386_v8  ;;  %v18768_v13 = vld [vmem:[#allocation94_spill] sm:$0xff] }
 0x7fb   : > { %v12390_v42 = vpop.eup %12389  ;;  %12409 = vrcp.f32 %v7608_v5  ;;  %v7611_v50 = vadd.f32 1.0, %v12388_v39  ;;  %v17764_v8 = vadd.f32 %v18768_v13, %v16559_v51 }
 0x7fc   : > { %v12392_v10 = vpop.eup %12391  ;;  %12411 = vrcp.f32 %v7602_v35  ;;  %v7605_v48 = vadd.f32 1.0, %v12390_v42  ;;  %v7983_v42 = vmul.f32 %v17722_v19, %v17585_v11  ;;  %v17785_v11 = vmul.f32 %v17732_v21, %v17592_v30 }
 0x7fd   : > { %v12394_v28 = vpop.eup %12393  ;;  %12413 = vrcp.f32 %v7611_v50  ;;  %v7612_v52 = vadd.f32 1.0, %v12392_v10  ;;  %v9698_v50 = vmul.f32 -1.442695, %v17760_v2  ;;  %v9705_v13 = vmul.f32 -1.442695, %v17764_v8 }
 0x7fe   : > { %v12396_v5 = vpop.eup %12395  ;;  %12415 = vrcp.f32 %v7605_v48  ;;  %v7606_v39 = vadd.f32 1.0, %v12394_v28  ;;  %v18769_v48 = vld [vmem:[#allocation79_spill] sm:$0xff] }
 0x7ff   : > { %v12398_v35 = vpop.eup %12397  ;;  %v7987_v51 = vmul.f32 %v12396_v5, %v17642_v22  ;;  %12417 = vrcp.f32 %v7612_v52  ;;  %v17777_v28 = vadd.f32 %v18769_v48, %v18689_v55  ;;  %v7984_v5 = vmul.f32 %v17735_v40, %v17603_v14  ;;  %v18771_v48 = vld [vmem:[#allocation89_spill] sm:$0xff]  ;;  %v18773_v40 = vld [vmem:[#allocation96_spill] sm:$0xff] }
 0x800   : > { %v12400_v10 = vpop.eup %12399  ;;  %12419 = vrcp.f32 %v7606_v39  ;;  %v17795_v7 = vadd.f32 %v18771_v48, %v18689_v55  ;;  %v17813_v25 = vadd.f32 %v18773_v40, %v18689_v55 }
 0x801   : > { %v12402_v26 = vpop.eup %12401  ;;  %v17788_v22 = vmul.f32 %v12400_v10, %v17646_v62  ;;  %12421 = vpow2.f32 %v9694_v58  ;;  %v8059_v19 = vpack.c.bf16 %v7987_v51, %v7983_v42  ;;  %v17803_v62 = vmul.f32 %v17740_v63, %v17619_v45 }
 0x802   : > { %v12404_v52 = vpop.eup %12403  ;;  %v7988_v39 = vmul.f32 %v12402_v26, %v17650_v3  ;;  %12423 = vpow2.f32 %v9701_v6  ;;  %v9699_v26 = vmul.f32 -1.442695, %v17777_v28  ;;  %v9702_v45 = vmul.f32 -1.442695, %v17781_v4 }
 0x803   : > { %v12406_v30 = vpop.eup %12405  ;;  %v17806_v21 = vmul.f32 %v12404_v52, %v17655_v18  ;;  %v8057_v14 = vpack.c.bf16 %v17788_v22, %v17785_v11  ;;  %12425 = vpow2.f32 %v9695_v20  ;;  %v9703_v6 = vmul.f32 -1.442695, %v17795_v7  ;;  %v18832_v22 = vld [vmem:[#allocation29_spill] sm:$0xff] }
 0x804   : > { %v12408_v3 = vpop.eup %12407  ;;  %v8060_v9 = vpack.c.bf16 %v7988_v39, %v7984_v5  ;;  %12427 = vpow2.f32 %v9704_v24  ;;  %v9706_v42 = vmul.f32 -1.442695, %v17799_v59  ;;  %v7991_v51 = vmul.f32 %v12406_v30, %v17661_v33 }
 0x805   : > { %v12410_v58 = vpop.eup %12409  ;;  %v8058_v18 = vpack.c.bf16 %v17806_v21, %v17803_v62  ;;  %12429 = vpow2.f32 %v9698_v50  ;;  %v9707_v10 = vmul.f32 -1.442695, %v17813_v25  ;;  %v17824_v5 = vmul.f32 %v12408_v3, %v17665_v60 }
 0x806   : > { %v12412_v63 = vpop.eup %12411  ;;  %8629 = vmatprep.mubr.bf16.mxu0 %v8060_v9  ;;  %12431 = vpow2.f32 %v9705_v13  ;;  %v7615_v39 = vadd.f32 1.0, %v12398_v35 }
 0x807   : > { %v12414_v20 = vpop.eup %12413  ;;  %8630 = vmatmul.mubr.bf16.gmra.mrb[180].mxu0 %v8059_v19  ;;  %12433 = vpow2.f32 %v9699_v26  ;;  %v7992_v19 = vmul.f32 %v12410_v58, %v17669_v27  ;;  %v17832_v30 = vmul.f32 %v12412_v63, %v17673_v41 }
 0x808   : > { %v12416_v55 = vpop.eup %12415  ;;  %v7995_v24 = vmul.f32 %v12414_v20, %v17684_v32  ;;  %12435 = vpow2.f32 %v9702_v45 }
 0x809   : > { %v12418_v52 = vpop.eup %12417  ;;  %v17827_v50 = vmul.f32 %v12416_v55, %v17688_v31  ;;  %12437 = vpow2.f32 %v9703_v6 }
 0x80a   : > { %v12420_v13 = vpop.eup %12419  ;;  %v7996_v48 = vmul.f32 %v12418_v52, %v17692_v61  ;;  %v8063_v33 = vpack.c.bf16 %v7995_v24, %v7991_v51  ;;  %12439 = vpow2.f32 %v9706_v42 }
 0x80b   : > { %v12422_v32 = vpop.eup %12421  ;;  %v17835_v26 = vmul.f32 %v12420_v13, %v17708_v16  ;;  %v8061_v60 = vpack.c.bf16 %v17827_v50, %v17824_v5  ;;  %12441 = vpow2.f32 %v9707_v10 }
 0x80c   : > { %v7609_v31 = vadd.f32 1.0, %v12422_v32  ;;  %v8064_v35 = vpack.c.bf16 %v7996_v48, %v7992_v19  ;;  %v12424_v3 = vpop.eup %12423  ;;  %12443 = vrcp.f32 %v7615_v39 }
 0x80d   : > { %v8062_v61 = vpack.c.bf16 %v17835_v26, %v17832_v30  ;;  %v12426_v27 = vpop.eup %12425  ;;  %v7616_v40 = vadd.f32 1.0, %v12424_v3 }
 0x80e   : > { %8639 = vmatprep.mubr.bf16.mxu0 %v8064_v35  ;;  %v12428_v41 = vpop.eup %12427  ;;  %12445 = vrcp.f32 %v7609_v31  ;;  %v7610_v9 = vadd.f32 1.0, %v12426_v27 }
 0x80f   : > { %8640 = vmatmul.mubr.bf16.gmra.mrb[184].mxu0 %v8063_v33  ;;  %v12430_v16 = vpop.eup %12429  ;;  %12447 = vrcp.f32 %v7616_v40  ;;  %v7619_v58 = vadd.f32 1.0, %v12428_v41 }
 0x810   : > { %v12432_v45 = vpop.eup %12431  ;;  %12449 = vrcp.f32 %v7610_v9  ;;  %v7613_v63 = vadd.f32 1.0, %v12430_v16 }
 0x811   : > { %v12434_v6 = vpop.eup %12433  ;;  %12451 = vrcp.f32 %v7619_v58  ;;  %v7620_v20 = vadd.f32 1.0, %v12432_v45 }
 0x812   : > { %v12436_v42 = vpop.eup %12435  ;;  %12453 = vrcp.f32 %v7613_v63  ;;  %v7614_v55 = vadd.f32 1.0, %v12434_v6 }
 0x813   : > { %v12438_v51 = vpop.eup %12437  ;;  %12455 = vrcp.f32 %v7620_v20  ;;  %v7617_v24 = vadd.f32 1.0, %v12436_v42 }
 0x814   : > { %v12440_v10 = vpop.eup %12439  ;;  %12457 = vrcp.f32 %v7614_v55  ;;  %v7618_v52 = vadd.f32 1.0, %v12438_v51 }
 0x815   : > { %v12442_v39 = vpop.eup %12441  ;;  %12459 = vrcp.f32 %v7617_v24  ;;  %v7621_v13 = vadd.f32 1.0, %v12440_v10 }
 0x816   : > { %12461 = vrcp.f32 %v7618_v52  ;;  %v7622_v19 = vadd.f32 1.0, %v12442_v39  ;;  %v12444_v48 = vpop.eup %12443 }
 0x817   : > { %12463 = vrcp.f32 %v7621_v13  ;;  %v7999_v27 = vmul.f32 %v12444_v48, %v17718_v12  ;;  %v18775_v13 = vld [vmem:[#allocation25_spill] sm:$0xff] }
 0x818   : > { %v12446_v33 = vpop.eup %12445  ;;  %12465 = vrcp.f32 %v7622_v19  ;;  %v18776_v19 = vld [vmem:[#allocation121_spill] sm:$0xff] }
 0x819   : > { %v12448_v32 = vpop.eup %12447  ;;  %v7993_v9 = vmul.f32 %v12446_v33, %v17744_v15  ;;  %v18777_v48 = vpack.c.bf16 %v18775_v13, %v18776_v19  ;;  %v18784_v33 = vld [vmem:[#allocation113_spill] sm:$0xff] }
 0x81a   : > { %v12450_v31 = vpop.eup %12449  ;;  %v8000_v45 = vmul.f32 %v12448_v32, %v17748_v46  ;;  %v18787_v32 = vld [vmem:[#allocation117_spill] sm:$0xff] }
 0x81b   : > { %v12452_v35 = vpop.eup %12451  ;;  %v7994_v42 = vmul.f32 %v12450_v31, %v17752_v17  ;;  %v18774_v17 = vpack.c.bf16 %v17140_v44, %v17120_v23  ;;  %v18781_v23 = vpack.c.bf16 %v17219_v53, %v17199_v34  ;;  %v18782_v44 = vpack.c.bf16 %v17323_v47, %v17312_v36  ;;  %v18790_v31 = vld [vmem:[#allocation116_spill] sm:$0xff]  ;;  %v18795_v53 = vld [vmem:[#allocation102_spill] sm:$0xff]  ;;  %v18798_v36 = vld [vmem:[#allocation39_spill] sm:$0xff] }
 0x81c   : > { %v12454_v3 = vpop.eup %12453  ;;  %v8003_v40 = vmul.f32 %v12452_v35, %v17756_v56  ;;  %v18793_v35 = vld [vmem:[#allocation103_spill] sm:$0xff]  ;;  %v18820_v13 = vld [vmem:[#allocation57_spill] sm:$0xff] }
 0x81d   : > { %v12456_v41 = vpop.eup %12455  ;;  %v7997_v16 = vmul.f32 %v12454_v3, %v17760_v2  ;;  %v18796_v3 = vld [vmem:[#allocation42_spill] sm:$0xff]  ;;  %v18821_v19 = vld [vmem:[#allocation17_spill] sm:$0xff] }
 0x81e   : > { %v12458_v58 = vpop.eup %12457  ;;  %v8004_v63 = vmul.f32 %v12456_v41, %v17764_v8  ;;  %v8067_v6 = vpack.c.bf16 %v8003_v40, %v7999_v27  ;;  %v18797_v47 = vpack.c.bf16 %v18795_v53, %v18796_v3  ;;  %v18799_v27 = vld [vmem:[#allocation56_spill] sm:$0xff] }
 0x81f   : > { %v12460_v20 = vpop.eup %12459  ;;  %v7998_v55 = vmul.f32 %v12458_v58, %v17777_v28  ;;  %v8065_v51 = vpack.c.bf16 %v7997_v16, %v7993_v9  ;;  %v18800_v40 = vpack.c.bf16 %v18798_v36, %v18799_v27  ;;  %v18801_v41 = vld [vmem:[#allocation24_spill] sm:$0xff]  ;;  %v18804_v58 = vld [vmem:[#allocation122_spill] sm:$0xff] }
 0x820   : > { %v12462_v12 = vpop.eup %12461  ;;  %v8068_v24 = vpack.c.bf16 %v8004_v63, %v8000_v45  ;;  %v8001_v15 = vmul.f32 %v12460_v20, %v17781_v4  ;;  %v18778_v4 = vpack.c.bf16 %v17172_v43, %v17159_v57  ;;  %v18786_v57 = vld [vmem:[#allocation20_spill] sm:$0xff]  ;;  %v18805_v45 = vld [vmem:[#allocation51_spill] sm:$0xff]  ;;  %v18808_v20 = vld [vmem:[#allocation49_spill] sm:$0xff] }
 0x821   : > { %v12464_v56 = vpop.eup %12463  ;;  %v8066_v10 = vpack.c.bf16 %v7998_v55, %v7994_v42  ;;  %v8002_v46 = vmul.f32 %v12462_v12, %v17795_v7  ;;  %v18780_v7 = vpack.c.bf16 %v17294_v1, %v17207_v49  ;;  %v18792_v1 = vld [vmem:[#allocation52_spill] sm:$0xff]  ;;  %v18806_v63 = vpack.c.bf16 %v18804_v58, %v18805_v45  ;;  %v18810_v55 = vld [vmem:[#allocation65_spill] sm:$0xff]  ;;  %v18811_v12 = vld [vmem:[#allocation107_spill] sm:$0xff] }
 0x822   : > { %v12466_v52 = vpop.eup %12465  ;;  %v8005_v2 = vmul.f32 %v12464_v56, %v17799_v59  ;;  %8649 = vmatprep.mubr.bf16.mxu0 %v8068_v24  ;;  %v18779_v59 = vpack.c.bf16 %v17168_v0, %v17155_v37  ;;  %v18788_v0 = vpack.c.bf16 %v18786_v57, %v18787_v32  ;;  %v18789_v37 = vld [vmem:[#allocation28_spill] sm:$0xff]  ;;  %v18794_v34 = vpack.c.bf16 %v18792_v1, %v18793_v35  ;;  %v18813_v56 = vld [vmem:[#allocation106_spill] sm:$0xff] }
 0x823   : > { %v8006_v8 = vmul.f32 %v12466_v52, %v17813_v25  ;;  %8650 = vmatmul.mubr.bf16.gmra.mrb[188].mxu0 %v8067_v6  ;;  %v18783_v25 = vld [vmem:[#allocation115_spill] sm:$0xff]  ;;  %v18791_v49 = vpack.c.bf16 %v18789_v37, %v18790_v31  ;;  %v18802_v9 = vld [vmem:[#allocation124_spill] sm:$0xff]  ;;  %v18807_v6 = vld [vmem:[#allocation126_spill] sm:$0xff]  ;;  %v18812_v24 = vpack.c.bf16 %v18810_v55, %v18811_v12 }
 0x824   : > { %8692 = vmatprep.mubr.bf16.mxu0 %v18774_v17  ;;  %v8069_v28 = vpack.c.bf16 %v8005_v2, %v8001_v15  ;;  %v18785_v43 = vpack.c.bf16 %v18783_v25, %v18784_v33  ;;  %v18803_v16 = vpack.c.bf16 %v18801_v41, %v18802_v9  ;;  %v18809_v42 = vpack.c.bf16 %v18807_v6, %v18808_v20  ;;  %v18814_v52 = vld [vmem:[#allocation44_spill] sm:$0xff]  ;;  %v18828_v25 = vld [vmem:[#allocation125_spill] sm:$0xff] }
 0x825   : > { %v8070_v39 = vpack.c.bf16 %v8006_v8, %v8002_v46  ;;  %v18815_v15 = vpack.c.bf16 %v18813_v56, %v18814_v52  ;;  %v18816_v2 = vpack.c.bf16 %v17611_v29, %v17608_v54  ;;  %v18817_v46 = vld [vmem:[#allocation110_spill] sm:$0xff]  ;;  %v18818_v8 = vld [vmem:[#allocation21_spill] sm:$0xff]  ;;  %v18829_v33 = vld [vmem:[#allocation104_spill] sm:$0xff] }
 0x826   : > { %v18819_v17 = vpack.c.bf16 %v18817_v46, %v18818_v8  ;;  %v18830_v54 = vpack.c.bf16 %v18828_v25, %v18829_v33  ;;  %v8135_v29 = vld [vmem:[%s18130_s2 + $0x12] sm:$0x3] }
 0x827   : > { %v17944_v62 = vrot.slane %v8135_v29, %v18832_v22 }
 0x82b   : > { %8693 = vmatmul.mubr.bf16.vlgmr.msra.gmra.mrb[128].mxu0 %v18777_v48  ;;  %v18822_v48 = vpack.c.bf16 %v18820_v13, %v18821_v19 }
 0x82c   : > { %8702 = vmatprep.mubr.bf16.mxu0 %v18778_v4  ;;  %v18823_v4 = vld [vmem:[#allocation123_spill] sm:$0xff] }
 0x833   : > { %8703 = vmatmul.mubr.bf16.gmra.mrb[132].mxu0 %v18779_v59  ;;  %v18824_v59 = vld [vmem:[#allocation108_spill] sm:$0xff] }
 0x834   : > { %8712 = vmatprep.mubr.bf16.mxu0 %v18780_v7  ;;  %v18825_v7 = vpack.c.bf16 %v18823_v4, %v18824_v59 }
 0x83b   : > { %8713 = vmatmul.mubr.bf16.gmra.mrb[136].mxu0 %v18781_v23  ;;  %v18826_v23 = vld [vmem:[#allocation35_spill] sm:$0xff] }
 0x83c   : > { %8722 = vmatprep.mubr.bf16.mxu0 %v18782_v44  ;;  %v18827_v44 = vpack.c.bf16 %v17728_v38, %v18826_v23  ;;  %v18831_v38 = vld [vmem:[#allocation33_spill] sm:$0xff] }
 0x83d   : > { %v17941_v11 = vrot.slane %v8135_v29, %v18831_v38 }
 0x843   : > { %8723 = vmatmul.mubr.bf16.gmra.mrb[140].mxu0 %v18785_v43 }
 0x844   : > { %8732 = vmatprep.mubr.bf16.mxu0 %v18788_v0 }
 0x84b   : > { %8733 = vmatmul.mubr.bf16.gmra.mrb[144].mxu0 %v18791_v49 }
 0x84c   : > { %8742 = vmatprep.mubr.bf16.mxu0 %v18794_v34 }
 0x853   : > { %8743 = vmatmul.mubr.bf16.gmra.mrb[148].mxu0 %v18797_v47 }
 0x854   : > { %8752 = vmatprep.mubr.bf16.mxu0 %v18800_v40 }
 0x85b   : > { %8753 = vmatmul.mubr.bf16.gmra.mrb[152].mxu0 %v18803_v16 }
 0x85c   : > { %8762 = vmatprep.mubr.bf16.mxu0 %v18806_v63 }
 0x863   : > { %8763 = vmatmul.mubr.bf16.gmra.mrb[156].mxu0 %v18809_v42 }
 0x864   : > { %8772 = vmatprep.mubr.bf16.mxu0 %v18812_v24 }
 0x86b   : > { %8773 = vmatmul.mubr.bf16.gmra.mrb[160].mxu0 %v18815_v15 }
 0x86c   : > { %8782 = vmatprep.mubr.bf16.mxu0 %v18816_v2 }
 0x873   : > { %8783 = vmatmul.mubr.bf16.gmra.mrb[164].mxu0 %v18819_v17 }
 0x874   : > { %8792 = vmatprep.mubr.bf16.mxu0 %v18822_v48 }
 0x87b   : > { %8793 = vmatmul.mubr.bf16.gmra.mrb[168].mxu0 %v18825_v7 }
 0x87c   : > { %8802 = vmatprep.mubr.bf16.mxu0 %v18827_v44 }
 0x883   : > { %8803 = vmatmul.mubr.bf16.gmra.mrb[172].mxu0 %v18830_v54 }
 0x884   : > { %8812 = vmatprep.mubr.bf16.mxu0 %v8058_v18 }
 0x88b   : > { %8813 = vmatmul.mubr.bf16.gmra.mrb[176].mxu0 %v8057_v14 }
 0x88c   : > { %8822 = vmatprep.mubr.bf16.mxu0 %v8062_v61 }
 0x893   : > { %8823 = vmatmul.mubr.bf16.gmra.mrb[180].mxu0 %v8061_v60 }
 0x894   : > { %8832 = vmatprep.mubr.bf16.mxu0 %v8066_v10 }
 0x89b   : > { %8833 = vmatmul.mubr.bf16.gmra.mrb[184].mxu0 %v8065_v51 }
 0x89c   : > { %8842 = vmatprep.mubr.bf16.mxu0 %v8070_v39 }
 0x8a3   : > { %8843 = vmatmul.mubr.bf16.gmra.mrb[188].mxu0 %v8069_v28 }
 0x8fe   : > { %v8694_v21 = vpop.f32.mrb[128].mxu0 }
 0x8ff   : > { %v10038_v14 = vadd.f32 %v8694_v21, %v17941_v11  ;;  %v8696_v18 = vpop.f32.mrb[129].mxu0 }
 0x900   : > { %v10039_v5 = vadd.f32 %v8696_v18, %v17944_v62  ;;  %v8698_v50 = vpop.f32.mrb[130].mxu0 }
 0x901   : > { %8853 = vst [vmem:[%s17950_s13] sm:$0xff] %v10038_v14  ;;  %v10040_v30 = vadd.f32 %v8698_v50, %v17941_v11  ;;  %v8700_v26 = vpop.f32.mrb[131].mxu0 }
 0x902   : > { %8854 = vst [vmem:[%s17950_s13 + $0x8] sm:$0xff] %v10039_v5  ;;  %v10041_v60 = vadd.f32 %v8700_v26, %v17944_v62 }
 0x903   : > { %8855 = vst [vmem:[%s17950_s13 + $0x10] sm:$0xff] %v10040_v30 }
 0x904   : > { %8856 = vst [vmem:[%s17950_s13 + $0x18] sm:$0xff] %v10041_v60 }
 0x906   : > { %v8704_v61 = vpop.f32.mrb[132].mxu0 }
 0x907   : > { %v10042_v51 = vadd.f32 %v8704_v61, %v17941_v11  ;;  %v8706_v10 = vpop.f32.mrb[133].mxu0 }
 0x908   : > { %v10043_v28 = vadd.f32 %v8706_v10, %v17944_v62  ;;  %v8708_v39 = vpop.f32.mrb[134].mxu0 }
 0x909   : > { %8857 = vst [vmem:[%s17950_s13 + $0x20] sm:$0xff] %v10042_v51  ;;  %v10044_v43 = vadd.f32 %v8708_v39, %v17941_v11  ;;  %v8710_v57 = vpop.f32.mrb[135].mxu0 }
 0x90a   : > { %8858 = vst [vmem:[%s17950_s13 + $0x28] sm:$0xff] %v10043_v28  ;;  %v10045_v32 = vadd.f32 %v8710_v57, %v17944_v62 }
 0x90b   : > { %8859 = vst [vmem:[%s17950_s13 + $0x30] sm:$0xff] %v10044_v43 }
 0x90c   : > { %8860 = vst [vmem:[%s17950_s13 + $0x38] sm:$0xff] %v10045_v32 }
 0x90e   : > { %v8714_v0 = vpop.f32.mrb[136].mxu0 }
 0x90f   : > { %v10046_v37 = vadd.f32 %v8714_v0, %v17941_v11  ;;  %v8716_v31 = vpop.f32.mrb[137].mxu0 }
 0x910   : > { %v10047_v49 = vadd.f32 %v8716_v31, %v17944_v62  ;;  %v8718_v1 = vpop.f32.mrb[138].mxu0 }
 0x911   : > { %8861 = vst [vmem:[%s17950_s13 + $0x40] sm:$0xff] %v10046_v37  ;;  %v10048_v35 = vadd.f32 %v8718_v1, %v17941_v11  ;;  %v8720_v34 = vpop.f32.mrb[139].mxu0 }
 0x912   : > { %8862 = vst [vmem:[%s17950_s13 + $0x48] sm:$0xff] %v10047_v49  ;;  %v10049_v53 = vadd.f32 %v8720_v34, %v17944_v62 }
 0x913   : > { %8863 = vst [vmem:[%s17950_s13 + $0x50] sm:$0xff] %v10048_v35 }
 0x914   : > { %8864 = vst [vmem:[%s17950_s13 + $0x58] sm:$0xff] %v10049_v53 }
 0x916   : > { %v8724_v3 = vpop.f32.mrb[140].mxu0 }
 0x917   : > { %v10050_v47 = vadd.f32 %v8724_v3, %v17941_v11  ;;  %v8726_v36 = vpop.f32.mrb[141].mxu0 }
 0x918   : > { %v10051_v27 = vadd.f32 %v8726_v36, %v17944_v62  ;;  %v8728_v40 = vpop.f32.mrb[142].mxu0 }
 0x919   : > { %8865 = vst [vmem:[%s17950_s13 + $0x60] sm:$0xff] %v10050_v47  ;;  %v10052_v41 = vadd.f32 %v8728_v40, %v17941_v11  ;;  %v8730_v9 = vpop.f32.mrb[143].mxu0 }
 0x91a   : > { %8866 = vst [vmem:[%s17950_s13 + $0x68] sm:$0xff] %v10051_v27  ;;  %v10053_v16 = vadd.f32 %v8730_v9, %v17944_v62 }
 0x91b   : > { %8867 = vst [vmem:[%s17950_s13 + $0x70] sm:$0xff] %v10052_v41 }
 0x91c   : > { %8868 = vst [vmem:[%s17950_s13 + $0x78] sm:$0xff] %v10053_v16 }
 0x91e   : > { %v8734_v58 = vpop.f32.mrb[144].mxu0 }
 0x91f   : > { %v10054_v45 = vadd.f32 %v8734_v58, %v17941_v11  ;;  %v8736_v63 = vpop.f32.mrb[145].mxu0 }
 0x920   : > { %v10055_v6 = vadd.f32 %v8736_v63, %v17944_v62  ;;  %v8738_v20 = vpop.f32.mrb[146].mxu0 }
 0x921   : > { %8869 = vst [vmem:[%s17950_s13 + $0x80] sm:$0xff] %v10054_v45  ;;  %v10056_v42 = vadd.f32 %v8738_v20, %v17941_v11  ;;  %v8740_v55 = vpop.f32.mrb[147].mxu0 }
 0x922   : > { %8870 = vst [vmem:[%s17950_s13 + $0x88] sm:$0xff] %v10055_v6  ;;  %v10057_v12 = vadd.f32 %v8740_v55, %v17944_v62 }
 0x923   : > { %8871 = vst [vmem:[%s17950_s13 + $0x90] sm:$0xff] %v10056_v42 }
 0x924   : > { %8872 = vst [vmem:[%s17950_s13 + $0x98] sm:$0xff] %v10057_v12 }
 0x926   : > { %v8744_v24 = vpop.f32.mrb[148].mxu0 }
 0x927   : > { %v10058_v56 = vadd.f32 %v8744_v24, %v17941_v11  ;;  %v8746_v52 = vpop.f32.mrb[149].mxu0 }
 0x928   : > { %v10059_v15 = vadd.f32 %v8746_v52, %v17944_v62  ;;  %v8748_v2 = vpop.f32.mrb[150].mxu0 }
 0x929   : > { %8873 = vst [vmem:[%s17950_s13 + $0xa0] sm:$0xff] %v10058_v56  ;;  %v10060_v46 = vadd.f32 %v8748_v2, %v17941_v11  ;;  %v8750_v8 = vpop.f32.mrb[151].mxu0 }
 0x92a   : > { %8874 = vst [vmem:[%s17950_s13 + $0xa8] sm:$0xff] %v10059_v15  ;;  %v10061_v17 = vadd.f32 %v8750_v8, %v17944_v62 }
 0x92b   : > { %8875 = vst [vmem:[%s17950_s13 + $0xb0] sm:$0xff] %v10060_v46 }
 0x92c   : > { %8876 = vst [vmem:[%s17950_s13 + $0xb8] sm:$0xff] %v10061_v17 }
 0x92e   : > { %v8754_v13 = vpop.f32.mrb[152].mxu0 }
 0x92f   : > { %v10062_v19 = vadd.f32 %v8754_v13, %v17941_v11  ;;  %v8756_v48 = vpop.f32.mrb[153].mxu0 }
 0x930   : > { %v10063_v4 = vadd.f32 %v8756_v48, %v17944_v62  ;;  %v8758_v59 = vpop.f32.mrb[154].mxu0 }
 0x931   : > { %8877 = vst [vmem:[%s17950_s13 + $0xc0] sm:$0xff] %v10062_v19  ;;  %v10064_v7 = vadd.f32 %v8758_v59, %v17941_v11  ;;  %v8760_v23 = vpop.f32.mrb[155].mxu0 }
 0x932   : > { %8878 = vst [vmem:[%s17950_s13 + $0xc8] sm:$0xff] %v10063_v4  ;;  %v10065_v44 = vadd.f32 %v8760_v23, %v17944_v62 }
 0x933   : > { %8879 = vst [vmem:[%s17950_s13 + $0xd0] sm:$0xff] %v10064_v7 }
 0x934   : > { %8880 = vst [vmem:[%s17950_s13 + $0xd8] sm:$0xff] %v10065_v44 }
 0x936   : > { %v8764_v25 = vpop.f32.mrb[156].mxu0 }
 0x937   : > { %v10066_v33 = vadd.f32 %v8764_v25, %v17941_v11  ;;  %v8766_v54 = vpop.f32.mrb[157].mxu0 }
 0x938   : > { %v10067_v29 = vadd.f32 %v8766_v54, %v17944_v62  ;;  %v8768_v38 = vpop.f32.mrb[158].mxu0 }
 0x939   : > { %8881 = vst [vmem:[%s17950_s13 + $0xe0] sm:$0xff] %v10066_v33  ;;  %v10068_v22 = vadd.f32 %v8768_v38, %v17941_v11  ;;  %v8770_v21 = vpop.f32.mrb[159].mxu0 }
 0x93a   : > { %8882 = vst [vmem:[%s17950_s13 + $0xe8] sm:$0xff] %v10067_v29  ;;  %v10069_v14 = vadd.f32 %v8770_v21, %v17944_v62 }
 0x93b   : > { %8883 = vst [vmem:[%s17950_s13 + $0xf0] sm:$0xff] %v10068_v22 }
 0x93c   : > { %8884 = vst [vmem:[%s17950_s13 + $0xf8] sm:$0xff] %v10069_v14 }
 0x93e   : > { %v8774_v18 = vpop.f32.mrb[160].mxu0 }
 0x93f   : > { %v10070_v5 = vadd.f32 %v8774_v18, %v17941_v11  ;;  %v8776_v50 = vpop.f32.mrb[161].mxu0 }
 0x940   : > { %v10071_v30 = vadd.f32 %v8776_v50, %v17944_v62  ;;  %v8778_v26 = vpop.f32.mrb[162].mxu0 }
 0x941   : > { %8885 = vst [vmem:[%s17950_s13 + $0x100] sm:$0xff] %v10070_v5  ;;  %v10072_v60 = vadd.f32 %v8778_v26, %v17941_v11  ;;  %v8780_v61 = vpop.f32.mrb[163].mxu0 }
 0x942   : > { %8886 = vst [vmem:[%s17950_s13 + $0x108] sm:$0xff] %v10071_v30  ;;  %v10073_v51 = vadd.f32 %v8780_v61, %v17944_v62 }
 0x943   : > { %8887 = vst [vmem:[%s17950_s13 + $0x110] sm:$0xff] %v10072_v60 }
 0x944   : > { %8888 = vst [vmem:[%s17950_s13 + $0x118] sm:$0xff] %v10073_v51 }
 0x946   : > { %v8784_v10 = vpop.f32.mrb[164].mxu0 }
 0x947   : > { %v10074_v28 = vadd.f32 %v8784_v10, %v17941_v11  ;;  %v8786_v39 = vpop.f32.mrb[165].mxu0 }
 0x948   : > { %v10075_v43 = vadd.f32 %v8786_v39, %v17944_v62  ;;  %v8788_v57 = vpop.f32.mrb[166].mxu0 }
 0x949   : > { %8889 = vst [vmem:[%s17950_s13 + $0x120] sm:$0xff] %v10074_v28  ;;  %v10076_v32 = vadd.f32 %v8788_v57, %v17941_v11  ;;  %v8790_v0 = vpop.f32.mrb[167].mxu0 }
 0x94a   : > { %8890 = vst [vmem:[%s17950_s13 + $0x128] sm:$0xff] %v10075_v43  ;;  %v10077_v37 = vadd.f32 %v8790_v0, %v17944_v62 }
 0x94b   : > { %8891 = vst [vmem:[%s17950_s13 + $0x130] sm:$0xff] %v10076_v32 }
 0x94c   : > { %8892 = vst [vmem:[%s17950_s13 + $0x138] sm:$0xff] %v10077_v37 }
 0x94e   : > { %v8794_v31 = vpop.f32.mrb[168].mxu0 }
 0x94f   : > { %v10078_v49 = vadd.f32 %v8794_v31, %v17941_v11  ;;  %v8796_v1 = vpop.f32.mrb[169].mxu0 }
 0x950   : > { %v10079_v35 = vadd.f32 %v8796_v1, %v17944_v62  ;;  %v8798_v34 = vpop.f32.mrb[170].mxu0 }
 0x951   : > { %8893 = vst [vmem:[%s17950_s13 + $0x140] sm:$0xff] %v10078_v49  ;;  %v10080_v53 = vadd.f32 %v8798_v34, %v17941_v11  ;;  %v8800_v3 = vpop.f32.mrb[171].mxu0 }
 0x952   : > { %8894 = vst [vmem:[%s17950_s13 + $0x148] sm:$0xff] %v10079_v35  ;;  %v10081_v47 = vadd.f32 %v8800_v3, %v17944_v62 }
 0x953   : > { %8895 = vst [vmem:[%s17950_s13 + $0x150] sm:$0xff] %v10080_v53 }
 0x954   : > { %8896 = vst [vmem:[%s17950_s13 + $0x158] sm:$0xff] %v10081_v47 }
 0x956   : > { %v8804_v36 = vpop.f32.mrb[172].mxu0 }
 0x957   : > { %v10082_v27 = vadd.f32 %v8804_v36, %v17941_v11  ;;  %v8806_v40 = vpop.f32.mrb[173].mxu0 }
 0x958   : > { %v10083_v41 = vadd.f32 %v8806_v40, %v17944_v62  ;;  %v8808_v9 = vpop.f32.mrb[174].mxu0 }
 0x959   : > { %8897 = vst [vmem:[%s17950_s13 + $0x160] sm:$0xff] %v10082_v27  ;;  %v10084_v16 = vadd.f32 %v8808_v9, %v17941_v11  ;;  %v8810_v58 = vpop.f32.mrb[175].mxu0 }
 0x95a   : > { %8898 = vst [vmem:[%s17950_s13 + $0x168] sm:$0xff] %v10083_v41  ;;  %v10085_v45 = vadd.f32 %v8810_v58, %v17944_v62 }
 0x95b   : > { %8899 = vst [vmem:[%s17950_s13 + $0x170] sm:$0xff] %v10084_v16 }
 0x95c   : > { %8900 = vst [vmem:[%s17950_s13 + $0x178] sm:$0xff] %v10085_v45 }
 0x95e   : > { %v8814_v63 = vpop.f32.mrb[176].mxu0 }
 0x95f   : > { %v10086_v6 = vadd.f32 %v8814_v63, %v17941_v11  ;;  %v8816_v20 = vpop.f32.mrb[177].mxu0 }
 0x960   : > { %v10087_v42 = vadd.f32 %v8816_v20, %v17944_v62  ;;  %v8818_v55 = vpop.f32.mrb[178].mxu0 }
 0x961   : > { %8901 = vst [vmem:[%s17950_s13 + $0x180] sm:$0xff] %v10086_v6  ;;  %v10088_v12 = vadd.f32 %v8818_v55, %v17941_v11  ;;  %v8820_v24 = vpop.f32.mrb[179].mxu0 }
 0x962   : > { %8902 = vst [vmem:[%s17950_s13 + $0x188] sm:$0xff] %v10087_v42  ;;  %v10089_v56 = vadd.f32 %v8820_v24, %v17944_v62 }
 0x963   : > { %8903 = vst [vmem:[%s17950_s13 + $0x190] sm:$0xff] %v10088_v12 }
 0x964   : > { %8904 = vst [vmem:[%s17950_s13 + $0x198] sm:$0xff] %v10089_v56 }
 0x966   : > { %v8824_v52 = vpop.f32.mrb[180].mxu0 }
 0x967   : > { %v10090_v15 = vadd.f32 %v8824_v52, %v17941_v11  ;;  %v8826_v2 = vpop.f32.mrb[181].mxu0 }
 0x968   : > { %v10091_v46 = vadd.f32 %v8826_v2, %v17944_v62  ;;  %v8828_v8 = vpop.f32.mrb[182].mxu0 }
 0x969   : > { %8905 = vst [vmem:[%s17950_s13 + $0x1a0] sm:$0xff] %v10090_v15  ;;  %v10092_v17 = vadd.f32 %v8828_v8, %v17941_v11  ;;  %v8830_v13 = vpop.f32.mrb[183].mxu0 }
 0x96a   : > { %8906 = vst [vmem:[%s17950_s13 + $0x1a8] sm:$0xff] %v10091_v46  ;;  %v10093_v19 = vadd.f32 %v8830_v13, %v17944_v62 }
 0x96b   : > { %8907 = vst [vmem:[%s17950_s13 + $0x1b0] sm:$0xff] %v10092_v17 }
 0x96c   : > { %8908 = vst [vmem:[%s17950_s13 + $0x1b8] sm:$0xff] %v10093_v19 }
 0x96e   : > { %v8834_v48 = vpop.f32.mrb[184].mxu0 }
 0x96f   : > { %v10094_v4 = vadd.f32 %v8834_v48, %v17941_v11  ;;  %v8836_v59 = vpop.f32.mrb[185].mxu0 }
 0x970   : > { %v10095_v7 = vadd.f32 %v8836_v59, %v17944_v62  ;;  %v8838_v23 = vpop.f32.mrb[186].mxu0 }
 0x971   : > { %8909 = vst [vmem:[%s17950_s13 + $0x1c0] sm:$0xff] %v10094_v4  ;;  %v10096_v44 = vadd.f32 %v8838_v23, %v17941_v11  ;;  %v8840_v25 = vpop.f32.mrb[187].mxu0 }
 0x972   : > { %8910 = vst [vmem:[%s17950_s13 + $0x1c8] sm:$0xff] %v10095_v7  ;;  %v10097_v33 = vadd.f32 %v8840_v25, %v17944_v62 }
 0x973   : > { %8911 = vst [vmem:[%s17950_s13 + $0x1d0] sm:$0xff] %v10096_v44 }
 0x974   : > { %8912 = vst [vmem:[%s17950_s13 + $0x1d8] sm:$0xff] %v10097_v33 }
 0x976   : > { %v8844_v54 = vpop.f32.mrb[188].mxu0 }
 0x977   : > { %v10098_v29 = vadd.f32 %v8844_v54, %v17941_v11  ;;  %v8846_v38 = vpop.f32.mrb[189].mxu0 }
 0x978   : > { %v10099_v22 = vadd.f32 %v8846_v38, %v17944_v62  ;;  %v8848_v21 = vpop.f32.mrb[190].mxu0 }
 0x979   : > { %8913 = vst [vmem:[%s17950_s13 + $0x1e0] sm:$0xff] %v10098_v29  ;;  %v10100_v14 = vadd.f32 %v8848_v21, %v17941_v11  ;;  %v8850_v18 = vpop.f32.mrb[191].mxu0 }
 0x97a   : > { %8914 = vst [vmem:[%s17950_s13 + $0x1e8] sm:$0xff] %v10099_v22  ;;  %v10101_v5 = vadd.f32 %v8850_v18, %v17944_v62 }
 0x97b   : > { %8915 = vst [vmem:[%s17950_s13 + $0x1f0] sm:$0xff] %v10100_v14 }
 0x97c   : > { %8916 = vst [vmem:[%s17950_s13 + $0x1f8] sm:$0xff] %v10101_v5 }
 0x97d   : > { %12661 = shalt.err (!%p12658_p0)
}
 0x97e   : > { %s12662_s22 = scalar_lea.hbm %s18079_s8, 8192  ;;  %s12666_s3 = scalar_lea.hbm %s18135_s7, 32768 }
 0x97f   : > { %p12663_p5 = scmp.ne.s32.totalorder %s18079_s8, %s12662_s22  ;;  %p12667_p2 = scmp.lt.u32.totalorder %s18079_s8, %s18135_s7 }
 0x980   : > { %p12668_p4 = scmp.lt.u32.totalorder %s12666_s3, %s12662_s22  ;;  %p12670_p8 = scmp.lt.u32.totalorder %s12662_s22, %s18079_s8 }
 0x981   : > { %p12664_p10 = pnand %p12663_p5, %p12921_p11 }
 0x982   : > { %p12669_p6 = por %p12668_p4, %p12667_p2 }
 0x983   : > { %p12665_p1 = pneg %p12664_p10 }
 0x984   : > { %p12671_p13 = por %p12670_p8, %p12669_p6 }
 0x986   : > { %p12672_p3 = pnand %p12671_p13, %p12665_p1 }
 0x988   : > { %12675 = shalt.err (!%p12672_p3)
}
 0x989   : > { %s12736_s23 = smov 256   ;;  %s12737_s19 = smov 16  }
 0x98a   : > { %10308 = dma.vmem_to_hbm [thread:$0]  (%p12921_p11), %s18081_s15, 8192, %s18079_s8, %s8918_s28, %s12736_s23, %s12736_s23, %s12737_s19  }
 0x98b PF: > { %s18833_s10 = sld [smem:[#allocation15_spill]]  ;;  %p10335_p7 = scmp.ge.s32.totalorder %s12722_s27, 2 }
 0x98c   : > { %s8947_s14 = sand.u32 1, %s12710_s24  }
 0x98d   : > { %s8948_s18 = scalar_lea.sflag [#allocation4], %s8947_s14 }
 0x991   : > { %p18834_p9 = scmp.ne.s32.totalorder %s18833_s10, 0 }
 0x993   : > { %p10325_p12 = pnand %p10335_p7, %p18834_p9 }
 0x995   : > { %12705 = dma.done.wait (!%p10325_p12), %s8948_s18, 8192  }
 0x996   : > { %12707 = vsyncadd (!%p10325_p12), %s8948_s18, 4294959104  ;;  %p22_p0 = scmp.ge.s32.totalorder %s12886_s21, 6   ;;  %s18835_s24 = smov %s12714_s25 }
 0x997   : > { %s18836_s25 = smov %s12718_s26  ;;  %s18837_s26 = smov %s12917_s16 }
 0x998   : > { %s18838_s27 = smov %s12886_s21  ;;  %24 = sbr.rel (!%p22_p0) target bundleno = 9 (0x9), region = 108 }
 0x99f   :  { %8953 = vsyncpa [#allocation3], 1 }
 0x9a0   :  { %8955 = vsyncpa [#allocation3 + $0x1], 1 }
 0x9a1   :  { %8956 = vsyncpa [#allocation6], 1 }
 0x9a2   :  { %8957 = vsyncpa [#allocation9], 1 }
 0x9a3   :  { %8958 = vsyncpa [#allocation4], 1 }
 0x9a4   :  { %8960 = vsyncpa [#allocation4 + $0x1], 1 }

</bundles_post_ra>
